<compile_context>
chip_gen: v5e
topology: v5e:2x2
jax: 0.10.0
libtpu: 0.0.40
codegen_flags: <defaults>
</compile_context>

<pallas_src>
import numpy as np
import jax
import jax.numpy as jnp
from jax.experimental import pallas as pl
from jax.experimental.pallas import tpu as pltpu

_EPS = 1e-12           # clamp for ||psi||^2 (PennyLane raises on a zero-norm input row)
_OUT_LANES = 128       # lane-dense padded output width (sliced back to n_wires in the wrapper)
_NORM_LANE = _OUT_LANES - 1   # lane that carries sum(|psi|^2) == ||x||^2 (unitarity trick)
_HAS_BUFFERED = hasattr(pl, "Buffered")


def _round_up(a, b):
    return (a + b - 1) // b * b


def _vmem_capacity_bytes():
    """Generation-aware VMEM capacity (128 MiB v5e/v6e, 64 MiB v7x); conservative fallback."""
    try:
        info = pltpu.get_tpu_info()
        cap = getattr(info, "vmem_capacity_bytes", None)
        if cap:
            return int(cap)
    except Exception:
        pass
    return 64 << 20


def _invariant_spec(shape, index_map):
    """BlockSpec for a grid-invariant operand: single-buffered when supported."""
    if _HAS_BUFFERED:
        try:
            return pl.BlockSpec(shape, index_map, pipeline_mode=pl.Buffered(1))
        except TypeError:
            pass
    return pl.BlockSpec(shape, index_map)


# ---------------------------------------------------------------------------
# Circuit construction (plain numpy glue; input independent, built once).
# Convention matches pennylane default.qubit: wire 0 is the most-significant bit.
# ---------------------------------------------------------------------------
def _apply_single_qubit(gate, mat, wire, n_wires):
    d = 2 ** n_wires
    left = 2 ** wire
    right = 2 ** (n_wires - 1 - wire)
    m = mat.reshape(left, 2, right, d)
    m = np.einsum("ab,xbyc->xayc", gate, m)
    return m.reshape(d, d)


def _apply_cnot(mat, control, target, n_wires):
    d = 2 ** n_wires
    idx = np.arange(d)
    cbit = (idx >> (n_wires - 1 - control)) & 1
    flipped = idx ^ (1 << (n_wires - 1 - target))
    perm = np.where(cbit == 1, flipped, idx)
    return mat[perm, :]


def basic_entangler_unitary(weights, n_wires):
    """Dense unitary of pennylane.BasicEntanglerLayers (RX rotations + CNOT ring)."""
    weights = np.asarray(weights, dtype=np.float64)
    d = 2 ** n_wires
    u = np.eye(d, dtype=np.complex128)
    for layer in range(weights.shape[0]):
        for w in range(n_wires):
            half = 0.5 * weights[layer, w]
            c, s = np.cos(half), np.sin(half)
            rx = np.array([[c, -1j * s], [-1j * s, c]], dtype=np.complex128)
            u = _apply_single_qubit(rx, u, w, n_wires)
        if n_wires == 2:
            u = _apply_cnot(u, 0, 1, n_wires)
        elif n_wires > 2:
            for w in range(n_wires):
                u = _apply_cnot(u, w, (w + 1) % n_wires, n_wires)
    return u


def pauliz_sign_matrix(n_wires):
    """S[i, w] = <basis_i| Z_w |basis_i> in {+1, -1}."""
    d = 2 ** n_wires
    idx = np.arange(d)[:, None]
    w = np.arange(n_wires)[None, :]
    return (1.0 - 2.0 * ((idx >> (n_wires - 1 - w)) & 1)).astype(np.float64)


# ---------------------------------------------------------------------------
# Pallas kernel
# ---------------------------------------------------------------------------
def _qcnn_kernel(x_ref, uc_ref, s_ref, out_ref, psi_acc):
    k = pl.program_id(1)

    @pl.when(k == 0)
    def _():
        psi_acc[...] = jnp.zeros_like(psi_acc)

    # Single fused MXU matmul per K step: PSI = [Re(psi) | Im(psi)], f32 accumulation.
    psi_acc[...] += jnp.dot(x_ref[...], uc_ref[...],
                            preferred_element_type=jnp.float32)

    @pl.when(k == pl.num_programs(1) - 1)
    def _():
        p = psi_acc[...]
        prob2 = p * p                                           # re^2 and im^2, side by side
        # PauliZ expectations (x15) AND the norm (ones column) as one lane-dense matmul.
        meas = jnp.dot(prob2, s_ref[...],
                       preferred_element_type=jnp.float32)      # (tm, 128)
        n2 = meas[:, _NORM_LANE:_NORM_LANE + 1]                 # ||psi||^2 == ||x||^2
        inv_n2 = pl.reciprocal(jnp.maximum(n2, _EPS), approx=False)
        out_ref[...] = (meas * inv_n2).astype(out_ref.dtype)


# ---------------------------------------------------------------------------
# Wrapper: builds UC / S once, tiles, and calls pallas_call.
# ---------------------------------------------------------------------------
def make_qcnn_forward(n_wires, weights, *, u_dtype=jnp.bfloat16):
    assert n_wires < _NORM_LANE
    d = 2 ** n_wires
    d_pad = max(_round_up(d, 128), 128)

    u = basic_entangler_unitary(weights, n_wires)               # (D, D) complex128

    # Fused, pre-transposed unitary planes: UC = [U_re^T | U_im^T], zero-padded.
    uc_np = np.zeros((d_pad, 2 * d_pad), dtype=np.float32)
    uc_np[:d, :d] = np.real(u).T
    uc_np[:d, d_pad:d_pad + d] = np.imag(u).T

    # S stacked twice (acts on [re^2 | im^2]); "15 *" folded in; ones column -> norm lane.
    s_np = np.zeros((2 * d_pad, _OUT_LANES), dtype=np.float32)
    sz = (15.0 * pauliz_sign_matrix(n_wires)).astype(np.float32)
    s_np[:d, :n_wires] = sz
    s_np[d_pad:d_pad + d, :n_wires] = sz
    s_np[:d, _NORM_LANE] = 1.0
    s_np[d_pad:d_pad + d, _NORM_LANE] = 1.0

    uc = jnp.asarray(uc_np, dtype=u_dtype)
    s15 = jnp.asarray(s_np)                                      # sign matmul stays f32

    u_bytes = jnp.dtype(u_dtype).itemsize
    compute_dtype = (jnp.bfloat16 if jnp.dtype(u_dtype) == jnp.dtype(jnp.bfloat16)
                     else jnp.float32)
    x_bytes = jnp.dtype(compute_dtype).itemsize
    vmem_cap = _vmem_capacity_bytes()

    @jax.jit
    def forward(x):
        b = x.shape[0]
        x2d = x.reshape(b, -1).astype(jnp.float32)               # == torch x.view(B, -1)
        feat = x2d.shape[1]
        if feat > d:
            raise ValueError(f"flattened input length {feat} exceeds 2**n_wires = {d}")
        if feat < d_pad:                                         # amplitude-embedding zero pad
            x2d = jnp.pad(x2d, ((0, 0), (0, d_pad - feat)))

        # Batch tile: keep >= 2 tiles for 128 < b <= 256 so the "parallel" batch axis
        # feeds both v7x TensorCores; 256 fills the 256x256 MXU for larger batches.
        if b <= 128:
            tm = _round_up(b, 8)
        elif b <= 256:
            tm = 128
        else:
            tm = 256

        # K tile / U residency: keep the fused UC operand VMEM-resident (single-buffered)
        # when it fits within a generation-aware fraction of VMEM, else stream K slabs.
        uc_bytes = d_pad * 2 * d_pad * u_bytes
        resident_frac = 0.45 if vmem_cap >= (96 << 20) else 0.28
        if uc_bytes <= resident_frac * vmem_cap:
            tk = d_pad
        else:
            tk = 512 if d_pad % 512 == 0 else 128
            if b >= 1024:
                # Larger batch tile halves the number of full U re-stream passes.
                need512 = (2 * 512 * tk * x_bytes + 2 * tk * 2 * d_pad * u_bytes
                           + 512 * 2 * d_pad * 4 + 2 * 512 * _OUT_LANES * 4
                           + 2 * 2 * d_pad * _OUT_LANES * 4)
                if need512 <= 0.7 * vmem_cap:
                    tm = 512

        b_pad = _round_up(b, tm)
        if b_pad > b:
            x2d = jnp.pad(x2d, ((0, b_pad - b), (0, 0)))
        x2d = x2d.astype(compute_dtype)          # bf16 cast hoisted out of the kernel

        grid = (b_pad // tm, d_pad // tk)

        # VMEM budget from actual per-buffer need (invariant operands single-buffered),
        # clamped below the physical capacity (64 MiB v7x / 128 MiB v5e-v6e).
        u_nbuf = 1 if (tk == d_pad and _HAS_BUFFERED) else 2
        s_nbuf = 1 if _HAS_BUFFERED else 2
        vmem_need = (2 * tm * tk * x_bytes                       # X tiles (double-buffered)
                     + u_nbuf * tk * 2 * d_pad * u_bytes         # UC slab(s)
                     + s_nbuf * 2 * d_pad * _OUT_LANES * 4       # S
                     + 2 * tm * _OUT_LANES * 4                   # output tiles
                     + tm * 2 * d_pad * 4)                       # psi accumulator (f32)
        ceiling = min(vmem_cap - (8 << 20), int(0.82 * vmem_cap))
        vmem_limit = int(min(max(int(1.25 * vmem_need) + (2 << 20), 16 << 20), ceiling))

        u_passes = 1 if tk == d_pad else (b_pad // tm)
        cost = pl.CostEstimate(
            flops=int(2 * b_pad * d_pad * 2 * d_pad
                      + 2 * b_pad * 2 * d_pad * _OUT_LANES
                      + 2 * b_pad * 2 * d_pad),
            transcendentals=0,
            bytes_accessed=int(b_pad * d_pad * x_bytes
                               + u_passes * d_pad * 2 * d_pad * u_bytes
                               + 2 * d_pad * _OUT_LANES * 4
                               + b_pad * _OUT_LANES * 4),
        )

        if tk == d_pad:
            u_spec = _invariant_spec((tk, 2 * d_pad), lambda i, k: (k, 0))
        else:
            u_spec = pl.BlockSpec((tk, 2 * d_pad), lambda i, k: (k, 0))
        s_spec = _invariant_spec((2 * d_pad, _OUT_LANES), lambda i, k: (0, 0))

        out = pl.pallas_call(
            _qcnn_kernel,
            out_shape=jax.ShapeDtypeStruct((b_pad, _OUT_LANES), jnp.float32),
            grid_spec=pltpu.PrefetchScalarGridSpec(
                num_scalar_prefetch=0,
                grid=grid,
                in_specs=[
                    pl.BlockSpec((tm, tk), lambda i, k: (i, k)),   # X
                    u_spec,                                        # [U_re^T | U_im^T]
                    s_spec,                                        # stacked S (+ norm lane)
                ],
                out_specs=pl.BlockSpec((tm, _OUT_LANES), lambda i, k: (i, 0)),
                scratch_shapes=[
                    pltpu.VMEM((tm, 2 * d_pad), jnp.float32),      # PSI accumulator
                ],
            ),
            compiler_params=pltpu.CompilerParams(
                dimension_semantics=("parallel", "arbitrary"),
                vmem_limit_bytes=vmem_limit,
            ),
            cost_estimate=cost,
        )(x2d, uc, s15)

        return out[:b, :n_wires]

    return forward


# ---------------------------------------------------------------------------
# Pure numpy reference (float64) of the module's forward pass.
# ---------------------------------------------------------------------------
def reference_forward(x, n_wires, weights):
    u = basic_entangler_unitary(weights, n_wires)
    s = pauliz_sign_matrix(n_wires)
    d = 2 ** n_wires
    b = x.shape[0]
    xf = np.asarray(x, dtype=np.float64).reshape(b, -1)
    if xf.shape[1] < d:
        xf = np.pad(xf, ((0, 0), (0, d - xf.shape[1])))
    norm = np.maximum(np.linalg.norm(xf, axis=1, keepdims=True), np.sqrt(_EPS))
    psi0 = xf / norm
    psi = psi0 @ u.T
    probs = np.abs(psi) ** 2
    return 15.0 * (probs @ s)


if __name__ == "__main__":
    n_wires = 10                       # D = 2^10 = 1024 amplitudes = 4 * 16 * 16 features
    n_layers = 3
    batch, channels, height, width = 2, 4, 16, 16

    key = jax.random.PRNGKey(0)
    kx, kw = jax.random.split(key)
    x = jax.random.normal(kx, (batch, channels, height, width), dtype=jnp.float32)
    weights = jax.random.uniform(kw, (n_layers, n_wires), dtype=jnp.float32,
                                 minval=0.0, maxval=2.0 * np.pi)
    weights_np = np.asarray(weights)

    ref = reference_forward(np.asarray(x), n_wires, weights_np)

    # f32 unitary planes (highest-precision path).
    fwd_f32 = make_qcnn_forward(n_wires, weights_np, u_dtype=jnp.float32)
    out_f32 = jax.block_until_ready(fwd_f32(x))
    np.testing.assert_allclose(np.asarray(out_f32), ref, rtol=2e-2, atol=1e-1)

    # bf16 unitary planes + bf16 inputs with f32 MXU accumulation (default, all generations).
    fwd_bf16 = make_qcnn_forward(n_wires, weights_np, u_dtype=jnp.bfloat16)
    out_bf16 = jax.block_until_ready(fwd_bf16(x))
    np.testing.assert_allclose(np.asarray(out_bf16), ref, rtol=1e-1, atol=5e-1)

    print("KERNEL_OK")
</pallas_src>

<mosaic_0001>
module attributes {stable_mosaic.version = 11 : i64} {
  func.func @_qcnn_kernel(%arg0: i32, %arg1: i32, %arg2: memref<8x1024xf32, #tpu.memory_space<vmem>>, %arg3: memref<1024x2048xf32, #tpu.memory_space<vmem>>, %arg4: memref<2048x128xf32, #tpu.memory_space<vmem>>, %arg5: memref<8x128xf32, #tpu.memory_space<vmem>>, %arg6: memref<8x2048xf32, #tpu.memory_space<vmem>>) attributes {dimension_semantics = [#tpu.dimension_semantics<parallel>, #tpu.dimension_semantics<arbitrary>], iteration_bounds = array<i64: 1, 1>, scalar_prefetch = 0 : i64, scratch_operands = 1 : i64, tpu.core_type = #tpu.core_type<tc>, window_params = [{transform_indices = @transform_0, window_bounds = array<i64: 8, 1024>}, {pipeline_mode = #tpu.pipeline_mode<synchronous>, transform_indices = @transform_1, window_bounds = array<i64: 1024, 2048>}, {pipeline_mode = #tpu.pipeline_mode<synchronous>, transform_indices = @transform_2, window_bounds = array<i64: 2048, 128>}, {transform_indices = @transform_3, window_bounds = array<i64: 8, 128>}]} {
    %c0_i32 = arith.constant 0 : i32
    %0 = arith.cmpi eq, %arg1, %c0_i32 : i32
    %1 = arith.extui %0 : i1 to i32
    %c0_i32_0 = arith.constant 0 : i32
    %2 = arith.cmpi ne, %1, %c0_i32_0 : i32
    scf.if %2 {
      %cst_10 = arith.constant 0.000000e+00 : f32
      %12 = vector.broadcast %cst_10 : f32 to vector<8x2048xf32>
      %c0_11 = arith.constant 0 : index
      %c0_12 = arith.constant 0 : index
      %13 = vector.load %arg6[%c0_11, %c0_12] : memref<8x2048xf32, #tpu.memory_space<vmem>>, vector<8x2048xf32>
      tpu.vector_store %arg6[%c0_11, %c0_12], %12 {strides = array<i32>} : memref<8x2048xf32, #tpu.memory_space<vmem>>, vector<8x2048xf32>,
    } else {
    }
    %c0 = arith.constant 0 : index
    %c0_1 = arith.constant 0 : index
    %3 = vector.load %arg6[%c0, %c0_1] : memref<8x2048xf32, #tpu.memory_space<vmem>>, vector<8x2048xf32>
    %c0_2 = arith.constant 0 : index
    %c0_3 = arith.constant 0 : index
    %4 = vector.load %arg2[%c0_2, %c0_3] : memref<8x1024xf32, #tpu.memory_space<vmem>>, vector<8x1024xf32>
    %c0_4 = arith.constant 0 : index
    %c0_5 = arith.constant 0 : index
    %5 = vector.load %arg3[%c0_4, %c0_5] : memref<1024x2048xf32, #tpu.memory_space<vmem>>, vector<1024x2048xf32>
    %cst = arith.constant dense<0.000000e+00> : vector<8x2048xf32>
    %6 = tpu.matmul %4, %5, %cst {dimension_numbers = #tpu.dot_dimension_numbers<[1], [0], [0], [1], [0, 0, 1, 1], [], []>} : vector<8x1024xf32>, vector<1024x2048xf32>, vector<8x2048xf32> -> vector<8x2048xf32>
    %7 = arith.addf %3, %6 : vector<8x2048xf32>
    %c0_6 = arith.constant 0 : index
    %c0_7 = arith.constant 0 : index
    %8 = vector.load %arg6[%c0_6, %c0_7] : memref<8x2048xf32, #tpu.memory_space<vmem>>, vector<8x2048xf32>
    tpu.vector_store %arg6[%c0_6, %c0_7], %7 {strides = array<i32>} : memref<8x2048xf32, #tpu.memory_space<vmem>>, vector<8x2048xf32>,
    %c0_i32_8 = arith.constant 0 : i32
    %9 = arith.cmpi eq, %arg1, %c0_i32_8 : i32
    %10 = arith.extui %9 : i1 to i32
    %c0_i32_9 = arith.constant 0 : i32
    %11 = arith.cmpi ne, %10, %c0_i32_9 : i32
    scf.if %11 {
      %c0_10 = arith.constant 0 : index
      %c0_11 = arith.constant 0 : index
      %12 = vector.load %arg6[%c0_10, %c0_11] : memref<8x2048xf32, #tpu.memory_space<vmem>>, vector<8x2048xf32>
      %13 = arith.mulf %12, %12 : vector<8x2048xf32>
      %c0_12 = arith.constant 0 : index
      %c0_13 = arith.constant 0 : index
      %14 = vector.load %arg4[%c0_12, %c0_13] : memref<2048x128xf32, #tpu.memory_space<vmem>>, vector<2048x128xf32>
      %cst_14 = arith.constant dense<0.000000e+00> : vector<8x128xf32>
      %15 = tpu.matmul %13, %14, %cst_14 {dimension_numbers = #tpu.dot_dimension_numbers<[1], [0], [0], [1], [0, 0, 1, 1], [], []>} : vector<8x2048xf32>, vector<2048x128xf32>, vector<8x128xf32> -> vector<8x128xf32>
      %16 = vector.extract_strided_slice %15 {offsets = [0, 127], sizes = [8, 1], strides = [1, 1]} : vector<8x128xf32> to vector<8x1xf32>
      %cst_15 = arith.constant 9.99999996E-13 : f32
      %17 = vector.broadcast %cst_15 : f32 to vector<8x1xf32>
      %18 = arith.maximumf %16, %17 : vector<8x1xf32>
      %19 = tpu.reciprocal %18 : vector<8x1xf32> -> vector<8x1xf32>
      %20 = vector.broadcast %19 : vector<8x1xf32> to vector<8x128xf32>
      %21 = arith.mulf %15, %20 : vector<8x128xf32>
      %c0_16 = arith.constant 0 : index
      %c0_17 = arith.constant 0 : index
      %22 = vector.load %arg5[%c0_16, %c0_17] : memref<8x128xf32, #tpu.memory_space<vmem>>, vector<8x128xf32>
      tpu.vector_store %arg5[%c0_16, %c0_17], %21 {strides = array<i32>} : memref<8x128xf32, #tpu.memory_space<vmem>>, vector<8x128xf32>,
    } else {
    }
    return
  }
  func.func @transform_0(%arg0: i32, %arg1: i32) -> (i32, i32) {
    %c0_i32 = arith.constant 0 : i32
    return %arg0, %arg1 : i32, i32
  }
  func.func @transform_1(%arg0: i32, %arg1: i32) -> (i32, i32) {
    %c0_i32 = arith.constant 0 : i32
    %c0_i32_0 = arith.constant 0 : i32
    return %arg1, %c0_i32 : i32, i32
  }
  func.func @transform_2(%arg0: i32, %arg1: i32) -> (i32, i32) {
    %c0_i32 = arith.constant 0 : i32
    %c0_i32_0 = arith.constant 0 : i32
    %c0_i32_1 = arith.constant 0 : i32
    return %c0_i32, %c0_i32_0 : i32, i32
  }
  func.func @transform_3(%arg0: i32, %arg1: i32) -> (i32, i32) {
    %c0_i32 = arith.constant 0 : i32
    %c0_i32_0 = arith.constant 0 : i32
    return %arg0, %c0_i32 : i32, i32
  }
}

</mosaic_0001>

<bundles_post_ra>
// kernel: forward.1
= control target key start
LH: loop header
LB: loop body
LE: loop exit
PB: predicated region body
PF: predicated region fallthrough
CT: control target
= control target key end

     0   :  { %8 = vsyncpa [#allocation4], 0  ;;  %s6274_s0 = inlined_call_operand.vmem [shape: f32[8,1024], index: 0, kind: input, shape index: {}]   ;;  %s6275_s1 = inlined_call_operand.hbm [shape: f32[1024,2048], index: 1, kind: input, shape index: {}]   ;;  %s6276_s2 = inlined_call_operand.hbm [shape: f32[2048,128], index: 2, kind: input, shape index: {}]   ;;  %s6277_s3 = inlined_call_operand.vmem [shape: f32[8,128], index: 3, kind: output, shape index: {}]  }
   0x1   :  { %s16_s14 = sshll.u32 %s6275_s1, 4  ;;  %s17_s14 = int_to_ptr.hbm [resolvable:$true] %s16_s14 }
   0x2   :  { %9 = vsyncpa [#allocation6], 0  ;;  %s5486_s15 = smov [#allocation3]   ;;  %s29_s19 = sshll.u32 %s6276_s2, 4  ;;  %s30_s19 = int_to_ptr.hbm [resolvable:$true] %s29_s19 }
   0x3   :  { %s18_s16 = sshll.u32 %s5486_s15, 4  ;;  %s5487_s20 = smov 2048   ;;  %s19_s16 = int_to_ptr.vmem [resolvable:$true] %s18_s16 }
   0x4   :  { %s5488_s21 = smov 128   ;;  %s5489_s22 = smov [#allocation5]  }
   0x5   :  { %24 = dma.hbm_to_vmem [thread:$0]  %s17_s14, 262144, %s19_s16, [#allocation4], %s5487_s20, %s5487_s20, %s5488_s21  }
   0x6   :  { %s31_s23 = sshll.u32 %s5489_s22, 4  ;;  %s5490_s24 = smov 8   ;;  %s32_s23 = int_to_ptr.vmem [resolvable:$true] %s31_s23 }
   0x7   :  { %37 = dma.hbm_to_vmem [thread:$0]  %s30_s19, 32768, %s32_s23, [#allocation6], %s5488_s21, %s5488_s21, %s5490_s24  }
   0x8   :  { %5482 = dma.done.wait [#allocation4], 262144  }
   0x9   :  { %5483 = vsyncadd [#allocation4], 4294705152 }
   0xa   :  { %5484 = dma.done.wait [#allocation6], 32768  }
   0xb   :  { %5485 = vsyncadd [#allocation6], 4294934528  ;;  %v330_v0 = vld [vmem:[#allocation3 + $0x780] sm:$0xff] }
   0xc   :  { %v586_v1 = vld [vmem:[#allocation3 + $0xf80] sm:$0xff]  ;;  %2138 = vmatpush.msra.mxu0 %v330_v0 }
   0xd   :  { %v842_v2 = vld [vmem:[#allocation3 + $0x1780] sm:$0xff]  ;;  %2158 = vmatpush.msra.mxu1 %v586_v1 }
   0xe   :  { %v1098_v3 = vld [vmem:[#allocation3 + $0x1f80] sm:$0xff]  ;;  %2178 = vmatpush.msra.mxu2 %v842_v2 }
   0xf   :  { %v314_v4 = vld [vmem:[#allocation3 + $0x700] sm:$0xff]  ;;  %2198 = vmatpush.msra.mxu3 %v1098_v3 }
  0x10   :  { %v570_v5 = vld [vmem:[#allocation3 + $0xf00] sm:$0xff]  ;;  %2139 = vmatpush.msra.mxu0 %v314_v4 }
  0x11   :  { %v826_v6 = vld [vmem:[#allocation3 + $0x1700] sm:$0xff]  ;;  %2159 = vmatpush.msra.mxu1 %v570_v5 }
  0x12   :  { %v1082_v7 = vld [vmem:[#allocation3 + $0x1f00] sm:$0xff]  ;;  %2179 = vmatpush.msra.mxu2 %v826_v6 }
  0x13   :  { %v298_v8 = vld [vmem:[#allocation3 + $0x680] sm:$0xff]  ;;  %2199 = vmatpush.msra.mxu3 %v1082_v7 }
  0x14   :  { %v554_v9 = vld [vmem:[#allocation3 + $0xe80] sm:$0xff]  ;;  %2140 = vmatpush.msra.mxu0 %v298_v8 }
  0x15   :  { %v810_v10 = vld [vmem:[#allocation3 + $0x1680] sm:$0xff]  ;;  %2160 = vmatpush.msra.mxu1 %v554_v9 }
  0x16   :  { %v1066_v11 = vld [vmem:[#allocation3 + $0x1e80] sm:$0xff]  ;;  %2180 = vmatpush.msra.mxu2 %v810_v10 }
  0x17   :  { %v282_v12 = vld [vmem:[#allocation3 + $0x600] sm:$0xff]  ;;  %2200 = vmatpush.msra.mxu3 %v1066_v11 }
  0x18   :  { %v538_v13 = vld [vmem:[#allocation3 + $0xe00] sm:$0xff]  ;;  %2141 = vmatpush.msra.mxu0 %v282_v12 }
  0x19   :  { %v794_v14 = vld [vmem:[#allocation3 + $0x1600] sm:$0xff]  ;;  %2161 = vmatpush.msra.mxu1 %v538_v13 }
  0x1a   :  { %v1050_v15 = vld [vmem:[#allocation3 + $0x1e00] sm:$0xff]  ;;  %2181 = vmatpush.msra.mxu2 %v794_v14 }
  0x1b   :  { %v266_v16 = vld [vmem:[#allocation3 + $0x580] sm:$0xff]  ;;  %2201 = vmatpush.msra.mxu3 %v1050_v15 }
  0x1c   :  { %v522_v17 = vld [vmem:[#allocation3 + $0xd80] sm:$0xff]  ;;  %2142 = vmatpush.msra.mxu0 %v266_v16 }
  0x1d   :  { %v778_v18 = vld [vmem:[#allocation3 + $0x1580] sm:$0xff]  ;;  %2162 = vmatpush.msra.mxu1 %v522_v17 }
  0x1e   :  { %v1034_v19 = vld [vmem:[#allocation3 + $0x1d80] sm:$0xff]  ;;  %2182 = vmatpush.msra.mxu2 %v778_v18 }
  0x1f   :  { %v250_v20 = vld [vmem:[#allocation3 + $0x500] sm:$0xff]  ;;  %2202 = vmatpush.msra.mxu3 %v1034_v19 }
  0x20   :  { %v506_v21 = vld [vmem:[#allocation3 + $0xd00] sm:$0xff]  ;;  %2143 = vmatpush.msra.mxu0 %v250_v20 }
  0x21   :  { %v762_v22 = vld [vmem:[#allocation3 + $0x1500] sm:$0xff]  ;;  %2163 = vmatpush.msra.mxu1 %v506_v21 }
  0x22   :  { %v1018_v23 = vld [vmem:[#allocation3 + $0x1d00] sm:$0xff]  ;;  %2183 = vmatpush.msra.mxu2 %v762_v22 }
  0x23   :  { %v234_v24 = vld [vmem:[#allocation3 + $0x480] sm:$0xff]  ;;  %2203 = vmatpush.msra.mxu3 %v1018_v23 }
  0x24   :  { %v490_v25 = vld [vmem:[#allocation3 + $0xc80] sm:$0xff]  ;;  %2144 = vmatpush.msra.mxu0 %v234_v24 }
  0x25   :  { %v746_v26 = vld [vmem:[#allocation3 + $0x1480] sm:$0xff]  ;;  %2164 = vmatpush.msra.mxu1 %v490_v25 }
  0x26   :  { %v1002_v27 = vld [vmem:[#allocation3 + $0x1c80] sm:$0xff]  ;;  %2184 = vmatpush.msra.mxu2 %v746_v26 }
  0x27   :  { %v218_v28 = vld [vmem:[#allocation3 + $0x400] sm:$0xff]  ;;  %2204 = vmatpush.msra.mxu3 %v1002_v27 }
  0x28   :  { %v474_v29 = vld [vmem:[#allocation3 + $0xc00] sm:$0xff]  ;;  %2145 = vmatpush.msra.mxu0 %v218_v28 }
  0x29   :  { %v730_v30 = vld [vmem:[#allocation3 + $0x1400] sm:$0xff]  ;;  %2165 = vmatpush.msra.mxu1 %v474_v29 }
  0x2a   :  { %v986_v31 = vld [vmem:[#allocation3 + $0x1c00] sm:$0xff]  ;;  %2185 = vmatpush.msra.mxu2 %v730_v30 }
  0x2b   :  { %v202_v32 = vld [vmem:[#allocation3 + $0x380] sm:$0xff]  ;;  %2205 = vmatpush.msra.mxu3 %v986_v31 }
  0x2c   :  { %v458_v33 = vld [vmem:[#allocation3 + $0xb80] sm:$0xff]  ;;  %2146 = vmatpush.msra.mxu0 %v202_v32 }
  0x2d   :  { %v714_v34 = vld [vmem:[#allocation3 + $0x1380] sm:$0xff]  ;;  %2166 = vmatpush.msra.mxu1 %v458_v33 }
  0x2e   :  { %v970_v35 = vld [vmem:[#allocation3 + $0x1b80] sm:$0xff]  ;;  %2186 = vmatpush.msra.mxu2 %v714_v34 }
  0x2f   :  { %v186_v36 = vld [vmem:[#allocation3 + $0x300] sm:$0xff]  ;;  %2206 = vmatpush.msra.mxu3 %v970_v35 }
  0x30   :  { %v442_v37 = vld [vmem:[#allocation3 + $0xb00] sm:$0xff]  ;;  %2147 = vmatpush.msra.mxu0 %v186_v36 }
  0x31   :  { %v698_v38 = vld [vmem:[#allocation3 + $0x1300] sm:$0xff]  ;;  %2167 = vmatpush.msra.mxu1 %v442_v37 }
  0x32   :  { %v954_v39 = vld [vmem:[#allocation3 + $0x1b00] sm:$0xff]  ;;  %2187 = vmatpush.msra.mxu2 %v698_v38 }
  0x33   :  { %v170_v40 = vld [vmem:[#allocation3 + $0x280] sm:$0xff]  ;;  %2207 = vmatpush.msra.mxu3 %v954_v39 }
  0x34   :  { %v426_v41 = vld [vmem:[#allocation3 + $0xa80] sm:$0xff]  ;;  %2148 = vmatpush.msra.mxu0 %v170_v40 }
  0x35   :  { %v682_v42 = vld [vmem:[#allocation3 + $0x1280] sm:$0xff]  ;;  %2168 = vmatpush.msra.mxu1 %v426_v41 }
  0x36   :  { %v938_v43 = vld [vmem:[#allocation3 + $0x1a80] sm:$0xff]  ;;  %2188 = vmatpush.msra.mxu2 %v682_v42 }
  0x37   :  { %v154_v44 = vld [vmem:[#allocation3 + $0x200] sm:$0xff]  ;;  %2208 = vmatpush.msra.mxu3 %v938_v43 }
  0x38   :  { %v410_v45 = vld [vmem:[#allocation3 + $0xa00] sm:$0xff]  ;;  %2149 = vmatpush.msra.mxu0 %v154_v44 }
  0x39   :  { %v666_v46 = vld [vmem:[#allocation3 + $0x1200] sm:$0xff]  ;;  %2169 = vmatpush.msra.mxu1 %v410_v45 }
  0x3a   :  { %v922_v47 = vld [vmem:[#allocation3 + $0x1a00] sm:$0xff]  ;;  %2189 = vmatpush.msra.mxu2 %v666_v46 }
  0x3b   :  { %v138_v48 = vld [vmem:[#allocation3 + $0x180] sm:$0xff]  ;;  %2209 = vmatpush.msra.mxu3 %v922_v47 }
  0x3c   :  { %v394_v49 = vld [vmem:[#allocation3 + $0x980] sm:$0xff]  ;;  %2150 = vmatpush.msra.mxu0 %v138_v48 }
  0x3d   :  { %v650_v50 = vld [vmem:[#allocation3 + $0x1180] sm:$0xff]  ;;  %2170 = vmatpush.msra.mxu1 %v394_v49 }
  0x3e   :  { %v906_v51 = vld [vmem:[#allocation3 + $0x1980] sm:$0xff]  ;;  %2190 = vmatpush.msra.mxu2 %v650_v50 }
  0x3f   :  { %v122_v52 = vld [vmem:[#allocation3 + $0x100] sm:$0xff]  ;;  %2210 = vmatpush.msra.mxu3 %v906_v51 }
  0x40   :  { %v378_v53 = vld [vmem:[#allocation3 + $0x900] sm:$0xff]  ;;  %2151 = vmatpush.msra.mxu0 %v122_v52 }
  0x41   :  { %v634_v54 = vld [vmem:[#allocation3 + $0x1100] sm:$0xff]  ;;  %2171 = vmatpush.msra.mxu1 %v378_v53 }
  0x42   :  { %v890_v55 = vld [vmem:[#allocation3 + $0x1900] sm:$0xff]  ;;  %2191 = vmatpush.msra.mxu2 %v634_v54 }
  0x43   :  { %v106_v56 = vld [vmem:[#allocation3 + $0x80] sm:$0xff]  ;;  %2211 = vmatpush.msra.mxu3 %v890_v55 }
  0x44   :  { %v362_v57 = vld [vmem:[#allocation3 + $0x880] sm:$0xff]  ;;  %2152 = vmatpush.msra.mxu0 %v106_v56 }
  0x45   :  { %v618_v58 = vld [vmem:[#allocation3 + $0x1080] sm:$0xff]  ;;  %2172 = vmatpush.msra.mxu1 %v362_v57 }
  0x46   :  { %v874_v59 = vld [vmem:[#allocation3 + $0x1880] sm:$0xff]  ;;  %2192 = vmatpush.msra.mxu2 %v618_v58 }
  0x47   :  { %v90_v60 = vld [vmem:[#allocation3] sm:$0xff]  ;;  %2212 = vmatpush.msra.mxu3 %v874_v59 }
  0x48   :  { %v346_v61 = vld [vmem:[#allocation3 + $0x800] sm:$0xff]  ;;  %2153 = vmatpush.msra.mxu0 %v90_v60  ;;  %v5521_v60 = vld [vmem:[%s6274_s0 + $0x10] sm:$0xff] }
  0x49   :  { %v602_v62 = vld [vmem:[#allocation3 + $0x1000] sm:$0xff]  ;;  %2173 = vmatpush.msra.mxu1 %v346_v61 }
  0x4a   :  { %v858_v63 = vld [vmem:[#allocation3 + $0x1800] sm:$0xff]  ;;  %2193 = vmatpush.msra.mxu2 %v602_v62 }
  0x4b   :  { %v1354_v0 = vld [vmem:[#allocation3 + $0x2780] sm:$0xff]  ;;  %2213 = vmatpush.msra.mxu3 %v858_v63  ;;  %2194 = vmatmul.f32.vlgmr.msra.gmra.mxu2 %v5521_v60 }
  0x4c   :  { %v1610_v1 = vld [vmem:[#allocation3 + $0x2f80] sm:$0xff]  ;;  %2218 = vmatpush.msrb.mxu0 %v1354_v0 }
  0x4d   :  { %v1866_v2 = vld [vmem:[#allocation3 + $0x3780] sm:$0xff]  ;;  %2238 = vmatpush.msrb.mxu1 %v1610_v1 }
  0x4e   :  { %v2122_v3 = vld [vmem:[#allocation3 + $0x3f80] sm:$0xff]  ;;  %2258 = vmatpush.msrb.mxu2 %v1866_v2  ;;  %v5532_v2 = vld [vmem:[%s6274_s0 + $0x8] sm:$0xff] }
  0x4f   :  { %v1338_v4 = vld [vmem:[#allocation3 + $0x2700] sm:$0xff]  ;;  %2278 = vmatpush.msrb.mxu3 %v2122_v3  ;;  %v5537_v3 = vld [vmem:[%s6274_s0 + $0x18] sm:$0xff]  ;;  %2174 = vmatmul.f32.vlgmr.msra.gmra.mxu1 %v5532_v2 }
  0x50   :  { %v1594_v5 = vld [vmem:[#allocation3 + $0x2f00] sm:$0xff]  ;;  %2219 = vmatpush.msrb.mxu0 %v1338_v4  ;;  %v331_v4 = vld [vmem:[#allocation3 + $0x788] sm:$0xff]  ;;  %2214 = vmatmul.f32.vlgmr.msra.gmra.mxu3 %v5537_v3 }
  0x51   :  { %v1850_v6 = vld [vmem:[#allocation3 + $0x3700] sm:$0xff]  ;;  %2239 = vmatpush.msrb.mxu1 %v1594_v5  ;;  %v587_v5 = vld [vmem:[#allocation3 + $0xf88] sm:$0xff] }
  0x52   :  { %v2106_v7 = vld [vmem:[#allocation3 + $0x3f00] sm:$0xff]  ;;  %2259 = vmatpush.msrb.mxu2 %v1850_v6  ;;  %v843_v6 = vld [vmem:[#allocation3 + $0x1788] sm:$0xff] }
  0x53   :  { %v1322_v8 = vld [vmem:[#allocation3 + $0x2680] sm:$0xff]  ;;  %2279 = vmatpush.msrb.mxu3 %v2106_v7  ;;  %v1099_v7 = vld [vmem:[#allocation3 + $0x1f88] sm:$0xff] }
  0x54   :  { %v1578_v9 = vld [vmem:[#allocation3 + $0x2e80] sm:$0xff]  ;;  %2220 = vmatpush.msrb.mxu0 %v1322_v8  ;;  %v315_v8 = vld [vmem:[#allocation3 + $0x708] sm:$0xff] }
  0x55   :  { %v1834_v10 = vld [vmem:[#allocation3 + $0x3680] sm:$0xff]  ;;  %2240 = vmatpush.msrb.mxu1 %v1578_v9  ;;  %v571_v9 = vld [vmem:[#allocation3 + $0xf08] sm:$0xff] }
  0x56   :  { %v2090_v11 = vld [vmem:[#allocation3 + $0x3e80] sm:$0xff]  ;;  %2260 = vmatpush.msrb.mxu2 %v1834_v10  ;;  %v827_v10 = vld [vmem:[#allocation3 + $0x1708] sm:$0xff] }
  0x57   :  { %v1306_v12 = vld [vmem:[#allocation3 + $0x2600] sm:$0xff]  ;;  %2280 = vmatpush.msrb.mxu3 %v2090_v11  ;;  %v1083_v11 = vld [vmem:[#allocation3 + $0x1f08] sm:$0xff] }
  0x58   :  { %v1562_v13 = vld [vmem:[#allocation3 + $0x2e00] sm:$0xff]  ;;  %2221 = vmatpush.msrb.mxu0 %v1306_v12  ;;  %v299_v12 = vld [vmem:[#allocation3 + $0x688] sm:$0xff] }
  0x59   :  { %v1818_v14 = vld [vmem:[#allocation3 + $0x3600] sm:$0xff]  ;;  %2241 = vmatpush.msrb.mxu1 %v1562_v13  ;;  %v555_v13 = vld [vmem:[#allocation3 + $0xe88] sm:$0xff] }
  0x5a   :  { %v2074_v15 = vld [vmem:[#allocation3 + $0x3e00] sm:$0xff]  ;;  %2261 = vmatpush.msrb.mxu2 %v1818_v14  ;;  %v811_v14 = vld [vmem:[#allocation3 + $0x1688] sm:$0xff] }
  0x5b   :  { %v1290_v16 = vld [vmem:[#allocation3 + $0x2580] sm:$0xff]  ;;  %2281 = vmatpush.msrb.mxu3 %v2074_v15  ;;  %v1067_v15 = vld [vmem:[#allocation3 + $0x1e88] sm:$0xff] }
  0x5c   :  { %v1546_v17 = vld [vmem:[#allocation3 + $0x2d80] sm:$0xff]  ;;  %2222 = vmatpush.msrb.mxu0 %v1290_v16  ;;  %v5545_v16 = vld [vmem:[%s6274_s0 + $0x30] sm:$0xff] }
  0x5d   :  { %v1802_v18 = vld [vmem:[#allocation3 + $0x3580] sm:$0xff]  ;;  %2242 = vmatpush.msrb.mxu1 %v1546_v17  ;;  %v283_v17 = vld [vmem:[#allocation3 + $0x608] sm:$0xff] }
  0x5e   :  { %v2058_v19 = vld [vmem:[#allocation3 + $0x3d80] sm:$0xff]  ;;  %2262 = vmatpush.msrb.mxu2 %v1802_v18  ;;  %v539_v18 = vld [vmem:[#allocation3 + $0xe08] sm:$0xff] }
  0x5f   :  { %v1274_v20 = vld [vmem:[#allocation3 + $0x2500] sm:$0xff]  ;;  %2282 = vmatpush.msrb.mxu3 %v2058_v19  ;;  %v795_v19 = vld [vmem:[#allocation3 + $0x1608] sm:$0xff] }
  0x60   :  { %v1530_v21 = vld [vmem:[#allocation3 + $0x2d00] sm:$0xff]  ;;  %2223 = vmatpush.msrb.mxu0 %v1274_v20  ;;  %v1051_v20 = vld [vmem:[#allocation3 + $0x1e08] sm:$0xff] }
  0x61   :  { %v1786_v22 = vld [vmem:[#allocation3 + $0x3500] sm:$0xff]  ;;  %2243 = vmatpush.msrb.mxu1 %v1530_v21 }
  0x62   :  { %v2042_v23 = vld [vmem:[#allocation3 + $0x3d00] sm:$0xff]  ;;  %2263 = vmatpush.msrb.mxu2 %v1786_v22  ;;  %v5556_v22 = vld [vmem:[%s6274_s0 + $0x38] sm:$0xff] }
  0x63   :  { %v1258_v24 = vld [vmem:[#allocation3 + $0x2480] sm:$0xff]  ;;  %2283 = vmatpush.msrb.mxu3 %v2042_v23  ;;  %v267_v23 = vld [vmem:[#allocation3 + $0x588] sm:$0xff] }
  0x64   :  { %v1514_v25 = vld [vmem:[#allocation3 + $0x2c80] sm:$0xff]  ;;  %2224 = vmatpush.msrb.mxu0 %v1258_v24  ;;  %v523_v24 = vld [vmem:[#allocation3 + $0xd88] sm:$0xff] }
  0x65   :  { %v1770_v26 = vld [vmem:[#allocation3 + $0x3480] sm:$0xff]  ;;  %2244 = vmatpush.msrb.mxu1 %v1514_v25  ;;  %v779_v25 = vld [vmem:[#allocation3 + $0x1588] sm:$0xff] }
  0x66   :  { %v2026_v27 = vld [vmem:[#allocation3 + $0x3c80] sm:$0xff]  ;;  %2264 = vmatpush.msrb.mxu2 %v1770_v26  ;;  %v1035_v26 = vld [vmem:[#allocation3 + $0x1d88] sm:$0xff] }
  0x67   :  { %v1242_v28 = vld [vmem:[#allocation3 + $0x2400] sm:$0xff]  ;;  %2284 = vmatpush.msrb.mxu3 %v2026_v27  ;;  %v5562_v27 = vld [vmem:[%s6274_s0 + $0x28] sm:$0xff] }
  0x68   :  { %v1498_v29 = vld [vmem:[#allocation3 + $0x2c00] sm:$0xff]  ;;  %2225 = vmatpush.msrb.mxu0 %v1242_v28  ;;  %v251_v28 = vld [vmem:[#allocation3 + $0x508] sm:$0xff] }
  0x69   :  { %v1754_v30 = vld [vmem:[#allocation3 + $0x3400] sm:$0xff]  ;;  %2245 = vmatpush.msrb.mxu1 %v1498_v29  ;;  %v507_v29 = vld [vmem:[#allocation3 + $0xd08] sm:$0xff] }
  0x6a   :  { %v2010_v31 = vld [vmem:[#allocation3 + $0x3c00] sm:$0xff]  ;;  %2265 = vmatpush.msrb.mxu2 %v1754_v30  ;;  %v763_v30 = vld [vmem:[#allocation3 + $0x1508] sm:$0xff] }
  0x6b   :  { %v1226_v32 = vld [vmem:[#allocation3 + $0x2380] sm:$0xff]  ;;  %2285 = vmatpush.msrb.mxu3 %v2010_v31  ;;  %v1019_v31 = vld [vmem:[#allocation3 + $0x1d08] sm:$0xff] }
  0x6c   :  { %v1482_v33 = vld [vmem:[#allocation3 + $0x2b80] sm:$0xff]  ;;  %2226 = vmatpush.msrb.mxu0 %v1226_v32  ;;  %v235_v32 = vld [vmem:[#allocation3 + $0x488] sm:$0xff] }
  0x6d   :  { %v1738_v34 = vld [vmem:[#allocation3 + $0x3380] sm:$0xff]  ;;  %2246 = vmatpush.msrb.mxu1 %v1482_v33  ;;  %v491_v33 = vld [vmem:[#allocation3 + $0xc88] sm:$0xff] }
  0x6e   :  { %v1994_v35 = vld [vmem:[#allocation3 + $0x3b80] sm:$0xff]  ;;  %2266 = vmatpush.msrb.mxu2 %v1738_v34  ;;  %v747_v34 = vld [vmem:[#allocation3 + $0x1488] sm:$0xff] }
  0x6f   :  { %v1210_v36 = vld [vmem:[#allocation3 + $0x2300] sm:$0xff]  ;;  %2286 = vmatpush.msrb.mxu3 %v1994_v35  ;;  %v1003_v35 = vld [vmem:[#allocation3 + $0x1c88] sm:$0xff] }
  0x70   :  { %v1466_v37 = vld [vmem:[#allocation3 + $0x2b00] sm:$0xff]  ;;  %2227 = vmatpush.msrb.mxu0 %v1210_v36  ;;  %v219_v36 = vld [vmem:[#allocation3 + $0x408] sm:$0xff] }
  0x71   :  { %v1722_v38 = vld [vmem:[#allocation3 + $0x3300] sm:$0xff]  ;;  %2247 = vmatpush.msrb.mxu1 %v1466_v37  ;;  %v475_v37 = vld [vmem:[#allocation3 + $0xc08] sm:$0xff] }
  0x72   :  { %v1978_v39 = vld [vmem:[#allocation3 + $0x3b00] sm:$0xff]  ;;  %2267 = vmatpush.msrb.mxu2 %v1722_v38  ;;  %v731_v38 = vld [vmem:[#allocation3 + $0x1408] sm:$0xff] }
  0x73   :  { %v1194_v40 = vld [vmem:[#allocation3 + $0x2280] sm:$0xff]  ;;  %2287 = vmatpush.msrb.mxu3 %v1978_v39  ;;  %v987_v39 = vld [vmem:[#allocation3 + $0x1c08] sm:$0xff] }
  0x74   :  { %v1450_v41 = vld [vmem:[#allocation3 + $0x2a80] sm:$0xff]  ;;  %2228 = vmatpush.msrb.mxu0 %v1194_v40  ;;  %v203_v40 = vld [vmem:[#allocation3 + $0x388] sm:$0xff] }
  0x75   :  { %v1706_v42 = vld [vmem:[#allocation3 + $0x3280] sm:$0xff]  ;;  %2248 = vmatpush.msrb.mxu1 %v1450_v41  ;;  %v459_v41 = vld [vmem:[#allocation3 + $0xb88] sm:$0xff] }
  0x76   :  { %v1962_v43 = vld [vmem:[#allocation3 + $0x3a80] sm:$0xff]  ;;  %2268 = vmatpush.msrb.mxu2 %v1706_v42  ;;  %v715_v42 = vld [vmem:[#allocation3 + $0x1388] sm:$0xff] }
  0x77   :  { %v1178_v44 = vld [vmem:[#allocation3 + $0x2200] sm:$0xff]  ;;  %2288 = vmatpush.msrb.mxu3 %v1962_v43  ;;  %v971_v43 = vld [vmem:[#allocation3 + $0x1b88] sm:$0xff] }
  0x78   :  { %v1434_v45 = vld [vmem:[#allocation3 + $0x2a00] sm:$0xff]  ;;  %2229 = vmatpush.msrb.mxu0 %v1178_v44  ;;  %v187_v44 = vld [vmem:[#allocation3 + $0x308] sm:$0xff] }
  0x79   :  { %v1690_v46 = vld [vmem:[#allocation3 + $0x3200] sm:$0xff]  ;;  %2249 = vmatpush.msrb.mxu1 %v1434_v45  ;;  %v443_v45 = vld [vmem:[#allocation3 + $0xb08] sm:$0xff] }
  0x7a   :  { %v1946_v47 = vld [vmem:[#allocation3 + $0x3a00] sm:$0xff]  ;;  %2269 = vmatpush.msrb.mxu2 %v1690_v46  ;;  %v699_v46 = vld [vmem:[#allocation3 + $0x1308] sm:$0xff] }
  0x7b   :  { %v1162_v48 = vld [vmem:[#allocation3 + $0x2180] sm:$0xff]  ;;  %2289 = vmatpush.msrb.mxu3 %v1946_v47  ;;  %v955_v47 = vld [vmem:[#allocation3 + $0x1b08] sm:$0xff] }
  0x7c   :  { %v1418_v49 = vld [vmem:[#allocation3 + $0x2980] sm:$0xff]  ;;  %2230 = vmatpush.msrb.mxu0 %v1162_v48  ;;  %v171_v48 = vld [vmem:[#allocation3 + $0x288] sm:$0xff] }
  0x7d   :  { %v1674_v50 = vld [vmem:[#allocation3 + $0x3180] sm:$0xff]  ;;  %2250 = vmatpush.msrb.mxu1 %v1418_v49  ;;  %v427_v49 = vld [vmem:[#allocation3 + $0xa88] sm:$0xff] }
  0x7e   :  { %v1930_v51 = vld [vmem:[#allocation3 + $0x3980] sm:$0xff]  ;;  %2270 = vmatpush.msrb.mxu2 %v1674_v50  ;;  %v683_v50 = vld [vmem:[#allocation3 + $0x1288] sm:$0xff] }
  0x7f   :  { %v1146_v52 = vld [vmem:[#allocation3 + $0x2100] sm:$0xff]  ;;  %2290 = vmatpush.msrb.mxu3 %v1930_v51  ;;  %v939_v51 = vld [vmem:[#allocation3 + $0x1a88] sm:$0xff] }
  0x80   :  { %v1402_v53 = vld [vmem:[#allocation3 + $0x2900] sm:$0xff]  ;;  %2231 = vmatpush.msrb.mxu0 %v1146_v52  ;;  %v155_v52 = vld [vmem:[#allocation3 + $0x208] sm:$0xff] }
  0x81   :  { %v1658_v54 = vld [vmem:[#allocation3 + $0x3100] sm:$0xff]  ;;  %2251 = vmatpush.msrb.mxu1 %v1402_v53  ;;  %v411_v53 = vld [vmem:[#allocation3 + $0xa08] sm:$0xff] }
  0x82   :  { %v1914_v55 = vld [vmem:[#allocation3 + $0x3900] sm:$0xff]  ;;  %2271 = vmatpush.msrb.mxu2 %v1658_v54  ;;  %v667_v54 = vld [vmem:[#allocation3 + $0x1208] sm:$0xff] }
  0x83   :  { %v1130_v56 = vld [vmem:[#allocation3 + $0x2080] sm:$0xff]  ;;  %2291 = vmatpush.msrb.mxu3 %v1914_v55  ;;  %v923_v55 = vld [vmem:[#allocation3 + $0x1a08] sm:$0xff] }
  0x84   :  { %v1386_v57 = vld [vmem:[#allocation3 + $0x2880] sm:$0xff]  ;;  %2232 = vmatpush.msrb.mxu0 %v1130_v56  ;;  %v139_v56 = vld [vmem:[#allocation3 + $0x188] sm:$0xff] }
  0x85   :  { %v1642_v58 = vld [vmem:[#allocation3 + $0x3080] sm:$0xff]  ;;  %2252 = vmatpush.msrb.mxu1 %v1386_v57  ;;  %v395_v57 = vld [vmem:[#allocation3 + $0x988] sm:$0xff] }
  0x86   :  { %v1898_v59 = vld [vmem:[#allocation3 + $0x3880] sm:$0xff]  ;;  %2272 = vmatpush.msrb.mxu2 %v1642_v58  ;;  %v651_v58 = vld [vmem:[#allocation3 + $0x1188] sm:$0xff] }
  0x87   :  { %v1114_v61 = vld [vmem:[#allocation3 + $0x2000] sm:$0xff]  ;;  %2292 = vmatpush.msrb.mxu3 %v1898_v59  ;;  %v907_v59 = vld [vmem:[#allocation3 + $0x1988] sm:$0xff] }
  0x88   :  { %v1370_v62 = vld [vmem:[#allocation3 + $0x2800] sm:$0xff]  ;;  %2233 = vmatpush.msrb.mxu0 %v1114_v61  ;;  %v123_v61 = vld [vmem:[#allocation3 + $0x108] sm:$0xff] }
  0x89   :  { %v1626_v63 = vld [vmem:[#allocation3 + $0x3000] sm:$0xff]  ;;  %2253 = vmatpush.msrb.mxu1 %v1370_v62  ;;  %v379_v62 = vld [vmem:[#allocation3 + $0x908] sm:$0xff] }
  0x8a   :  { %v1882_v0 = vld [vmem:[#allocation3 + $0x3800] sm:$0xff]  ;;  %2273 = vmatpush.msrb.mxu2 %v1626_v63  ;;  %2254 = vmatmul.f32.vlgmr.msrb.gmra.mxu1 %v5562_v27  ;;  %v635_v63 = vld [vmem:[#allocation3 + $0x1108] sm:$0xff] }
  0x8b   :  { %v5526_v1 = vld [vmem:[%s6274_s0] sm:$0xff]  ;;  %2293 = vmatpush.msrb.mxu3 %v1882_v0  ;;  %2318 = vmatpush.msra.mxu1 %v587_v5  ;;  %v891_v0 = vld [vmem:[#allocation3 + $0x1908] sm:$0xff] }
  0x8c   :  { %2154 = vmatmul.f32.vlgmr.msra.gmra.mxu0 %v5526_v1  ;;  %2338 = vmatpush.msra.mxu2 %v843_v6  ;;  %v5550_v21 = vld [vmem:[%s6274_s0 + $0x20] sm:$0xff]  ;;  %v363_v5 = vld [vmem:[#allocation3 + $0x888] sm:$0xff] }
  0x8d   :  { %2298 = vmatpush.msra.mxu0 %v331_v4  ;;  %2358 = vmatpush.msra.mxu3 %v1099_v7  ;;  %v107_v4 = vld [vmem:[#allocation3 + $0x88] sm:$0xff] }
  0x8e   :  { %2319 = vmatpush.msra.mxu1 %v571_v9  ;;  %2339 = vmatpush.msra.mxu2 %v827_v10  ;;  %v619_v6 = vld [vmem:[#allocation3 + $0x1088] sm:$0xff] }
  0x8f   :  { %2299 = vmatpush.msra.mxu0 %v315_v8  ;;  %2359 = vmatpush.msra.mxu3 %v1083_v11  ;;  %v875_v7 = vld [vmem:[#allocation3 + $0x1888] sm:$0xff] }
  0x90   :  { %2320 = vmatpush.msra.mxu1 %v555_v13  ;;  %2340 = vmatpush.msra.mxu2 %v811_v14  ;;  %v91_v8 = vld [vmem:[#allocation3 + $0x8] sm:$0xff] }
  0x91   :  { %2300 = vmatpush.msra.mxu0 %v299_v12  ;;  %2360 = vmatpush.msra.mxu3 %v1067_v15  ;;  %v347_v9 = vld [vmem:[#allocation3 + $0x808] sm:$0xff] }
  0x92   :  { %2274 = vmatmul.f32.vlgmr.msrb.gmra.mxu2 %v5545_v16  ;;  %2321 = vmatpush.msra.mxu1 %v539_v18  ;;  %v603_v10 = vld [vmem:[#allocation3 + $0x1008] sm:$0xff] }
  0x93   :  { %2301 = vmatpush.msra.mxu0 %v283_v17  ;;  %2341 = vmatpush.msra.mxu2 %v795_v19  ;;  %v859_v11 = vld [vmem:[#allocation3 + $0x1808] sm:$0xff] }
  0x94   :  { %2361 = vmatpush.msra.mxu3 %v1051_v20  ;;  %2234 = vmatmul.f32.vlgmr.msrb.gmra.mxu0 %v5550_v21  ;;  %v1355_v12 = vld [vmem:[#allocation3 + $0x2788] sm:$0xff] }
  0x95   :  { %2294 = vmatmul.f32.vlgmr.msrb.gmra.mxu3 %v5556_v22  ;;  %2302 = vmatpush.msra.mxu0 %v267_v23  ;;  %v1611_v13 = vld [vmem:[#allocation3 + $0x2f88] sm:$0xff] }
  0x96   :  { %2322 = vmatpush.msra.mxu1 %v523_v24  ;;  %2342 = vmatpush.msra.mxu2 %v779_v25  ;;  %v1867_v14 = vld [vmem:[#allocation3 + $0x3788] sm:$0xff] }
  0x97   :  { %2362 = vmatpush.msra.mxu3 %v1035_v26  ;;  %2303 = vmatpush.msra.mxu0 %v251_v28  ;;  %v2123_v15 = vld [vmem:[#allocation3 + $0x3f88] sm:$0xff] }
  0x98   :  { %2323 = vmatpush.msra.mxu1 %v507_v29  ;;  %2343 = vmatpush.msra.mxu2 %v763_v30  ;;  %v1339_v17 = vld [vmem:[#allocation3 + $0x2708] sm:$0xff] }
  0x99   :  { %2363 = vmatpush.msra.mxu3 %v1019_v31  ;;  %2304 = vmatpush.msra.mxu0 %v235_v32  ;;  %v1595_v18 = vld [vmem:[#allocation3 + $0x2f08] sm:$0xff] }
  0x9a   :  { %2324 = vmatpush.msra.mxu1 %v491_v33  ;;  %2344 = vmatpush.msra.mxu2 %v747_v34  ;;  %v1851_v19 = vld [vmem:[#allocation3 + $0x3708] sm:$0xff] }
  0x9b   :  { %2364 = vmatpush.msra.mxu3 %v1003_v35  ;;  %2305 = vmatpush.msra.mxu0 %v219_v36  ;;  %v2107_v20 = vld [vmem:[#allocation3 + $0x3f08] sm:$0xff] }
  0x9c   :  { %2325 = vmatpush.msra.mxu1 %v475_v37  ;;  %2345 = vmatpush.msra.mxu2 %v731_v38  ;;  %v1323_v23 = vld [vmem:[#allocation3 + $0x2688] sm:$0xff] }
  0x9d   :  { %2365 = vmatpush.msra.mxu3 %v987_v39  ;;  %2306 = vmatpush.msra.mxu0 %v203_v40  ;;  %v1579_v24 = vld [vmem:[#allocation3 + $0x2e88] sm:$0xff] }
  0x9e   :  { %2326 = vmatpush.msra.mxu1 %v459_v41  ;;  %2346 = vmatpush.msra.mxu2 %v715_v42  ;;  %v1835_v25 = vld [vmem:[#allocation3 + $0x3688] sm:$0xff] }
  0x9f   :  { %2366 = vmatpush.msra.mxu3 %v971_v43  ;;  %2307 = vmatpush.msra.mxu0 %v187_v44  ;;  %v2091_v26 = vld [vmem:[#allocation3 + $0x3e88] sm:$0xff] }
  0xa0   :  { %2327 = vmatpush.msra.mxu1 %v443_v45  ;;  %2347 = vmatpush.msra.mxu2 %v699_v46  ;;  %v1307_v28 = vld [vmem:[#allocation3 + $0x2608] sm:$0xff] }
  0xa1   :  { %2367 = vmatpush.msra.mxu3 %v955_v47  ;;  %2308 = vmatpush.msra.mxu0 %v171_v48  ;;  %v1563_v29 = vld [vmem:[#allocation3 + $0x2e08] sm:$0xff] }
  0xa2   :  { %2328 = vmatpush.msra.mxu1 %v427_v49  ;;  %2348 = vmatpush.msra.mxu2 %v683_v50  ;;  %v1819_v30 = vld [vmem:[#allocation3 + $0x3608] sm:$0xff] }
  0xa3   :  { %2368 = vmatpush.msra.mxu3 %v939_v51  ;;  %2309 = vmatpush.msra.mxu0 %v155_v52  ;;  %v2075_v31 = vld [vmem:[#allocation3 + $0x3e08] sm:$0xff] }
  0xa4   :  { %2329 = vmatpush.msra.mxu1 %v411_v53  ;;  %2349 = vmatpush.msra.mxu2 %v667_v54  ;;  %v1291_v32 = vld [vmem:[#allocation3 + $0x2588] sm:$0xff] }
  0xa5   :  { %2369 = vmatpush.msra.mxu3 %v923_v55  ;;  %2310 = vmatpush.msra.mxu0 %v139_v56  ;;  %v1547_v33 = vld [vmem:[#allocation3 + $0x2d88] sm:$0xff] }
  0xa6   :  { %2330 = vmatpush.msra.mxu1 %v395_v57  ;;  %2350 = vmatpush.msra.mxu2 %v651_v58  ;;  %v1803_v34 = vld [vmem:[#allocation3 + $0x3588] sm:$0xff] }
  0xa7   :  { %2370 = vmatpush.msra.mxu3 %v907_v59  ;;  %2311 = vmatpush.msra.mxu0 %v123_v61  ;;  %v2059_v35 = vld [vmem:[#allocation3 + $0x3d88] sm:$0xff] }
  0xa8   :  { %2331 = vmatpush.msra.mxu1 %v379_v62  ;;  %2351 = vmatpush.msra.mxu2 %v635_v63  ;;  %v1275_v36 = vld [vmem:[#allocation3 + $0x2508] sm:$0xff] }
  0xa9   :  { %2371 = vmatpush.msra.mxu3 %v891_v0  ;;  %2312 = vmatpush.msra.mxu0 %v107_v4  ;;  %v1531_v37 = vld [vmem:[#allocation3 + $0x2d08] sm:$0xff] }
  0xaa   :  { %2332 = vmatpush.msra.mxu1 %v363_v5  ;;  %2352 = vmatpush.msra.mxu2 %v619_v6  ;;  %v1787_v38 = vld [vmem:[#allocation3 + $0x3508] sm:$0xff] }
  0xab   :  { %2372 = vmatpush.msra.mxu3 %v875_v7  ;;  %2313 = vmatpush.msra.mxu0 %v91_v8  ;;  %v2043_v39 = vld [vmem:[#allocation3 + $0x3d08] sm:$0xff] }
  0xac   :  { %2333 = vmatpush.msra.mxu1 %v347_v9  ;;  %2353 = vmatpush.msra.mxu2 %v603_v10  ;;  %v1259_v40 = vld [vmem:[#allocation3 + $0x2488] sm:$0xff] }
  0xad   :  { %2373 = vmatpush.msra.mxu3 %v859_v11  ;;  %2378 = vmatpush.msrb.mxu0 %v1355_v12  ;;  %v1515_v41 = vld [vmem:[#allocation3 + $0x2c88] sm:$0xff] }
  0xae   :  { %2398 = vmatpush.msrb.mxu1 %v1611_v13  ;;  %2418 = vmatpush.msrb.mxu2 %v1867_v14  ;;  %v1771_v42 = vld [vmem:[#allocation3 + $0x3488] sm:$0xff] }
  0xaf   :  { %2438 = vmatpush.msrb.mxu3 %v2123_v15  ;;  %2379 = vmatpush.msrb.mxu0 %v1339_v17  ;;  %v2027_v43 = vld [vmem:[#allocation3 + $0x3c88] sm:$0xff] }
  0xb0   :  { %2399 = vmatpush.msrb.mxu1 %v1595_v18  ;;  %2419 = vmatpush.msrb.mxu2 %v1851_v19  ;;  %v1243_v44 = vld [vmem:[#allocation3 + $0x2408] sm:$0xff] }
  0xb1   :  { %2439 = vmatpush.msrb.mxu3 %v2107_v20  ;;  %2380 = vmatpush.msrb.mxu0 %v1323_v23  ;;  %v1499_v45 = vld [vmem:[#allocation3 + $0x2c08] sm:$0xff]  ;;  %v332_v23 = vld [vmem:[#allocation3 + $0x790] sm:$0xff] }
  0xb2   :  { %2400 = vmatpush.msrb.mxu1 %v1579_v24  ;;  %2420 = vmatpush.msrb.mxu2 %v1835_v25  ;;  %v1755_v46 = vld [vmem:[#allocation3 + $0x3408] sm:$0xff]  ;;  %v588_v24 = vld [vmem:[#allocation3 + $0xf90] sm:$0xff] }
  0xb3   :  { %2440 = vmatpush.msrb.mxu3 %v2091_v26  ;;  %2381 = vmatpush.msrb.mxu0 %v1307_v28  ;;  %v2011_v47 = vld [vmem:[#allocation3 + $0x3c08] sm:$0xff]  ;;  %v844_v25 = vld [vmem:[#allocation3 + $0x1790] sm:$0xff] }
  0xb4   :  { %2401 = vmatpush.msrb.mxu1 %v1563_v29  ;;  %2421 = vmatpush.msrb.mxu2 %v1819_v30  ;;  %v1227_v48 = vld [vmem:[#allocation3 + $0x2388] sm:$0xff]  ;;  %v1100_v26 = vld [vmem:[#allocation3 + $0x1f90] sm:$0xff] }
  0xb5   :  { %2441 = vmatpush.msrb.mxu3 %v2075_v31  ;;  %2382 = vmatpush.msrb.mxu0 %v1291_v32  ;;  %v1483_v49 = vld [vmem:[#allocation3 + $0x2b88] sm:$0xff]  ;;  %v316_v28 = vld [vmem:[#allocation3 + $0x710] sm:$0xff] }
  0xb6   :  { %2402 = vmatpush.msrb.mxu1 %v1547_v33  ;;  %2422 = vmatpush.msrb.mxu2 %v1803_v34  ;;  %v1739_v50 = vld [vmem:[#allocation3 + $0x3388] sm:$0xff]  ;;  %v572_v29 = vld [vmem:[#allocation3 + $0xf10] sm:$0xff] }
  0xb7   :  { %2442 = vmatpush.msrb.mxu3 %v2059_v35  ;;  %2383 = vmatpush.msrb.mxu0 %v1275_v36  ;;  %v1995_v51 = vld [vmem:[#allocation3 + $0x3b88] sm:$0xff]  ;;  %v828_v30 = vld [vmem:[#allocation3 + $0x1710] sm:$0xff] }
  0xb8   :  { %2403 = vmatpush.msrb.mxu1 %v1531_v37  ;;  %2423 = vmatpush.msrb.mxu2 %v1787_v38  ;;  %v1211_v52 = vld [vmem:[#allocation3 + $0x2308] sm:$0xff]  ;;  %v300_v31 = vld [vmem:[#allocation3 + $0x690] sm:$0xff] }
  0xb9   :  { %2443 = vmatpush.msrb.mxu3 %v2043_v39  ;;  %2384 = vmatpush.msrb.mxu0 %v1259_v40  ;;  %v1467_v53 = vld [vmem:[#allocation3 + $0x2b08] sm:$0xff]  ;;  %v556_v32 = vld [vmem:[#allocation3 + $0xe90] sm:$0xff] }
  0xba   :  { %2404 = vmatpush.msrb.mxu1 %v1515_v41  ;;  %2424 = vmatpush.msrb.mxu2 %v1771_v42  ;;  %v1723_v54 = vld [vmem:[#allocation3 + $0x3308] sm:$0xff]  ;;  %v812_v33 = vld [vmem:[#allocation3 + $0x1690] sm:$0xff] }
  0xbb   :  { %2444 = vmatpush.msrb.mxu3 %v2027_v43  ;;  %2385 = vmatpush.msrb.mxu0 %v1243_v44  ;;  %v1979_v55 = vld [vmem:[#allocation3 + $0x3b08] sm:$0xff]  ;;  %v284_v34 = vld [vmem:[#allocation3 + $0x610] sm:$0xff] }
  0xbc   :  { %2405 = vmatpush.msrb.mxu1 %v1499_v45  ;;  %2425 = vmatpush.msrb.mxu2 %v1755_v46  ;;  %v1195_v56 = vld [vmem:[#allocation3 + $0x2288] sm:$0xff]  ;;  %v1052_v35 = vld [vmem:[#allocation3 + $0x1e10] sm:$0xff] }
  0xbd   :  { %2445 = vmatpush.msrb.mxu3 %v2011_v47  ;;  %2386 = vmatpush.msrb.mxu0 %v1227_v48  ;;  %v1451_v57 = vld [vmem:[#allocation3 + $0x2a88] sm:$0xff]  ;;  %v268_v36 = vld [vmem:[#allocation3 + $0x590] sm:$0xff] }
  0xbe   :  { %2406 = vmatpush.msrb.mxu1 %v1483_v49  ;;  %2426 = vmatpush.msrb.mxu2 %v1739_v50  ;;  %v1707_v58 = vld [vmem:[#allocation3 + $0x3288] sm:$0xff]  ;;  %v524_v37 = vld [vmem:[#allocation3 + $0xd90] sm:$0xff] }
  0xbf   :  { %2446 = vmatpush.msrb.mxu3 %v1995_v51  ;;  %2387 = vmatpush.msrb.mxu0 %v1211_v52  ;;  %v1963_v59 = vld [vmem:[#allocation3 + $0x3a88] sm:$0xff]  ;;  %v780_v38 = vld [vmem:[#allocation3 + $0x1590] sm:$0xff] }
  0xc0   :  { %2407 = vmatpush.msrb.mxu1 %v1467_v53  ;;  %2427 = vmatpush.msrb.mxu2 %v1723_v54  ;;  %v1179_v61 = vld [vmem:[#allocation3 + $0x2208] sm:$0xff]  ;;  %v1036_v39 = vld [vmem:[#allocation3 + $0x1d90] sm:$0xff] }
  0xc1   :  { %2447 = vmatpush.msrb.mxu3 %v1979_v55  ;;  %v1435_v62 = vld [vmem:[#allocation3 + $0x2a08] sm:$0xff]  ;;  %2388 = vmatpush.msrb.mxu0 %v1195_v56  ;;  %v252_v40 = vld [vmem:[#allocation3 + $0x510] sm:$0xff] }
  0xc2   :  { %2408 = vmatpush.msrb.mxu1 %v1451_v57  ;;  %v1691_v63 = vld [vmem:[#allocation3 + $0x3208] sm:$0xff]  ;;  %2428 = vmatpush.msrb.mxu2 %v1707_v58  ;;  %v508_v41 = vld [vmem:[#allocation3 + $0xd10] sm:$0xff] }
  0xc3   :  { %v1947_v0 = vld [vmem:[#allocation3 + $0x3a08] sm:$0xff]  ;;  %2448 = vmatpush.msrb.mxu3 %v1963_v59  ;;  %2389 = vmatpush.msrb.mxu0 %v1179_v61  ;;  %v764_v42 = vld [vmem:[#allocation3 + $0x1510] sm:$0xff] }
  0xc4   :  { %v1163_v4 = vld [vmem:[#allocation3 + $0x2188] sm:$0xff]  ;;  %2409 = vmatpush.msrb.mxu1 %v1435_v62  ;;  %2429 = vmatpush.msrb.mxu2 %v1691_v63  ;;  %v1020_v43 = vld [vmem:[#allocation3 + $0x1d10] sm:$0xff] }
  0xc5   :  { %v1419_v5 = vld [vmem:[#allocation3 + $0x2988] sm:$0xff]  ;;  %2449 = vmatpush.msrb.mxu3 %v1947_v0  ;;  %2390 = vmatpush.msrb.mxu0 %v1163_v4  ;;  %v492_v44 = vld [vmem:[#allocation3 + $0xc90] sm:$0xff] }
  0xc6   :  { %v1675_v6 = vld [vmem:[#allocation3 + $0x3188] sm:$0xff]  ;;  %2410 = vmatpush.msrb.mxu1 %v1419_v5  ;;  %2354 = vmatmul.f32.vlgmr.msra.gmra.mxu2 %v5521_v60  ;;  %v1084_v60 = vld [vmem:[#allocation3 + $0x1f10] sm:$0xff] }
  0xc7   :  { %v1931_v7 = vld [vmem:[#allocation3 + $0x3988] sm:$0xff]  ;;  %2430 = vmatpush.msrb.mxu2 %v1675_v6  ;;  %2314 = vmatmul.f32.vlgmr.msra.gmra.mxu0 %v5526_v1  ;;  %v1068_v1 = vld [vmem:[#allocation3 + $0x1e90] sm:$0xff] }
  0xc8   :  { %v1147_v8 = vld [vmem:[#allocation3 + $0x2108] sm:$0xff]  ;;  %2450 = vmatpush.msrb.mxu3 %v1931_v7  ;;  %2334 = vmatmul.f32.vlgmr.msra.gmra.mxu1 %v5532_v2  ;;  %v540_v2 = vld [vmem:[#allocation3 + $0xe10] sm:$0xff] }
  0xc9   :  { %v1403_v9 = vld [vmem:[#allocation3 + $0x2908] sm:$0xff]  ;;  %2391 = vmatpush.msrb.mxu0 %v1147_v8  ;;  %2374 = vmatmul.f32.vlgmr.msra.gmra.mxu3 %v5537_v3  ;;  %v796_v3 = vld [vmem:[#allocation3 + $0x1610] sm:$0xff] }
  0xca   :  { %v1659_v10 = vld [vmem:[#allocation3 + $0x3108] sm:$0xff]  ;;  %2411 = vmatpush.msrb.mxu1 %v1403_v9  ;;  %v748_v45 = vld [vmem:[#allocation3 + $0x1490] sm:$0xff] }
  0xcb   :  { %v1915_v11 = vld [vmem:[#allocation3 + $0x3908] sm:$0xff]  ;;  %2431 = vmatpush.msrb.mxu2 %v1659_v10  ;;  %v1004_v46 = vld [vmem:[#allocation3 + $0x1c90] sm:$0xff] }
  0xcc   :  { %v1131_v12 = vld [vmem:[#allocation3 + $0x2088] sm:$0xff]  ;;  %2451 = vmatpush.msrb.mxu3 %v1915_v11  ;;  %v732_v47 = vld [vmem:[#allocation3 + $0x1410] sm:$0xff] }
  0xcd   :  { %v1387_v13 = vld [vmem:[#allocation3 + $0x2888] sm:$0xff]  ;;  %2392 = vmatpush.msrb.mxu0 %v1131_v12  ;;  %v988_v48 = vld [vmem:[#allocation3 + $0x1c10] sm:$0xff] }
  0xce   :  { %v1643_v14 = vld [vmem:[#allocation3 + $0x3088] sm:$0xff]  ;;  %2412 = vmatpush.msrb.mxu1 %v1387_v13  ;;  %v204_v49 = vld [vmem:[#allocation3 + $0x390] sm:$0xff] }
  0xcf   :  { %v1899_v15 = vld [vmem:[#allocation3 + $0x3888] sm:$0xff]  ;;  %2432 = vmatpush.msrb.mxu2 %v1643_v14  ;;  %v460_v50 = vld [vmem:[#allocation3 + $0xb90] sm:$0xff] }
  0xd0   :  { %v1115_v17 = vld [vmem:[#allocation3 + $0x2008] sm:$0xff]  ;;  %2452 = vmatpush.msrb.mxu3 %v1899_v15  ;;  %v972_v51 = vld [vmem:[#allocation3 + $0x1b90] sm:$0xff] }
  0xd1   :  { %v1371_v18 = vld [vmem:[#allocation3 + $0x2808] sm:$0xff]  ;;  %2393 = vmatpush.msrb.mxu0 %v1115_v17  ;;  %v188_v52 = vld [vmem:[#allocation3 + $0x310] sm:$0xff] }
  0xd2   :  { %v1627_v19 = vld [vmem:[#allocation3 + $0x3008] sm:$0xff]  ;;  %2413 = vmatpush.msrb.mxu1 %v1371_v18  ;;  %2394 = vmatmul.f32.vlgmr.msrb.gmra.mxu0 %v5550_v21  ;;  %v220_v21 = vld [vmem:[#allocation3 + $0x410] sm:$0xff] }
  0xd3   :  { %v1883_v20 = vld [vmem:[#allocation3 + $0x3808] sm:$0xff]  ;;  %2433 = vmatpush.msrb.mxu2 %v1627_v19  ;;  %2458 = vmatpush.msra.mxu0 %v332_v23  ;;  %v444_v53 = vld [vmem:[#allocation3 + $0xb10] sm:$0xff] }
  0xd4   :  { %2453 = vmatpush.msrb.mxu3 %v1883_v20  ;;  %2478 = vmatpush.msra.mxu1 %v588_v24  ;;  %v700_v54 = vld [vmem:[#allocation3 + $0x1310] sm:$0xff] }
  0xd5   :  { %2498 = vmatpush.msra.mxu2 %v844_v25  ;;  %2459 = vmatpush.msra.mxu0 %v316_v28  ;;  %v956_v55 = vld [vmem:[#allocation3 + $0x1b10] sm:$0xff] }
  0xd6   :  { %2518 = vmatpush.msra.mxu3 %v1100_v26  ;;  %2479 = vmatpush.msra.mxu1 %v572_v29  ;;  %v172_v56 = vld [vmem:[#allocation3 + $0x290] sm:$0xff] }
  0xd7   :  { %2499 = vmatpush.msra.mxu2 %v828_v30  ;;  %2460 = vmatpush.msra.mxu0 %v300_v31  ;;  %v428_v57 = vld [vmem:[#allocation3 + $0xa90] sm:$0xff] }
  0xd8   :  { %2519 = vmatpush.msra.mxu3 %v1084_v60  ;;  %2480 = vmatpush.msra.mxu1 %v556_v32  ;;  %v684_v58 = vld [vmem:[#allocation3 + $0x1290] sm:$0xff] }
  0xd9   :  { %2500 = vmatpush.msra.mxu2 %v812_v33  ;;  %2461 = vmatpush.msra.mxu0 %v284_v34  ;;  %v940_v59 = vld [vmem:[#allocation3 + $0x1a90] sm:$0xff] }
  0xda   :  { %2520 = vmatpush.msra.mxu3 %v1068_v1  ;;  %2434 = vmatmul.f32.vlgmr.msrb.gmra.mxu2 %v5545_v16  ;;  %v236_v16 = vld [vmem:[#allocation3 + $0x490] sm:$0xff] }
  0xdb   :  { %2481 = vmatpush.msra.mxu1 %v540_v2  ;;  %2501 = vmatpush.msra.mxu2 %v796_v3  ;;  %v156_v61 = vld [vmem:[#allocation3 + $0x210] sm:$0xff] }
  0xdc   :  { %2521 = vmatpush.msra.mxu3 %v1052_v35  ;;  %2462 = vmatpush.msra.mxu0 %v268_v36  ;;  %v412_v62 = vld [vmem:[#allocation3 + $0xa10] sm:$0xff] }
  0xdd   :  { %2454 = vmatmul.f32.vlgmr.msrb.gmra.mxu3 %v5556_v22  ;;  %2482 = vmatpush.msra.mxu1 %v524_v37  ;;  %v476_v22 = vld [vmem:[#allocation3 + $0xc10] sm:$0xff] }
  0xde   :  { %2502 = vmatpush.msra.mxu2 %v780_v38  ;;  %2522 = vmatpush.msra.mxu3 %v1036_v39  ;;  %v668_v63 = vld [vmem:[#allocation3 + $0x1210] sm:$0xff] }
  0xdf   :  { %2414 = vmatmul.f32.vlgmr.msrb.gmra.mxu1 %v5562_v27  ;;  %2463 = vmatpush.msra.mxu0 %v252_v40  ;;  %v716_v27 = vld [vmem:[#allocation3 + $0x1390] sm:$0xff] }
  0xe0   :  { %2483 = vmatpush.msra.mxu1 %v508_v41  ;;  %2503 = vmatpush.msra.mxu2 %v764_v42  ;;  %v924_v0 = vld [vmem:[#allocation3 + $0x1a10] sm:$0xff] }
  0xe1   :  { %2523 = vmatpush.msra.mxu3 %v1020_v43  ;;  %2464 = vmatpush.msra.mxu0 %v236_v16  ;;  %v140_v4 = vld [vmem:[#allocation3 + $0x190] sm:$0xff] }
  0xe2   :  { %2484 = vmatpush.msra.mxu1 %v492_v44  ;;  %2504 = vmatpush.msra.mxu2 %v748_v45  ;;  %v396_v5 = vld [vmem:[#allocation3 + $0x990] sm:$0xff] }
  0xe3   :  { %2524 = vmatpush.msra.mxu3 %v1004_v46  ;;  %2465 = vmatpush.msra.mxu0 %v220_v21  ;;  %v652_v6 = vld [vmem:[#allocation3 + $0x1190] sm:$0xff] }
  0xe4   :  { %2485 = vmatpush.msra.mxu1 %v476_v22  ;;  %2505 = vmatpush.msra.mxu2 %v732_v47  ;;  %v908_v7 = vld [vmem:[#allocation3 + $0x1990] sm:$0xff] }
  0xe5   :  { %2525 = vmatpush.msra.mxu3 %v988_v48  ;;  %2466 = vmatpush.msra.mxu0 %v204_v49  ;;  %v124_v8 = vld [vmem:[#allocation3 + $0x110] sm:$0xff] }
  0xe6   :  { %2486 = vmatpush.msra.mxu1 %v460_v50  ;;  %2506 = vmatpush.msra.mxu2 %v716_v27  ;;  %v380_v9 = vld [vmem:[#allocation3 + $0x910] sm:$0xff] }
  0xe7   :  { %2526 = vmatpush.msra.mxu3 %v972_v51  ;;  %2467 = vmatpush.msra.mxu0 %v188_v52  ;;  %v636_v10 = vld [vmem:[#allocation3 + $0x1110] sm:$0xff] }
  0xe8   :  { %2487 = vmatpush.msra.mxu1 %v444_v53  ;;  %2507 = vmatpush.msra.mxu2 %v700_v54  ;;  %v892_v11 = vld [vmem:[#allocation3 + $0x1910] sm:$0xff] }
  0xe9   :  { %2527 = vmatpush.msra.mxu3 %v956_v55  ;;  %2468 = vmatpush.msra.mxu0 %v172_v56  ;;  %v108_v12 = vld [vmem:[#allocation3 + $0x90] sm:$0xff] }
  0xea   :  { %2488 = vmatpush.msra.mxu1 %v428_v57  ;;  %2508 = vmatpush.msra.mxu2 %v684_v58  ;;  %v364_v13 = vld [vmem:[#allocation3 + $0x890] sm:$0xff] }
  0xeb   :  { %2528 = vmatpush.msra.mxu3 %v940_v59  ;;  %2469 = vmatpush.msra.mxu0 %v156_v61  ;;  %v620_v14 = vld [vmem:[#allocation3 + $0x1090] sm:$0xff] }
  0xec   :  { %2489 = vmatpush.msra.mxu1 %v412_v62  ;;  %2509 = vmatpush.msra.mxu2 %v668_v63  ;;  %v876_v15 = vld [vmem:[#allocation3 + $0x1890] sm:$0xff] }
  0xed   :  { %2529 = vmatpush.msra.mxu3 %v924_v0  ;;  %2470 = vmatpush.msra.mxu0 %v140_v4  ;;  %v92_v17 = vld [vmem:[#allocation3 + $0x10] sm:$0xff] }
  0xee   :  { %2490 = vmatpush.msra.mxu1 %v396_v5  ;;  %2510 = vmatpush.msra.mxu2 %v652_v6  ;;  %v348_v18 = vld [vmem:[#allocation3 + $0x810] sm:$0xff] }
  0xef   :  { %2530 = vmatpush.msra.mxu3 %v908_v7  ;;  %2471 = vmatpush.msra.mxu0 %v124_v8  ;;  %v604_v19 = vld [vmem:[#allocation3 + $0x1010] sm:$0xff] }
  0xf0   :  { %2491 = vmatpush.msra.mxu1 %v380_v9  ;;  %2511 = vmatpush.msra.mxu2 %v636_v10  ;;  %v860_v20 = vld [vmem:[#allocation3 + $0x1810] sm:$0xff] }
  0xf1   :  { %2531 = vmatpush.msra.mxu3 %v892_v11  ;;  %2472 = vmatpush.msra.mxu0 %v108_v12  ;;  %v1356_v23 = vld [vmem:[#allocation3 + $0x2790] sm:$0xff] }
  0xf2   :  { %2492 = vmatpush.msra.mxu1 %v364_v13  ;;  %2512 = vmatpush.msra.mxu2 %v620_v14  ;;  %v1612_v24 = vld [vmem:[#allocation3 + $0x2f90] sm:$0xff] }
  0xf3   :  { %2532 = vmatpush.msra.mxu3 %v876_v15  ;;  %2473 = vmatpush.msra.mxu0 %v92_v17  ;;  %v1868_v25 = vld [vmem:[#allocation3 + $0x3790] sm:$0xff] }
  0xf4   :  { %2493 = vmatpush.msra.mxu1 %v348_v18  ;;  %v2124_v26 = vld [vmem:[#allocation3 + $0x3f90] sm:$0xff]  ;;  %2513 = vmatpush.msra.mxu2 %v604_v19 }
  0xf5   :  { %2533 = vmatpush.msra.mxu3 %v860_v20  ;;  %v1340_v28 = vld [vmem:[#allocation3 + $0x2710] sm:$0xff]  ;;  %2538 = vmatpush.msrb.mxu0 %v1356_v23 }
  0xf6   :  { %v1596_v29 = vld [vmem:[#allocation3 + $0x2f10] sm:$0xff]  ;;  %2558 = vmatpush.msrb.mxu1 %v1612_v24  ;;  %2578 = vmatpush.msrb.mxu2 %v1868_v25  ;;  %v333_v24 = vld [vmem:[#allocation3 + $0x798] sm:$0xff] }
  0xf7   :  { %v1852_v30 = vld [vmem:[#allocation3 + $0x3710] sm:$0xff]  ;;  %2598 = vmatpush.msrb.mxu3 %v2124_v26  ;;  %2539 = vmatpush.msrb.mxu0 %v1340_v28  ;;  %v589_v25 = vld [vmem:[#allocation3 + $0xf98] sm:$0xff]  ;;  %v5583_v26 = vld [vmem:[%s6274_s0] sm:$0xff] }
  0xf8   :  { %v2108_v60 = vld [vmem:[#allocation3 + $0x3f10] sm:$0xff]  ;;  %2559 = vmatpush.msrb.mxu1 %v1596_v29  ;;  %2579 = vmatpush.msrb.mxu2 %v1852_v30  ;;  %v845_v28 = vld [vmem:[#allocation3 + $0x1798] sm:$0xff]  ;;  %v5589_v30 = vld [vmem:[%s6274_s0 + $0x8] sm:$0xff] }
  0xf9   :  { %v1324_v31 = vld [vmem:[#allocation3 + $0x2690] sm:$0xff]  ;;  %2599 = vmatpush.msrb.mxu3 %v2108_v60  ;;  %2474 = vmatmul.f32.vlgmr.msra.gmra.mxu0 %v5583_v26  ;;  %v1101_v29 = vld [vmem:[#allocation3 + $0x1f98] sm:$0xff] }
  0xfa   :  { %v1580_v32 = vld [vmem:[#allocation3 + $0x2e90] sm:$0xff]  ;;  %2540 = vmatpush.msrb.mxu0 %v1324_v31  ;;  %2494 = vmatmul.f32.vlgmr.msra.gmra.mxu1 %v5589_v30  ;;  %v5595_v60 = vld [vmem:[%s6274_s0 + $0x18] sm:$0xff] }
  0xfb   :  { %v1836_v33 = vld [vmem:[#allocation3 + $0x3690] sm:$0xff]  ;;  %2560 = vmatpush.msrb.mxu1 %v1580_v32  ;;  %2534 = vmatmul.f32.vlgmr.msra.gmra.mxu3 %v5595_v60  ;;  %v317_v31 = vld [vmem:[#allocation3 + $0x718] sm:$0xff] }
  0xfc   :  { %v2092_v1 = vld [vmem:[#allocation3 + $0x3e90] sm:$0xff]  ;;  %2580 = vmatpush.msrb.mxu2 %v1836_v33  ;;  %v573_v32 = vld [vmem:[#allocation3 + $0xf18] sm:$0xff] }
  0xfd   :  { %v1308_v34 = vld [vmem:[#allocation3 + $0x2610] sm:$0xff]  ;;  %2600 = vmatpush.msrb.mxu3 %v2092_v1  ;;  %v829_v33 = vld [vmem:[#allocation3 + $0x1718] sm:$0xff] }
  0xfe   :  { %v1564_v2 = vld [vmem:[#allocation3 + $0x2e10] sm:$0xff]  ;;  %2541 = vmatpush.msrb.mxu0 %v1308_v34  ;;  %v1085_v1 = vld [vmem:[#allocation3 + $0x1f18] sm:$0xff] }
  0xff   :  { %v1820_v3 = vld [vmem:[#allocation3 + $0x3610] sm:$0xff]  ;;  %2561 = vmatpush.msrb.mxu1 %v1564_v2  ;;  %v301_v34 = vld [vmem:[#allocation3 + $0x698] sm:$0xff] }
 0x100   :  { %v2076_v35 = vld [vmem:[#allocation3 + $0x3e10] sm:$0xff]  ;;  %2581 = vmatpush.msrb.mxu2 %v1820_v3  ;;  %v557_v2 = vld [vmem:[#allocation3 + $0xe98] sm:$0xff] }
 0x101   :  { %v1292_v36 = vld [vmem:[#allocation3 + $0x2590] sm:$0xff]  ;;  %2601 = vmatpush.msrb.mxu3 %v2076_v35  ;;  %v813_v3 = vld [vmem:[#allocation3 + $0x1698] sm:$0xff] }
 0x102   :  { %v1548_v37 = vld [vmem:[#allocation3 + $0x2d90] sm:$0xff]  ;;  %2542 = vmatpush.msrb.mxu0 %v1292_v36  ;;  %v1069_v35 = vld [vmem:[#allocation3 + $0x1e98] sm:$0xff] }
 0x103   :  { %v1804_v38 = vld [vmem:[#allocation3 + $0x3590] sm:$0xff]  ;;  %2562 = vmatpush.msrb.mxu1 %v1548_v37  ;;  %v285_v36 = vld [vmem:[#allocation3 + $0x618] sm:$0xff] }
 0x104   :  { %v2060_v39 = vld [vmem:[#allocation3 + $0x3d90] sm:$0xff]  ;;  %2582 = vmatpush.msrb.mxu2 %v1804_v38  ;;  %v541_v37 = vld [vmem:[#allocation3 + $0xe18] sm:$0xff] }
 0x105   :  { %v1276_v40 = vld [vmem:[#allocation3 + $0x2510] sm:$0xff]  ;;  %2602 = vmatpush.msrb.mxu3 %v2060_v39  ;;  %v797_v38 = vld [vmem:[#allocation3 + $0x1618] sm:$0xff] }
 0x106   :  { %v1532_v41 = vld [vmem:[#allocation3 + $0x2d10] sm:$0xff]  ;;  %2543 = vmatpush.msrb.mxu0 %v1276_v40  ;;  %v1053_v39 = vld [vmem:[#allocation3 + $0x1e18] sm:$0xff] }
 0x107   :  { %v1788_v42 = vld [vmem:[#allocation3 + $0x3510] sm:$0xff]  ;;  %2563 = vmatpush.msrb.mxu1 %v1532_v41  ;;  %v269_v41 = vld [vmem:[#allocation3 + $0x598] sm:$0xff] }
 0x108   :  { %v2044_v43 = vld [vmem:[#allocation3 + $0x3d10] sm:$0xff]  ;;  %2583 = vmatpush.msrb.mxu2 %v1788_v42  ;;  %v525_v42 = vld [vmem:[#allocation3 + $0xd98] sm:$0xff] }
 0x109   :  { %v1260_v16 = vld [vmem:[#allocation3 + $0x2490] sm:$0xff]  ;;  %2603 = vmatpush.msrb.mxu3 %v2044_v43  ;;  %v781_v43 = vld [vmem:[#allocation3 + $0x1598] sm:$0xff] }
 0x10a   :  { %v1516_v44 = vld [vmem:[#allocation3 + $0x2c90] sm:$0xff]  ;;  %2544 = vmatpush.msrb.mxu0 %v1260_v16  ;;  %v5607_v16 = vld [vmem:[%s6274_s0 + $0x20] sm:$0xff] }
 0x10b   :  { %v1772_v45 = vld [vmem:[#allocation3 + $0x3490] sm:$0xff]  ;;  %2564 = vmatpush.msrb.mxu1 %v1516_v44  ;;  %v1037_v44 = vld [vmem:[#allocation3 + $0x1d98] sm:$0xff] }
 0x10c   :  { %v2028_v46 = vld [vmem:[#allocation3 + $0x3c90] sm:$0xff]  ;;  %2584 = vmatpush.msrb.mxu2 %v1772_v45  ;;  %v5613_v45 = vld [vmem:[%s6274_s0 + $0x38] sm:$0xff] }
 0x10d   :  { %v1244_v21 = vld [vmem:[#allocation3 + $0x2410] sm:$0xff]  ;;  %2604 = vmatpush.msrb.mxu3 %v2028_v46  ;;  %v253_v46 = vld [vmem:[#allocation3 + $0x518] sm:$0xff] }
 0x10e   :  { %v1500_v22 = vld [vmem:[#allocation3 + $0x2c10] sm:$0xff]  ;;  %2545 = vmatpush.msrb.mxu0 %v1244_v21  ;;  %v509_v21 = vld [vmem:[#allocation3 + $0xd18] sm:$0xff] }
 0x10f   :  { %v1756_v47 = vld [vmem:[#allocation3 + $0x3410] sm:$0xff]  ;;  %2565 = vmatpush.msrb.mxu1 %v1500_v22  ;;  %v765_v22 = vld [vmem:[#allocation3 + $0x1518] sm:$0xff] }
 0x110   :  { %v2012_v48 = vld [vmem:[#allocation3 + $0x3c10] sm:$0xff]  ;;  %2585 = vmatpush.msrb.mxu2 %v1756_v47  ;;  %v1021_v47 = vld [vmem:[#allocation3 + $0x1d18] sm:$0xff] }
 0x111   :  { %v1228_v49 = vld [vmem:[#allocation3 + $0x2390] sm:$0xff]  ;;  %2605 = vmatpush.msrb.mxu3 %v2012_v48  ;;  %v5619_v48 = vld [vmem:[%s6274_s0 + $0x28] sm:$0xff] }
 0x112   :  { %v1484_v50 = vld [vmem:[#allocation3 + $0x2b90] sm:$0xff]  ;;  %2546 = vmatpush.msrb.mxu0 %v1228_v49  ;;  %v237_v49 = vld [vmem:[#allocation3 + $0x498] sm:$0xff] }
 0x113   :  { %v1740_v27 = vld [vmem:[#allocation3 + $0x3390] sm:$0xff]  ;;  %2566 = vmatpush.msrb.mxu1 %v1484_v50  ;;  %v493_v50 = vld [vmem:[#allocation3 + $0xc98] sm:$0xff] }
 0x114   :  { %v1996_v51 = vld [vmem:[#allocation3 + $0x3b90] sm:$0xff]  ;;  %2586 = vmatpush.msrb.mxu2 %v1740_v27  ;;  %v749_v27 = vld [vmem:[#allocation3 + $0x1498] sm:$0xff] }
 0x115   :  { %v1212_v52 = vld [vmem:[#allocation3 + $0x2310] sm:$0xff]  ;;  %2606 = vmatpush.msrb.mxu3 %v1996_v51  ;;  %v1005_v51 = vld [vmem:[#allocation3 + $0x1c98] sm:$0xff] }
 0x116   :  { %v1468_v53 = vld [vmem:[#allocation3 + $0x2b10] sm:$0xff]  ;;  %2547 = vmatpush.msrb.mxu0 %v1212_v52  ;;  %v221_v52 = vld [vmem:[#allocation3 + $0x418] sm:$0xff] }
 0x117   :  { %v1724_v54 = vld [vmem:[#allocation3 + $0x3310] sm:$0xff]  ;;  %2567 = vmatpush.msrb.mxu1 %v1468_v53  ;;  %v477_v53 = vld [vmem:[#allocation3 + $0xc18] sm:$0xff] }
 0x118   :  { %v1980_v55 = vld [vmem:[#allocation3 + $0x3b10] sm:$0xff]  ;;  %2587 = vmatpush.msrb.mxu2 %v1724_v54  ;;  %v733_v54 = vld [vmem:[#allocation3 + $0x1418] sm:$0xff] }
 0x119   :  { %v1196_v56 = vld [vmem:[#allocation3 + $0x2290] sm:$0xff]  ;;  %2607 = vmatpush.msrb.mxu3 %v1980_v55  ;;  %v989_v55 = vld [vmem:[#allocation3 + $0x1c18] sm:$0xff] }
 0x11a   :  { %v1452_v57 = vld [vmem:[#allocation3 + $0x2a90] sm:$0xff]  ;;  %2548 = vmatpush.msrb.mxu0 %v1196_v56  ;;  %v205_v56 = vld [vmem:[#allocation3 + $0x398] sm:$0xff] }
 0x11b   :  { %v1708_v58 = vld [vmem:[#allocation3 + $0x3290] sm:$0xff]  ;;  %2568 = vmatpush.msrb.mxu1 %v1452_v57  ;;  %v461_v57 = vld [vmem:[#allocation3 + $0xb98] sm:$0xff] }
 0x11c   :  { %v1964_v59 = vld [vmem:[#allocation3 + $0x3a90] sm:$0xff]  ;;  %2588 = vmatpush.msrb.mxu2 %v1708_v58  ;;  %v717_v58 = vld [vmem:[#allocation3 + $0x1398] sm:$0xff] }
 0x11d   :  { %v1180_v61 = vld [vmem:[#allocation3 + $0x2210] sm:$0xff]  ;;  %2608 = vmatpush.msrb.mxu3 %v1964_v59  ;;  %v973_v59 = vld [vmem:[#allocation3 + $0x1b98] sm:$0xff] }
 0x11e   :  { %v1436_v62 = vld [vmem:[#allocation3 + $0x2a10] sm:$0xff]  ;;  %2549 = vmatpush.msrb.mxu0 %v1180_v61  ;;  %v189_v61 = vld [vmem:[#allocation3 + $0x318] sm:$0xff] }
 0x11f   :  { %v1692_v63 = vld [vmem:[#allocation3 + $0x3210] sm:$0xff]  ;;  %2569 = vmatpush.msrb.mxu1 %v1436_v62  ;;  %v445_v62 = vld [vmem:[#allocation3 + $0xb18] sm:$0xff] }
 0x120   :  { %v1948_v0 = vld [vmem:[#allocation3 + $0x3a10] sm:$0xff]  ;;  %2589 = vmatpush.msrb.mxu2 %v1692_v63  ;;  %v701_v63 = vld [vmem:[#allocation3 + $0x1318] sm:$0xff] }
 0x121   :  { %v1164_v4 = vld [vmem:[#allocation3 + $0x2190] sm:$0xff]  ;;  %2609 = vmatpush.msrb.mxu3 %v1948_v0  ;;  %v957_v0 = vld [vmem:[#allocation3 + $0x1b18] sm:$0xff] }
 0x122   :  { %v1420_v5 = vld [vmem:[#allocation3 + $0x2990] sm:$0xff]  ;;  %2550 = vmatpush.msrb.mxu0 %v1164_v4  ;;  %v173_v4 = vld [vmem:[#allocation3 + $0x298] sm:$0xff] }
 0x123   :  { %v1676_v6 = vld [vmem:[#allocation3 + $0x3190] sm:$0xff]  ;;  %2570 = vmatpush.msrb.mxu1 %v1420_v5  ;;  %v429_v5 = vld [vmem:[#allocation3 + $0xa98] sm:$0xff] }
 0x124   :  { %v1932_v7 = vld [vmem:[#allocation3 + $0x3990] sm:$0xff]  ;;  %2590 = vmatpush.msrb.mxu2 %v1676_v6  ;;  %v685_v6 = vld [vmem:[#allocation3 + $0x1298] sm:$0xff] }
 0x125   :  { %v1148_v8 = vld [vmem:[#allocation3 + $0x2110] sm:$0xff]  ;;  %2610 = vmatpush.msrb.mxu3 %v1932_v7  ;;  %v941_v7 = vld [vmem:[#allocation3 + $0x1a98] sm:$0xff] }
 0x126   :  { %v1404_v9 = vld [vmem:[#allocation3 + $0x2910] sm:$0xff]  ;;  %2551 = vmatpush.msrb.mxu0 %v1148_v8  ;;  %v157_v8 = vld [vmem:[#allocation3 + $0x218] sm:$0xff] }
 0x127   :  { %v1660_v10 = vld [vmem:[#allocation3 + $0x3110] sm:$0xff]  ;;  %2571 = vmatpush.msrb.mxu1 %v1404_v9  ;;  %v413_v9 = vld [vmem:[#allocation3 + $0xa18] sm:$0xff] }
 0x128   :  { %v1916_v11 = vld [vmem:[#allocation3 + $0x3910] sm:$0xff]  ;;  %2591 = vmatpush.msrb.mxu2 %v1660_v10  ;;  %v669_v10 = vld [vmem:[#allocation3 + $0x1218] sm:$0xff] }
 0x129   :  { %v1132_v12 = vld [vmem:[#allocation3 + $0x2090] sm:$0xff]  ;;  %2611 = vmatpush.msrb.mxu3 %v1916_v11  ;;  %v925_v11 = vld [vmem:[#allocation3 + $0x1a18] sm:$0xff] }
 0x12a   :  { %v1388_v13 = vld [vmem:[#allocation3 + $0x2890] sm:$0xff]  ;;  %2552 = vmatpush.msrb.mxu0 %v1132_v12  ;;  %v141_v12 = vld [vmem:[#allocation3 + $0x198] sm:$0xff] }
 0x12b   :  { %v1644_v14 = vld [vmem:[#allocation3 + $0x3090] sm:$0xff]  ;;  %2572 = vmatpush.msrb.mxu1 %v1388_v13  ;;  %v397_v13 = vld [vmem:[#allocation3 + $0x998] sm:$0xff] }
 0x12c   :  { %v1900_v15 = vld [vmem:[#allocation3 + $0x3890] sm:$0xff]  ;;  %2592 = vmatpush.msrb.mxu2 %v1644_v14  ;;  %v653_v14 = vld [vmem:[#allocation3 + $0x1198] sm:$0xff] }
 0x12d   :  { %v1116_v17 = vld [vmem:[#allocation3 + $0x2010] sm:$0xff]  ;;  %2612 = vmatpush.msrb.mxu3 %v1900_v15  ;;  %v909_v15 = vld [vmem:[#allocation3 + $0x1998] sm:$0xff] }
 0x12e   :  { %v1372_v18 = vld [vmem:[#allocation3 + $0x2810] sm:$0xff]  ;;  %2553 = vmatpush.msrb.mxu0 %v1116_v17  ;;  %v125_v17 = vld [vmem:[#allocation3 + $0x118] sm:$0xff] }
 0x12f   :  { %v1628_v19 = vld [vmem:[#allocation3 + $0x3010] sm:$0xff]  ;;  %2573 = vmatpush.msrb.mxu1 %v1372_v18  ;;  %2554 = vmatmul.f32.vlgmr.msrb.gmra.mxu0 %v5607_v16  ;;  %v381_v18 = vld [vmem:[#allocation3 + $0x918] sm:$0xff] }
 0x130   :  { %v1884_v20 = vld [vmem:[#allocation3 + $0x3810] sm:$0xff]  ;;  %2593 = vmatpush.msrb.mxu2 %v1628_v19  ;;  %2618 = vmatpush.msra.mxu0 %v333_v24  ;;  %v637_v19 = vld [vmem:[#allocation3 + $0x1118] sm:$0xff] }
 0x131   :  { %v5577_v23 = vld [vmem:[%s6274_s0 + $0x10] sm:$0xff]  ;;  %2613 = vmatpush.msrb.mxu3 %v1884_v20  ;;  %2638 = vmatpush.msra.mxu1 %v589_v25  ;;  %v893_v20 = vld [vmem:[#allocation3 + $0x1918] sm:$0xff] }
 0x132   :  { %2514 = vmatmul.f32.vlgmr.msra.gmra.mxu2 %v5577_v23  ;;  %2619 = vmatpush.msra.mxu0 %v317_v31  ;;  %v5601_v40 = vld [vmem:[%s6274_s0 + $0x30] sm:$0xff]  ;;  %v109_v24 = vld [vmem:[#allocation3 + $0x98] sm:$0xff] }
 0x133   :  { %2658 = vmatpush.msra.mxu2 %v845_v28  ;;  %2678 = vmatpush.msra.mxu3 %v1101_v29  ;;  %v365_v25 = vld [vmem:[#allocation3 + $0x898] sm:$0xff] }
 0x134   :  { %2639 = vmatpush.msra.mxu1 %v573_v32  ;;  %2620 = vmatpush.msra.mxu0 %v301_v34  ;;  %v621_v28 = vld [vmem:[#allocation3 + $0x1098] sm:$0xff] }
 0x135   :  { %2659 = vmatpush.msra.mxu2 %v829_v33  ;;  %2679 = vmatpush.msra.mxu3 %v1085_v1  ;;  %v877_v29 = vld [vmem:[#allocation3 + $0x1898] sm:$0xff] }
 0x136   :  { %2640 = vmatpush.msra.mxu1 %v557_v2  ;;  %2621 = vmatpush.msra.mxu0 %v285_v36  ;;  %v93_v31 = vld [vmem:[#allocation3 + $0x18] sm:$0xff] }
 0x137   :  { %2660 = vmatpush.msra.mxu2 %v813_v3  ;;  %2680 = vmatpush.msra.mxu3 %v1069_v35  ;;  %v349_v32 = vld [vmem:[#allocation3 + $0x818] sm:$0xff] }
 0x138   :  { %2641 = vmatpush.msra.mxu1 %v541_v37  ;;  %2614 = vmatmul.f32.vlgmr.msrb.gmra.mxu3 %v5613_v45  ;;  %v605_v33 = vld [vmem:[#allocation3 + $0x1018] sm:$0xff] }
 0x139   :  { %2661 = vmatpush.msra.mxu2 %v797_v38  ;;  %2681 = vmatpush.msra.mxu3 %v1053_v39  ;;  %v861_v1 = vld [vmem:[#allocation3 + $0x1818] sm:$0xff] }
 0x13a   :  { %2594 = vmatmul.f32.vlgmr.msrb.gmra.mxu2 %v5601_v40  ;;  %2622 = vmatpush.msra.mxu0 %v269_v41  ;;  %v1357_v34 = vld [vmem:[#allocation3 + $0x2798] sm:$0xff] }
 0x13b   :  { %2642 = vmatpush.msra.mxu1 %v525_v42  ;;  %2662 = vmatpush.msra.mxu2 %v781_v43  ;;  %v1613_v2 = vld [vmem:[#allocation3 + $0x2f98] sm:$0xff] }
 0x13c   :  { %2682 = vmatpush.msra.mxu3 %v1037_v44  ;;  %2574 = vmatmul.f32.vlgmr.msrb.gmra.mxu1 %v5619_v48  ;;  %v1869_v3 = vld [vmem:[#allocation3 + $0x3798] sm:$0xff] }
 0x13d   :  { %2623 = vmatpush.msra.mxu0 %v253_v46  ;;  %2643 = vmatpush.msra.mxu1 %v509_v21  ;;  %v2125_v35 = vld [vmem:[#allocation3 + $0x3f98] sm:$0xff] }
 0x13e   :  { %2663 = vmatpush.msra.mxu2 %v765_v22  ;;  %2683 = vmatpush.msra.mxu3 %v1021_v47  ;;  %v1341_v36 = vld [vmem:[#allocation3 + $0x2718] sm:$0xff] }
 0x13f   :  { %2624 = vmatpush.msra.mxu0 %v237_v49  ;;  %2644 = vmatpush.msra.mxu1 %v493_v50  ;;  %v1597_v37 = vld [vmem:[#allocation3 + $0x2f18] sm:$0xff] }
 0x140   :  { %2664 = vmatpush.msra.mxu2 %v749_v27  ;;  %2684 = vmatpush.msra.mxu3 %v1005_v51  ;;  %v1853_v38 = vld [vmem:[#allocation3 + $0x3718] sm:$0xff] }
 0x141   :  { %2625 = vmatpush.msra.mxu0 %v221_v52  ;;  %2645 = vmatpush.msra.mxu1 %v477_v53  ;;  %v2109_v39 = vld [vmem:[#allocation3 + $0x3f18] sm:$0xff] }
 0x142   :  { %2665 = vmatpush.msra.mxu2 %v733_v54  ;;  %2685 = vmatpush.msra.mxu3 %v989_v55  ;;  %v1325_v41 = vld [vmem:[#allocation3 + $0x2698] sm:$0xff] }
 0x143   :  { %2626 = vmatpush.msra.mxu0 %v205_v56  ;;  %2646 = vmatpush.msra.mxu1 %v461_v57  ;;  %v1581_v42 = vld [vmem:[#allocation3 + $0x2e98] sm:$0xff] }
 0x144   :  { %2666 = vmatpush.msra.mxu2 %v717_v58  ;;  %2686 = vmatpush.msra.mxu3 %v973_v59  ;;  %v1837_v43 = vld [vmem:[#allocation3 + $0x3698] sm:$0xff] }
 0x145   :  { %2627 = vmatpush.msra.mxu0 %v189_v61  ;;  %2647 = vmatpush.msra.mxu1 %v445_v62  ;;  %v2093_v44 = vld [vmem:[#allocation3 + $0x3e98] sm:$0xff] }
 0x146   :  { %2667 = vmatpush.msra.mxu2 %v701_v63  ;;  %2687 = vmatpush.msra.mxu3 %v957_v0  ;;  %v1309_v46 = vld [vmem:[#allocation3 + $0x2618] sm:$0xff] }
 0x147   :  { %2628 = vmatpush.msra.mxu0 %v173_v4  ;;  %2648 = vmatpush.msra.mxu1 %v429_v5  ;;  %v1565_v21 = vld [vmem:[#allocation3 + $0x2e18] sm:$0xff] }
 0x148   :  { %2668 = vmatpush.msra.mxu2 %v685_v6  ;;  %2688 = vmatpush.msra.mxu3 %v941_v7  ;;  %v1821_v22 = vld [vmem:[#allocation3 + $0x3618] sm:$0xff] }
 0x149   :  { %2629 = vmatpush.msra.mxu0 %v157_v8  ;;  %2649 = vmatpush.msra.mxu1 %v413_v9  ;;  %v2077_v47 = vld [vmem:[#allocation3 + $0x3e18] sm:$0xff] }
 0x14a   :  { %2669 = vmatpush.msra.mxu2 %v669_v10  ;;  %2689 = vmatpush.msra.mxu3 %v925_v11  ;;  %v1293_v49 = vld [vmem:[#allocation3 + $0x2598] sm:$0xff] }
 0x14b   :  { %2630 = vmatpush.msra.mxu0 %v141_v12  ;;  %2650 = vmatpush.msra.mxu1 %v397_v13  ;;  %v1549_v50 = vld [vmem:[#allocation3 + $0x2d98] sm:$0xff] }
 0x14c   :  { %2670 = vmatpush.msra.mxu2 %v653_v14  ;;  %2690 = vmatpush.msra.mxu3 %v909_v15  ;;  %v1805_v27 = vld [vmem:[#allocation3 + $0x3598] sm:$0xff] }
 0x14d   :  { %2631 = vmatpush.msra.mxu0 %v125_v17  ;;  %2651 = vmatpush.msra.mxu1 %v381_v18  ;;  %v2061_v51 = vld [vmem:[#allocation3 + $0x3d98] sm:$0xff] }
 0x14e   :  { %2671 = vmatpush.msra.mxu2 %v637_v19  ;;  %2691 = vmatpush.msra.mxu3 %v893_v20  ;;  %v1277_v52 = vld [vmem:[#allocation3 + $0x2518] sm:$0xff] }
 0x14f   :  { %2632 = vmatpush.msra.mxu0 %v109_v24  ;;  %2652 = vmatpush.msra.mxu1 %v365_v25  ;;  %v1533_v53 = vld [vmem:[#allocation3 + $0x2d18] sm:$0xff] }
 0x150   :  { %2672 = vmatpush.msra.mxu2 %v621_v28  ;;  %2692 = vmatpush.msra.mxu3 %v877_v29  ;;  %v1789_v54 = vld [vmem:[#allocation3 + $0x3518] sm:$0xff] }
 0x151   :  { %2633 = vmatpush.msra.mxu0 %v93_v31  ;;  %2653 = vmatpush.msra.mxu1 %v349_v32  ;;  %v2045_v55 = vld [vmem:[#allocation3 + $0x3d18] sm:$0xff] }
 0x152   :  { %2673 = vmatpush.msra.mxu2 %v605_v33  ;;  %2693 = vmatpush.msra.mxu3 %v861_v1  ;;  %v1261_v56 = vld [vmem:[#allocation3 + $0x2498] sm:$0xff] }
 0x153   :  { %2698 = vmatpush.msrb.mxu0 %v1357_v34  ;;  %2718 = vmatpush.msrb.mxu1 %v1613_v2  ;;  %v1517_v57 = vld [vmem:[#allocation3 + $0x2c98] sm:$0xff] }
 0x154   :  { %2738 = vmatpush.msrb.mxu2 %v1869_v3  ;;  %2758 = vmatpush.msrb.mxu3 %v2125_v35  ;;  %v1773_v58 = vld [vmem:[#allocation3 + $0x3498] sm:$0xff] }
 0x155   :  { %2699 = vmatpush.msrb.mxu0 %v1341_v36  ;;  %2719 = vmatpush.msrb.mxu1 %v1597_v37  ;;  %v2029_v59 = vld [vmem:[#allocation3 + $0x3c98] sm:$0xff] }
 0x156   :  { %2739 = vmatpush.msrb.mxu2 %v1853_v38  ;;  %2759 = vmatpush.msrb.mxu3 %v2109_v39  ;;  %v1245_v61 = vld [vmem:[#allocation3 + $0x2418] sm:$0xff] }
 0x157   :  { %2700 = vmatpush.msrb.mxu0 %v1325_v41  ;;  %2720 = vmatpush.msrb.mxu1 %v1581_v42  ;;  %v1501_v62 = vld [vmem:[#allocation3 + $0x2c18] sm:$0xff]  ;;  %v334_v41 = vld [vmem:[#allocation3 + $0x7a0] sm:$0xff] }
 0x158   :  { %2740 = vmatpush.msrb.mxu2 %v1837_v43  ;;  %2760 = vmatpush.msrb.mxu3 %v2093_v44  ;;  %v1757_v63 = vld [vmem:[#allocation3 + $0x3418] sm:$0xff]  ;;  %v590_v42 = vld [vmem:[#allocation3 + $0xfa0] sm:$0xff] }
 0x159   :  { %2701 = vmatpush.msrb.mxu0 %v1309_v46  ;;  %2721 = vmatpush.msrb.mxu1 %v1565_v21  ;;  %v2013_v0 = vld [vmem:[#allocation3 + $0x3c18] sm:$0xff]  ;;  %v846_v43 = vld [vmem:[#allocation3 + $0x17a0] sm:$0xff] }
 0x15a   :  { %2741 = vmatpush.msrb.mxu2 %v1821_v22  ;;  %2761 = vmatpush.msrb.mxu3 %v2077_v47  ;;  %v1229_v4 = vld [vmem:[#allocation3 + $0x2398] sm:$0xff]  ;;  %v1102_v44 = vld [vmem:[#allocation3 + $0x1fa0] sm:$0xff] }
 0x15b   :  { %2702 = vmatpush.msrb.mxu0 %v1293_v49  ;;  %2722 = vmatpush.msrb.mxu1 %v1549_v50  ;;  %v1485_v5 = vld [vmem:[#allocation3 + $0x2b98] sm:$0xff]  ;;  %v318_v46 = vld [vmem:[#allocation3 + $0x720] sm:$0xff] }
 0x15c   :  { %2742 = vmatpush.msrb.mxu2 %v1805_v27  ;;  %2762 = vmatpush.msrb.mxu3 %v2061_v51  ;;  %v1741_v6 = vld [vmem:[#allocation3 + $0x3398] sm:$0xff]  ;;  %v574_v21 = vld [vmem:[#allocation3 + $0xf20] sm:$0xff] }
 0x15d   :  { %2703 = vmatpush.msrb.mxu0 %v1277_v52  ;;  %2723 = vmatpush.msrb.mxu1 %v1533_v53  ;;  %v1997_v7 = vld [vmem:[#allocation3 + $0x3b98] sm:$0xff]  ;;  %v830_v22 = vld [vmem:[#allocation3 + $0x1720] sm:$0xff] }
 0x15e   :  { %2743 = vmatpush.msrb.mxu2 %v1789_v54  ;;  %2763 = vmatpush.msrb.mxu3 %v2045_v55  ;;  %v1213_v8 = vld [vmem:[#allocation3 + $0x2318] sm:$0xff]  ;;  %v302_v47 = vld [vmem:[#allocation3 + $0x6a0] sm:$0xff] }
 0x15f   :  { %2704 = vmatpush.msrb.mxu0 %v1261_v56  ;;  %2724 = vmatpush.msrb.mxu1 %v1517_v57  ;;  %v1469_v9 = vld [vmem:[#allocation3 + $0x2b18] sm:$0xff]  ;;  %v558_v49 = vld [vmem:[#allocation3 + $0xea0] sm:$0xff] }
 0x160   :  { %2744 = vmatpush.msrb.mxu2 %v1773_v58  ;;  %2764 = vmatpush.msrb.mxu3 %v2029_v59  ;;  %v1725_v10 = vld [vmem:[#allocation3 + $0x3318] sm:$0xff]  ;;  %v814_v50 = vld [vmem:[#allocation3 + $0x16a0] sm:$0xff] }
 0x161   :  { %2705 = vmatpush.msrb.mxu0 %v1245_v61  ;;  %2725 = vmatpush.msrb.mxu1 %v1501_v62  ;;  %v1981_v11 = vld [vmem:[#allocation3 + $0x3b18] sm:$0xff]  ;;  %v286_v27 = vld [vmem:[#allocation3 + $0x620] sm:$0xff] }
 0x162   :  { %2745 = vmatpush.msrb.mxu2 %v1757_v63  ;;  %2765 = vmatpush.msrb.mxu3 %v2013_v0  ;;  %v1197_v12 = vld [vmem:[#allocation3 + $0x2298] sm:$0xff]  ;;  %v1054_v51 = vld [vmem:[#allocation3 + $0x1e20] sm:$0xff] }
 0x163   :  { %2706 = vmatpush.msrb.mxu0 %v1229_v4  ;;  %2726 = vmatpush.msrb.mxu1 %v1485_v5  ;;  %v1453_v13 = vld [vmem:[#allocation3 + $0x2a98] sm:$0xff]  ;;  %v270_v52 = vld [vmem:[#allocation3 + $0x5a0] sm:$0xff] }
 0x164   :  { %2746 = vmatpush.msrb.mxu2 %v1741_v6  ;;  %2766 = vmatpush.msrb.mxu3 %v1997_v7  ;;  %v1709_v14 = vld [vmem:[#allocation3 + $0x3298] sm:$0xff]  ;;  %v526_v53 = vld [vmem:[#allocation3 + $0xda0] sm:$0xff] }
 0x165   :  { %2707 = vmatpush.msrb.mxu0 %v1213_v8  ;;  %2727 = vmatpush.msrb.mxu1 %v1469_v9  ;;  %v1965_v15 = vld [vmem:[#allocation3 + $0x3a98] sm:$0xff]  ;;  %v782_v54 = vld [vmem:[#allocation3 + $0x15a0] sm:$0xff] }
 0x166   :  { %2747 = vmatpush.msrb.mxu2 %v1725_v10  ;;  %2767 = vmatpush.msrb.mxu3 %v1981_v11  ;;  %v1181_v17 = vld [vmem:[#allocation3 + $0x2218] sm:$0xff]  ;;  %v1038_v55 = vld [vmem:[#allocation3 + $0x1da0] sm:$0xff] }
 0x167   :  { %v1437_v18 = vld [vmem:[#allocation3 + $0x2a18] sm:$0xff]  ;;  %2708 = vmatpush.msrb.mxu0 %v1197_v12  ;;  %2728 = vmatpush.msrb.mxu1 %v1453_v13  ;;  %v254_v56 = vld [vmem:[#allocation3 + $0x520] sm:$0xff] }
 0x168   :  { %v1693_v19 = vld [vmem:[#allocation3 + $0x3218] sm:$0xff]  ;;  %2748 = vmatpush.msrb.mxu2 %v1709_v14  ;;  %2768 = vmatpush.msrb.mxu3 %v1965_v15  ;;  %v510_v57 = vld [vmem:[#allocation3 + $0xd20] sm:$0xff] }
 0x169   :  { %v1949_v20 = vld [vmem:[#allocation3 + $0x3a18] sm:$0xff]  ;;  %2709 = vmatpush.msrb.mxu0 %v1181_v17  ;;  %2729 = vmatpush.msrb.mxu1 %v1437_v18  ;;  %v766_v58 = vld [vmem:[#allocation3 + $0x1520] sm:$0xff] }
 0x16a   :  { %v1165_v24 = vld [vmem:[#allocation3 + $0x2198] sm:$0xff]  ;;  %2749 = vmatpush.msrb.mxu2 %v1693_v19  ;;  %2769 = vmatpush.msrb.mxu3 %v1949_v20  ;;  %v1022_v59 = vld [vmem:[#allocation3 + $0x1d20] sm:$0xff] }
 0x16b   :  { %v1421_v25 = vld [vmem:[#allocation3 + $0x2998] sm:$0xff]  ;;  %2710 = vmatpush.msrb.mxu0 %v1165_v24  ;;  %2674 = vmatmul.f32.vlgmr.msra.gmra.mxu2 %v5577_v23  ;;  %v1086_v23 = vld [vmem:[#allocation3 + $0x1f20] sm:$0xff] }
 0x16c   :  { %v1677_v28 = vld [vmem:[#allocation3 + $0x3198] sm:$0xff]  ;;  %2730 = vmatpush.msrb.mxu1 %v1421_v25  ;;  %2634 = vmatmul.f32.vlgmr.msra.gmra.mxu0 %v5583_v26  ;;  %v1070_v26 = vld [vmem:[#allocation3 + $0x1ea0] sm:$0xff] }
 0x16d   :  { %v1933_v29 = vld [vmem:[#allocation3 + $0x3998] sm:$0xff]  ;;  %2750 = vmatpush.msrb.mxu2 %v1677_v28  ;;  %2654 = vmatmul.f32.vlgmr.msra.gmra.mxu1 %v5589_v30  ;;  %v542_v30 = vld [vmem:[#allocation3 + $0xe20] sm:$0xff] }
 0x16e   :  { %v1149_v31 = vld [vmem:[#allocation3 + $0x2118] sm:$0xff]  ;;  %2770 = vmatpush.msrb.mxu3 %v1933_v29  ;;  %v494_v61 = vld [vmem:[#allocation3 + $0xca0] sm:$0xff] }
 0x16f   :  { %v1405_v32 = vld [vmem:[#allocation3 + $0x2918] sm:$0xff]  ;;  %2711 = vmatpush.msrb.mxu0 %v1149_v31  ;;  %2694 = vmatmul.f32.vlgmr.msra.gmra.mxu3 %v5595_v60  ;;  %v798_v60 = vld [vmem:[#allocation3 + $0x1620] sm:$0xff] }
 0x170   :  { %v1661_v33 = vld [vmem:[#allocation3 + $0x3118] sm:$0xff]  ;;  %2731 = vmatpush.msrb.mxu1 %v1405_v32  ;;  %v750_v62 = vld [vmem:[#allocation3 + $0x14a0] sm:$0xff] }
 0x171   :  { %v1917_v1 = vld [vmem:[#allocation3 + $0x3918] sm:$0xff]  ;;  %2751 = vmatpush.msrb.mxu2 %v1661_v33  ;;  %v1006_v63 = vld [vmem:[#allocation3 + $0x1ca0] sm:$0xff] }
 0x172   :  { %v1133_v34 = vld [vmem:[#allocation3 + $0x2098] sm:$0xff]  ;;  %2771 = vmatpush.msrb.mxu3 %v1917_v1  ;;  %v734_v0 = vld [vmem:[#allocation3 + $0x1420] sm:$0xff] }
 0x173   :  { %v1389_v2 = vld [vmem:[#allocation3 + $0x2898] sm:$0xff]  ;;  %2712 = vmatpush.msrb.mxu0 %v1133_v34  ;;  %v990_v4 = vld [vmem:[#allocation3 + $0x1c20] sm:$0xff] }
 0x174   :  { %v1645_v3 = vld [vmem:[#allocation3 + $0x3098] sm:$0xff]  ;;  %2732 = vmatpush.msrb.mxu1 %v1389_v2  ;;  %v206_v5 = vld [vmem:[#allocation3 + $0x3a0] sm:$0xff] }
 0x175   :  { %v1901_v35 = vld [vmem:[#allocation3 + $0x3898] sm:$0xff]  ;;  %2752 = vmatpush.msrb.mxu2 %v1645_v3  ;;  %v462_v6 = vld [vmem:[#allocation3 + $0xba0] sm:$0xff] }
 0x176   :  { %v1117_v36 = vld [vmem:[#allocation3 + $0x2018] sm:$0xff]  ;;  %2772 = vmatpush.msrb.mxu3 %v1901_v35  ;;  %v974_v7 = vld [vmem:[#allocation3 + $0x1ba0] sm:$0xff] }
 0x177   :  { %v1373_v37 = vld [vmem:[#allocation3 + $0x2818] sm:$0xff]  ;;  %2713 = vmatpush.msrb.mxu0 %v1117_v36  ;;  %v190_v8 = vld [vmem:[#allocation3 + $0x320] sm:$0xff] }
 0x178   :  { %v1629_v38 = vld [vmem:[#allocation3 + $0x3018] sm:$0xff]  ;;  %2733 = vmatpush.msrb.mxu1 %v1373_v37  ;;  %2714 = vmatmul.f32.vlgmr.msrb.gmra.mxu0 %v5607_v16  ;;  %v222_v16 = vld [vmem:[#allocation3 + $0x420] sm:$0xff] }
 0x179   :  { %v1885_v39 = vld [vmem:[#allocation3 + $0x3818] sm:$0xff]  ;;  %2753 = vmatpush.msrb.mxu2 %v1629_v38  ;;  %2778 = vmatpush.msra.mxu0 %v334_v41  ;;  %v446_v9 = vld [vmem:[#allocation3 + $0xb20] sm:$0xff] }
 0x17a   :  { %2773 = vmatpush.msrb.mxu3 %v1885_v39  ;;  %2798 = vmatpush.msra.mxu1 %v590_v42  ;;  %v702_v10 = vld [vmem:[#allocation3 + $0x1320] sm:$0xff] }
 0x17b   :  { %2818 = vmatpush.msra.mxu2 %v846_v43  ;;  %2779 = vmatpush.msra.mxu0 %v318_v46  ;;  %v958_v11 = vld [vmem:[#allocation3 + $0x1b20] sm:$0xff] }
 0x17c   :  { %2838 = vmatpush.msra.mxu3 %v1102_v44  ;;  %2799 = vmatpush.msra.mxu1 %v574_v21  ;;  %v174_v12 = vld [vmem:[#allocation3 + $0x2a0] sm:$0xff] }
 0x17d   :  { %2819 = vmatpush.msra.mxu2 %v830_v22  ;;  %2780 = vmatpush.msra.mxu0 %v302_v47  ;;  %v430_v13 = vld [vmem:[#allocation3 + $0xaa0] sm:$0xff] }
 0x17e   :  { %2839 = vmatpush.msra.mxu3 %v1086_v23  ;;  %2800 = vmatpush.msra.mxu1 %v558_v49  ;;  %v686_v14 = vld [vmem:[#allocation3 + $0x12a0] sm:$0xff] }
 0x17f   :  { %2820 = vmatpush.msra.mxu2 %v814_v50  ;;  %2781 = vmatpush.msra.mxu0 %v286_v27  ;;  %v942_v15 = vld [vmem:[#allocation3 + $0x1aa0] sm:$0xff] }
 0x180   :  { %2840 = vmatpush.msra.mxu3 %v1070_v26  ;;  %2754 = vmatmul.f32.vlgmr.msrb.gmra.mxu2 %v5601_v40  ;;  %v238_v40 = vld [vmem:[#allocation3 + $0x4a0] sm:$0xff] }
 0x181   :  { %2801 = vmatpush.msra.mxu1 %v542_v30  ;;  %2821 = vmatpush.msra.mxu2 %v798_v60  ;;  %v158_v17 = vld [vmem:[#allocation3 + $0x220] sm:$0xff] }
 0x182   :  { %2841 = vmatpush.msra.mxu3 %v1054_v51  ;;  %2782 = vmatpush.msra.mxu0 %v270_v52  ;;  %v414_v18 = vld [vmem:[#allocation3 + $0xa20] sm:$0xff] }
 0x183   :  { %2774 = vmatmul.f32.vlgmr.msrb.gmra.mxu3 %v5613_v45  ;;  %2802 = vmatpush.msra.mxu1 %v526_v53  ;;  %v478_v45 = vld [vmem:[#allocation3 + $0xc20] sm:$0xff] }
 0x184   :  { %2822 = vmatpush.msra.mxu2 %v782_v54  ;;  %2842 = vmatpush.msra.mxu3 %v1038_v55  ;;  %v670_v19 = vld [vmem:[#allocation3 + $0x1220] sm:$0xff] }
 0x185   :  { %2734 = vmatmul.f32.vlgmr.msrb.gmra.mxu1 %v5619_v48  ;;  %2783 = vmatpush.msra.mxu0 %v254_v56  ;;  %v718_v48 = vld [vmem:[#allocation3 + $0x13a0] sm:$0xff] }
 0x186   :  { %2803 = vmatpush.msra.mxu1 %v510_v57  ;;  %2823 = vmatpush.msra.mxu2 %v766_v58  ;;  %v926_v20 = vld [vmem:[#allocation3 + $0x1a20] sm:$0xff] }
 0x187   :  { %2843 = vmatpush.msra.mxu3 %v1022_v59  ;;  %2784 = vmatpush.msra.mxu0 %v238_v40  ;;  %v142_v24 = vld [vmem:[#allocation3 + $0x1a0] sm:$0xff] }
 0x188   :  { %2804 = vmatpush.msra.mxu1 %v494_v61  ;;  %2824 = vmatpush.msra.mxu2 %v750_v62  ;;  %v398_v25 = vld [vmem:[#allocation3 + $0x9a0] sm:$0xff] }
 0x189   :  { %2844 = vmatpush.msra.mxu3 %v1006_v63  ;;  %2785 = vmatpush.msra.mxu0 %v222_v16  ;;  %v654_v28 = vld [vmem:[#allocation3 + $0x11a0] sm:$0xff] }
 0x18a   :  { %2805 = vmatpush.msra.mxu1 %v478_v45  ;;  %2825 = vmatpush.msra.mxu2 %v734_v0  ;;  %v910_v29 = vld [vmem:[#allocation3 + $0x19a0] sm:$0xff] }
 0x18b   :  { %2845 = vmatpush.msra.mxu3 %v990_v4  ;;  %2786 = vmatpush.msra.mxu0 %v206_v5  ;;  %v126_v31 = vld [vmem:[#allocation3 + $0x120] sm:$0xff] }
 0x18c   :  { %2806 = vmatpush.msra.mxu1 %v462_v6  ;;  %2826 = vmatpush.msra.mxu2 %v718_v48  ;;  %v382_v32 = vld [vmem:[#allocation3 + $0x920] sm:$0xff] }
 0x18d   :  { %2846 = vmatpush.msra.mxu3 %v974_v7  ;;  %2787 = vmatpush.msra.mxu0 %v190_v8  ;;  %v638_v33 = vld [vmem:[#allocation3 + $0x1120] sm:$0xff] }
 0x18e   :  { %2807 = vmatpush.msra.mxu1 %v446_v9  ;;  %2827 = vmatpush.msra.mxu2 %v702_v10  ;;  %v894_v1 = vld [vmem:[#allocation3 + $0x1920] sm:$0xff] }
 0x18f   :  { %2847 = vmatpush.msra.mxu3 %v958_v11  ;;  %2788 = vmatpush.msra.mxu0 %v174_v12  ;;  %v110_v34 = vld [vmem:[#allocation3 + $0xa0] sm:$0xff] }
 0x190   :  { %2808 = vmatpush.msra.mxu1 %v430_v13  ;;  %2828 = vmatpush.msra.mxu2 %v686_v14  ;;  %v366_v2 = vld [vmem:[#allocation3 + $0x8a0] sm:$0xff] }
 0x191   :  { %2848 = vmatpush.msra.mxu3 %v942_v15  ;;  %2789 = vmatpush.msra.mxu0 %v158_v17  ;;  %v622_v3 = vld [vmem:[#allocation3 + $0x10a0] sm:$0xff] }
 0x192   :  { %2809 = vmatpush.msra.mxu1 %v414_v18  ;;  %2829 = vmatpush.msra.mxu2 %v670_v19  ;;  %v878_v35 = vld [vmem:[#allocation3 + $0x18a0] sm:$0xff] }
 0x193   :  { %2849 = vmatpush.msra.mxu3 %v926_v20  ;;  %2790 = vmatpush.msra.mxu0 %v142_v24  ;;  %v94_v36 = vld [vmem:[#allocation3 + $0x20] sm:$0xff] }
 0x194   :  { %2810 = vmatpush.msra.mxu1 %v398_v25  ;;  %2830 = vmatpush.msra.mxu2 %v654_v28  ;;  %v350_v37 = vld [vmem:[#allocation3 + $0x820] sm:$0xff] }
 0x195   :  { %2850 = vmatpush.msra.mxu3 %v910_v29  ;;  %2791 = vmatpush.msra.mxu0 %v126_v31  ;;  %v606_v38 = vld [vmem:[#allocation3 + $0x1020] sm:$0xff] }
 0x196   :  { %2811 = vmatpush.msra.mxu1 %v382_v32  ;;  %2831 = vmatpush.msra.mxu2 %v638_v33  ;;  %v862_v39 = vld [vmem:[#allocation3 + $0x1820] sm:$0xff] }
 0x197   :  { %2851 = vmatpush.msra.mxu3 %v894_v1  ;;  %2792 = vmatpush.msra.mxu0 %v110_v34  ;;  %v1358_v41 = vld [vmem:[#allocation3 + $0x27a0] sm:$0xff] }
 0x198   :  { %2812 = vmatpush.msra.mxu1 %v366_v2  ;;  %2832 = vmatpush.msra.mxu2 %v622_v3  ;;  %v1614_v42 = vld [vmem:[#allocation3 + $0x2fa0] sm:$0xff] }
 0x199   :  { %2852 = vmatpush.msra.mxu3 %v878_v35  ;;  %2793 = vmatpush.msra.mxu0 %v94_v36  ;;  %v1870_v43 = vld [vmem:[#allocation3 + $0x37a0] sm:$0xff] }
 0x19a   :  { %2813 = vmatpush.msra.mxu1 %v350_v37  ;;  %v2126_v44 = vld [vmem:[#allocation3 + $0x3fa0] sm:$0xff]  ;;  %2833 = vmatpush.msra.mxu2 %v606_v38 }
 0x19b   :  { %2853 = vmatpush.msra.mxu3 %v862_v39  ;;  %v1342_v46 = vld [vmem:[#allocation3 + $0x2720] sm:$0xff]  ;;  %2858 = vmatpush.msrb.mxu0 %v1358_v41  ;;  %v5633_v41 = vld [vmem:[%s6274_s0 + $0x10] sm:$0xff] }
 0x19c   :  { %v1598_v21 = vld [vmem:[#allocation3 + $0x2f20] sm:$0xff]  ;;  %2878 = vmatpush.msrb.mxu1 %v1614_v42  ;;  %2898 = vmatpush.msrb.mxu2 %v1870_v43  ;;  %v335_v42 = vld [vmem:[#allocation3 + $0x7a8] sm:$0xff] }
 0x19d   :  { %v1854_v22 = vld [vmem:[#allocation3 + $0x3720] sm:$0xff]  ;;  %2918 = vmatpush.msrb.mxu3 %v2126_v44  ;;  %2859 = vmatpush.msrb.mxu0 %v1342_v46  ;;  %v591_v43 = vld [vmem:[#allocation3 + $0xfa8] sm:$0xff] }
 0x19e   :  { %v2110_v23 = vld [vmem:[#allocation3 + $0x3f20] sm:$0xff]  ;;  %2879 = vmatpush.msrb.mxu1 %v1598_v21  ;;  %2899 = vmatpush.msrb.mxu2 %v1854_v22  ;;  %v847_v46 = vld [vmem:[#allocation3 + $0x17a8] sm:$0xff] }
 0x19f   :  { %v1326_v47 = vld [vmem:[#allocation3 + $0x26a0] sm:$0xff]  ;;  %2919 = vmatpush.msrb.mxu3 %v2110_v23  ;;  %2834 = vmatmul.f32.vlgmr.msra.gmra.mxu2 %v5633_v41  ;;  %v1103_v21 = vld [vmem:[#allocation3 + $0x1fa8] sm:$0xff]  ;;  %v5651_v23 = vld [vmem:[%s6274_s0 + $0x18] sm:$0xff] }
 0x1a0   :  { %v1582_v49 = vld [vmem:[#allocation3 + $0x2ea0] sm:$0xff]  ;;  %2860 = vmatpush.msrb.mxu0 %v1326_v47  ;;  %v5645_v22 = vld [vmem:[%s6274_s0 + $0x8] sm:$0xff]  ;;  %2854 = vmatmul.f32.vlgmr.msra.gmra.mxu3 %v5651_v23 }
 0x1a1   :  { %v1838_v50 = vld [vmem:[#allocation3 + $0x36a0] sm:$0xff]  ;;  %2880 = vmatpush.msrb.mxu1 %v1582_v49  ;;  %v319_v47 = vld [vmem:[#allocation3 + $0x728] sm:$0xff] }
 0x1a2   :  { %v2094_v26 = vld [vmem:[#allocation3 + $0x3ea0] sm:$0xff]  ;;  %2900 = vmatpush.msrb.mxu2 %v1838_v50  ;;  %2814 = vmatmul.f32.vlgmr.msra.gmra.mxu1 %v5645_v22  ;;  %v575_v49 = vld [vmem:[#allocation3 + $0xf28] sm:$0xff] }
 0x1a3   :  { %v1310_v27 = vld [vmem:[#allocation3 + $0x2620] sm:$0xff]  ;;  %2920 = vmatpush.msrb.mxu3 %v2094_v26  ;;  %v831_v50 = vld [vmem:[#allocation3 + $0x1728] sm:$0xff] }
 0x1a4   :  { %v1566_v30 = vld [vmem:[#allocation3 + $0x2e20] sm:$0xff]  ;;  %2861 = vmatpush.msrb.mxu0 %v1310_v27  ;;  %v1087_v26 = vld [vmem:[#allocation3 + $0x1f28] sm:$0xff] }
 0x1a5   :  { %v1822_v60 = vld [vmem:[#allocation3 + $0x3620] sm:$0xff]  ;;  %2881 = vmatpush.msrb.mxu1 %v1566_v30  ;;  %v303_v27 = vld [vmem:[#allocation3 + $0x6a8] sm:$0xff] }
 0x1a6   :  { %v2078_v51 = vld [vmem:[#allocation3 + $0x3e20] sm:$0xff]  ;;  %2901 = vmatpush.msrb.mxu2 %v1822_v60  ;;  %v559_v30 = vld [vmem:[#allocation3 + $0xea8] sm:$0xff] }
 0x1a7   :  { %v1294_v52 = vld [vmem:[#allocation3 + $0x25a0] sm:$0xff]  ;;  %2921 = vmatpush.msrb.mxu3 %v2078_v51  ;;  %v815_v60 = vld [vmem:[#allocation3 + $0x16a8] sm:$0xff] }
 0x1a8   :  { %v1550_v53 = vld [vmem:[#allocation3 + $0x2da0] sm:$0xff]  ;;  %2862 = vmatpush.msrb.mxu0 %v1294_v52  ;;  %v1071_v51 = vld [vmem:[#allocation3 + $0x1ea8] sm:$0xff] }
 0x1a9   :  { %v1806_v54 = vld [vmem:[#allocation3 + $0x35a0] sm:$0xff]  ;;  %2882 = vmatpush.msrb.mxu1 %v1550_v53  ;;  %v287_v52 = vld [vmem:[#allocation3 + $0x628] sm:$0xff] }
 0x1aa   :  { %v2062_v55 = vld [vmem:[#allocation3 + $0x3da0] sm:$0xff]  ;;  %2902 = vmatpush.msrb.mxu2 %v1806_v54  ;;  %v543_v53 = vld [vmem:[#allocation3 + $0xe28] sm:$0xff] }
 0x1ab   :  { %v1278_v56 = vld [vmem:[#allocation3 + $0x2520] sm:$0xff]  ;;  %2922 = vmatpush.msrb.mxu3 %v2062_v55  ;;  %v799_v54 = vld [vmem:[#allocation3 + $0x1628] sm:$0xff] }
 0x1ac   :  { %v1534_v57 = vld [vmem:[#allocation3 + $0x2d20] sm:$0xff]  ;;  %2863 = vmatpush.msrb.mxu0 %v1278_v56  ;;  %v1055_v55 = vld [vmem:[#allocation3 + $0x1e28] sm:$0xff]  ;;  %v5657_v56 = vld [vmem:[%s6274_s0 + $0x30] sm:$0xff] }
 0x1ad   :  { %v1790_v58 = vld [vmem:[#allocation3 + $0x3520] sm:$0xff]  ;;  %2883 = vmatpush.msrb.mxu1 %v1534_v57  ;;  %v271_v57 = vld [vmem:[#allocation3 + $0x5a8] sm:$0xff] }
 0x1ae   :  { %v2046_v59 = vld [vmem:[#allocation3 + $0x3d20] sm:$0xff]  ;;  %2903 = vmatpush.msrb.mxu2 %v1790_v58  ;;  %v527_v58 = vld [vmem:[#allocation3 + $0xda8] sm:$0xff] }
 0x1af   :  { %v1262_v40 = vld [vmem:[#allocation3 + $0x24a0] sm:$0xff]  ;;  %2923 = vmatpush.msrb.mxu3 %v2046_v59  ;;  %v783_v59 = vld [vmem:[#allocation3 + $0x15a8] sm:$0xff] }
 0x1b0   :  { %v1518_v61 = vld [vmem:[#allocation3 + $0x2ca0] sm:$0xff]  ;;  %2864 = vmatpush.msrb.mxu0 %v1262_v40 }
 0x1b1   :  { %v1774_v62 = vld [vmem:[#allocation3 + $0x34a0] sm:$0xff]  ;;  %2884 = vmatpush.msrb.mxu1 %v1518_v61  ;;  %v1039_v61 = vld [vmem:[#allocation3 + $0x1da8] sm:$0xff] }
 0x1b2   :  { %v2030_v63 = vld [vmem:[#allocation3 + $0x3ca0] sm:$0xff]  ;;  %2904 = vmatpush.msrb.mxu2 %v1774_v62  ;;  %v5669_v62 = vld [vmem:[%s6274_s0 + $0x38] sm:$0xff] }
 0x1b3   :  { %v1246_v16 = vld [vmem:[#allocation3 + $0x2420] sm:$0xff]  ;;  %2924 = vmatpush.msrb.mxu3 %v2030_v63  ;;  %v255_v63 = vld [vmem:[#allocation3 + $0x528] sm:$0xff] }
 0x1b4   :  { %v1502_v45 = vld [vmem:[#allocation3 + $0x2c20] sm:$0xff]  ;;  %2865 = vmatpush.msrb.mxu0 %v1246_v16  ;;  %v511_v16 = vld [vmem:[#allocation3 + $0xd28] sm:$0xff] }
 0x1b5   :  { %v1758_v0 = vld [vmem:[#allocation3 + $0x3420] sm:$0xff]  ;;  %2885 = vmatpush.msrb.mxu1 %v1502_v45  ;;  %v767_v45 = vld [vmem:[#allocation3 + $0x1528] sm:$0xff] }
 0x1b6   :  { %v2014_v4 = vld [vmem:[#allocation3 + $0x3c20] sm:$0xff]  ;;  %2905 = vmatpush.msrb.mxu2 %v1758_v0  ;;  %v1023_v0 = vld [vmem:[#allocation3 + $0x1d28] sm:$0xff] }
 0x1b7   :  { %v1230_v5 = vld [vmem:[#allocation3 + $0x23a0] sm:$0xff]  ;;  %2925 = vmatpush.msrb.mxu3 %v2014_v4  ;;  %v5675_v4 = vld [vmem:[%s6274_s0 + $0x28] sm:$0xff] }
 0x1b8   :  { %v1486_v6 = vld [vmem:[#allocation3 + $0x2ba0] sm:$0xff]  ;;  %2866 = vmatpush.msrb.mxu0 %v1230_v5  ;;  %v239_v5 = vld [vmem:[#allocation3 + $0x4a8] sm:$0xff] }
 0x1b9   :  { %v1742_v48 = vld [vmem:[#allocation3 + $0x33a0] sm:$0xff]  ;;  %2886 = vmatpush.msrb.mxu1 %v1486_v6  ;;  %v495_v6 = vld [vmem:[#allocation3 + $0xca8] sm:$0xff] }
 0x1ba   :  { %v1998_v7 = vld [vmem:[#allocation3 + $0x3ba0] sm:$0xff]  ;;  %2906 = vmatpush.msrb.mxu2 %v1742_v48  ;;  %v751_v48 = vld [vmem:[#allocation3 + $0x14a8] sm:$0xff] }
 0x1bb   :  { %v1214_v8 = vld [vmem:[#allocation3 + $0x2320] sm:$0xff]  ;;  %2926 = vmatpush.msrb.mxu3 %v1998_v7  ;;  %v1007_v7 = vld [vmem:[#allocation3 + $0x1ca8] sm:$0xff] }
 0x1bc   :  { %v1470_v9 = vld [vmem:[#allocation3 + $0x2b20] sm:$0xff]  ;;  %2867 = vmatpush.msrb.mxu0 %v1214_v8  ;;  %v223_v8 = vld [vmem:[#allocation3 + $0x428] sm:$0xff] }
 0x1bd   :  { %v1726_v10 = vld [vmem:[#allocation3 + $0x3320] sm:$0xff]  ;;  %2887 = vmatpush.msrb.mxu1 %v1470_v9  ;;  %v479_v9 = vld [vmem:[#allocation3 + $0xc28] sm:$0xff] }
 0x1be   :  { %v1982_v11 = vld [vmem:[#allocation3 + $0x3b20] sm:$0xff]  ;;  %2907 = vmatpush.msrb.mxu2 %v1726_v10  ;;  %v735_v10 = vld [vmem:[#allocation3 + $0x1428] sm:$0xff] }
 0x1bf   :  { %v1198_v12 = vld [vmem:[#allocation3 + $0x22a0] sm:$0xff]  ;;  %2927 = vmatpush.msrb.mxu3 %v1982_v11  ;;  %v991_v11 = vld [vmem:[#allocation3 + $0x1c28] sm:$0xff] }
 0x1c0   :  { %v1454_v13 = vld [vmem:[#allocation3 + $0x2aa0] sm:$0xff]  ;;  %2868 = vmatpush.msrb.mxu0 %v1198_v12  ;;  %v207_v12 = vld [vmem:[#allocation3 + $0x3a8] sm:$0xff] }
 0x1c1   :  { %v1710_v14 = vld [vmem:[#allocation3 + $0x32a0] sm:$0xff]  ;;  %2888 = vmatpush.msrb.mxu1 %v1454_v13  ;;  %v463_v13 = vld [vmem:[#allocation3 + $0xba8] sm:$0xff] }
 0x1c2   :  { %v1966_v15 = vld [vmem:[#allocation3 + $0x3aa0] sm:$0xff]  ;;  %2908 = vmatpush.msrb.mxu2 %v1710_v14  ;;  %v719_v14 = vld [vmem:[#allocation3 + $0x13a8] sm:$0xff] }
 0x1c3   :  { %v1182_v17 = vld [vmem:[#allocation3 + $0x2220] sm:$0xff]  ;;  %2928 = vmatpush.msrb.mxu3 %v1966_v15  ;;  %v975_v15 = vld [vmem:[#allocation3 + $0x1ba8] sm:$0xff] }
 0x1c4   :  { %v1438_v18 = vld [vmem:[#allocation3 + $0x2a20] sm:$0xff]  ;;  %2869 = vmatpush.msrb.mxu0 %v1182_v17  ;;  %v191_v17 = vld [vmem:[#allocation3 + $0x328] sm:$0xff] }
 0x1c5   :  { %v1694_v19 = vld [vmem:[#allocation3 + $0x3220] sm:$0xff]  ;;  %2889 = vmatpush.msrb.mxu1 %v1438_v18  ;;  %v447_v18 = vld [vmem:[#allocation3 + $0xb28] sm:$0xff] }
 0x1c6   :  { %v1950_v20 = vld [vmem:[#allocation3 + $0x3a20] sm:$0xff]  ;;  %2909 = vmatpush.msrb.mxu2 %v1694_v19  ;;  %v703_v19 = vld [vmem:[#allocation3 + $0x1328] sm:$0xff] }
 0x1c7   :  { %v1166_v24 = vld [vmem:[#allocation3 + $0x21a0] sm:$0xff]  ;;  %2929 = vmatpush.msrb.mxu3 %v1950_v20  ;;  %v959_v20 = vld [vmem:[#allocation3 + $0x1b28] sm:$0xff] }
 0x1c8   :  { %v1422_v25 = vld [vmem:[#allocation3 + $0x29a0] sm:$0xff]  ;;  %2870 = vmatpush.msrb.mxu0 %v1166_v24  ;;  %v175_v24 = vld [vmem:[#allocation3 + $0x2a8] sm:$0xff] }
 0x1c9   :  { %v1678_v28 = vld [vmem:[#allocation3 + $0x31a0] sm:$0xff]  ;;  %2890 = vmatpush.msrb.mxu1 %v1422_v25  ;;  %v431_v25 = vld [vmem:[#allocation3 + $0xaa8] sm:$0xff] }
 0x1ca   :  { %v1934_v29 = vld [vmem:[#allocation3 + $0x39a0] sm:$0xff]  ;;  %2910 = vmatpush.msrb.mxu2 %v1678_v28  ;;  %v687_v28 = vld [vmem:[#allocation3 + $0x12a8] sm:$0xff] }
 0x1cb   :  { %v1150_v31 = vld [vmem:[#allocation3 + $0x2120] sm:$0xff]  ;;  %2930 = vmatpush.msrb.mxu3 %v1934_v29  ;;  %v943_v29 = vld [vmem:[#allocation3 + $0x1aa8] sm:$0xff] }
 0x1cc   :  { %v1406_v32 = vld [vmem:[#allocation3 + $0x2920] sm:$0xff]  ;;  %2871 = vmatpush.msrb.mxu0 %v1150_v31  ;;  %v159_v31 = vld [vmem:[#allocation3 + $0x228] sm:$0xff] }
 0x1cd   :  { %v1662_v33 = vld [vmem:[#allocation3 + $0x3120] sm:$0xff]  ;;  %2891 = vmatpush.msrb.mxu1 %v1406_v32  ;;  %v415_v32 = vld [vmem:[#allocation3 + $0xa28] sm:$0xff] }
 0x1ce   :  { %v1918_v1 = vld [vmem:[#allocation3 + $0x3920] sm:$0xff]  ;;  %2911 = vmatpush.msrb.mxu2 %v1662_v33  ;;  %v671_v33 = vld [vmem:[#allocation3 + $0x1228] sm:$0xff] }
 0x1cf   :  { %v1134_v34 = vld [vmem:[#allocation3 + $0x20a0] sm:$0xff]  ;;  %2931 = vmatpush.msrb.mxu3 %v1918_v1  ;;  %v927_v1 = vld [vmem:[#allocation3 + $0x1a28] sm:$0xff] }
 0x1d0   :  { %v1390_v2 = vld [vmem:[#allocation3 + $0x28a0] sm:$0xff]  ;;  %2872 = vmatpush.msrb.mxu0 %v1134_v34  ;;  %v143_v34 = vld [vmem:[#allocation3 + $0x1a8] sm:$0xff] }
 0x1d1   :  { %v1646_v3 = vld [vmem:[#allocation3 + $0x30a0] sm:$0xff]  ;;  %2892 = vmatpush.msrb.mxu1 %v1390_v2  ;;  %v399_v2 = vld [vmem:[#allocation3 + $0x9a8] sm:$0xff] }
 0x1d2   :  { %v1902_v35 = vld [vmem:[#allocation3 + $0x38a0] sm:$0xff]  ;;  %2912 = vmatpush.msrb.mxu2 %v1646_v3  ;;  %v655_v3 = vld [vmem:[#allocation3 + $0x11a8] sm:$0xff] }
 0x1d3   :  { %v1118_v36 = vld [vmem:[#allocation3 + $0x2020] sm:$0xff]  ;;  %2932 = vmatpush.msrb.mxu3 %v1902_v35  ;;  %v911_v35 = vld [vmem:[#allocation3 + $0x19a8] sm:$0xff] }
 0x1d4   :  { %v1374_v37 = vld [vmem:[#allocation3 + $0x2820] sm:$0xff]  ;;  %2873 = vmatpush.msrb.mxu0 %v1118_v36  ;;  %v127_v36 = vld [vmem:[#allocation3 + $0x128] sm:$0xff] }
 0x1d5   :  { %v1630_v38 = vld [vmem:[#allocation3 + $0x3020] sm:$0xff]  ;;  %2893 = vmatpush.msrb.mxu1 %v1374_v37  ;;  %v383_v37 = vld [vmem:[#allocation3 + $0x928] sm:$0xff] }
 0x1d6   :  { %v1886_v39 = vld [vmem:[#allocation3 + $0x3820] sm:$0xff]  ;;  %2913 = vmatpush.msrb.mxu2 %v1630_v38  ;;  %2894 = vmatmul.f32.vlgmr.msrb.gmra.mxu1 %v5675_v4  ;;  %v639_v38 = vld [vmem:[#allocation3 + $0x1128] sm:$0xff] }
 0x1d7   :  { %2933 = vmatpush.msrb.mxu3 %v1886_v39  ;;  %v5639_v44 = vld [vmem:[%s6274_s0] sm:$0xff]  ;;  %2958 = vmatpush.msra.mxu1 %v591_v43  ;;  %v895_v39 = vld [vmem:[#allocation3 + $0x1928] sm:$0xff] }
 0x1d8   :  { %2794 = vmatmul.f32.vlgmr.msra.gmra.mxu0 %v5639_v44  ;;  %2978 = vmatpush.msra.mxu2 %v847_v46  ;;  %v5663_v40 = vld [vmem:[%s6274_s0 + $0x20] sm:$0xff]  ;;  %v367_v43 = vld [vmem:[#allocation3 + $0x8a8] sm:$0xff] }
 0x1d9   :  { %2938 = vmatpush.msra.mxu0 %v335_v42  ;;  %2998 = vmatpush.msra.mxu3 %v1103_v21  ;;  %v111_v42 = vld [vmem:[#allocation3 + $0xa8] sm:$0xff] }
 0x1da   :  { %2959 = vmatpush.msra.mxu1 %v575_v49  ;;  %2979 = vmatpush.msra.mxu2 %v831_v50  ;;  %v623_v46 = vld [vmem:[#allocation3 + $0x10a8] sm:$0xff] }
 0x1db   :  { %2939 = vmatpush.msra.mxu0 %v319_v47  ;;  %2999 = vmatpush.msra.mxu3 %v1087_v26  ;;  %v879_v21 = vld [vmem:[#allocation3 + $0x18a8] sm:$0xff] }
 0x1dc   :  { %2960 = vmatpush.msra.mxu1 %v559_v30  ;;  %2980 = vmatpush.msra.mxu2 %v815_v60  ;;  %v95_v47 = vld [vmem:[#allocation3 + $0x28] sm:$0xff] }
 0x1dd   :  { %2940 = vmatpush.msra.mxu0 %v303_v27  ;;  %3000 = vmatpush.msra.mxu3 %v1071_v51  ;;  %v351_v49 = vld [vmem:[#allocation3 + $0x828] sm:$0xff] }
 0x1de   :  { %2914 = vmatmul.f32.vlgmr.msrb.gmra.mxu2 %v5657_v56  ;;  %2961 = vmatpush.msra.mxu1 %v543_v53  ;;  %v607_v50 = vld [vmem:[#allocation3 + $0x1028] sm:$0xff] }
 0x1df   :  { %2941 = vmatpush.msra.mxu0 %v287_v52  ;;  %2981 = vmatpush.msra.mxu2 %v799_v54  ;;  %v863_v26 = vld [vmem:[#allocation3 + $0x1828] sm:$0xff] }
 0x1e0   :  { %3001 = vmatpush.msra.mxu3 %v1055_v55  ;;  %2874 = vmatmul.f32.vlgmr.msrb.gmra.mxu0 %v5663_v40  ;;  %v1359_v27 = vld [vmem:[#allocation3 + $0x27a8] sm:$0xff] }
 0x1e1   :  { %2934 = vmatmul.f32.vlgmr.msrb.gmra.mxu3 %v5669_v62  ;;  %2942 = vmatpush.msra.mxu0 %v271_v57  ;;  %v1615_v30 = vld [vmem:[#allocation3 + $0x2fa8] sm:$0xff] }
 0x1e2   :  { %2962 = vmatpush.msra.mxu1 %v527_v58  ;;  %2982 = vmatpush.msra.mxu2 %v783_v59  ;;  %v1871_v60 = vld [vmem:[#allocation3 + $0x37a8] sm:$0xff] }
 0x1e3   :  { %3002 = vmatpush.msra.mxu3 %v1039_v61  ;;  %2943 = vmatpush.msra.mxu0 %v255_v63  ;;  %v2127_v51 = vld [vmem:[#allocation3 + $0x3fa8] sm:$0xff] }
 0x1e4   :  { %2963 = vmatpush.msra.mxu1 %v511_v16  ;;  %2983 = vmatpush.msra.mxu2 %v767_v45  ;;  %v1343_v52 = vld [vmem:[#allocation3 + $0x2728] sm:$0xff] }
 0x1e5   :  { %3003 = vmatpush.msra.mxu3 %v1023_v0  ;;  %2944 = vmatpush.msra.mxu0 %v239_v5  ;;  %v1599_v53 = vld [vmem:[#allocation3 + $0x2f28] sm:$0xff] }
 0x1e6   :  { %2964 = vmatpush.msra.mxu1 %v495_v6  ;;  %2984 = vmatpush.msra.mxu2 %v751_v48  ;;  %v1855_v54 = vld [vmem:[#allocation3 + $0x3728] sm:$0xff] }
 0x1e7   :  { %3004 = vmatpush.msra.mxu3 %v1007_v7  ;;  %2945 = vmatpush.msra.mxu0 %v223_v8  ;;  %v2111_v55 = vld [vmem:[#allocation3 + $0x3f28] sm:$0xff] }
 0x1e8   :  { %2965 = vmatpush.msra.mxu1 %v479_v9  ;;  %2985 = vmatpush.msra.mxu2 %v735_v10  ;;  %v1327_v57 = vld [vmem:[#allocation3 + $0x26a8] sm:$0xff] }
 0x1e9   :  { %3005 = vmatpush.msra.mxu3 %v991_v11  ;;  %2946 = vmatpush.msra.mxu0 %v207_v12  ;;  %v1583_v58 = vld [vmem:[#allocation3 + $0x2ea8] sm:$0xff] }
 0x1ea   :  { %2966 = vmatpush.msra.mxu1 %v463_v13  ;;  %2986 = vmatpush.msra.mxu2 %v719_v14  ;;  %v1839_v59 = vld [vmem:[#allocation3 + $0x36a8] sm:$0xff] }
 0x1eb   :  { %3006 = vmatpush.msra.mxu3 %v975_v15  ;;  %2947 = vmatpush.msra.mxu0 %v191_v17  ;;  %v2095_v61 = vld [vmem:[#allocation3 + $0x3ea8] sm:$0xff] }
 0x1ec   :  { %2967 = vmatpush.msra.mxu1 %v447_v18  ;;  %2987 = vmatpush.msra.mxu2 %v703_v19  ;;  %v1311_v63 = vld [vmem:[#allocation3 + $0x2628] sm:$0xff] }
 0x1ed   :  { %3007 = vmatpush.msra.mxu3 %v959_v20  ;;  %2948 = vmatpush.msra.mxu0 %v175_v24  ;;  %v1567_v16 = vld [vmem:[#allocation3 + $0x2e28] sm:$0xff] }
 0x1ee   :  { %2968 = vmatpush.msra.mxu1 %v431_v25  ;;  %2988 = vmatpush.msra.mxu2 %v687_v28  ;;  %v1823_v45 = vld [vmem:[#allocation3 + $0x3628] sm:$0xff] }
 0x1ef   :  { %3008 = vmatpush.msra.mxu3 %v943_v29  ;;  %2949 = vmatpush.msra.mxu0 %v159_v31  ;;  %v2079_v0 = vld [vmem:[#allocation3 + $0x3e28] sm:$0xff] }
 0x1f0   :  { %2969 = vmatpush.msra.mxu1 %v415_v32  ;;  %2989 = vmatpush.msra.mxu2 %v671_v33  ;;  %v1295_v5 = vld [vmem:[#allocation3 + $0x25a8] sm:$0xff] }
 0x1f1   :  { %3009 = vmatpush.msra.mxu3 %v927_v1  ;;  %2950 = vmatpush.msra.mxu0 %v143_v34  ;;  %v1551_v6 = vld [vmem:[#allocation3 + $0x2da8] sm:$0xff] }
 0x1f2   :  { %2970 = vmatpush.msra.mxu1 %v399_v2  ;;  %2990 = vmatpush.msra.mxu2 %v655_v3  ;;  %v1807_v48 = vld [vmem:[#allocation3 + $0x35a8] sm:$0xff] }
 0x1f3   :  { %3010 = vmatpush.msra.mxu3 %v911_v35  ;;  %2951 = vmatpush.msra.mxu0 %v127_v36  ;;  %v2063_v7 = vld [vmem:[#allocation3 + $0x3da8] sm:$0xff] }
 0x1f4   :  { %2971 = vmatpush.msra.mxu1 %v383_v37  ;;  %2991 = vmatpush.msra.mxu2 %v639_v38  ;;  %v1279_v8 = vld [vmem:[#allocation3 + $0x2528] sm:$0xff] }
 0x1f5   :  { %3011 = vmatpush.msra.mxu3 %v895_v39  ;;  %2952 = vmatpush.msra.mxu0 %v111_v42  ;;  %v1535_v9 = vld [vmem:[#allocation3 + $0x2d28] sm:$0xff] }
 0x1f6   :  { %2972 = vmatpush.msra.mxu1 %v367_v43  ;;  %2992 = vmatpush.msra.mxu2 %v623_v46  ;;  %v1791_v10 = vld [vmem:[#allocation3 + $0x3528] sm:$0xff] }
 0x1f7   :  { %3012 = vmatpush.msra.mxu3 %v879_v21  ;;  %2953 = vmatpush.msra.mxu0 %v95_v47  ;;  %v2047_v11 = vld [vmem:[#allocation3 + $0x3d28] sm:$0xff] }
 0x1f8   :  { %2973 = vmatpush.msra.mxu1 %v351_v49  ;;  %2993 = vmatpush.msra.mxu2 %v607_v50  ;;  %v1263_v12 = vld [vmem:[#allocation3 + $0x24a8] sm:$0xff] }
 0x1f9   :  { %3013 = vmatpush.msra.mxu3 %v863_v26  ;;  %3018 = vmatpush.msrb.mxu0 %v1359_v27  ;;  %v1519_v13 = vld [vmem:[#allocation3 + $0x2ca8] sm:$0xff] }
 0x1fa   :  { %3038 = vmatpush.msrb.mxu1 %v1615_v30  ;;  %3058 = vmatpush.msrb.mxu2 %v1871_v60  ;;  %v1775_v14 = vld [vmem:[#allocation3 + $0x34a8] sm:$0xff] }
 0x1fb   :  { %3078 = vmatpush.msrb.mxu3 %v2127_v51  ;;  %3019 = vmatpush.msrb.mxu0 %v1343_v52  ;;  %v2031_v15 = vld [vmem:[#allocation3 + $0x3ca8] sm:$0xff] }
 0x1fc   :  { %3039 = vmatpush.msrb.mxu1 %v1599_v53  ;;  %3059 = vmatpush.msrb.mxu2 %v1855_v54  ;;  %v1247_v17 = vld [vmem:[#allocation3 + $0x2428] sm:$0xff] }
 0x1fd   :  { %3079 = vmatpush.msrb.mxu3 %v2111_v55  ;;  %3020 = vmatpush.msrb.mxu0 %v1327_v57  ;;  %v1503_v18 = vld [vmem:[#allocation3 + $0x2c28] sm:$0xff]  ;;  %v336_v57 = vld [vmem:[#allocation3 + $0x7b0] sm:$0xff] }
 0x1fe   :  { %3040 = vmatpush.msrb.mxu1 %v1583_v58  ;;  %3060 = vmatpush.msrb.mxu2 %v1839_v59  ;;  %v1759_v19 = vld [vmem:[#allocation3 + $0x3428] sm:$0xff]  ;;  %v592_v58 = vld [vmem:[#allocation3 + $0xfb0] sm:$0xff] }
 0x1ff   :  { %3080 = vmatpush.msrb.mxu3 %v2095_v61  ;;  %3021 = vmatpush.msrb.mxu0 %v1311_v63  ;;  %v2015_v20 = vld [vmem:[#allocation3 + $0x3c28] sm:$0xff]  ;;  %v848_v59 = vld [vmem:[#allocation3 + $0x17b0] sm:$0xff] }
 0x200   :  { %3041 = vmatpush.msrb.mxu1 %v1567_v16  ;;  %3061 = vmatpush.msrb.mxu2 %v1823_v45  ;;  %v1231_v24 = vld [vmem:[#allocation3 + $0x23a8] sm:$0xff]  ;;  %v1104_v61 = vld [vmem:[#allocation3 + $0x1fb0] sm:$0xff] }
 0x201   :  { %3081 = vmatpush.msrb.mxu3 %v2079_v0  ;;  %3022 = vmatpush.msrb.mxu0 %v1295_v5  ;;  %v1487_v25 = vld [vmem:[#allocation3 + $0x2ba8] sm:$0xff]  ;;  %v320_v63 = vld [vmem:[#allocation3 + $0x730] sm:$0xff] }
 0x202   :  { %3042 = vmatpush.msrb.mxu1 %v1551_v6  ;;  %3062 = vmatpush.msrb.mxu2 %v1807_v48  ;;  %v1743_v28 = vld [vmem:[#allocation3 + $0x33a8] sm:$0xff]  ;;  %v576_v16 = vld [vmem:[#allocation3 + $0xf30] sm:$0xff] }
 0x203   :  { %3082 = vmatpush.msrb.mxu3 %v2063_v7  ;;  %3023 = vmatpush.msrb.mxu0 %v1279_v8  ;;  %v1999_v29 = vld [vmem:[#allocation3 + $0x3ba8] sm:$0xff]  ;;  %v832_v45 = vld [vmem:[#allocation3 + $0x1730] sm:$0xff] }
 0x204   :  { %3043 = vmatpush.msrb.mxu1 %v1535_v9  ;;  %3063 = vmatpush.msrb.mxu2 %v1791_v10  ;;  %v1215_v31 = vld [vmem:[#allocation3 + $0x2328] sm:$0xff]  ;;  %v304_v0 = vld [vmem:[#allocation3 + $0x6b0] sm:$0xff] }
 0x205   :  { %3083 = vmatpush.msrb.mxu3 %v2047_v11  ;;  %3024 = vmatpush.msrb.mxu0 %v1263_v12  ;;  %v1471_v32 = vld [vmem:[#allocation3 + $0x2b28] sm:$0xff]  ;;  %v560_v5 = vld [vmem:[#allocation3 + $0xeb0] sm:$0xff] }
 0x206   :  { %3044 = vmatpush.msrb.mxu1 %v1519_v13  ;;  %3064 = vmatpush.msrb.mxu2 %v1775_v14  ;;  %v1727_v33 = vld [vmem:[#allocation3 + $0x3328] sm:$0xff]  ;;  %v816_v6 = vld [vmem:[#allocation3 + $0x16b0] sm:$0xff] }
 0x207   :  { %3084 = vmatpush.msrb.mxu3 %v2031_v15  ;;  %3025 = vmatpush.msrb.mxu0 %v1247_v17  ;;  %v1983_v1 = vld [vmem:[#allocation3 + $0x3b28] sm:$0xff]  ;;  %v288_v48 = vld [vmem:[#allocation3 + $0x630] sm:$0xff] }
 0x208   :  { %3045 = vmatpush.msrb.mxu1 %v1503_v18  ;;  %3065 = vmatpush.msrb.mxu2 %v1759_v19  ;;  %v1199_v34 = vld [vmem:[#allocation3 + $0x22a8] sm:$0xff]  ;;  %v1056_v7 = vld [vmem:[#allocation3 + $0x1e30] sm:$0xff] }
 0x209   :  { %3085 = vmatpush.msrb.mxu3 %v2015_v20  ;;  %3026 = vmatpush.msrb.mxu0 %v1231_v24  ;;  %v1455_v2 = vld [vmem:[#allocation3 + $0x2aa8] sm:$0xff]  ;;  %v272_v8 = vld [vmem:[#allocation3 + $0x5b0] sm:$0xff] }
 0x20a   :  { %3046 = vmatpush.msrb.mxu1 %v1487_v25  ;;  %3066 = vmatpush.msrb.mxu2 %v1743_v28  ;;  %v1711_v3 = vld [vmem:[#allocation3 + $0x32a8] sm:$0xff]  ;;  %v528_v9 = vld [vmem:[#allocation3 + $0xdb0] sm:$0xff] }
 0x20b   :  { %3086 = vmatpush.msrb.mxu3 %v1999_v29  ;;  %3027 = vmatpush.msrb.mxu0 %v1215_v31  ;;  %v1967_v35 = vld [vmem:[#allocation3 + $0x3aa8] sm:$0xff]  ;;  %v784_v10 = vld [vmem:[#allocation3 + $0x15b0] sm:$0xff] }
 0x20c   :  { %3047 = vmatpush.msrb.mxu1 %v1471_v32  ;;  %3067 = vmatpush.msrb.mxu2 %v1727_v33  ;;  %v1183_v36 = vld [vmem:[#allocation3 + $0x2228] sm:$0xff]  ;;  %v1040_v11 = vld [vmem:[#allocation3 + $0x1db0] sm:$0xff] }
 0x20d   :  { %3087 = vmatpush.msrb.mxu3 %v1983_v1  ;;  %v1439_v37 = vld [vmem:[#allocation3 + $0x2a28] sm:$0xff]  ;;  %3028 = vmatpush.msrb.mxu0 %v1199_v34  ;;  %v256_v12 = vld [vmem:[#allocation3 + $0x530] sm:$0xff] }
 0x20e   :  { %3048 = vmatpush.msrb.mxu1 %v1455_v2  ;;  %v1695_v38 = vld [vmem:[#allocation3 + $0x3228] sm:$0xff]  ;;  %3068 = vmatpush.msrb.mxu2 %v1711_v3  ;;  %v512_v13 = vld [vmem:[#allocation3 + $0xd30] sm:$0xff] }
 0x20f   :  { %v1951_v39 = vld [vmem:[#allocation3 + $0x3a28] sm:$0xff]  ;;  %3088 = vmatpush.msrb.mxu3 %v1967_v35  ;;  %3029 = vmatpush.msrb.mxu0 %v1183_v36  ;;  %v768_v14 = vld [vmem:[#allocation3 + $0x1530] sm:$0xff] }
 0x210   :  { %v1167_v42 = vld [vmem:[#allocation3 + $0x21a8] sm:$0xff]  ;;  %3049 = vmatpush.msrb.mxu1 %v1439_v37  ;;  %3069 = vmatpush.msrb.mxu2 %v1695_v38  ;;  %v1024_v15 = vld [vmem:[#allocation3 + $0x1d30] sm:$0xff] }
 0x211   :  { %v1423_v43 = vld [vmem:[#allocation3 + $0x29a8] sm:$0xff]  ;;  %3089 = vmatpush.msrb.mxu3 %v1951_v39  ;;  %3030 = vmatpush.msrb.mxu0 %v1167_v42  ;;  %v496_v17 = vld [vmem:[#allocation3 + $0xcb0] sm:$0xff] }
 0x212   :  { %v1679_v46 = vld [vmem:[#allocation3 + $0x31a8] sm:$0xff]  ;;  %3050 = vmatpush.msrb.mxu1 %v1423_v43  ;;  %2994 = vmatmul.f32.vlgmr.msra.gmra.mxu2 %v5633_v41  ;;  %v1088_v41 = vld [vmem:[#allocation3 + $0x1f30] sm:$0xff] }
 0x213   :  { %v1935_v21 = vld [vmem:[#allocation3 + $0x39a8] sm:$0xff]  ;;  %3070 = vmatpush.msrb.mxu2 %v1679_v46  ;;  %2954 = vmatmul.f32.vlgmr.msra.gmra.mxu0 %v5639_v44  ;;  %v1072_v44 = vld [vmem:[#allocation3 + $0x1eb0] sm:$0xff] }
 0x214   :  { %v1151_v47 = vld [vmem:[#allocation3 + $0x2128] sm:$0xff]  ;;  %3090 = vmatpush.msrb.mxu3 %v1935_v21  ;;  %2974 = vmatmul.f32.vlgmr.msra.gmra.mxu1 %v5645_v22  ;;  %v544_v22 = vld [vmem:[#allocation3 + $0xe30] sm:$0xff] }
 0x215   :  { %v1407_v49 = vld [vmem:[#allocation3 + $0x2928] sm:$0xff]  ;;  %3031 = vmatpush.msrb.mxu0 %v1151_v47  ;;  %3014 = vmatmul.f32.vlgmr.msra.gmra.mxu3 %v5651_v23  ;;  %v800_v23 = vld [vmem:[#allocation3 + $0x1630] sm:$0xff] }
 0x216   :  { %v1663_v50 = vld [vmem:[#allocation3 + $0x3128] sm:$0xff]  ;;  %3051 = vmatpush.msrb.mxu1 %v1407_v49  ;;  %v752_v18 = vld [vmem:[#allocation3 + $0x14b0] sm:$0xff] }
 0x217   :  { %v1919_v26 = vld [vmem:[#allocation3 + $0x3928] sm:$0xff]  ;;  %3071 = vmatpush.msrb.mxu2 %v1663_v50  ;;  %v1008_v19 = vld [vmem:[#allocation3 + $0x1cb0] sm:$0xff] }
 0x218   :  { %v1135_v27 = vld [vmem:[#allocation3 + $0x20a8] sm:$0xff]  ;;  %3091 = vmatpush.msrb.mxu3 %v1919_v26  ;;  %v736_v20 = vld [vmem:[#allocation3 + $0x1430] sm:$0xff] }
 0x219   :  { %v1391_v30 = vld [vmem:[#allocation3 + $0x28a8] sm:$0xff]  ;;  %3032 = vmatpush.msrb.mxu0 %v1135_v27  ;;  %v992_v24 = vld [vmem:[#allocation3 + $0x1c30] sm:$0xff] }
 0x21a   :  { %v1647_v60 = vld [vmem:[#allocation3 + $0x30a8] sm:$0xff]  ;;  %3052 = vmatpush.msrb.mxu1 %v1391_v30  ;;  %v208_v25 = vld [vmem:[#allocation3 + $0x3b0] sm:$0xff] }
 0x21b   :  { %v1903_v51 = vld [vmem:[#allocation3 + $0x38a8] sm:$0xff]  ;;  %3072 = vmatpush.msrb.mxu2 %v1647_v60  ;;  %v464_v28 = vld [vmem:[#allocation3 + $0xbb0] sm:$0xff] }
 0x21c   :  { %v1119_v52 = vld [vmem:[#allocation3 + $0x2028] sm:$0xff]  ;;  %3092 = vmatpush.msrb.mxu3 %v1903_v51  ;;  %v976_v29 = vld [vmem:[#allocation3 + $0x1bb0] sm:$0xff] }
 0x21d   :  { %v1375_v53 = vld [vmem:[#allocation3 + $0x2828] sm:$0xff]  ;;  %3033 = vmatpush.msrb.mxu0 %v1119_v52  ;;  %v192_v31 = vld [vmem:[#allocation3 + $0x330] sm:$0xff] }
 0x21e   :  { %v1631_v54 = vld [vmem:[#allocation3 + $0x3028] sm:$0xff]  ;;  %3053 = vmatpush.msrb.mxu1 %v1375_v53  ;;  %3034 = vmatmul.f32.vlgmr.msrb.gmra.mxu0 %v5663_v40  ;;  %v224_v40 = vld [vmem:[#allocation3 + $0x430] sm:$0xff] }
 0x21f   :  { %v1887_v55 = vld [vmem:[#allocation3 + $0x3828] sm:$0xff]  ;;  %3073 = vmatpush.msrb.mxu2 %v1631_v54  ;;  %3098 = vmatpush.msra.mxu0 %v336_v57  ;;  %v448_v32 = vld [vmem:[#allocation3 + $0xb30] sm:$0xff] }
 0x220   :  { %3093 = vmatpush.msrb.mxu3 %v1887_v55  ;;  %3118 = vmatpush.msra.mxu1 %v592_v58  ;;  %v704_v33 = vld [vmem:[#allocation3 + $0x1330] sm:$0xff] }
 0x221   :  { %3138 = vmatpush.msra.mxu2 %v848_v59  ;;  %3099 = vmatpush.msra.mxu0 %v320_v63  ;;  %v960_v1 = vld [vmem:[#allocation3 + $0x1b30] sm:$0xff] }
 0x222   :  { %3158 = vmatpush.msra.mxu3 %v1104_v61  ;;  %3119 = vmatpush.msra.mxu1 %v576_v16  ;;  %v176_v34 = vld [vmem:[#allocation3 + $0x2b0] sm:$0xff] }
 0x223   :  { %3139 = vmatpush.msra.mxu2 %v832_v45  ;;  %3100 = vmatpush.msra.mxu0 %v304_v0  ;;  %v432_v2 = vld [vmem:[#allocation3 + $0xab0] sm:$0xff] }
 0x224   :  { %3159 = vmatpush.msra.mxu3 %v1088_v41  ;;  %3120 = vmatpush.msra.mxu1 %v560_v5  ;;  %v688_v3 = vld [vmem:[#allocation3 + $0x12b0] sm:$0xff] }
 0x225   :  { %3140 = vmatpush.msra.mxu2 %v816_v6  ;;  %3101 = vmatpush.msra.mxu0 %v288_v48  ;;  %v944_v35 = vld [vmem:[#allocation3 + $0x1ab0] sm:$0xff] }
 0x226   :  { %3160 = vmatpush.msra.mxu3 %v1072_v44  ;;  %3074 = vmatmul.f32.vlgmr.msrb.gmra.mxu2 %v5657_v56  ;;  %v240_v56 = vld [vmem:[#allocation3 + $0x4b0] sm:$0xff] }
 0x227   :  { %3121 = vmatpush.msra.mxu1 %v544_v22  ;;  %3141 = vmatpush.msra.mxu2 %v800_v23  ;;  %v160_v36 = vld [vmem:[#allocation3 + $0x230] sm:$0xff] }
 0x228   :  { %3161 = vmatpush.msra.mxu3 %v1056_v7  ;;  %3102 = vmatpush.msra.mxu0 %v272_v8  ;;  %v416_v37 = vld [vmem:[#allocation3 + $0xa30] sm:$0xff] }
 0x229   :  { %3094 = vmatmul.f32.vlgmr.msrb.gmra.mxu3 %v5669_v62  ;;  %3122 = vmatpush.msra.mxu1 %v528_v9  ;;  %v480_v62 = vld [vmem:[#allocation3 + $0xc30] sm:$0xff] }
 0x22a   :  { %3142 = vmatpush.msra.mxu2 %v784_v10  ;;  %3162 = vmatpush.msra.mxu3 %v1040_v11  ;;  %v672_v38 = vld [vmem:[#allocation3 + $0x1230] sm:$0xff] }
 0x22b   :  { %3054 = vmatmul.f32.vlgmr.msrb.gmra.mxu1 %v5675_v4  ;;  %3103 = vmatpush.msra.mxu0 %v256_v12  ;;  %v720_v4 = vld [vmem:[#allocation3 + $0x13b0] sm:$0xff] }
 0x22c   :  { %3123 = vmatpush.msra.mxu1 %v512_v13  ;;  %3143 = vmatpush.msra.mxu2 %v768_v14  ;;  %v928_v39 = vld [vmem:[#allocation3 + $0x1a30] sm:$0xff] }
 0x22d   :  { %3163 = vmatpush.msra.mxu3 %v1024_v15  ;;  %3104 = vmatpush.msra.mxu0 %v240_v56  ;;  %v144_v42 = vld [vmem:[#allocation3 + $0x1b0] sm:$0xff] }
 0x22e   :  { %3124 = vmatpush.msra.mxu1 %v496_v17  ;;  %3144 = vmatpush.msra.mxu2 %v752_v18  ;;  %v400_v43 = vld [vmem:[#allocation3 + $0x9b0] sm:$0xff] }
 0x22f   :  { %3164 = vmatpush.msra.mxu3 %v1008_v19  ;;  %3105 = vmatpush.msra.mxu0 %v224_v40  ;;  %v656_v46 = vld [vmem:[#allocation3 + $0x11b0] sm:$0xff] }
 0x230   :  { %3125 = vmatpush.msra.mxu1 %v480_v62  ;;  %3145 = vmatpush.msra.mxu2 %v736_v20  ;;  %v912_v21 = vld [vmem:[#allocation3 + $0x19b0] sm:$0xff] }
 0x231   :  { %3165 = vmatpush.msra.mxu3 %v992_v24  ;;  %3106 = vmatpush.msra.mxu0 %v208_v25  ;;  %v128_v47 = vld [vmem:[#allocation3 + $0x130] sm:$0xff] }
 0x232   :  { %3126 = vmatpush.msra.mxu1 %v464_v28  ;;  %3146 = vmatpush.msra.mxu2 %v720_v4  ;;  %v384_v49 = vld [vmem:[#allocation3 + $0x930] sm:$0xff] }
 0x233   :  { %3166 = vmatpush.msra.mxu3 %v976_v29  ;;  %3107 = vmatpush.msra.mxu0 %v192_v31  ;;  %v640_v50 = vld [vmem:[#allocation3 + $0x1130] sm:$0xff] }
 0x234   :  { %3127 = vmatpush.msra.mxu1 %v448_v32  ;;  %3147 = vmatpush.msra.mxu2 %v704_v33  ;;  %v896_v26 = vld [vmem:[#allocation3 + $0x1930] sm:$0xff] }
 0x235   :  { %3167 = vmatpush.msra.mxu3 %v960_v1  ;;  %3108 = vmatpush.msra.mxu0 %v176_v34  ;;  %v112_v27 = vld [vmem:[#allocation3 + $0xb0] sm:$0xff] }
 0x236   :  { %3128 = vmatpush.msra.mxu1 %v432_v2  ;;  %3148 = vmatpush.msra.mxu2 %v688_v3  ;;  %v368_v30 = vld [vmem:[#allocation3 + $0x8b0] sm:$0xff] }
 0x237   :  { %3168 = vmatpush.msra.mxu3 %v944_v35  ;;  %3109 = vmatpush.msra.mxu0 %v160_v36  ;;  %v624_v60 = vld [vmem:[#allocation3 + $0x10b0] sm:$0xff] }
 0x238   :  { %3129 = vmatpush.msra.mxu1 %v416_v37  ;;  %3149 = vmatpush.msra.mxu2 %v672_v38  ;;  %v880_v51 = vld [vmem:[#allocation3 + $0x18b0] sm:$0xff] }
 0x239   :  { %3169 = vmatpush.msra.mxu3 %v928_v39  ;;  %3110 = vmatpush.msra.mxu0 %v144_v42  ;;  %v96_v52 = vld [vmem:[#allocation3 + $0x30] sm:$0xff] }
 0x23a   :  { %3130 = vmatpush.msra.mxu1 %v400_v43  ;;  %3150 = vmatpush.msra.mxu2 %v656_v46  ;;  %v352_v53 = vld [vmem:[#allocation3 + $0x830] sm:$0xff] }
 0x23b   :  { %3170 = vmatpush.msra.mxu3 %v912_v21  ;;  %3111 = vmatpush.msra.mxu0 %v128_v47  ;;  %v608_v54 = vld [vmem:[#allocation3 + $0x1030] sm:$0xff] }
 0x23c   :  { %3131 = vmatpush.msra.mxu1 %v384_v49  ;;  %3151 = vmatpush.msra.mxu2 %v640_v50  ;;  %v864_v55 = vld [vmem:[#allocation3 + $0x1830] sm:$0xff] }
 0x23d   :  { %3171 = vmatpush.msra.mxu3 %v896_v26  ;;  %3112 = vmatpush.msra.mxu0 %v112_v27  ;;  %v1360_v57 = vld [vmem:[#allocation3 + $0x27b0] sm:$0xff] }
 0x23e   :  { %3132 = vmatpush.msra.mxu1 %v368_v30  ;;  %3152 = vmatpush.msra.mxu2 %v624_v60  ;;  %v1616_v58 = vld [vmem:[#allocation3 + $0x2fb0] sm:$0xff] }
 0x23f   :  { %3172 = vmatpush.msra.mxu3 %v880_v51  ;;  %3113 = vmatpush.msra.mxu0 %v96_v52  ;;  %v1872_v59 = vld [vmem:[#allocation3 + $0x37b0] sm:$0xff] }
 0x240   :  { %3133 = vmatpush.msra.mxu1 %v352_v53  ;;  %v2128_v61 = vld [vmem:[#allocation3 + $0x3fb0] sm:$0xff]  ;;  %3153 = vmatpush.msra.mxu2 %v608_v54 }
 0x241   :  { %3173 = vmatpush.msra.mxu3 %v864_v55  ;;  %v1344_v63 = vld [vmem:[#allocation3 + $0x2730] sm:$0xff]  ;;  %3178 = vmatpush.msrb.mxu0 %v1360_v57 }
 0x242   :  { %v1600_v16 = vld [vmem:[#allocation3 + $0x2f30] sm:$0xff]  ;;  %3198 = vmatpush.msrb.mxu1 %v1616_v58  ;;  %3218 = vmatpush.msrb.mxu2 %v1872_v59  ;;  %v337_v58 = vld [vmem:[#allocation3 + $0x7b8] sm:$0xff] }
 0x243   :  { %v1856_v45 = vld [vmem:[#allocation3 + $0x3730] sm:$0xff]  ;;  %3238 = vmatpush.msrb.mxu3 %v2128_v61  ;;  %3179 = vmatpush.msrb.mxu0 %v1344_v63  ;;  %v593_v59 = vld [vmem:[#allocation3 + $0xfb8] sm:$0xff]  ;;  %v5695_v61 = vld [vmem:[%s6274_s0] sm:$0xff] }
 0x244   :  { %v2112_v41 = vld [vmem:[#allocation3 + $0x3f30] sm:$0xff]  ;;  %3199 = vmatpush.msrb.mxu1 %v1600_v16  ;;  %3219 = vmatpush.msrb.mxu2 %v1856_v45  ;;  %v849_v63 = vld [vmem:[#allocation3 + $0x17b8] sm:$0xff]  ;;  %v5701_v45 = vld [vmem:[%s6274_s0 + $0x8] sm:$0xff] }
 0x245   :  { %v1328_v0 = vld [vmem:[#allocation3 + $0x26b0] sm:$0xff]  ;;  %3239 = vmatpush.msrb.mxu3 %v2112_v41  ;;  %3114 = vmatmul.f32.vlgmr.msra.gmra.mxu0 %v5695_v61  ;;  %v1105_v16 = vld [vmem:[#allocation3 + $0x1fb8] sm:$0xff] }
 0x246   :  { %v1584_v5 = vld [vmem:[#allocation3 + $0x2eb0] sm:$0xff]  ;;  %3180 = vmatpush.msrb.mxu0 %v1328_v0  ;;  %3134 = vmatmul.f32.vlgmr.msra.gmra.mxu1 %v5701_v45  ;;  %v5707_v41 = vld [vmem:[%s6274_s0 + $0x18] sm:$0xff] }
 0x247   :  { %v1840_v6 = vld [vmem:[#allocation3 + $0x36b0] sm:$0xff]  ;;  %3200 = vmatpush.msrb.mxu1 %v1584_v5  ;;  %3174 = vmatmul.f32.vlgmr.msra.gmra.mxu3 %v5707_v41  ;;  %v321_v0 = vld [vmem:[#allocation3 + $0x738] sm:$0xff] }
 0x248   :  { %v2096_v44 = vld [vmem:[#allocation3 + $0x3eb0] sm:$0xff]  ;;  %3220 = vmatpush.msrb.mxu2 %v1840_v6  ;;  %v577_v5 = vld [vmem:[#allocation3 + $0xf38] sm:$0xff] }
 0x249   :  { %v1312_v48 = vld [vmem:[#allocation3 + $0x2630] sm:$0xff]  ;;  %3240 = vmatpush.msrb.mxu3 %v2096_v44  ;;  %v833_v6 = vld [vmem:[#allocation3 + $0x1738] sm:$0xff] }
 0x24a   :  { %v1568_v22 = vld [vmem:[#allocation3 + $0x2e30] sm:$0xff]  ;;  %3181 = vmatpush.msrb.mxu0 %v1312_v48  ;;  %v1089_v44 = vld [vmem:[#allocation3 + $0x1f38] sm:$0xff] }
 0x24b   :  { %v1824_v23 = vld [vmem:[#allocation3 + $0x3630] sm:$0xff]  ;;  %3201 = vmatpush.msrb.mxu1 %v1568_v22  ;;  %v305_v48 = vld [vmem:[#allocation3 + $0x6b8] sm:$0xff] }
 0x24c   :  { %v2080_v7 = vld [vmem:[#allocation3 + $0x3e30] sm:$0xff]  ;;  %3221 = vmatpush.msrb.mxu2 %v1824_v23  ;;  %v561_v22 = vld [vmem:[#allocation3 + $0xeb8] sm:$0xff] }
 0x24d   :  { %v1296_v8 = vld [vmem:[#allocation3 + $0x25b0] sm:$0xff]  ;;  %3241 = vmatpush.msrb.mxu3 %v2080_v7  ;;  %v817_v23 = vld [vmem:[#allocation3 + $0x16b8] sm:$0xff] }
 0x24e   :  { %v1552_v9 = vld [vmem:[#allocation3 + $0x2db0] sm:$0xff]  ;;  %3182 = vmatpush.msrb.mxu0 %v1296_v8  ;;  %v1073_v7 = vld [vmem:[#allocation3 + $0x1eb8] sm:$0xff] }
 0x24f   :  { %v1808_v10 = vld [vmem:[#allocation3 + $0x35b0] sm:$0xff]  ;;  %3202 = vmatpush.msrb.mxu1 %v1552_v9  ;;  %v289_v8 = vld [vmem:[#allocation3 + $0x638] sm:$0xff] }
 0x250   :  { %v2064_v11 = vld [vmem:[#allocation3 + $0x3db0] sm:$0xff]  ;;  %3222 = vmatpush.msrb.mxu2 %v1808_v10  ;;  %v545_v9 = vld [vmem:[#allocation3 + $0xe38] sm:$0xff] }
 0x251   :  { %v1280_v12 = vld [vmem:[#allocation3 + $0x2530] sm:$0xff]  ;;  %3242 = vmatpush.msrb.mxu3 %v2064_v11  ;;  %v801_v10 = vld [vmem:[#allocation3 + $0x1638] sm:$0xff] }
 0x252   :  { %v1536_v13 = vld [vmem:[#allocation3 + $0x2d30] sm:$0xff]  ;;  %3183 = vmatpush.msrb.mxu0 %v1280_v12  ;;  %v1057_v11 = vld [vmem:[#allocation3 + $0x1e38] sm:$0xff] }
 0x253   :  { %v1792_v14 = vld [vmem:[#allocation3 + $0x3530] sm:$0xff]  ;;  %3203 = vmatpush.msrb.mxu1 %v1536_v13  ;;  %v273_v13 = vld [vmem:[#allocation3 + $0x5b8] sm:$0xff] }
 0x254   :  { %v2048_v15 = vld [vmem:[#allocation3 + $0x3d30] sm:$0xff]  ;;  %3223 = vmatpush.msrb.mxu2 %v1792_v14  ;;  %v529_v14 = vld [vmem:[#allocation3 + $0xdb8] sm:$0xff] }
 0x255   :  { %v1264_v56 = vld [vmem:[#allocation3 + $0x24b0] sm:$0xff]  ;;  %3243 = vmatpush.msrb.mxu3 %v2048_v15  ;;  %v785_v15 = vld [vmem:[#allocation3 + $0x15b8] sm:$0xff] }
 0x256   :  { %v1520_v17 = vld [vmem:[#allocation3 + $0x2cb0] sm:$0xff]  ;;  %3184 = vmatpush.msrb.mxu0 %v1264_v56  ;;  %v5719_v56 = vld [vmem:[%s6274_s0 + $0x20] sm:$0xff] }
 0x257   :  { %v1776_v18 = vld [vmem:[#allocation3 + $0x34b0] sm:$0xff]  ;;  %3204 = vmatpush.msrb.mxu1 %v1520_v17  ;;  %v1041_v17 = vld [vmem:[#allocation3 + $0x1db8] sm:$0xff] }
 0x258   :  { %v2032_v19 = vld [vmem:[#allocation3 + $0x3cb0] sm:$0xff]  ;;  %3224 = vmatpush.msrb.mxu2 %v1776_v18  ;;  %v5725_v18 = vld [vmem:[%s6274_s0 + $0x38] sm:$0xff] }
 0x259   :  { %v1248_v40 = vld [vmem:[#allocation3 + $0x2430] sm:$0xff]  ;;  %3244 = vmatpush.msrb.mxu3 %v2032_v19  ;;  %v257_v19 = vld [vmem:[#allocation3 + $0x538] sm:$0xff] }
 0x25a   :  { %v1504_v62 = vld [vmem:[#allocation3 + $0x2c30] sm:$0xff]  ;;  %3185 = vmatpush.msrb.mxu0 %v1248_v40  ;;  %v513_v40 = vld [vmem:[#allocation3 + $0xd38] sm:$0xff] }
 0x25b   :  { %v1760_v20 = vld [vmem:[#allocation3 + $0x3430] sm:$0xff]  ;;  %3205 = vmatpush.msrb.mxu1 %v1504_v62  ;;  %v769_v62 = vld [vmem:[#allocation3 + $0x1538] sm:$0xff] }
 0x25c   :  { %v2016_v24 = vld [vmem:[#allocation3 + $0x3c30] sm:$0xff]  ;;  %3225 = vmatpush.msrb.mxu2 %v1760_v20  ;;  %v1025_v20 = vld [vmem:[#allocation3 + $0x1d38] sm:$0xff] }
 0x25d   :  { %v1232_v25 = vld [vmem:[#allocation3 + $0x23b0] sm:$0xff]  ;;  %3245 = vmatpush.msrb.mxu3 %v2016_v24  ;;  %v5731_v24 = vld [vmem:[%s6274_s0 + $0x28] sm:$0xff] }
 0x25e   :  { %v1488_v28 = vld [vmem:[#allocation3 + $0x2bb0] sm:$0xff]  ;;  %3186 = vmatpush.msrb.mxu0 %v1232_v25  ;;  %v241_v25 = vld [vmem:[#allocation3 + $0x4b8] sm:$0xff] }
 0x25f   :  { %v1744_v4 = vld [vmem:[#allocation3 + $0x33b0] sm:$0xff]  ;;  %3206 = vmatpush.msrb.mxu1 %v1488_v28  ;;  %v497_v28 = vld [vmem:[#allocation3 + $0xcb8] sm:$0xff] }
 0x260   :  { %v2000_v29 = vld [vmem:[#allocation3 + $0x3bb0] sm:$0xff]  ;;  %3226 = vmatpush.msrb.mxu2 %v1744_v4  ;;  %v753_v4 = vld [vmem:[#allocation3 + $0x14b8] sm:$0xff] }
 0x261   :  { %v1216_v31 = vld [vmem:[#allocation3 + $0x2330] sm:$0xff]  ;;  %3246 = vmatpush.msrb.mxu3 %v2000_v29  ;;  %v1009_v29 = vld [vmem:[#allocation3 + $0x1cb8] sm:$0xff] }
 0x262   :  { %v1472_v32 = vld [vmem:[#allocation3 + $0x2b30] sm:$0xff]  ;;  %3187 = vmatpush.msrb.mxu0 %v1216_v31  ;;  %v225_v31 = vld [vmem:[#allocation3 + $0x438] sm:$0xff] }
 0x263   :  { %v1728_v33 = vld [vmem:[#allocation3 + $0x3330] sm:$0xff]  ;;  %3207 = vmatpush.msrb.mxu1 %v1472_v32  ;;  %v481_v32 = vld [vmem:[#allocation3 + $0xc38] sm:$0xff] }
 0x264   :  { %v1984_v1 = vld [vmem:[#allocation3 + $0x3b30] sm:$0xff]  ;;  %3227 = vmatpush.msrb.mxu2 %v1728_v33  ;;  %v737_v33 = vld [vmem:[#allocation3 + $0x1438] sm:$0xff] }
 0x265   :  { %v1200_v34 = vld [vmem:[#allocation3 + $0x22b0] sm:$0xff]  ;;  %3247 = vmatpush.msrb.mxu3 %v1984_v1  ;;  %v993_v1 = vld [vmem:[#allocation3 + $0x1c38] sm:$0xff] }
 0x266   :  { %v1456_v2 = vld [vmem:[#allocation3 + $0x2ab0] sm:$0xff]  ;;  %3188 = vmatpush.msrb.mxu0 %v1200_v34  ;;  %v5734_v34 = vpop.f32.mrf.mxu0 }
 0x267   :  { %v1712_v3 = vld [vmem:[#allocation3 + $0x32b0] sm:$0xff]  ;;  %3208 = vmatpush.msrb.mxu1 %v1456_v2  ;;  %v209_v2 = vld [vmem:[#allocation3 + $0x3b8] sm:$0xff] }
 0x268   :  { %v1968_v35 = vld [vmem:[#allocation3 + $0x3ab0] sm:$0xff]  ;;  %3228 = vmatpush.msrb.mxu2 %v1712_v3  ;;  %v465_v3 = vld [vmem:[#allocation3 + $0xbb8] sm:$0xff] }
 0x269   :  { %v1184_v36 = vld [vmem:[#allocation3 + $0x2230] sm:$0xff]  ;;  %3248 = vmatpush.msrb.mxu3 %v1968_v35  ;;  %v5736_v35 = vpop.f32.mrf.mxu1 }
 0x26a   :  { %v1440_v37 = vld [vmem:[#allocation3 + $0x2a30] sm:$0xff]  ;;  %3189 = vmatpush.msrb.mxu0 %v1184_v36  ;;  %v721_v36 = vld [vmem:[#allocation3 + $0x13b8] sm:$0xff] }
 0x26b   :  { %v1696_v38 = vld [vmem:[#allocation3 + $0x3230] sm:$0xff]  ;;  %3209 = vmatpush.msrb.mxu1 %v1440_v37  ;;  %v977_v37 = vld [vmem:[#allocation3 + $0x1bb8] sm:$0xff] }
 0x26c   :  { %v1952_v39 = vld [vmem:[#allocation3 + $0x3a30] sm:$0xff]  ;;  %3229 = vmatpush.msrb.mxu2 %v1696_v38  ;;  %v193_v38 = vld [vmem:[#allocation3 + $0x338] sm:$0xff] }
 0x26d   :  { %v1168_v42 = vld [vmem:[#allocation3 + $0x21b0] sm:$0xff]  ;;  %3249 = vmatpush.msrb.mxu3 %v1952_v39  ;;  %v449_v39 = vld [vmem:[#allocation3 + $0xb38] sm:$0xff] }
 0x26e   :  { %v1424_v43 = vld [vmem:[#allocation3 + $0x29b0] sm:$0xff]  ;;  %3190 = vmatpush.msrb.mxu0 %v1168_v42  ;;  %v705_v42 = vld [vmem:[#allocation3 + $0x1338] sm:$0xff] }
 0x26f   :  { %v1680_v46 = vld [vmem:[#allocation3 + $0x31b0] sm:$0xff]  ;;  %3210 = vmatpush.msrb.mxu1 %v1424_v43  ;;  %v961_v43 = vld [vmem:[#allocation3 + $0x1b38] sm:$0xff] }
 0x270   :  { %v1936_v21 = vld [vmem:[#allocation3 + $0x39b0] sm:$0xff]  ;;  %3230 = vmatpush.msrb.mxu2 %v1680_v46  ;;  %v5738_v46 = vpop.f32.mrf.mxu2 }
 0x271   :  { %v1152_v47 = vld [vmem:[#allocation3 + $0x2130] sm:$0xff]  ;;  %3250 = vmatpush.msrb.mxu3 %v1936_v21  ;;  %v177_v21 = vld [vmem:[#allocation3 + $0x2b8] sm:$0xff] }
 0x272   :  { %v1408_v49 = vld [vmem:[#allocation3 + $0x2930] sm:$0xff]  ;;  %3191 = vmatpush.msrb.mxu0 %v1152_v47  ;;  %v433_v47 = vld [vmem:[#allocation3 + $0xab8] sm:$0xff] }
 0x273   :  { %v1664_v50 = vld [vmem:[#allocation3 + $0x3130] sm:$0xff]  ;;  %3211 = vmatpush.msrb.mxu1 %v1408_v49  ;;  %v689_v49 = vld [vmem:[#allocation3 + $0x12b8] sm:$0xff] }
 0x274   :  { %v1920_v26 = vld [vmem:[#allocation3 + $0x3930] sm:$0xff]  ;;  %3231 = vmatpush.msrb.mxu2 %v1664_v50  ;;  %v945_v50 = vld [vmem:[#allocation3 + $0x1ab8] sm:$0xff] }
 0x275   :  { %v1136_v27 = vld [vmem:[#allocation3 + $0x20b0] sm:$0xff]  ;;  %3251 = vmatpush.msrb.mxu3 %v1920_v26  ;;  %v161_v26 = vld [vmem:[#allocation3 + $0x238] sm:$0xff] }
 0x276   :  { %v1392_v30 = vld [vmem:[#allocation3 + $0x28b0] sm:$0xff]  ;;  %3192 = vmatpush.msrb.mxu0 %v1136_v27  ;;  %v417_v27 = vld [vmem:[#allocation3 + $0xa38] sm:$0xff] }
 0x277   :  { %v1648_v60 = vld [vmem:[#allocation3 + $0x30b0] sm:$0xff]  ;;  %3212 = vmatpush.msrb.mxu1 %v1392_v30  ;;  %v5740_v30 = vpop.f32.mrf.mxu3 }
 0x278   :  { %v1904_v51 = vld [vmem:[#allocation3 + $0x38b0] sm:$0xff]  ;;  %3232 = vmatpush.msrb.mxu2 %v1648_v60  ;;  %v673_v60 = vld [vmem:[#allocation3 + $0x1238] sm:$0xff] }
 0x279   :  { %v1120_v52 = vld [vmem:[#allocation3 + $0x2030] sm:$0xff]  ;;  %3252 = vmatpush.msrb.mxu3 %v1904_v51  ;;  %v929_v51 = vld [vmem:[#allocation3 + $0x1a38] sm:$0xff] }
 0x27a   :  { %v1376_v53 = vld [vmem:[#allocation3 + $0x2830] sm:$0xff]  ;;  %3193 = vmatpush.msrb.mxu0 %v1120_v52  ;;  %v145_v52 = vld [vmem:[#allocation3 + $0x1b8] sm:$0xff] }
 0x27b   :  { %v1632_v54 = vld [vmem:[#allocation3 + $0x3030] sm:$0xff]  ;;  %3213 = vmatpush.msrb.mxu1 %v1376_v53  ;;  %3194 = vmatmul.f32.vlgmr.msrb.gmra.mxu0 %v5719_v56  ;;  %v401_v53 = vld [vmem:[#allocation3 + $0x9b8] sm:$0xff] }
 0x27c   :  { %v1888_v55 = vld [vmem:[#allocation3 + $0x3830] sm:$0xff]  ;;  %3233 = vmatpush.msrb.mxu2 %v1632_v54  ;;  %3258 = vmatpush.msra.mxu0 %v337_v58  ;;  %v657_v54 = vld [vmem:[#allocation3 + $0x11b8] sm:$0xff]  ;;  %v5742_v58 = vpop.f32.mrf.mxu0 }
 0x27d   :  { %v5689_v57 = vld [vmem:[%s6274_s0 + $0x10] sm:$0xff]  ;;  %3253 = vmatpush.msrb.mxu3 %v1888_v55  ;;  %3278 = vmatpush.msra.mxu1 %v593_v59  ;;  %v913_v55 = vld [vmem:[#allocation3 + $0x19b8] sm:$0xff] }
 0x27e   :  { %3154 = vmatmul.f32.vlgmr.msra.gmra.mxu2 %v5689_v57  ;;  %3259 = vmatpush.msra.mxu0 %v321_v0  ;;  %v5713_v12 = vld [vmem:[%s6274_s0 + $0x30] sm:$0xff]  ;;  %v129_v59 = vld [vmem:[#allocation3 + $0x138] sm:$0xff] }
 0x27f   :  { %3298 = vmatpush.msra.mxu2 %v849_v63  ;;  %3318 = vmatpush.msra.mxu3 %v1105_v16  ;;  %v385_v63 = vld [vmem:[#allocation3 + $0x938] sm:$0xff]  ;;  %v5744_v16 = vpop.f32.mrf.mxu1 }
 0x280   :  { %3279 = vmatpush.msra.mxu1 %v577_v5  ;;  %3260 = vmatpush.msra.mxu0 %v305_v48  ;;  %v641_v0 = vld [vmem:[#allocation3 + $0x1138] sm:$0xff] }
 0x281   :  { %3299 = vmatpush.msra.mxu2 %v833_v6  ;;  %3319 = vmatpush.msra.mxu3 %v1089_v44  ;;  %v897_v5 = vld [vmem:[#allocation3 + $0x1938] sm:$0xff] }
 0x282   :  { %3280 = vmatpush.msra.mxu1 %v561_v22  ;;  %3261 = vmatpush.msra.mxu0 %v289_v8  ;;  %v113_v6 = vld [vmem:[#allocation3 + $0xb8] sm:$0xff] }
 0x283   :  { %3300 = vmatpush.msra.mxu2 %v817_v23  ;;  %3320 = vmatpush.msra.mxu3 %v1073_v7  ;;  %v369_v44 = vld [vmem:[#allocation3 + $0x8b8] sm:$0xff]  ;;  %v5746_v23 = vpop.f32.mrf.mxu2 }
 0x284   :  { %3281 = vmatpush.msra.mxu1 %v545_v9  ;;  %3254 = vmatmul.f32.vlgmr.msrb.gmra.mxu3 %v5725_v18  ;;  %v625_v48 = vld [vmem:[#allocation3 + $0x10b8] sm:$0xff] }
 0x285   :  { %3301 = vmatpush.msra.mxu2 %v801_v10  ;;  %3321 = vmatpush.msra.mxu3 %v1057_v11  ;;  %v881_v22 = vld [vmem:[#allocation3 + $0x18b8] sm:$0xff] }
 0x286   :  { %3234 = vmatmul.f32.vlgmr.msrb.gmra.mxu2 %v5713_v12  ;;  %3262 = vmatpush.msra.mxu0 %v273_v13  ;;  %v97_v7 = vld [vmem:[#allocation3 + $0x38] sm:$0xff] }
 0x287   :  { %3282 = vmatpush.msra.mxu1 %v529_v14  ;;  %3302 = vmatpush.msra.mxu2 %v785_v15  ;;  %v353_v8 = vld [vmem:[#allocation3 + $0x838] sm:$0xff]  ;;  %v5748_v14 = vpop.f32.mrf.mxu3 }
 0x288   :  { %3322 = vmatpush.msra.mxu3 %v1041_v17  ;;  %3214 = vmatmul.f32.vlgmr.msrb.gmra.mxu1 %v5731_v24  ;;  %v609_v9 = vld [vmem:[#allocation3 + $0x1038] sm:$0xff] }
 0x289   :  { %3263 = vmatpush.msra.mxu0 %v257_v19  ;;  %3283 = vmatpush.msra.mxu1 %v513_v40  ;;  %v865_v10 = vld [vmem:[#allocation3 + $0x1838] sm:$0xff]  ;;  %v5750_v19 = vpop.f32.mrf.mxu0 }
 0x28a   :  { %3303 = vmatpush.msra.mxu2 %v769_v62  ;;  %3323 = vmatpush.msra.mxu3 %v1025_v20  ;;  %v1361_v11 = vld [vmem:[#allocation3 + $0x27b8] sm:$0xff]  ;;  %v5752_v20 = vpop.f32.mrf.mxu1 }
 0x28b   :  { %3264 = vmatpush.msra.mxu0 %v241_v25  ;;  %3284 = vmatpush.msra.mxu1 %v497_v28  ;;  %v1617_v13 = vld [vmem:[#allocation3 + $0x2fb8] sm:$0xff] }
 0x28c   :  { %3304 = vmatpush.msra.mxu2 %v753_v4  ;;  %3324 = vmatpush.msra.mxu3 %v1009_v29  ;;  %v1873_v15 = vld [vmem:[#allocation3 + $0x37b8] sm:$0xff] }
 0x28d   :  { %3265 = vmatpush.msra.mxu0 %v225_v31  ;;  %3285 = vmatpush.msra.mxu1 %v481_v32  ;;  %v2129_v17 = vld [vmem:[#allocation3 + $0x3fb8] sm:$0xff] }
 0x28e   :  { %3305 = vmatpush.msra.mxu2 %v737_v33  ;;  %3325 = vmatpush.msra.mxu3 %v993_v1  ;;  %v1345_v40 = vld [vmem:[#allocation3 + $0x2738] sm:$0xff]  ;;  %v5754_v33 = vpop.f32.mrf.mxu2 }
 0x28f   :  { %3266 = vmatpush.msra.mxu0 %v209_v2  ;;  %3286 = vmatpush.msra.mxu1 %v465_v3  ;;  %v1601_v62 = vld [vmem:[#allocation3 + $0x2f38] sm:$0xff] }
 0x290   :  { %3306 = vmatpush.msra.mxu2 %v721_v36  ;;  %3326 = vmatpush.msra.mxu3 %v977_v37  ;;  %v1857_v25 = vld [vmem:[#allocation3 + $0x3738] sm:$0xff] }
 0x291   :  { %3267 = vmatpush.msra.mxu0 %v193_v38  ;;  %3287 = vmatpush.msra.mxu1 %v449_v39  ;;  %v2113_v28 = vld [vmem:[#allocation3 + $0x3f38] sm:$0xff]  ;;  %v5756_v39 = vpop.f32.mrf.mxu3 }
 0x292   :  { %3307 = vmatpush.msra.mxu2 %v705_v42  ;;  %3327 = vmatpush.msra.mxu3 %v961_v43  ;;  %v1329_v4 = vld [vmem:[#allocation3 + $0x26b8] sm:$0xff] }
 0x293   :  { %3268 = vmatpush.msra.mxu0 %v177_v21  ;;  %3288 = vmatpush.msra.mxu1 %v433_v47  ;;  %v1585_v29 = vld [vmem:[#allocation3 + $0x2eb8] sm:$0xff] }
 0x294   :  { %3308 = vmatpush.msra.mxu2 %v689_v49  ;;  %3328 = vmatpush.msra.mxu3 %v945_v50  ;;  %v1841_v31 = vld [vmem:[#allocation3 + $0x36b8] sm:$0xff] }
 0x295   :  { %3269 = vmatpush.msra.mxu0 %v161_v26  ;;  %3289 = vmatpush.msra.mxu1 %v417_v27  ;;  %v2097_v32 = vld [vmem:[#allocation3 + $0x3eb8] sm:$0xff]  ;;  %v5758_v26 = vpop.f32.mrf.mxu0 }
 0x296   :  { %3309 = vmatpush.msra.mxu2 %v673_v60  ;;  %3329 = vmatpush.msra.mxu3 %v929_v51  ;;  %v1313_v1 = vld [vmem:[#allocation3 + $0x2638] sm:$0xff]  ;;  %v5760_v51 = vpop.f32.mrf.mxu1 }
 0x297   :  { %3270 = vmatpush.msra.mxu0 %v145_v52  ;;  %3290 = vmatpush.msra.mxu1 %v401_v53  ;;  %v1569_v2 = vld [vmem:[#allocation3 + $0x2e38] sm:$0xff] }
 0x298   :  { %3310 = vmatpush.msra.mxu2 %v657_v54  ;;  %3330 = vmatpush.msra.mxu3 %v913_v55  ;;  %v1825_v3 = vld [vmem:[#allocation3 + $0x3638] sm:$0xff] }
 0x299   :  { %3271 = vmatpush.msra.mxu0 %v129_v59  ;;  %3291 = vmatpush.msra.mxu1 %v385_v63  ;;  %v2081_v36 = vld [vmem:[#allocation3 + $0x3e38] sm:$0xff] }
 0x29a   :  { %3311 = vmatpush.msra.mxu2 %v641_v0  ;;  %3331 = vmatpush.msra.mxu3 %v897_v5  ;;  %v1297_v37 = vld [vmem:[#allocation3 + $0x25b8] sm:$0xff]  ;;  %v5762_v0 = vpop.f32.mrf.mxu2 }
 0x29b   :  { %3272 = vmatpush.msra.mxu0 %v113_v6  ;;  %3292 = vmatpush.msra.mxu1 %v369_v44  ;;  %v1553_v38 = vld [vmem:[#allocation3 + $0x2db8] sm:$0xff] }
 0x29c   :  { %3312 = vmatpush.msra.mxu2 %v625_v48  ;;  %3332 = vmatpush.msra.mxu3 %v881_v22  ;;  %v1809_v42 = vld [vmem:[#allocation3 + $0x35b8] sm:$0xff] }
 0x29d   :  { %3273 = vmatpush.msra.mxu0 %v97_v7  ;;  %3293 = vmatpush.msra.mxu1 %v353_v8  ;;  %v2065_v43 = vld [vmem:[#allocation3 + $0x3db8] sm:$0xff]  ;;  %v5764_v8 = vpop.f32.mrf.mxu3 }
 0x29e   :  { %3313 = vmatpush.msra.mxu2 %v609_v9  ;;  %3333 = vmatpush.msra.mxu3 %v865_v10  ;;  %v1281_v21 = vld [vmem:[#allocation3 + $0x2538] sm:$0xff] }
 0x29f   :  { %3338 = vmatpush.msrb.mxu0 %v1361_v11  ;;  %3358 = vmatpush.msrb.mxu1 %v1617_v13  ;;  %v1537_v47 = vld [vmem:[#allocation3 + $0x2d38] sm:$0xff]  ;;  %v5766_v11 = vpop.f32.mrf.mxu0 }
 0x2a0   :  { %3378 = vmatpush.msrb.mxu2 %v1873_v15  ;;  %3398 = vmatpush.msrb.mxu3 %v2129_v17  ;;  %v1793_v49 = vld [vmem:[#allocation3 + $0x3538] sm:$0xff]  ;;  %v5768_v17 = vpop.f32.mrf.mxu1 }
 0x2a1   :  { %3339 = vmatpush.msrb.mxu0 %v1345_v40  ;;  %3359 = vmatpush.msrb.mxu1 %v1601_v62  ;;  %v2049_v50 = vld [vmem:[#allocation3 + $0x3d38] sm:$0xff] }
 0x2a2   :  { %3379 = vmatpush.msrb.mxu2 %v1857_v25  ;;  %3399 = vmatpush.msrb.mxu3 %v2113_v28  ;;  %v1265_v27 = vld [vmem:[#allocation3 + $0x24b8] sm:$0xff] }
 0x2a3   :  { %3340 = vmatpush.msrb.mxu0 %v1329_v4  ;;  %3360 = vmatpush.msrb.mxu1 %v1585_v29  ;;  %v1521_v60 = vld [vmem:[#allocation3 + $0x2cb8] sm:$0xff] }
 0x2a4   :  { %3380 = vmatpush.msrb.mxu2 %v1841_v31  ;;  %3400 = vmatpush.msrb.mxu3 %v2097_v32  ;;  %v1777_v52 = vld [vmem:[#allocation3 + $0x34b8] sm:$0xff]  ;;  %v5770_v31 = vpop.f32.mrf.mxu2 }
 0x2a5   :  { %3341 = vmatpush.msrb.mxu0 %v1313_v1  ;;  %3361 = vmatpush.msrb.mxu1 %v1569_v2  ;;  %v2033_v53 = vld [vmem:[#allocation3 + $0x3cb8] sm:$0xff] }
 0x2a6   :  { %3381 = vmatpush.msrb.mxu2 %v1825_v3  ;;  %3401 = vmatpush.msrb.mxu3 %v2081_v36  ;;  %v1249_v54 = vld [vmem:[#allocation3 + $0x2438] sm:$0xff] }
 0x2a7   :  { %3342 = vmatpush.msrb.mxu0 %v1297_v37  ;;  %3362 = vmatpush.msrb.mxu1 %v1553_v38  ;;  %v1505_v55 = vld [vmem:[#allocation3 + $0x2c38] sm:$0xff]  ;;  %v5772_v38 = vpop.f32.mrf.mxu3 }
 0x2a8   :  { %3382 = vmatpush.msrb.mxu2 %v1809_v42  ;;  %3402 = vmatpush.msrb.mxu3 %v2065_v43  ;;  %v1761_v59 = vld [vmem:[#allocation3 + $0x3438] sm:$0xff] }
 0x2a9   :  { %3343 = vmatpush.msrb.mxu0 %v1281_v21  ;;  %3363 = vmatpush.msrb.mxu1 %v1537_v47  ;;  %v2017_v63 = vld [vmem:[#allocation3 + $0x3c38] sm:$0xff] }
 0x2aa   :  { %3383 = vmatpush.msrb.mxu2 %v1793_v49  ;;  %3403 = vmatpush.msrb.mxu3 %v2049_v50  ;;  %v1233_v5 = vld [vmem:[#allocation3 + $0x23b8] sm:$0xff] }
 0x2ab   :  { %3344 = vmatpush.msrb.mxu0 %v1265_v27  ;;  %3364 = vmatpush.msrb.mxu1 %v1521_v60  ;;  %v1489_v6 = vld [vmem:[#allocation3 + $0x2bb8] sm:$0xff]  ;;  %v5774_v27 = vpop.f32.mrf.mxu0 }
 0x2ac   :  { %3384 = vmatpush.msrb.mxu2 %v1777_v52  ;;  %3404 = vmatpush.msrb.mxu3 %v2033_v53  ;;  %v1745_v44 = vld [vmem:[#allocation3 + $0x33b8] sm:$0xff]  ;;  %v5776_v52 = vpop.f32.mrf.mxu1 }
 0x2ad   :  { %3345 = vmatpush.msrb.mxu0 %v1249_v54  ;;  %3365 = vmatpush.msrb.mxu1 %v1505_v55  ;;  %v2001_v48 = vld [vmem:[#allocation3 + $0x3bb8] sm:$0xff] }
 0x2ae   :  { %3385 = vmatpush.msrb.mxu2 %v1761_v59  ;;  %3405 = vmatpush.msrb.mxu3 %v2017_v63  ;;  %v1217_v22 = vld [vmem:[#allocation3 + $0x2338] sm:$0xff]  ;;  %v5779_v59 = vpop.f32.mrf.mxu2  ;;  %v338_v63 = vld [vmem:[#allocation3 + $0x7c0] sm:$0xff] }
 0x2af   :  { %v1473_v7 = vld [vmem:[#allocation3 + $0x2b38] sm:$0xff]  ;;  %3346 = vmatpush.msrb.mxu0 %v1233_v5  ;;  %3366 = vmatpush.msrb.mxu1 %v1489_v6  ;;  %v594_v5 = vld [vmem:[#allocation3 + $0xfc0] sm:$0xff] }
 0x2b0   :  { %v1729_v9 = vld [vmem:[#allocation3 + $0x3338] sm:$0xff]  ;;  %3386 = vmatpush.msrb.mxu2 %v1745_v44  ;;  %3406 = vmatpush.msrb.mxu3 %v2001_v48  ;;  %v850_v6 = vld [vmem:[#allocation3 + $0x17c0] sm:$0xff] }
 0x2b1   :  { %v1985_v10 = vld [vmem:[#allocation3 + $0x3b38] sm:$0xff]  ;;  %3347 = vmatpush.msrb.mxu0 %v1217_v22  ;;  %3367 = vmatpush.msrb.mxu1 %v1473_v7  ;;  %v1106_v44 = vld [vmem:[#allocation3 + $0x1fc0] sm:$0xff]  ;;  %v5784_v7 = vpop.f32.mrf.mxu3 }
 0x2b2   :  { %v1201_v13 = vld [vmem:[#allocation3 + $0x22b8] sm:$0xff]  ;;  %3387 = vmatpush.msrb.mxu2 %v1729_v9  ;;  %3407 = vmatpush.msrb.mxu3 %v1985_v10  ;;  %v322_v48 = vld [vmem:[#allocation3 + $0x740] sm:$0xff] }
 0x2b3   :  { %v1457_v15 = vld [vmem:[#allocation3 + $0x2ab8] sm:$0xff]  ;;  %3348 = vmatpush.msrb.mxu0 %v1201_v13  ;;  %3314 = vmatmul.f32.vlgmr.msra.gmra.mxu2 %v5689_v57  ;;  %v578_v22 = vld [vmem:[#allocation3 + $0xf40] sm:$0xff]  ;;  %v5786_v10 = vpop.f32.mrf.mxu0 }
 0x2b4   :  { %v1713_v40 = vld [vmem:[#allocation3 + $0x32b8] sm:$0xff]  ;;  %3368 = vmatpush.msrb.mxu1 %v1457_v15  ;;  %3274 = vmatmul.f32.vlgmr.msra.gmra.mxu0 %v5695_v61  ;;  %v834_v57 = vld [vmem:[#allocation3 + $0x1740] sm:$0xff]  ;;  %v5788_v15 = vpop.f32.mrf.mxu1 }
 0x2b5   :  { %v1969_v62 = vld [vmem:[#allocation3 + $0x3ab8] sm:$0xff]  ;;  %3388 = vmatpush.msrb.mxu2 %v1713_v40  ;;  %3294 = vmatmul.f32.vlgmr.msra.gmra.mxu1 %v5701_v45  ;;  %v1090_v9 = vld [vmem:[#allocation3 + $0x1f40] sm:$0xff] }
 0x2b6   :  { %v1185_v25 = vld [vmem:[#allocation3 + $0x2238] sm:$0xff]  ;;  %3408 = vmatpush.msrb.mxu3 %v1969_v62  ;;  %v306_v13 = vld [vmem:[#allocation3 + $0x6c0] sm:$0xff] }
 0x2b7   :  { %v1441_v28 = vld [vmem:[#allocation3 + $0x2a38] sm:$0xff]  ;;  %3349 = vmatpush.msrb.mxu0 %v1185_v25  ;;  %3334 = vmatmul.f32.vlgmr.msra.gmra.mxu3 %v5707_v41  ;;  %v562_v61 = vld [vmem:[#allocation3 + $0xec0] sm:$0xff] }
 0x2b8   :  { %v1697_v4 = vld [vmem:[#allocation3 + $0x3238] sm:$0xff]  ;;  %3369 = vmatpush.msrb.mxu1 %v1441_v28  ;;  %v818_v45 = vld [vmem:[#allocation3 + $0x16c0] sm:$0xff]  ;;  %v5790_v28 = vpop.f32.mrf.mxu2 }
 0x2b9   :  { %v1953_v29 = vld [vmem:[#allocation3 + $0x3a38] sm:$0xff]  ;;  %3389 = vmatpush.msrb.mxu2 %v1697_v4  ;;  %v1074_v41 = vld [vmem:[#allocation3 + $0x1ec0] sm:$0xff] }
 0x2ba   :  { %v1169_v32 = vld [vmem:[#allocation3 + $0x21b8] sm:$0xff]  ;;  %3409 = vmatpush.msrb.mxu3 %v1953_v29  ;;  %v290_v40 = vld [vmem:[#allocation3 + $0x640] sm:$0xff] }
 0x2bb   :  { %v1425_v1 = vld [vmem:[#allocation3 + $0x29b8] sm:$0xff]  ;;  %3350 = vmatpush.msrb.mxu0 %v1169_v32  ;;  %v546_v62 = vld [vmem:[#allocation3 + $0xe40] sm:$0xff] }
 0x2bc   :  { %v1681_v2 = vld [vmem:[#allocation3 + $0x31b8] sm:$0xff]  ;;  %3370 = vmatpush.msrb.mxu1 %v1425_v1  ;;  %v802_v25 = vld [vmem:[#allocation3 + $0x1640] sm:$0xff] }
 0x2bd   :  { %v1937_v3 = vld [vmem:[#allocation3 + $0x39b8] sm:$0xff]  ;;  %3390 = vmatpush.msrb.mxu2 %v1681_v2  ;;  %v1058_v4 = vld [vmem:[#allocation3 + $0x1e40] sm:$0xff]  ;;  %v5793_v2 = vpop.f32.mrf.mxu3 }
 0x2be   :  { %v1153_v36 = vld [vmem:[#allocation3 + $0x2138] sm:$0xff]  ;;  %3410 = vmatpush.msrb.mxu3 %v1937_v3  ;;  %v274_v29 = vld [vmem:[#allocation3 + $0x5c0] sm:$0xff] }
 0x2bf   :  { %v1409_v37 = vld [vmem:[#allocation3 + $0x2938] sm:$0xff]  ;;  %3351 = vmatpush.msrb.mxu0 %v1153_v36  ;;  %v530_v32 = vld [vmem:[#allocation3 + $0xdc0] sm:$0xff] }
 0x2c0   :  { %v1665_v42 = vld [vmem:[#allocation3 + $0x3138] sm:$0xff]  ;;  %3371 = vmatpush.msrb.mxu1 %v1409_v37  ;;  %v786_v1 = vld [vmem:[#allocation3 + $0x15c0] sm:$0xff] }
 0x2c1   :  { %v1921_v43 = vld [vmem:[#allocation3 + $0x3938] sm:$0xff]  ;;  %3391 = vmatpush.msrb.mxu2 %v1665_v42  ;;  %v1042_v3 = vld [vmem:[#allocation3 + $0x1dc0] sm:$0xff] }
 0x2c2   :  { %v1137_v21 = vld [vmem:[#allocation3 + $0x20b8] sm:$0xff]  ;;  %3411 = vmatpush.msrb.mxu3 %v1921_v43  ;;  %v258_v36 = vld [vmem:[#allocation3 + $0x540] sm:$0xff]  ;;  %v5797_v43 = vpop.f32.mrf.mxu0 }
 0x2c3   :  { %v1393_v47 = vld [vmem:[#allocation3 + $0x28b8] sm:$0xff]  ;;  %3352 = vmatpush.msrb.mxu0 %v1137_v21  ;;  %v514_v37 = vld [vmem:[#allocation3 + $0xd40] sm:$0xff] }
 0x2c4   :  { %v1649_v49 = vld [vmem:[#allocation3 + $0x30b8] sm:$0xff]  ;;  %3372 = vmatpush.msrb.mxu1 %v1393_v47  ;;  %v1026_v42 = vld [vmem:[#allocation3 + $0x1d40] sm:$0xff] }
 0x2c5   :  { %v1905_v50 = vld [vmem:[#allocation3 + $0x38b8] sm:$0xff]  ;;  %3392 = vmatpush.msrb.mxu2 %v1649_v49  ;;  %v242_v21 = vld [vmem:[#allocation3 + $0x4c0] sm:$0xff]  ;;  %v5800_v49 = vpop.f32.mrf.mxu1 }
 0x2c6   :  { %v1121_v60 = vld [vmem:[#allocation3 + $0x2038] sm:$0xff]  ;;  %3412 = vmatpush.msrb.mxu3 %v1905_v50  ;;  %v498_v47 = vld [vmem:[#allocation3 + $0xcc0] sm:$0xff] }
 0x2c7   :  { %v1377_v53 = vld [vmem:[#allocation3 + $0x2838] sm:$0xff]  ;;  %3353 = vmatpush.msrb.mxu0 %v1121_v60  ;;  %v226_v50 = vld [vmem:[#allocation3 + $0x440] sm:$0xff] }
 0x2c8   :  { %v1633_v54 = vld [vmem:[#allocation3 + $0x3038] sm:$0xff]  ;;  %3373 = vmatpush.msrb.mxu1 %v1377_v53  ;;  %3354 = vmatmul.f32.vlgmr.msrb.gmra.mxu0 %v5719_v56  ;;  %v754_v56 = vld [vmem:[#allocation3 + $0x14c0] sm:$0xff] }
 0x2c9   :  { %v1889_v55 = vld [vmem:[#allocation3 + $0x3838] sm:$0xff]  ;;  %3393 = vmatpush.msrb.mxu2 %v1633_v54  ;;  %3418 = vmatpush.msra.mxu0 %v338_v63  ;;  %v482_v60 = vld [vmem:[#allocation3 + $0xc40] sm:$0xff] }
 0x2ca   :  { %3413 = vmatpush.msrb.mxu3 %v1889_v55  ;;  %3438 = vmatpush.msra.mxu1 %v594_v5  ;;  %v738_v53 = vld [vmem:[#allocation3 + $0x1440] sm:$0xff]  ;;  %v5802_v55 = vpop.f32.mrf.mxu2 }
 0x2cb   :  { %3458 = vmatpush.msra.mxu2 %v850_v6  ;;  %3419 = vmatpush.msra.mxu0 %v322_v48  ;;  %v994_v54 = vld [vmem:[#allocation3 + $0x1c40] sm:$0xff] }
 0x2cc   :  { %3478 = vmatpush.msra.mxu3 %v1106_v44  ;;  %3439 = vmatpush.msra.mxu1 %v578_v22  ;;  %v466_v63 = vld [vmem:[#allocation3 + $0xbc0] sm:$0xff]  ;;  %v5804_v22 = vpop.f32.mrf.mxu3 }
 0x2cd   :  { %3459 = vmatpush.msra.mxu2 %v834_v57  ;;  %3420 = vmatpush.msra.mxu0 %v306_v13  ;;  %v722_v5 = vld [vmem:[#allocation3 + $0x13c0] sm:$0xff]  ;;  %v5806_v13 = vpop.f32.mrf.mxu0 }
 0x2ce   :  { %3479 = vmatpush.msra.mxu3 %v1090_v9  ;;  %3440 = vmatpush.msra.mxu1 %v562_v61  ;;  %v978_v6 = vld [vmem:[#allocation3 + $0x1bc0] sm:$0xff] }
 0x2cf   :  { %3460 = vmatpush.msra.mxu2 %v818_v45  ;;  %3421 = vmatpush.msra.mxu0 %v290_v40  ;;  %v194_v44 = vld [vmem:[#allocation3 + $0x340] sm:$0xff] }
 0x2d0   :  { %3480 = vmatpush.msra.mxu3 %v1074_v41  ;;  %3394 = vmatmul.f32.vlgmr.msrb.gmra.mxu2 %v5713_v12  ;;  %v770_v12 = vld [vmem:[#allocation3 + $0x1540] sm:$0xff]  ;;  %v5808_v41 = vpop.f32.mrf.mxu1 }
 0x2d1   :  { %3441 = vmatpush.msra.mxu1 %v546_v62  ;;  %3461 = vmatpush.msra.mxu2 %v802_v25  ;;  %v450_v48 = vld [vmem:[#allocation3 + $0xb40] sm:$0xff] }
 0x2d2   :  { %3481 = vmatpush.msra.mxu3 %v1058_v4  ;;  %3422 = vmatpush.msra.mxu0 %v274_v29  ;;  %v706_v57 = vld [vmem:[#allocation3 + $0x1340] sm:$0xff] }
 0x2d3   :  { %3414 = vmatmul.f32.vlgmr.msrb.gmra.mxu3 %v5725_v18  ;;  %3442 = vmatpush.msra.mxu1 %v530_v32  ;;  %v1010_v18 = vld [vmem:[#allocation3 + $0x1cc0] sm:$0xff] }
 0x2d4   :  { %3462 = vmatpush.msra.mxu2 %v786_v1  ;;  %3482 = vmatpush.msra.mxu3 %v1042_v3  ;;  %v962_v9 = vld [vmem:[#allocation3 + $0x1b40] sm:$0xff]  ;;  %v5810_v1 = vpop.f32.mrf.mxu2 }
 0x2d5   :  { %3374 = vmatmul.f32.vlgmr.msrb.gmra.mxu1 %v5731_v24  ;;  %3423 = vmatpush.msra.mxu0 %v258_v36  ;;  %v210_v24 = vld [vmem:[#allocation3 + $0x3c0] sm:$0xff] }
 0x2d6   :  { %3443 = vmatpush.msra.mxu1 %v514_v37  ;;  %3463 = vmatpush.msra.mxu2 %v770_v12  ;;  %v178_v61 = vld [vmem:[#allocation3 + $0x2c0] sm:$0xff] }
 0x2d7   :  { %3483 = vmatpush.msra.mxu3 %v1026_v42  ;;  %3424 = vmatpush.msra.mxu0 %v242_v21  ;;  %v434_v45 = vld [vmem:[#allocation3 + $0xac0] sm:$0xff] }
 0x2d8   :  { %3444 = vmatpush.msra.mxu1 %v498_v47  ;;  %3464 = vmatpush.msra.mxu2 %v754_v56  ;;  %v690_v40 = vld [vmem:[#allocation3 + $0x12c0] sm:$0xff]  ;;  %v5812_v47 = vpop.f32.mrf.mxu3 }
 0x2d9   :  { %3484 = vmatpush.msra.mxu3 %v1010_v18  ;;  %3425 = vmatpush.msra.mxu0 %v226_v50  ;;  %v946_v62 = vld [vmem:[#allocation3 + $0x1ac0] sm:$0xff]  ;;  %6278 = vst [vmem:[#allocation9_spill] sm:$0xff] %v5812_v47 }
 0x2da   :  { %3445 = vmatpush.msra.mxu1 %v482_v60  ;;  %3465 = vmatpush.msra.mxu2 %v738_v53  ;;  %v162_v25 = vld [vmem:[#allocation3 + $0x240] sm:$0xff] }
 0x2db   :  { %3485 = vmatpush.msra.mxu3 %v994_v54  ;;  %3426 = vmatpush.msra.mxu0 %v210_v24  ;;  %v418_v4 = vld [vmem:[#allocation3 + $0xa40] sm:$0xff]  ;;  %v5814_v24 = vpop.f32.mrf.mxu0 }
 0x2dc   :  { %3446 = vmatpush.msra.mxu1 %v466_v63  ;;  %3466 = vmatpush.msra.mxu2 %v722_v5  ;;  %v674_v29 = vld [vmem:[#allocation3 + $0x1240] sm:$0xff]  ;;  %6279 = vst [vmem:[#allocation10_spill] sm:$0xff] %v5814_v24  ;;  %v979_v24 = vld [vmem:[#allocation3 + $0x1bc8] sm:$0xff] }
 0x2dd   :  { %3486 = vmatpush.msra.mxu3 %v978_v6  ;;  %3427 = vmatpush.msra.mxu0 %v194_v44  ;;  %v930_v32 = vld [vmem:[#allocation3 + $0x1a40] sm:$0xff]  ;;  %v5816_v6 = vpop.f32.mrf.mxu1 }
 0x2de   :  { %3447 = vmatpush.msra.mxu1 %v450_v48  ;;  %3467 = vmatpush.msra.mxu2 %v706_v57  ;;  %v146_v3 = vld [vmem:[#allocation3 + $0x1c0] sm:$0xff]  ;;  %6280 = vst [vmem:[#allocation11_spill] sm:$0xff] %v5816_v6 }
 0x2df   :  { %3487 = vmatpush.msra.mxu3 %v962_v9  ;;  %3428 = vmatpush.msra.mxu0 %v178_v61  ;;  %v402_v36 = vld [vmem:[#allocation3 + $0x9c0] sm:$0xff] }
 0x2e0   :  { %3448 = vmatpush.msra.mxu1 %v434_v45  ;;  %3468 = vmatpush.msra.mxu2 %v690_v40  ;;  %v658_v37 = vld [vmem:[#allocation3 + $0x11c0] sm:$0xff]  ;;  %v5818_v40 = vpop.f32.mrf.mxu2 }
 0x2e1   :  { %3488 = vmatpush.msra.mxu3 %v946_v62  ;;  %3429 = vmatpush.msra.mxu0 %v162_v25  ;;  %v914_v12 = vld [vmem:[#allocation3 + $0x19c0] sm:$0xff]  ;;  %6281 = vst [vmem:[#allocation12_spill] sm:$0xff] %v5818_v40  ;;  %v1075_v40 = vld [vmem:[#allocation3 + $0x1ec8] sm:$0xff] }
 0x2e2   :  { %3449 = vmatpush.msra.mxu1 %v418_v4  ;;  %3469 = vmatpush.msra.mxu2 %v674_v29  ;;  %v130_v42 = vld [vmem:[#allocation3 + $0x140] sm:$0xff] }
 0x2e3   :  { %3489 = vmatpush.msra.mxu3 %v930_v32  ;;  %v386_v21 = vld [vmem:[#allocation3 + $0x940] sm:$0xff]  ;;  %3430 = vmatpush.msra.mxu0 %v146_v3 }
 0x2e4   :  { %3450 = vmatpush.msra.mxu1 %v402_v36  ;;  %v642_v56 = vld [vmem:[#allocation3 + $0x1140] sm:$0xff]  ;;  %3470 = vmatpush.msra.mxu2 %v658_v37  ;;  %v5820_v36 = vpop.f32.mrf.mxu3 }
 0x2e5   :  { %v898_v18 = vld [vmem:[#allocation3 + $0x1940] sm:$0xff]  ;;  %3490 = vmatpush.msra.mxu3 %v914_v12  ;;  %3431 = vmatpush.msra.mxu0 %v130_v42  ;;  %6282 = vst [vmem:[#allocation13_spill] sm:$0xff] %v5820_v36  ;;  %v5822_v42 = vpop.f32.mrf.mxu0 }
 0x2e6   :  { %v114_v50 = vld [vmem:[#allocation3 + $0xc0] sm:$0xff]  ;;  %3451 = vmatpush.msra.mxu1 %v386_v21  ;;  %3471 = vmatpush.msra.mxu2 %v642_v56 }
 0x2e7   :  { %v370_v60 = vld [vmem:[#allocation3 + $0x8c0] sm:$0xff]  ;;  %3491 = vmatpush.msra.mxu3 %v898_v18  ;;  %3432 = vmatpush.msra.mxu0 %v114_v50  ;;  %v5824_v18 = vpop.f32.mrf.mxu1 }
 0x2e8   :  { %v626_v53 = vld [vmem:[#allocation3 + $0x10c0] sm:$0xff]  ;;  %3452 = vmatpush.msra.mxu1 %v370_v60 }
 0x2e9   :  { %v882_v54 = vld [vmem:[#allocation3 + $0x18c0] sm:$0xff]  ;;  %3472 = vmatpush.msra.mxu2 %v626_v53 }
 0x2ea   :  { %v98_v63 = vld [vmem:[#allocation3 + $0x40] sm:$0xff]  ;;  %3492 = vmatpush.msra.mxu3 %v882_v54 }
 0x2eb   :  { %v354_v5 = vld [vmem:[#allocation3 + $0x840] sm:$0xff]  ;;  %3433 = vmatpush.msra.mxu0 %v98_v63 }
 0x2ec   :  { %v610_v44 = vld [vmem:[#allocation3 + $0x1040] sm:$0xff]  ;;  %3453 = vmatpush.msra.mxu1 %v354_v5 }
 0x2ed   :  { %v866_v48 = vld [vmem:[#allocation3 + $0x1840] sm:$0xff]  ;;  %3473 = vmatpush.msra.mxu2 %v610_v44  ;;  %v5826_v44 = vpop.f32.mrf.mxu2 }
 0x2ee   :  { %v1362_v57 = vld [vmem:[#allocation3 + $0x27c0] sm:$0xff]  ;;  %3493 = vmatpush.msra.mxu3 %v866_v48 }
 0x2ef   :  { %v1618_v9 = vld [vmem:[#allocation3 + $0x2fc0] sm:$0xff]  ;;  %3498 = vmatpush.msrb.mxu0 %v1362_v57 }
 0x2f0   :  { %v1874_v61 = vld [vmem:[#allocation3 + $0x37c0] sm:$0xff]  ;;  %3518 = vmatpush.msrb.mxu1 %v1618_v9 }
 0x2f1   :  { %v2130_v45 = vld [vmem:[#allocation3 + $0x3fc0] sm:$0xff]  ;;  %3538 = vmatpush.msrb.mxu2 %v1874_v61 }
 0x2f2   :  { %v1346_v62 = vld [vmem:[#allocation3 + $0x2740] sm:$0xff]  ;;  %3558 = vmatpush.msrb.mxu3 %v2130_v45 }
 0x2f3   :  { %v1602_v25 = vld [vmem:[#allocation3 + $0x2f40] sm:$0xff]  ;;  %3499 = vmatpush.msrb.mxu0 %v1346_v62 }
 0x2f4   :  { %v1858_v4 = vld [vmem:[#allocation3 + $0x3740] sm:$0xff]  ;;  %3519 = vmatpush.msrb.mxu1 %v1602_v25  ;;  %v5828_v25 = vpop.f32.mrf.mxu3 }
 0x2f5   :  { %v2114_v29 = vld [vmem:[#allocation3 + $0x3f40] sm:$0xff]  ;;  %3539 = vmatpush.msrb.mxu2 %v1858_v4  ;;  %6283 = vst [vmem:[#allocation14_spill] sm:$0xff] %v5828_v25 }
 0x2f6   :  { %v1330_v32 = vld [vmem:[#allocation3 + $0x26c0] sm:$0xff]  ;;  %3559 = vmatpush.msrb.mxu3 %v2114_v29 }
 0x2f7   :  { %v1586_v3 = vld [vmem:[#allocation3 + $0x2ec0] sm:$0xff]  ;;  %3500 = vmatpush.msrb.mxu0 %v1330_v32 }
 0x2f8   :  { %v1842_v37 = vld [vmem:[#allocation3 + $0x36c0] sm:$0xff]  ;;  %3520 = vmatpush.msrb.mxu1 %v1586_v3 }
 0x2f9   :  { %v2098_v12 = vld [vmem:[#allocation3 + $0x3ec0] sm:$0xff]  ;;  %3540 = vmatpush.msrb.mxu2 %v1842_v37 }
 0x2fa   :  { %v1314_v21 = vld [vmem:[#allocation3 + $0x2640] sm:$0xff]  ;;  %3560 = vmatpush.msrb.mxu3 %v2098_v12 }
 0x2fb   :  { %v1570_v56 = vld [vmem:[#allocation3 + $0x2e40] sm:$0xff]  ;;  %3501 = vmatpush.msrb.mxu0 %v1314_v21  ;;  %v5830_v21 = vpop.f32.mrf.mxu0 }
 0x2fc   :  { %v1826_v50 = vld [vmem:[#allocation3 + $0x3640] sm:$0xff]  ;;  %3521 = vmatpush.msrb.mxu1 %v1570_v56  ;;  %6284 = vst [vmem:[#allocation15_spill] sm:$0xff] %v5830_v21 }
 0x2fd   :  { %v2082_v60 = vld [vmem:[#allocation3 + $0x3e40] sm:$0xff]  ;;  %3541 = vmatpush.msrb.mxu2 %v1826_v50 }
 0x2fe   :  { %v1298_v53 = vld [vmem:[#allocation3 + $0x25c0] sm:$0xff]  ;;  %3561 = vmatpush.msrb.mxu3 %v2082_v60  ;;  %v5832_v60 = vpop.f32.mrf.mxu1 }
 0x2ff   :  { %v1554_v54 = vld [vmem:[#allocation3 + $0x2dc0] sm:$0xff]  ;;  %3502 = vmatpush.msrb.mxu0 %v1298_v53  ;;  %6285 = vst [vmem:[#allocation16_spill] sm:$0xff] %v5832_v60  ;;  %v291_v60 = vld [vmem:[#allocation3 + $0x648] sm:$0xff] }
 0x300   :  { %v1810_v63 = vld [vmem:[#allocation3 + $0x35c0] sm:$0xff]  ;;  %3522 = vmatpush.msrb.mxu1 %v1554_v54 }
 0x301   :  { %v2066_v5 = vld [vmem:[#allocation3 + $0x3dc0] sm:$0xff]  ;;  %3542 = vmatpush.msrb.mxu2 %v1810_v63 }
 0x302   :  { %v1282_v48 = vld [vmem:[#allocation3 + $0x2540] sm:$0xff]  ;;  %3562 = vmatpush.msrb.mxu3 %v2066_v5 }
 0x303   :  { %v1538_v57 = vld [vmem:[#allocation3 + $0x2d40] sm:$0xff]  ;;  %3503 = vmatpush.msrb.mxu0 %v1282_v48 }
 0x304   :  { %v1794_v9 = vld [vmem:[#allocation3 + $0x3540] sm:$0xff]  ;;  %3523 = vmatpush.msrb.mxu1 %v1538_v57 }
 0x305   :  { %v2050_v61 = vld [vmem:[#allocation3 + $0x3d40] sm:$0xff]  ;;  %3543 = vmatpush.msrb.mxu2 %v1794_v9  ;;  %v5834_v9 = vpop.f32.mrf.mxu2 }
 0x306   :  { %v1266_v45 = vld [vmem:[#allocation3 + $0x24c0] sm:$0xff]  ;;  %3563 = vmatpush.msrb.mxu3 %v2050_v61  ;;  %6286 = vst [vmem:[#allocation17_spill] sm:$0xff] %v5834_v9 }
 0x307   :  { %v1522_v62 = vld [vmem:[#allocation3 + $0x2cc0] sm:$0xff]  ;;  %3504 = vmatpush.msrb.mxu0 %v1266_v45 }
 0x308   :  { %v1778_v4 = vld [vmem:[#allocation3 + $0x34c0] sm:$0xff]  ;;  %3524 = vmatpush.msrb.mxu1 %v1522_v62 }
 0x309   :  { %v2034_v29 = vld [vmem:[#allocation3 + $0x3cc0] sm:$0xff]  ;;  %3544 = vmatpush.msrb.mxu2 %v1778_v4 }
 0x30a   :  { %v1250_v32 = vld [vmem:[#allocation3 + $0x2440] sm:$0xff]  ;;  %3564 = vmatpush.msrb.mxu3 %v2034_v29 }
 0x30b   :  { %v1506_v3 = vld [vmem:[#allocation3 + $0x2c40] sm:$0xff]  ;;  %3505 = vmatpush.msrb.mxu0 %v1250_v32 }
 0x30c   :  { %v1762_v37 = vld [vmem:[#allocation3 + $0x3440] sm:$0xff]  ;;  %3525 = vmatpush.msrb.mxu1 %v1506_v3  ;;  %v5836_v3 = vpop.f32.mrf.mxu3 }
 0x30d   :  { %v2018_v12 = vld [vmem:[#allocation3 + $0x3c40] sm:$0xff]  ;;  %3545 = vmatpush.msrb.mxu2 %v1762_v37  ;;  %6287 = vst [vmem:[#allocation18_spill] sm:$0xff] %v5836_v3  ;;  %v3155_v3 = vpop.f32.mrf.mxu2 }
 0x30e   :  { %v1234_v56 = vld [vmem:[#allocation3 + $0x23c0] sm:$0xff]  ;;  %3565 = vmatpush.msrb.mxu3 %v2018_v12 }
 0x30f   :  { %v1490_v50 = vld [vmem:[#allocation3 + $0x2bc0] sm:$0xff]  ;;  %3506 = vmatpush.msrb.mxu0 %v1234_v56 }
 0x310   :  { %v1746_v53 = vld [vmem:[#allocation3 + $0x33c0] sm:$0xff]  ;;  %3526 = vmatpush.msrb.mxu1 %v1490_v50 }
 0x311   :  { %v2002_v54 = vld [vmem:[#allocation3 + $0x3bc0] sm:$0xff]  ;;  %3546 = vmatpush.msrb.mxu2 %v1746_v53  ;;  %v3115_v53 = vpop.f32.mrf.mxu0 }
 0x312   :  { %v1218_v63 = vld [vmem:[#allocation3 + $0x2340] sm:$0xff]  ;;  %3566 = vmatpush.msrb.mxu3 %v2002_v54 }
 0x313   :  { %v1474_v5 = vld [vmem:[#allocation3 + $0x2b40] sm:$0xff]  ;;  %3507 = vmatpush.msrb.mxu0 %v1218_v63 }
 0x314   :  { %v1730_v48 = vld [vmem:[#allocation3 + $0x3340] sm:$0xff]  ;;  %3527 = vmatpush.msrb.mxu1 %v1474_v5  ;;  %v3135_v5 = vpop.f32.mrf.mxu1 }
 0x315   :  { %v1986_v57 = vld [vmem:[#allocation3 + $0x3b40] sm:$0xff]  ;;  %3547 = vmatpush.msrb.mxu2 %v1730_v48  ;;  %v3136_v36 = vadd.f32 %v3135_v5, %v3115_v53 }
 0x316   :  { %v1202_v61 = vld [vmem:[#allocation3 + $0x22c0] sm:$0xff]  ;;  %3567 = vmatpush.msrb.mxu3 %v1986_v57 }
 0x317   :  { %v1458_v45 = vld [vmem:[#allocation3 + $0x2ac0] sm:$0xff]  ;;  %3508 = vmatpush.msrb.mxu0 %v1202_v61  ;;  %v3156_v9 = vadd.f32 %v3155_v3, %v3136_v36  ;;  %v339_v36 = vld [vmem:[#allocation3 + $0x7c8] sm:$0xff] }
 0x318   :  { %v1714_v62 = vld [vmem:[#allocation3 + $0x32c0] sm:$0xff]  ;;  %3528 = vmatpush.msrb.mxu1 %v1458_v45  ;;  %v595_v3 = vld [vmem:[#allocation3 + $0xfc8] sm:$0xff] }
 0x319   :  { %v1970_v4 = vld [vmem:[#allocation3 + $0x3ac0] sm:$0xff]  ;;  %3548 = vmatpush.msrb.mxu2 %v1714_v62  ;;  %v3195_v5 = vpop.f32.mrf.mxu0 }
 0x31a   :  { %v1186_v29 = vld [vmem:[#allocation3 + $0x2240] sm:$0xff]  ;;  %3568 = vmatpush.msrb.mxu3 %v1970_v4 }
 0x31b   :  { %v1442_v32 = vld [vmem:[#allocation3 + $0x2a40] sm:$0xff]  ;;  %3509 = vmatpush.msrb.mxu0 %v1186_v29 }
 0x31c   :  { %v1698_v37 = vld [vmem:[#allocation3 + $0x3240] sm:$0xff]  ;;  %3529 = vmatpush.msrb.mxu1 %v1442_v32 }
 0x31d   :  { %v1954_v12 = vld [vmem:[#allocation3 + $0x3a40] sm:$0xff]  ;;  %3549 = vmatpush.msrb.mxu2 %v1698_v37 }
 0x31e   :  { %v1170_v56 = vld [vmem:[#allocation3 + $0x21c0] sm:$0xff]  ;;  %3569 = vmatpush.msrb.mxu3 %v1954_v12 }
 0x31f   :  { %v1426_v50 = vld [vmem:[#allocation3 + $0x29c0] sm:$0xff]  ;;  %3510 = vmatpush.msrb.mxu0 %v1170_v56 }
 0x320   :  { %v1682_v54 = vld [vmem:[#allocation3 + $0x31c0] sm:$0xff]  ;;  %3530 = vmatpush.msrb.mxu1 %v1426_v50  ;;  %v3175_v50 = vpop.f32.mrf.mxu3 }
 0x321   :  { %v1938_v63 = vld [vmem:[#allocation3 + $0x39c0] sm:$0xff]  ;;  %3550 = vmatpush.msrb.mxu2 %v1682_v54  ;;  %v3176_v54 = vadd.f32 %v3175_v50, %v3156_v9  ;;  %v851_v9 = vld [vmem:[#allocation3 + $0x17c8] sm:$0xff] }
 0x322   :  { %v1154_v48 = vld [vmem:[#allocation3 + $0x2140] sm:$0xff]  ;;  %3570 = vmatpush.msrb.mxu3 %v1938_v63  ;;  %v5841_v63 = vld [vmem:[%s6274_s0 + $0x10] sm:$0xff]  ;;  %v563_v50 = vld [vmem:[#allocation3 + $0xec8] sm:$0xff] }
 0x323   :  { %v1410_v57 = vld [vmem:[#allocation3 + $0x2940] sm:$0xff]  ;;  %3511 = vmatpush.msrb.mxu0 %v1154_v48  ;;  %3474 = vmatmul.f32.vlgmr.msra.gmra.mxu2 %v5841_v63 }
 0x324   :  { %v1666_v61 = vld [vmem:[#allocation3 + $0x3140] sm:$0xff]  ;;  %3531 = vmatpush.msrb.mxu1 %v1410_v57  ;;  %v1107_v57 = vld [vmem:[#allocation3 + $0x1fc8] sm:$0xff] }
 0x325   :  { %v1922_v45 = vld [vmem:[#allocation3 + $0x3940] sm:$0xff]  ;;  %3551 = vmatpush.msrb.mxu2 %v1666_v61  ;;  %v3196_v61 = vadd.f32 %v3195_v5, %v3176_v54  ;;  %v3235_v54 = vpop.f32.mrf.mxu2  ;;  %v819_v5 = vld [vmem:[#allocation3 + $0x16c8] sm:$0xff] }
 0x326   :  { %v1138_v62 = vld [vmem:[#allocation3 + $0x20c0] sm:$0xff]  ;;  %3571 = vmatpush.msrb.mxu3 %v1922_v45  ;;  %v5853_v45 = vld [vmem:[%s6274_s0 + $0x8] sm:$0xff] }
 0x327   :  { %v1394_v4 = vld [vmem:[#allocation3 + $0x28c0] sm:$0xff]  ;;  %3512 = vmatpush.msrb.mxu0 %v1138_v62  ;;  %3454 = vmatmul.f32.vlgmr.msra.gmra.mxu1 %v5853_v45  ;;  %v5859_v62 = vld [vmem:[%s6274_s0 + $0x18] sm:$0xff] }
 0x328   :  { %v1650_v29 = vld [vmem:[#allocation3 + $0x30c0] sm:$0xff]  ;;  %3532 = vmatpush.msrb.mxu1 %v1394_v4  ;;  %3494 = vmatmul.f32.vlgmr.msra.gmra.mxu3 %v5859_v62  ;;  %v323_v4 = vld [vmem:[#allocation3 + $0x748] sm:$0xff]  ;;  %v3255_v21 = vpop.f32.mrf.mxu3 }
 0x329   :  { %v1906_v32 = vld [vmem:[#allocation3 + $0x38c0] sm:$0xff]  ;;  %3552 = vmatpush.msrb.mxu2 %v1650_v29  ;;  %v579_v29 = vld [vmem:[#allocation3 + $0xf48] sm:$0xff] }
 0x32a   :  { %v1122_v37 = vld [vmem:[#allocation3 + $0x2040] sm:$0xff]  ;;  %3572 = vmatpush.msrb.mxu3 %v1906_v32  ;;  %v835_v32 = vld [vmem:[#allocation3 + $0x1748] sm:$0xff] }
 0x32b   :  { %v1378_v12 = vld [vmem:[#allocation3 + $0x2840] sm:$0xff]  ;;  %3513 = vmatpush.msrb.mxu0 %v1122_v37  ;;  %v1091_v37 = vld [vmem:[#allocation3 + $0x1f48] sm:$0xff] }
 0x32c   :  { %v1634_v56 = vld [vmem:[#allocation3 + $0x3040] sm:$0xff]  ;;  %3533 = vmatpush.msrb.mxu1 %v1378_v12  ;;  %v3215_v12 = vpop.f32.mrf.mxu1 }
 0x32d   :  { %v1890_v53 = vld [vmem:[#allocation3 + $0x3840] sm:$0xff]  ;;  %3553 = vmatpush.msrb.mxu2 %v1634_v56  ;;  %v307_v56 = vld [vmem:[#allocation3 + $0x6c8] sm:$0xff] }
 0x32e   :  { %3573 = vmatpush.msrb.mxu3 %v1890_v53  ;;  %v5847_v48 = vld [vmem:[%s6274_s0] sm:$0xff]  ;;  %3598 = vmatpush.msra.mxu1 %v595_v3  ;;  %v3216_v53 = vadd.f32 %v3215_v12, %v3196_v61  ;;  %v803_v3 = vld [vmem:[#allocation3 + $0x1648] sm:$0xff]  ;;  %v5867_v61 = vld [vmem:[%s6274_s0 + $0x30] sm:$0xff] }
 0x32f   :  { %3434 = vmatmul.f32.vlgmr.msra.gmra.mxu0 %v5847_v48  ;;  %3618 = vmatpush.msra.mxu2 %v851_v9  ;;  %v1059_v9 = vld [vmem:[#allocation3 + $0x1e48] sm:$0xff] }
 0x330   :  { %3578 = vmatpush.msra.mxu0 %v339_v36  ;;  %3638 = vmatpush.msra.mxu3 %v1107_v57  ;;  %v3236_v6 = vadd.f32 %v3235_v54, %v3216_v53  ;;  %v547_v36 = vld [vmem:[#allocation3 + $0xe48] sm:$0xff] }
 0x331   :  { %3599 = vmatpush.msra.mxu1 %v579_v29  ;;  %3619 = vmatpush.msra.mxu2 %v835_v32  ;;  %v531_v29 = vld [vmem:[#allocation3 + $0xdc8] sm:$0xff] }
 0x332   :  { %3579 = vmatpush.msra.mxu0 %v323_v4  ;;  %3639 = vmatpush.msra.mxu3 %v1091_v37  ;;  %v5862_v57 = vadd.f32 %v3255_v21, %v3236_v6  ;;  %v275_v4 = vld [vmem:[#allocation3 + $0x5c8] sm:$0xff]  ;;  %v5879_v21 = vld [vmem:[%s6274_s0 + $0x38] sm:$0xff] }
 0x333   :  { %3600 = vmatpush.msra.mxu1 %v563_v50  ;;  %3620 = vmatpush.msra.mxu2 %v819_v5  ;;  %v787_v32 = vld [vmem:[#allocation3 + $0x15c8] sm:$0xff] }
 0x334   :  { %3580 = vmatpush.msra.mxu0 %v307_v56  ;;  %3640 = vmatpush.msra.mxu3 %v1075_v40  ;;  %6288 = vst [vmem:[#allocation19_spill] sm:$0xff] %v5862_v57  ;;  %v5873_v40 = vld [vmem:[%s6274_s0 + $0x20] sm:$0xff]  ;;  %v1043_v6 = vld [vmem:[#allocation3 + $0x1dc8] sm:$0xff] }
 0x335   :  { %3554 = vmatmul.f32.vlgmr.msrb.gmra.mxu2 %v5867_v61  ;;  %3601 = vmatpush.msra.mxu1 %v547_v36  ;;  %v515_v37 = vld [vmem:[#allocation3 + $0xd48] sm:$0xff] }
 0x336   :  { %3581 = vmatpush.msra.mxu0 %v291_v60  ;;  %3621 = vmatpush.msra.mxu2 %v803_v3  ;;  %v259_v60 = vld [vmem:[#allocation3 + $0x548] sm:$0xff] }
 0x337   :  { %3641 = vmatpush.msra.mxu3 %v1059_v9  ;;  %3514 = vmatmul.f32.vlgmr.msrb.gmra.mxu0 %v5873_v40  ;;  %v771_v12 = vld [vmem:[#allocation3 + $0x1548] sm:$0xff] }
 0x338   :  { %3574 = vmatmul.f32.vlgmr.msrb.gmra.mxu3 %v5879_v21  ;;  %3582 = vmatpush.msra.mxu0 %v275_v4  ;;  %v1027_v56 = vld [vmem:[#allocation3 + $0x1d48] sm:$0xff] }
 0x339   :  { %3602 = vmatpush.msra.mxu1 %v531_v29  ;;  %3622 = vmatpush.msra.mxu2 %v787_v32  ;;  %v5885_v50 = vld [vmem:[%s6274_s0 + $0x28] sm:$0xff] }
 0x33a   :  { %3642 = vmatpush.msra.mxu3 %v1043_v6  ;;  %3534 = vmatmul.f32.vlgmr.msrb.gmra.mxu1 %v5885_v50  ;;  %v243_v53 = vld [vmem:[#allocation3 + $0x4c8] sm:$0xff] }
 0x33b   :  { %v499_v54 = vld [vmem:[#allocation3 + $0xcc8] sm:$0xff]  ;;  %3583 = vmatpush.msra.mxu0 %v259_v60  ;;  %3603 = vmatpush.msra.mxu1 %v515_v37 }
 0x33c   :  { %v755_v5 = vld [vmem:[#allocation3 + $0x14c8] sm:$0xff]  ;;  %3623 = vmatpush.msra.mxu2 %v771_v12  ;;  %3643 = vmatpush.msra.mxu3 %v1027_v56 }
 0x33d   :  { %v1011_v36 = vld [vmem:[#allocation3 + $0x1cc8] sm:$0xff]  ;;  %3584 = vmatpush.msra.mxu0 %v243_v53  ;;  %3604 = vmatpush.msra.mxu1 %v499_v54 }
 0x33e   :  { %v227_v3 = vld [vmem:[#allocation3 + $0x448] sm:$0xff]  ;;  %3624 = vmatpush.msra.mxu2 %v755_v5  ;;  %3644 = vmatpush.msra.mxu3 %v1011_v36 }
 0x33f   :  { %v483_v9 = vld [vmem:[#allocation3 + $0xc48] sm:$0xff]  ;;  %3585 = vmatpush.msra.mxu0 %v227_v3 }
 0x340   :  { %v739_v4 = vld [vmem:[#allocation3 + $0x1448] sm:$0xff]  ;;  %3605 = vmatpush.msra.mxu1 %v483_v9 }
 0x341   :  { %v995_v29 = vld [vmem:[#allocation3 + $0x1c48] sm:$0xff]  ;;  %3625 = vmatpush.msra.mxu2 %v739_v4 }
 0x342   :  { %v211_v32 = vld [vmem:[#allocation3 + $0x3c8] sm:$0xff]  ;;  %3645 = vmatpush.msra.mxu3 %v995_v29 }
 0x343   :  { %v467_v6 = vld [vmem:[#allocation3 + $0xbc8] sm:$0xff]  ;;  %3586 = vmatpush.msra.mxu0 %v211_v32 }
 0x344   :  { %v723_v57 = vld [vmem:[#allocation3 + $0x13c8] sm:$0xff]  ;;  %3606 = vmatpush.msra.mxu1 %v467_v6  ;;  %3646 = vmatpush.msra.mxu3 %v979_v24 }
 0x345   :  { %v195_v60 = vld [vmem:[#allocation3 + $0x348] sm:$0xff]  ;;  %3626 = vmatpush.msra.mxu2 %v723_v57 }
 0x346   :  { %v451_v37 = vld [vmem:[#allocation3 + $0xb48] sm:$0xff]  ;;  %3587 = vmatpush.msra.mxu0 %v195_v60 }
 0x347   :  { %v707_v12 = vld [vmem:[#allocation3 + $0x1348] sm:$0xff]  ;;  %3607 = vmatpush.msra.mxu1 %v451_v37 }
 0x348   :  { %v963_v56 = vld [vmem:[#allocation3 + $0x1b48] sm:$0xff]  ;;  %3627 = vmatpush.msra.mxu2 %v707_v12 }
 0x349   :  { %v179_v53 = vld [vmem:[#allocation3 + $0x2c8] sm:$0xff]  ;;  %3647 = vmatpush.msra.mxu3 %v963_v56 }
 0x34a   :  { %v435_v54 = vld [vmem:[#allocation3 + $0xac8] sm:$0xff]  ;;  %3588 = vmatpush.msra.mxu0 %v179_v53 }
 0x34b   :  { %v691_v5 = vld [vmem:[#allocation3 + $0x12c8] sm:$0xff]  ;;  %3608 = vmatpush.msra.mxu1 %v435_v54 }
 0x34c   :  { %v947_v36 = vld [vmem:[#allocation3 + $0x1ac8] sm:$0xff]  ;;  %3628 = vmatpush.msra.mxu2 %v691_v5 }
 0x34d   :  { %v163_v3 = vld [vmem:[#allocation3 + $0x248] sm:$0xff]  ;;  %3648 = vmatpush.msra.mxu3 %v947_v36 }
 0x34e   :  { %v419_v9 = vld [vmem:[#allocation3 + $0xa48] sm:$0xff]  ;;  %3589 = vmatpush.msra.mxu0 %v163_v3 }
 0x34f   :  { %v675_v4 = vld [vmem:[#allocation3 + $0x1248] sm:$0xff]  ;;  %3609 = vmatpush.msra.mxu1 %v419_v9 }
 0x350   :  { %v931_v29 = vld [vmem:[#allocation3 + $0x1a48] sm:$0xff]  ;;  %3629 = vmatpush.msra.mxu2 %v675_v4 }
 0x351   :  { %v147_v32 = vld [vmem:[#allocation3 + $0x1c8] sm:$0xff]  ;;  %3649 = vmatpush.msra.mxu3 %v931_v29 }
 0x352   :  { %v403_v6 = vld [vmem:[#allocation3 + $0x9c8] sm:$0xff]  ;;  %3590 = vmatpush.msra.mxu0 %v147_v32 }
 0x353   :  { %v659_v24 = vld [vmem:[#allocation3 + $0x11c8] sm:$0xff]  ;;  %3610 = vmatpush.msra.mxu1 %v403_v6 }
 0x354   :  { %v915_v57 = vld [vmem:[#allocation3 + $0x19c8] sm:$0xff]  ;;  %3630 = vmatpush.msra.mxu2 %v659_v24 }
 0x355   :  { %v131_v60 = vld [vmem:[#allocation3 + $0x148] sm:$0xff]  ;;  %3650 = vmatpush.msra.mxu3 %v915_v57 }
 0x356   :  { %v387_v37 = vld [vmem:[#allocation3 + $0x948] sm:$0xff]  ;;  %3591 = vmatpush.msra.mxu0 %v131_v60 }
 0x357   :  { %v643_v12 = vld [vmem:[#allocation3 + $0x1148] sm:$0xff]  ;;  %3611 = vmatpush.msra.mxu1 %v387_v37 }
 0x358   :  { %v899_v56 = vld [vmem:[#allocation3 + $0x1948] sm:$0xff]  ;;  %3631 = vmatpush.msra.mxu2 %v643_v12 }
 0x359   :  { %v115_v53 = vld [vmem:[#allocation3 + $0xc8] sm:$0xff]  ;;  %3651 = vmatpush.msra.mxu3 %v899_v56 }
 0x35a   :  { %v371_v54 = vld [vmem:[#allocation3 + $0x8c8] sm:$0xff]  ;;  %3592 = vmatpush.msra.mxu0 %v115_v53 }
 0x35b   :  { %v627_v5 = vld [vmem:[#allocation3 + $0x10c8] sm:$0xff]  ;;  %3612 = vmatpush.msra.mxu1 %v371_v54 }
 0x35c   :  { %v883_v36 = vld [vmem:[#allocation3 + $0x18c8] sm:$0xff]  ;;  %3632 = vmatpush.msra.mxu2 %v627_v5 }
 0x35d   :  { %v99_v3 = vld [vmem:[#allocation3 + $0x48] sm:$0xff]  ;;  %3652 = vmatpush.msra.mxu3 %v883_v36 }
 0x35e   :  { %v355_v9 = vld [vmem:[#allocation3 + $0x848] sm:$0xff]  ;;  %3593 = vmatpush.msra.mxu0 %v99_v3 }
 0x35f   :  { %v611_v4 = vld [vmem:[#allocation3 + $0x1048] sm:$0xff]  ;;  %3613 = vmatpush.msra.mxu1 %v355_v9  ;;  %3594 = vmatmul.f32.vlgmr.msra.gmra.mxu0 %v5847_v48  ;;  %v1076_v48 = vld [vmem:[#allocation3 + $0x1ed0] sm:$0xff] }
 0x360   :  { %v867_v29 = vld [vmem:[#allocation3 + $0x1848] sm:$0xff]  ;;  %3633 = vmatpush.msra.mxu2 %v611_v4  ;;  %3614 = vmatmul.f32.vlgmr.msra.gmra.mxu1 %v5853_v45  ;;  %v548_v45 = vld [vmem:[#allocation3 + $0xe50] sm:$0xff] }
 0x361   :  { %v1363_v32 = vld [vmem:[#allocation3 + $0x27c8] sm:$0xff]  ;;  %3653 = vmatpush.msra.mxu3 %v867_v29  ;;  %3634 = vmatmul.f32.vlgmr.msra.gmra.mxu2 %v5841_v63  ;;  %v1092_v63 = vld [vmem:[#allocation3 + $0x1f50] sm:$0xff] }
 0x362   :  { %v1619_v6 = vld [vmem:[#allocation3 + $0x2fc8] sm:$0xff]  ;;  %3658 = vmatpush.msrb.mxu0 %v1363_v32  ;;  %3654 = vmatmul.f32.vlgmr.msra.gmra.mxu3 %v5859_v62  ;;  %v804_v62 = vld [vmem:[#allocation3 + $0x1650] sm:$0xff] }
 0x363   :  { %v1875_v24 = vld [vmem:[#allocation3 + $0x37c8] sm:$0xff]  ;;  %3678 = vmatpush.msrb.mxu1 %v1619_v6 }
 0x364   :  { %v2131_v57 = vld [vmem:[#allocation3 + $0x3fc8] sm:$0xff]  ;;  %3698 = vmatpush.msrb.mxu2 %v1875_v24 }
 0x365   :  { %v1347_v60 = vld [vmem:[#allocation3 + $0x2748] sm:$0xff]  ;;  %3718 = vmatpush.msrb.mxu3 %v2131_v57 }
 0x366   :  { %v1603_v37 = vld [vmem:[#allocation3 + $0x2f48] sm:$0xff]  ;;  %3659 = vmatpush.msrb.mxu0 %v1347_v60 }
 0x367   :  { %v1859_v12 = vld [vmem:[#allocation3 + $0x3748] sm:$0xff]  ;;  %3679 = vmatpush.msrb.mxu1 %v1603_v37 }
 0x368   :  { %v2115_v56 = vld [vmem:[#allocation3 + $0x3f48] sm:$0xff]  ;;  %3699 = vmatpush.msrb.mxu2 %v1859_v12 }
 0x369   :  { %v1331_v53 = vld [vmem:[#allocation3 + $0x26c8] sm:$0xff]  ;;  %3719 = vmatpush.msrb.mxu3 %v2115_v56 }
 0x36a   :  { %v1587_v54 = vld [vmem:[#allocation3 + $0x2ec8] sm:$0xff]  ;;  %3660 = vmatpush.msrb.mxu0 %v1331_v53 }
 0x36b   :  { %v1843_v5 = vld [vmem:[#allocation3 + $0x36c8] sm:$0xff]  ;;  %3680 = vmatpush.msrb.mxu1 %v1587_v54 }
 0x36c   :  { %v2099_v36 = vld [vmem:[#allocation3 + $0x3ec8] sm:$0xff]  ;;  %3700 = vmatpush.msrb.mxu2 %v1843_v5 }
 0x36d   :  { %v1315_v3 = vld [vmem:[#allocation3 + $0x2648] sm:$0xff]  ;;  %3720 = vmatpush.msrb.mxu3 %v2099_v36 }
 0x36e   :  { %v1571_v9 = vld [vmem:[#allocation3 + $0x2e48] sm:$0xff]  ;;  %3661 = vmatpush.msrb.mxu0 %v1315_v3 }
 0x36f   :  { %v1827_v4 = vld [vmem:[#allocation3 + $0x3648] sm:$0xff]  ;;  %3681 = vmatpush.msrb.mxu1 %v1571_v9 }
 0x370   :  { %v2083_v29 = vld [vmem:[#allocation3 + $0x3e48] sm:$0xff]  ;;  %3701 = vmatpush.msrb.mxu2 %v1827_v4 }
 0x371   :  { %v1299_v32 = vld [vmem:[#allocation3 + $0x25c8] sm:$0xff]  ;;  %3721 = vmatpush.msrb.mxu3 %v2083_v29 }
 0x372   :  { %v1555_v6 = vld [vmem:[#allocation3 + $0x2dc8] sm:$0xff]  ;;  %3662 = vmatpush.msrb.mxu0 %v1299_v32 }
 0x373   :  { %v1811_v24 = vld [vmem:[#allocation3 + $0x35c8] sm:$0xff]  ;;  %3682 = vmatpush.msrb.mxu1 %v1555_v6 }
 0x374   :  { %v2067_v57 = vld [vmem:[#allocation3 + $0x3dc8] sm:$0xff]  ;;  %3702 = vmatpush.msrb.mxu2 %v1811_v24 }
 0x375   :  { %v1283_v60 = vld [vmem:[#allocation3 + $0x2548] sm:$0xff]  ;;  %3722 = vmatpush.msrb.mxu3 %v2067_v57 }
 0x376   :  { %v1539_v37 = vld [vmem:[#allocation3 + $0x2d48] sm:$0xff]  ;;  %3663 = vmatpush.msrb.mxu0 %v1283_v60 }
 0x377   :  { %v1795_v12 = vld [vmem:[#allocation3 + $0x3548] sm:$0xff]  ;;  %3683 = vmatpush.msrb.mxu1 %v1539_v37 }
 0x378   :  { %v2051_v56 = vld [vmem:[#allocation3 + $0x3d48] sm:$0xff]  ;;  %3703 = vmatpush.msrb.mxu2 %v1795_v12 }
 0x379   :  { %v1267_v53 = vld [vmem:[#allocation3 + $0x24c8] sm:$0xff]  ;;  %3723 = vmatpush.msrb.mxu3 %v2051_v56 }
 0x37a   :  { %v1523_v54 = vld [vmem:[#allocation3 + $0x2cc8] sm:$0xff]  ;;  %3664 = vmatpush.msrb.mxu0 %v1267_v53 }
 0x37b   :  { %v1779_v5 = vld [vmem:[#allocation3 + $0x34c8] sm:$0xff]  ;;  %3684 = vmatpush.msrb.mxu1 %v1523_v54 }
 0x37c   :  { %v2035_v36 = vld [vmem:[#allocation3 + $0x3cc8] sm:$0xff]  ;;  %3704 = vmatpush.msrb.mxu2 %v1779_v5 }
 0x37d   :  { %v1251_v3 = vld [vmem:[#allocation3 + $0x2448] sm:$0xff]  ;;  %3724 = vmatpush.msrb.mxu3 %v2035_v36 }
 0x37e   :  { %v1507_v9 = vld [vmem:[#allocation3 + $0x2c48] sm:$0xff]  ;;  %3665 = vmatpush.msrb.mxu0 %v1251_v3 }
 0x37f   :  { %v1763_v4 = vld [vmem:[#allocation3 + $0x3448] sm:$0xff]  ;;  %3685 = vmatpush.msrb.mxu1 %v1507_v9 }
 0x380   :  { %v2019_v29 = vld [vmem:[#allocation3 + $0x3c48] sm:$0xff]  ;;  %3705 = vmatpush.msrb.mxu2 %v1763_v4 }
 0x381   :  { %v1235_v32 = vld [vmem:[#allocation3 + $0x23c8] sm:$0xff]  ;;  %3725 = vmatpush.msrb.mxu3 %v2019_v29 }
 0x382   :  { %v1491_v6 = vld [vmem:[#allocation3 + $0x2bc8] sm:$0xff]  ;;  %3666 = vmatpush.msrb.mxu0 %v1235_v32 }
 0x383   :  { %v1747_v24 = vld [vmem:[#allocation3 + $0x33c8] sm:$0xff]  ;;  %3686 = vmatpush.msrb.mxu1 %v1491_v6 }
 0x384   :  { %v2003_v57 = vld [vmem:[#allocation3 + $0x3bc8] sm:$0xff]  ;;  %3706 = vmatpush.msrb.mxu2 %v1747_v24 }
 0x385   :  { %v1219_v60 = vld [vmem:[#allocation3 + $0x2348] sm:$0xff]  ;;  %3726 = vmatpush.msrb.mxu3 %v2003_v57 }
 0x386   :  { %v1475_v37 = vld [vmem:[#allocation3 + $0x2b48] sm:$0xff]  ;;  %3667 = vmatpush.msrb.mxu0 %v1219_v60 }
 0x387   :  { %v1731_v12 = vld [vmem:[#allocation3 + $0x3348] sm:$0xff]  ;;  %3687 = vmatpush.msrb.mxu1 %v1475_v37 }
 0x388   :  { %v1987_v56 = vld [vmem:[#allocation3 + $0x3b48] sm:$0xff]  ;;  %3707 = vmatpush.msrb.mxu2 %v1731_v12 }
 0x389   :  { %v1203_v53 = vld [vmem:[#allocation3 + $0x22c8] sm:$0xff]  ;;  %3727 = vmatpush.msrb.mxu3 %v1987_v56 }
 0x38a   :  { %v1459_v54 = vld [vmem:[#allocation3 + $0x2ac8] sm:$0xff]  ;;  %3668 = vmatpush.msrb.mxu0 %v1203_v53 }
 0x38b   :  { %v1715_v5 = vld [vmem:[#allocation3 + $0x32c8] sm:$0xff]  ;;  %3688 = vmatpush.msrb.mxu1 %v1459_v54 }
 0x38c   :  { %v1971_v36 = vld [vmem:[#allocation3 + $0x3ac8] sm:$0xff]  ;;  %3708 = vmatpush.msrb.mxu2 %v1715_v5 }
 0x38d   :  { %v1187_v3 = vld [vmem:[#allocation3 + $0x2248] sm:$0xff]  ;;  %3728 = vmatpush.msrb.mxu3 %v1971_v36 }
 0x38e   :  { %v1443_v9 = vld [vmem:[#allocation3 + $0x2a48] sm:$0xff]  ;;  %3669 = vmatpush.msrb.mxu0 %v1187_v3 }
 0x38f   :  { %v1699_v4 = vld [vmem:[#allocation3 + $0x3248] sm:$0xff]  ;;  %3689 = vmatpush.msrb.mxu1 %v1443_v9 }
 0x390   :  { %v1955_v29 = vld [vmem:[#allocation3 + $0x3a48] sm:$0xff]  ;;  %3709 = vmatpush.msrb.mxu2 %v1699_v4 }
 0x391   :  { %v1171_v32 = vld [vmem:[#allocation3 + $0x21c8] sm:$0xff]  ;;  %3729 = vmatpush.msrb.mxu3 %v1955_v29 }
 0x392   :  { %v1427_v6 = vld [vmem:[#allocation3 + $0x29c8] sm:$0xff]  ;;  %3670 = vmatpush.msrb.mxu0 %v1171_v32  ;;  %v340_v32 = vld [vmem:[#allocation3 + $0x7d0] sm:$0xff] }
 0x393   :  { %v1683_v24 = vld [vmem:[#allocation3 + $0x31c8] sm:$0xff]  ;;  %3690 = vmatpush.msrb.mxu1 %v1427_v6  ;;  %v596_v6 = vld [vmem:[#allocation3 + $0xfd0] sm:$0xff] }
 0x394   :  { %v1939_v57 = vld [vmem:[#allocation3 + $0x39c8] sm:$0xff]  ;;  %3710 = vmatpush.msrb.mxu2 %v1683_v24  ;;  %v852_v24 = vld [vmem:[#allocation3 + $0x17d0] sm:$0xff] }
 0x395   :  { %v1155_v60 = vld [vmem:[#allocation3 + $0x2148] sm:$0xff]  ;;  %3730 = vmatpush.msrb.mxu3 %v1939_v57  ;;  %v1108_v57 = vld [vmem:[#allocation3 + $0x1fd0] sm:$0xff] }
 0x396   :  { %v1411_v37 = vld [vmem:[#allocation3 + $0x2948] sm:$0xff]  ;;  %3671 = vmatpush.msrb.mxu0 %v1155_v60  ;;  %v324_v60 = vld [vmem:[#allocation3 + $0x750] sm:$0xff] }
 0x397   :  { %v1667_v12 = vld [vmem:[#allocation3 + $0x3148] sm:$0xff]  ;;  %3691 = vmatpush.msrb.mxu1 %v1411_v37  ;;  %v580_v37 = vld [vmem:[#allocation3 + $0xf50] sm:$0xff] }
 0x398   :  { %v1923_v56 = vld [vmem:[#allocation3 + $0x3948] sm:$0xff]  ;;  %3711 = vmatpush.msrb.mxu2 %v1667_v12  ;;  %v836_v12 = vld [vmem:[#allocation3 + $0x1750] sm:$0xff] }
 0x399   :  { %v1139_v53 = vld [vmem:[#allocation3 + $0x20c8] sm:$0xff]  ;;  %3731 = vmatpush.msrb.mxu3 %v1923_v56  ;;  %v308_v56 = vld [vmem:[#allocation3 + $0x6d0] sm:$0xff] }
 0x39a   :  { %v1395_v54 = vld [vmem:[#allocation3 + $0x28c8] sm:$0xff]  ;;  %3672 = vmatpush.msrb.mxu0 %v1139_v53  ;;  %v564_v53 = vld [vmem:[#allocation3 + $0xed0] sm:$0xff] }
 0x39b   :  { %v1651_v5 = vld [vmem:[#allocation3 + $0x30c8] sm:$0xff]  ;;  %3692 = vmatpush.msrb.mxu1 %v1395_v54  ;;  %v820_v54 = vld [vmem:[#allocation3 + $0x16d0] sm:$0xff] }
 0x39c   :  { %v1907_v36 = vld [vmem:[#allocation3 + $0x38c8] sm:$0xff]  ;;  %3712 = vmatpush.msrb.mxu2 %v1651_v5  ;;  %v292_v5 = vld [vmem:[#allocation3 + $0x650] sm:$0xff] }
 0x39d   :  { %v1123_v3 = vld [vmem:[#allocation3 + $0x2048] sm:$0xff]  ;;  %3732 = vmatpush.msrb.mxu3 %v1907_v36  ;;  %v1060_v36 = vld [vmem:[#allocation3 + $0x1e50] sm:$0xff] }
 0x39e   :  { %v1379_v9 = vld [vmem:[#allocation3 + $0x2848] sm:$0xff]  ;;  %3673 = vmatpush.msrb.mxu0 %v1123_v3  ;;  %v276_v3 = vld [vmem:[#allocation3 + $0x5d0] sm:$0xff] }
 0x39f   :  { %v1635_v4 = vld [vmem:[#allocation3 + $0x3048] sm:$0xff]  ;;  %3693 = vmatpush.msrb.mxu1 %v1379_v9  ;;  %v532_v9 = vld [vmem:[#allocation3 + $0xdd0] sm:$0xff]  ;;  %3674 = vmatmul.f32.vlgmr.msrb.gmra.mxu0 %v5873_v40 }
 0x3a0   :  { %v1891_v29 = vld [vmem:[#allocation3 + $0x3848] sm:$0xff]  ;;  %3713 = vmatpush.msrb.mxu2 %v1635_v4  ;;  %3738 = vmatpush.msra.mxu0 %v340_v32  ;;  %v788_v4 = vld [vmem:[#allocation3 + $0x15d0] sm:$0xff] }
 0x3a1   :  { %3733 = vmatpush.msrb.mxu3 %v1891_v29  ;;  %3758 = vmatpush.msra.mxu1 %v596_v6  ;;  %v1044_v29 = vld [vmem:[#allocation3 + $0x1dd0] sm:$0xff] }
 0x3a2   :  { %3778 = vmatpush.msra.mxu2 %v852_v24  ;;  %3739 = vmatpush.msra.mxu0 %v324_v60  ;;  %v260_v32 = vld [vmem:[#allocation3 + $0x550] sm:$0xff] }
 0x3a3   :  { %3798 = vmatpush.msra.mxu3 %v1108_v57  ;;  %3759 = vmatpush.msra.mxu1 %v580_v37  ;;  %v516_v6 = vld [vmem:[#allocation3 + $0xd50] sm:$0xff] }
 0x3a4   :  { %3779 = vmatpush.msra.mxu2 %v836_v12  ;;  %3740 = vmatpush.msra.mxu0 %v308_v56  ;;  %v772_v24 = vld [vmem:[#allocation3 + $0x1550] sm:$0xff] }
 0x3a5   :  { %3799 = vmatpush.msra.mxu3 %v1092_v63  ;;  %3760 = vmatpush.msra.mxu1 %v564_v53  ;;  %v1028_v57 = vld [vmem:[#allocation3 + $0x1d50] sm:$0xff] }
 0x3a6   :  { %3780 = vmatpush.msra.mxu2 %v820_v54  ;;  %3741 = vmatpush.msra.mxu0 %v292_v5  ;;  %v500_v60 = vld [vmem:[#allocation3 + $0xcd0] sm:$0xff] }
 0x3a7   :  { %3800 = vmatpush.msra.mxu3 %v1076_v48  ;;  %3714 = vmatmul.f32.vlgmr.msrb.gmra.mxu2 %v5867_v61  ;;  %v244_v61 = vld [vmem:[#allocation3 + $0x4d0] sm:$0xff] }
 0x3a8   :  { %3761 = vmatpush.msra.mxu1 %v548_v45  ;;  %3781 = vmatpush.msra.mxu2 %v804_v62  ;;  %v756_v37 = vld [vmem:[#allocation3 + $0x14d0] sm:$0xff] }
 0x3a9   :  { %3801 = vmatpush.msra.mxu3 %v1060_v36  ;;  %3742 = vmatpush.msra.mxu0 %v276_v3  ;;  %v1012_v12 = vld [vmem:[#allocation3 + $0x1cd0] sm:$0xff] }
 0x3aa   :  { %3734 = vmatmul.f32.vlgmr.msrb.gmra.mxu3 %v5879_v21  ;;  %3762 = vmatpush.msra.mxu1 %v532_v9  ;;  %v228_v40 = vld [vmem:[#allocation3 + $0x450] sm:$0xff] }
 0x3ab   :  { %3782 = vmatpush.msra.mxu2 %v788_v4  ;;  %3802 = vmatpush.msra.mxu3 %v1044_v29  ;;  %v484_v21 = vld [vmem:[#allocation3 + $0xc50] sm:$0xff] }
 0x3ac   :  { %3694 = vmatmul.f32.vlgmr.msrb.gmra.mxu1 %v5885_v50  ;;  %3743 = vmatpush.msra.mxu0 %v260_v32  ;;  %v740_v63 = vld [vmem:[#allocation3 + $0x1450] sm:$0xff] }
 0x3ad   :  { %3763 = vmatpush.msra.mxu1 %v516_v6  ;;  %3783 = vmatpush.msra.mxu2 %v772_v24  ;;  %v996_v56 = vld [vmem:[#allocation3 + $0x1c50] sm:$0xff] }
 0x3ae   :  { %3803 = vmatpush.msra.mxu3 %v1028_v57  ;;  %3744 = vmatpush.msra.mxu0 %v244_v61  ;;  %v212_v53 = vld [vmem:[#allocation3 + $0x3d0] sm:$0xff] }
 0x3af   :  { %3764 = vmatpush.msra.mxu1 %v500_v60  ;;  %3784 = vmatpush.msra.mxu2 %v756_v37  ;;  %v468_v54 = vld [vmem:[#allocation3 + $0xbd0] sm:$0xff] }
 0x3b0   :  { %3804 = vmatpush.msra.mxu3 %v1012_v12  ;;  %3745 = vmatpush.msra.mxu0 %v228_v40  ;;  %v724_v50 = vld [vmem:[#allocation3 + $0x13d0] sm:$0xff] }
 0x3b1   :  { %3765 = vmatpush.msra.mxu1 %v484_v21  ;;  %v980_v48 = vld [vmem:[#allocation3 + $0x1bd0] sm:$0xff]  ;;  %3785 = vmatpush.msra.mxu2 %v740_v63 }
 0x3b2   :  { %3805 = vmatpush.msra.mxu3 %v996_v56  ;;  %v196_v5 = vld [vmem:[#allocation3 + $0x350] sm:$0xff]  ;;  %3746 = vmatpush.msra.mxu0 %v212_v53 }
 0x3b3   :  { %v452_v45 = vld [vmem:[#allocation3 + $0xb50] sm:$0xff]  ;;  %3766 = vmatpush.msra.mxu1 %v468_v54  ;;  %3786 = vmatpush.msra.mxu2 %v724_v50 }
 0x3b4   :  { %v708_v62 = vld [vmem:[#allocation3 + $0x1350] sm:$0xff]  ;;  %3806 = vmatpush.msra.mxu3 %v980_v48  ;;  %3747 = vmatpush.msra.mxu0 %v196_v5 }
 0x3b5   :  { %v964_v36 = vld [vmem:[#allocation3 + $0x1b50] sm:$0xff]  ;;  %3767 = vmatpush.msra.mxu1 %v452_v45  ;;  %3787 = vmatpush.msra.mxu2 %v708_v62 }
 0x3b6   :  { %v180_v3 = vld [vmem:[#allocation3 + $0x2d0] sm:$0xff]  ;;  %3807 = vmatpush.msra.mxu3 %v964_v36 }
 0x3b7   :  { %v436_v9 = vld [vmem:[#allocation3 + $0xad0] sm:$0xff]  ;;  %3748 = vmatpush.msra.mxu0 %v180_v3 }
 0x3b8   :  { %v692_v4 = vld [vmem:[#allocation3 + $0x12d0] sm:$0xff]  ;;  %3768 = vmatpush.msra.mxu1 %v436_v9 }
 0x3b9   :  { %v948_v29 = vld [vmem:[#allocation3 + $0x1ad0] sm:$0xff]  ;;  %3788 = vmatpush.msra.mxu2 %v692_v4 }
 0x3ba   :  { %v164_v32 = vld [vmem:[#allocation3 + $0x250] sm:$0xff]  ;;  %3808 = vmatpush.msra.mxu3 %v948_v29 }
 0x3bb   :  { %v420_v6 = vld [vmem:[#allocation3 + $0xa50] sm:$0xff]  ;;  %3749 = vmatpush.msra.mxu0 %v164_v32 }
 0x3bc   :  { %v676_v24 = vld [vmem:[#allocation3 + $0x1250] sm:$0xff]  ;;  %3769 = vmatpush.msra.mxu1 %v420_v6 }
 0x3bd   :  { %v932_v57 = vld [vmem:[#allocation3 + $0x1a50] sm:$0xff]  ;;  %3789 = vmatpush.msra.mxu2 %v676_v24 }
 0x3be   :  { %v148_v61 = vld [vmem:[#allocation3 + $0x1d0] sm:$0xff]  ;;  %3809 = vmatpush.msra.mxu3 %v932_v57 }
 0x3bf   :  { %v404_v60 = vld [vmem:[#allocation3 + $0x9d0] sm:$0xff]  ;;  %3750 = vmatpush.msra.mxu0 %v148_v61 }
 0x3c0   :  { %v660_v37 = vld [vmem:[#allocation3 + $0x11d0] sm:$0xff]  ;;  %3770 = vmatpush.msra.mxu1 %v404_v60 }
 0x3c1   :  { %v916_v12 = vld [vmem:[#allocation3 + $0x19d0] sm:$0xff]  ;;  %3790 = vmatpush.msra.mxu2 %v660_v37 }
 0x3c2   :  { %v132_v40 = vld [vmem:[#allocation3 + $0x150] sm:$0xff]  ;;  %3810 = vmatpush.msra.mxu3 %v916_v12 }
 0x3c3   :  { %v388_v21 = vld [vmem:[#allocation3 + $0x950] sm:$0xff]  ;;  %3751 = vmatpush.msra.mxu0 %v132_v40  ;;  %v5896_v40 = vpop.f32.mrf.mxu0 }
 0x3c4   :  { %v644_v63 = vld [vmem:[#allocation3 + $0x1150] sm:$0xff]  ;;  %3771 = vmatpush.msra.mxu1 %v388_v21 }
 0x3c5   :  { %v900_v56 = vld [vmem:[#allocation3 + $0x1950] sm:$0xff]  ;;  %3791 = vmatpush.msra.mxu2 %v644_v63 }
 0x3c6   :  { %v116_v53 = vld [vmem:[#allocation3 + $0xd0] sm:$0xff]  ;;  %3811 = vmatpush.msra.mxu3 %v900_v56  ;;  %v5898_v56 = vpop.f32.mrf.mxu1 }
 0x3c7   :  { %v372_v54 = vld [vmem:[#allocation3 + $0x8d0] sm:$0xff]  ;;  %3752 = vmatpush.msra.mxu0 %v116_v53 }
 0x3c8   :  { %v628_v50 = vld [vmem:[#allocation3 + $0x10d0] sm:$0xff]  ;;  %3772 = vmatpush.msra.mxu1 %v372_v54 }
 0x3c9   :  { %v884_v48 = vld [vmem:[#allocation3 + $0x18d0] sm:$0xff]  ;;  %3792 = vmatpush.msra.mxu2 %v628_v50 }
 0x3ca   :  { %v100_v5 = vld [vmem:[#allocation3 + $0x50] sm:$0xff]  ;;  %3812 = vmatpush.msra.mxu3 %v884_v48 }
 0x3cb   :  { %v356_v45 = vld [vmem:[#allocation3 + $0x850] sm:$0xff]  ;;  %3753 = vmatpush.msra.mxu0 %v100_v5 }
 0x3cc   :  { %v612_v62 = vld [vmem:[#allocation3 + $0x1050] sm:$0xff]  ;;  %3773 = vmatpush.msra.mxu1 %v356_v45 }
 0x3cd   :  { %v868_v36 = vld [vmem:[#allocation3 + $0x1850] sm:$0xff]  ;;  %3793 = vmatpush.msra.mxu2 %v612_v62  ;;  %v5900_v62 = vpop.f32.mrf.mxu2 }
 0x3ce   :  { %v1364_v3 = vld [vmem:[#allocation3 + $0x27d0] sm:$0xff]  ;;  %3813 = vmatpush.msra.mxu3 %v868_v36  ;;  %6289 = vst [vmem:[#allocation20_spill] sm:$0xff] %v5900_v62  ;;  %v981_v62 = vld [vmem:[#allocation3 + $0x1bd8] sm:$0xff] }
 0x3cf   :  { %v1620_v9 = vld [vmem:[#allocation3 + $0x2fd0] sm:$0xff]  ;;  %3818 = vmatpush.msrb.mxu0 %v1364_v3 }
 0x3d0   :  { %v1876_v4 = vld [vmem:[#allocation3 + $0x37d0] sm:$0xff]  ;;  %3838 = vmatpush.msrb.mxu1 %v1620_v9 }
 0x3d1   :  { %v2132_v29 = vld [vmem:[#allocation3 + $0x3fd0] sm:$0xff]  ;;  %3858 = vmatpush.msrb.mxu2 %v1876_v4 }
 0x3d2   :  { %v1348_v32 = vld [vmem:[#allocation3 + $0x2750] sm:$0xff]  ;;  %3878 = vmatpush.msrb.mxu3 %v2132_v29 }
 0x3d3   :  { %v1604_v6 = vld [vmem:[#allocation3 + $0x2f50] sm:$0xff]  ;;  %3819 = vmatpush.msrb.mxu0 %v1348_v32 }
 0x3d4   :  { %v1860_v24 = vld [vmem:[#allocation3 + $0x3750] sm:$0xff]  ;;  %3839 = vmatpush.msrb.mxu1 %v1604_v6  ;;  %v5902_v6 = vpop.f32.mrf.mxu3 }
 0x3d5   :  { %v2116_v57 = vld [vmem:[#allocation3 + $0x3f50] sm:$0xff]  ;;  %3859 = vmatpush.msrb.mxu2 %v1860_v24  ;;  %6290 = vst [vmem:[#allocation21_spill] sm:$0xff] %v5902_v6  ;;  %v293_v6 = vld [vmem:[#allocation3 + $0x658] sm:$0xff] }
 0x3d6   :  { %v1332_v61 = vld [vmem:[#allocation3 + $0x26d0] sm:$0xff]  ;;  %3879 = vmatpush.msrb.mxu3 %v2116_v57 }
 0x3d7   :  { %v1588_v60 = vld [vmem:[#allocation3 + $0x2ed0] sm:$0xff]  ;;  %3820 = vmatpush.msrb.mxu0 %v1332_v61 }
 0x3d8   :  { %v1844_v37 = vld [vmem:[#allocation3 + $0x36d0] sm:$0xff]  ;;  %3840 = vmatpush.msrb.mxu1 %v1588_v60 }
 0x3d9   :  { %v2100_v12 = vld [vmem:[#allocation3 + $0x3ed0] sm:$0xff]  ;;  %3860 = vmatpush.msrb.mxu2 %v1844_v37 }
 0x3da   :  { %v1316_v21 = vld [vmem:[#allocation3 + $0x2650] sm:$0xff]  ;;  %3880 = vmatpush.msrb.mxu3 %v2100_v12 }
 0x3db   :  { %v1572_v63 = vld [vmem:[#allocation3 + $0x2e50] sm:$0xff]  ;;  %3821 = vmatpush.msrb.mxu0 %v1316_v21  ;;  %v5904_v21 = vpop.f32.mrf.mxu0 }
 0x3dc   :  { %v1828_v53 = vld [vmem:[#allocation3 + $0x3650] sm:$0xff]  ;;  %3841 = vmatpush.msrb.mxu1 %v1572_v63  ;;  %6291 = vst [vmem:[#allocation22_spill] sm:$0xff] %v5904_v21  ;;  %v1077_v21 = vld [vmem:[#allocation3 + $0x1ed8] sm:$0xff] }
 0x3dd   :  { %v2084_v54 = vld [vmem:[#allocation3 + $0x3e50] sm:$0xff]  ;;  %3861 = vmatpush.msrb.mxu2 %v1828_v53 }
 0x3de   :  { %v1300_v50 = vld [vmem:[#allocation3 + $0x25d0] sm:$0xff]  ;;  %3881 = vmatpush.msrb.mxu3 %v2084_v54  ;;  %v5906_v54 = vpop.f32.mrf.mxu1 }
 0x3df   :  { %v1556_v48 = vld [vmem:[#allocation3 + $0x2dd0] sm:$0xff]  ;;  %3822 = vmatpush.msrb.mxu0 %v1300_v50  ;;  %6292 = vst [vmem:[#allocation23_spill] sm:$0xff] %v5906_v54 }
 0x3e0   :  { %v1812_v5 = vld [vmem:[#allocation3 + $0x35d0] sm:$0xff]  ;;  %3842 = vmatpush.msrb.mxu1 %v1556_v48 }
 0x3e1   :  { %v2068_v45 = vld [vmem:[#allocation3 + $0x3dd0] sm:$0xff]  ;;  %3862 = vmatpush.msrb.mxu2 %v1812_v5 }
 0x3e2   :  { %v1284_v36 = vld [vmem:[#allocation3 + $0x2550] sm:$0xff]  ;;  %3882 = vmatpush.msrb.mxu3 %v2068_v45 }
 0x3e3   :  { %v1540_v3 = vld [vmem:[#allocation3 + $0x2d50] sm:$0xff]  ;;  %3823 = vmatpush.msrb.mxu0 %v1284_v36 }
 0x3e4   :  { %v1796_v9 = vld [vmem:[#allocation3 + $0x3550] sm:$0xff]  ;;  %3843 = vmatpush.msrb.mxu1 %v1540_v3 }
 0x3e5   :  { %v2052_v4 = vld [vmem:[#allocation3 + $0x3d50] sm:$0xff]  ;;  %3863 = vmatpush.msrb.mxu2 %v1796_v9  ;;  %v5908_v9 = vpop.f32.mrf.mxu2 }
 0x3e6   :  { %v1268_v29 = vld [vmem:[#allocation3 + $0x24d0] sm:$0xff]  ;;  %3883 = vmatpush.msrb.mxu3 %v2052_v4  ;;  %6293 = vst [vmem:[#allocation24_spill] sm:$0xff] %v5908_v9 }
 0x3e7   :  { %v1524_v32 = vld [vmem:[#allocation3 + $0x2cd0] sm:$0xff]  ;;  %3824 = vmatpush.msrb.mxu0 %v1268_v29 }
 0x3e8   :  { %v1780_v24 = vld [vmem:[#allocation3 + $0x34d0] sm:$0xff]  ;;  %3844 = vmatpush.msrb.mxu1 %v1524_v32 }
 0x3e9   :  { %v2036_v57 = vld [vmem:[#allocation3 + $0x3cd0] sm:$0xff]  ;;  %3864 = vmatpush.msrb.mxu2 %v1780_v24 }
 0x3ea   :  { %v1252_v61 = vld [vmem:[#allocation3 + $0x2450] sm:$0xff]  ;;  %3884 = vmatpush.msrb.mxu3 %v2036_v57 }
 0x3eb   :  { %v1508_v60 = vld [vmem:[#allocation3 + $0x2c50] sm:$0xff]  ;;  %3825 = vmatpush.msrb.mxu0 %v1252_v61 }
 0x3ec   :  { %v1764_v37 = vld [vmem:[#allocation3 + $0x3450] sm:$0xff]  ;;  %3845 = vmatpush.msrb.mxu1 %v1508_v60  ;;  %v5910_v60 = vpop.f32.mrf.mxu3 }
 0x3ed   :  { %v2020_v12 = vld [vmem:[#allocation3 + $0x3c50] sm:$0xff]  ;;  %3865 = vmatpush.msrb.mxu2 %v1764_v37  ;;  %6294 = vst [vmem:[#allocation25_spill] sm:$0xff] %v5910_v60  ;;  %v3475_v60 = vpop.f32.mrf.mxu2 }
 0x3ee   :  { %v1236_v63 = vld [vmem:[#allocation3 + $0x23d0] sm:$0xff]  ;;  %3885 = vmatpush.msrb.mxu3 %v2020_v12 }
 0x3ef   :  { %v1492_v53 = vld [vmem:[#allocation3 + $0x2bd0] sm:$0xff]  ;;  %3826 = vmatpush.msrb.mxu0 %v1236_v63 }
 0x3f0   :  { %v1748_v50 = vld [vmem:[#allocation3 + $0x33d0] sm:$0xff]  ;;  %3846 = vmatpush.msrb.mxu1 %v1492_v53 }
 0x3f1   :  { %v2004_v48 = vld [vmem:[#allocation3 + $0x3bd0] sm:$0xff]  ;;  %3866 = vmatpush.msrb.mxu2 %v1748_v50  ;;  %v3435_v50 = vpop.f32.mrf.mxu0 }
 0x3f2   :  { %v1220_v5 = vld [vmem:[#allocation3 + $0x2350] sm:$0xff]  ;;  %3886 = vmatpush.msrb.mxu3 %v2004_v48 }
 0x3f3   :  { %v1476_v45 = vld [vmem:[#allocation3 + $0x2b50] sm:$0xff]  ;;  %3827 = vmatpush.msrb.mxu0 %v1220_v5 }
 0x3f4   :  { %v1732_v36 = vld [vmem:[#allocation3 + $0x3350] sm:$0xff]  ;;  %3847 = vmatpush.msrb.mxu1 %v1476_v45  ;;  %v3455_v45 = vpop.f32.mrf.mxu1 }
 0x3f5   :  { %v1988_v3 = vld [vmem:[#allocation3 + $0x3b50] sm:$0xff]  ;;  %3867 = vmatpush.msrb.mxu2 %v1732_v36  ;;  %v3456_v9 = vadd.f32 %v3455_v45, %v3435_v50 }
 0x3f6   :  { %v1204_v4 = vld [vmem:[#allocation3 + $0x22d0] sm:$0xff]  ;;  %3887 = vmatpush.msrb.mxu3 %v1988_v3 }
 0x3f7   :  { %v1460_v29 = vld [vmem:[#allocation3 + $0x2ad0] sm:$0xff]  ;;  %3828 = vmatpush.msrb.mxu0 %v1204_v4  ;;  %v3476_v54 = vadd.f32 %v3475_v60, %v3456_v9  ;;  %v341_v9 = vld [vmem:[#allocation3 + $0x7d8] sm:$0xff] }
 0x3f8   :  { %v1716_v32 = vld [vmem:[#allocation3 + $0x32d0] sm:$0xff]  ;;  %3848 = vmatpush.msrb.mxu1 %v1460_v29  ;;  %v597_v60 = vld [vmem:[#allocation3 + $0xfd8] sm:$0xff] }
 0x3f9   :  { %v1972_v24 = vld [vmem:[#allocation3 + $0x3ad0] sm:$0xff]  ;;  %3868 = vmatpush.msrb.mxu2 %v1716_v32  ;;  %v3515_v45 = vpop.f32.mrf.mxu0 }
 0x3fa   :  { %v1188_v57 = vld [vmem:[#allocation3 + $0x2250] sm:$0xff]  ;;  %3888 = vmatpush.msrb.mxu3 %v1972_v24 }
 0x3fb   :  { %v1444_v61 = vld [vmem:[#allocation3 + $0x2a50] sm:$0xff]  ;;  %3829 = vmatpush.msrb.mxu0 %v1188_v57 }
 0x3fc   :  { %v1700_v37 = vld [vmem:[#allocation3 + $0x3250] sm:$0xff]  ;;  %3849 = vmatpush.msrb.mxu1 %v1444_v61 }
 0x3fd   :  { %v1956_v12 = vld [vmem:[#allocation3 + $0x3a50] sm:$0xff]  ;;  %3869 = vmatpush.msrb.mxu2 %v1700_v37 }
 0x3fe   :  { %v1172_v63 = vld [vmem:[#allocation3 + $0x21d0] sm:$0xff]  ;;  %3889 = vmatpush.msrb.mxu3 %v1956_v12 }
 0x3ff   :  { %v1428_v53 = vld [vmem:[#allocation3 + $0x29d0] sm:$0xff]  ;;  %3830 = vmatpush.msrb.mxu0 %v1172_v63 }
 0x400   :  { %v1684_v48 = vld [vmem:[#allocation3 + $0x31d0] sm:$0xff]  ;;  %3850 = vmatpush.msrb.mxu1 %v1428_v53  ;;  %v3495_v53 = vpop.f32.mrf.mxu3 }
 0x401   :  { %v1940_v5 = vld [vmem:[#allocation3 + $0x39d0] sm:$0xff]  ;;  %3870 = vmatpush.msrb.mxu2 %v1684_v48  ;;  %v3496_v48 = vadd.f32 %v3495_v53, %v3476_v54  ;;  %v853_v54 = vld [vmem:[#allocation3 + $0x17d8] sm:$0xff] }
 0x402   :  { %v1156_v36 = vld [vmem:[#allocation3 + $0x2150] sm:$0xff]  ;;  %3890 = vmatpush.msrb.mxu3 %v1940_v5  ;;  %v565_v53 = vld [vmem:[#allocation3 + $0xed8] sm:$0xff] }
 0x403   :  { %v1412_v3 = vld [vmem:[#allocation3 + $0x2950] sm:$0xff]  ;;  %3831 = vmatpush.msrb.mxu0 %v1156_v36  ;;  %v5921_v36 = vld [vmem:[%s6274_s0] sm:$0xff] }
 0x404   :  { %v1668_v4 = vld [vmem:[#allocation3 + $0x3150] sm:$0xff]  ;;  %3851 = vmatpush.msrb.mxu1 %v1412_v3  ;;  %3754 = vmatmul.f32.vlgmr.msra.gmra.mxu0 %v5921_v36  ;;  %v1109_v3 = vld [vmem:[#allocation3 + $0x1fd8] sm:$0xff] }
 0x405   :  { %v1924_v29 = vld [vmem:[#allocation3 + $0x3950] sm:$0xff]  ;;  %3871 = vmatpush.msrb.mxu2 %v1668_v4  ;;  %v3516_v4 = vadd.f32 %v3515_v45, %v3496_v48  ;;  %v3555_v48 = vpop.f32.mrf.mxu2  ;;  %v821_v45 = vld [vmem:[#allocation3 + $0x16d8] sm:$0xff] }
 0x406   :  { %v1140_v32 = vld [vmem:[#allocation3 + $0x20d0] sm:$0xff]  ;;  %3891 = vmatpush.msrb.mxu3 %v1924_v29  ;;  %v5927_v29 = vld [vmem:[%s6274_s0 + $0x8] sm:$0xff] }
 0x407   :  { %v1396_v24 = vld [vmem:[#allocation3 + $0x28d0] sm:$0xff]  ;;  %3832 = vmatpush.msrb.mxu0 %v1140_v32  ;;  %3774 = vmatmul.f32.vlgmr.msra.gmra.mxu1 %v5927_v29  ;;  %v5933_v32 = vld [vmem:[%s6274_s0 + $0x18] sm:$0xff] }
 0x408   :  { %v1652_v57 = vld [vmem:[#allocation3 + $0x30d0] sm:$0xff]  ;;  %3852 = vmatpush.msrb.mxu1 %v1396_v24  ;;  %3814 = vmatmul.f32.vlgmr.msra.gmra.mxu3 %v5933_v32  ;;  %v325_v24 = vld [vmem:[#allocation3 + $0x758] sm:$0xff]  ;;  %v3575_v47 = vpop.f32.mrf.mxu3 }
 0x409   :  { %v1908_v61 = vld [vmem:[#allocation3 + $0x38d0] sm:$0xff]  ;;  %3872 = vmatpush.msrb.mxu2 %v1652_v57  ;;  %v581_v57 = vld [vmem:[#allocation3 + $0xf58] sm:$0xff] }
 0x40a   :  { %v1124_v37 = vld [vmem:[#allocation3 + $0x2050] sm:$0xff]  ;;  %3892 = vmatpush.msrb.mxu3 %v1908_v61  ;;  %v837_v61 = vld [vmem:[#allocation3 + $0x1758] sm:$0xff] }
 0x40b   :  { %v1380_v12 = vld [vmem:[#allocation3 + $0x2850] sm:$0xff]  ;;  %3833 = vmatpush.msrb.mxu0 %v1124_v37  ;;  %v1093_v37 = vld [vmem:[#allocation3 + $0x1f58] sm:$0xff] }
 0x40c   :  { %v1636_v63 = vld [vmem:[#allocation3 + $0x3050] sm:$0xff]  ;;  %3853 = vmatpush.msrb.mxu1 %v1380_v12  ;;  %v3535_v12 = vpop.f32.mrf.mxu1 }
 0x40d   :  { %v1892_v50 = vld [vmem:[#allocation3 + $0x3850] sm:$0xff]  ;;  %3873 = vmatpush.msrb.mxu2 %v1636_v63  ;;  %3898 = vmatpush.msra.mxu0 %v341_v9  ;;  %v309_v63 = vld [vmem:[#allocation3 + $0x6d8] sm:$0xff] }
 0x40e   :  { %v5915_v5 = vld [vmem:[%s6274_s0 + $0x10] sm:$0xff]  ;;  %3893 = vmatpush.msrb.mxu3 %v1892_v50  ;;  %3918 = vmatpush.msra.mxu1 %v597_v60  ;;  %v3536_v50 = vadd.f32 %v3535_v12, %v3516_v4  ;;  %v549_v9 = vld [vmem:[#allocation3 + $0xe58] sm:$0xff] }
 0x40f   :  { %3794 = vmatmul.f32.vlgmr.msra.gmra.mxu2 %v5915_v5  ;;  %3899 = vmatpush.msra.mxu0 %v325_v24  ;;  %v805_v60 = vld [vmem:[#allocation3 + $0x1658] sm:$0xff]  ;;  %v5941_v4 = vld [vmem:[%s6274_s0 + $0x30] sm:$0xff] }
 0x410   :  { %3938 = vmatpush.msra.mxu2 %v853_v54  ;;  %3958 = vmatpush.msra.mxu3 %v1109_v3  ;;  %v3556_v25 = vadd.f32 %v3555_v48, %v3536_v50  ;;  %v1061_v54 = vld [vmem:[#allocation3 + $0x1e58] sm:$0xff] }
 0x411   :  { %3919 = vmatpush.msra.mxu1 %v581_v57  ;;  %3900 = vmatpush.msra.mxu0 %v309_v63  ;;  %v277_v24 = vld [vmem:[#allocation3 + $0x5d8] sm:$0xff] }
 0x412   :  { %3939 = vmatpush.msra.mxu2 %v837_v61  ;;  %3959 = vmatpush.msra.mxu3 %v1093_v37  ;;  %v5936_v3 = vadd.f32 %v3575_v47, %v3556_v25  ;;  %v533_v57 = vld [vmem:[#allocation3 + $0xdd8] sm:$0xff] }
 0x413   :  { %3920 = vmatpush.msra.mxu1 %v565_v53  ;;  %3901 = vmatpush.msra.mxu0 %v293_v6  ;;  %v789_v61 = vld [vmem:[#allocation3 + $0x15d8] sm:$0xff]  ;;  %v5959_v53 = vld [vmem:[%s6274_s0 + $0x28] sm:$0xff] }
 0x414   :  { %3940 = vmatpush.msra.mxu2 %v821_v45  ;;  %3960 = vmatpush.msra.mxu3 %v1077_v21  ;;  %6295 = vst [vmem:[#allocation26_spill] sm:$0xff] %v5936_v3  ;;  %v5947_v21 = vld [vmem:[%s6274_s0 + $0x20] sm:$0xff]  ;;  %v1045_v47 = vld [vmem:[#allocation3 + $0x1dd8] sm:$0xff] }
 0x415   :  { %3921 = vmatpush.msra.mxu1 %v549_v9  ;;  %3834 = vmatmul.f32.vlgmr.msrb.gmra.mxu0 %v5947_v21  ;;  %v5953_v25 = vld [vmem:[%s6274_s0 + $0x38] sm:$0xff] }
 0x416   :  { %3941 = vmatpush.msra.mxu2 %v805_v60  ;;  %3961 = vmatpush.msra.mxu3 %v1061_v54  ;;  %v261_v6 = vld [vmem:[#allocation3 + $0x558] sm:$0xff] }
 0x417   :  { %3874 = vmatmul.f32.vlgmr.msrb.gmra.mxu2 %v5941_v4  ;;  %3894 = vmatmul.f32.vlgmr.msrb.gmra.mxu3 %v5953_v25  ;;  %v517_v37 = vld [vmem:[#allocation3 + $0xd58] sm:$0xff] }
 0x418   :  { %3902 = vmatpush.msra.mxu0 %v277_v24  ;;  %3922 = vmatpush.msra.mxu1 %v533_v57  ;;  %v773_v12 = vld [vmem:[#allocation3 + $0x1558] sm:$0xff] }
 0x419   :  { %3942 = vmatpush.msra.mxu2 %v789_v61  ;;  %v1029_v63 = vld [vmem:[#allocation3 + $0x1d58] sm:$0xff]  ;;  %3962 = vmatpush.msra.mxu3 %v1045_v47 }
 0x41a   :  { %3854 = vmatmul.f32.vlgmr.msrb.gmra.mxu1 %v5959_v53  ;;  %v245_v50 = vld [vmem:[#allocation3 + $0x4d8] sm:$0xff]  ;;  %3903 = vmatpush.msra.mxu0 %v261_v6 }
 0x41b   :  { %v501_v48 = vld [vmem:[#allocation3 + $0xcd8] sm:$0xff]  ;;  %3923 = vmatpush.msra.mxu1 %v517_v37  ;;  %3943 = vmatpush.msra.mxu2 %v773_v12 }
 0x41c   :  { %v757_v45 = vld [vmem:[#allocation3 + $0x14d8] sm:$0xff]  ;;  %3963 = vmatpush.msra.mxu3 %v1029_v63  ;;  %3904 = vmatpush.msra.mxu0 %v245_v50 }
 0x41d   :  { %v1013_v9 = vld [vmem:[#allocation3 + $0x1cd8] sm:$0xff]  ;;  %3924 = vmatpush.msra.mxu1 %v501_v48  ;;  %3944 = vmatpush.msra.mxu2 %v757_v45 }
 0x41e   :  { %v229_v60 = vld [vmem:[#allocation3 + $0x458] sm:$0xff]  ;;  %3964 = vmatpush.msra.mxu3 %v1013_v9 }
 0x41f   :  { %v485_v54 = vld [vmem:[#allocation3 + $0xc58] sm:$0xff]  ;;  %3905 = vmatpush.msra.mxu0 %v229_v60 }
 0x420   :  { %v741_v24 = vld [vmem:[#allocation3 + $0x1458] sm:$0xff]  ;;  %3925 = vmatpush.msra.mxu1 %v485_v54 }
 0x421   :  { %v997_v57 = vld [vmem:[#allocation3 + $0x1c58] sm:$0xff]  ;;  %3945 = vmatpush.msra.mxu2 %v741_v24 }
 0x422   :  { %v213_v61 = vld [vmem:[#allocation3 + $0x3d8] sm:$0xff]  ;;  %3965 = vmatpush.msra.mxu3 %v997_v57 }
 0x423   :  { %v469_v47 = vld [vmem:[#allocation3 + $0xbd8] sm:$0xff]  ;;  %3906 = vmatpush.msra.mxu0 %v213_v61 }
 0x424   :  { %v725_v3 = vld [vmem:[#allocation3 + $0x13d8] sm:$0xff]  ;;  %3926 = vmatpush.msra.mxu1 %v469_v47  ;;  %3966 = vmatpush.msra.mxu3 %v981_v62 }
 0x425   :  { %v197_v6 = vld [vmem:[#allocation3 + $0x358] sm:$0xff]  ;;  %3946 = vmatpush.msra.mxu2 %v725_v3 }
 0x426   :  { %v453_v37 = vld [vmem:[#allocation3 + $0xb58] sm:$0xff]  ;;  %3907 = vmatpush.msra.mxu0 %v197_v6 }
 0x427   :  { %v709_v12 = vld [vmem:[#allocation3 + $0x1358] sm:$0xff]  ;;  %3927 = vmatpush.msra.mxu1 %v453_v37 }
 0x428   :  { %v965_v63 = vld [vmem:[#allocation3 + $0x1b58] sm:$0xff]  ;;  %3947 = vmatpush.msra.mxu2 %v709_v12 }
 0x429   :  { %v181_v50 = vld [vmem:[#allocation3 + $0x2d8] sm:$0xff]  ;;  %3967 = vmatpush.msra.mxu3 %v965_v63 }
 0x42a   :  { %v437_v48 = vld [vmem:[#allocation3 + $0xad8] sm:$0xff]  ;;  %3908 = vmatpush.msra.mxu0 %v181_v50 }
 0x42b   :  { %v693_v45 = vld [vmem:[#allocation3 + $0x12d8] sm:$0xff]  ;;  %3928 = vmatpush.msra.mxu1 %v437_v48 }
 0x42c   :  { %v949_v9 = vld [vmem:[#allocation3 + $0x1ad8] sm:$0xff]  ;;  %3948 = vmatpush.msra.mxu2 %v693_v45 }
 0x42d   :  { %v165_v60 = vld [vmem:[#allocation3 + $0x258] sm:$0xff]  ;;  %3968 = vmatpush.msra.mxu3 %v949_v9 }
 0x42e   :  { %v421_v54 = vld [vmem:[#allocation3 + $0xa58] sm:$0xff]  ;;  %3909 = vmatpush.msra.mxu0 %v165_v60 }
 0x42f   :  { %v677_v24 = vld [vmem:[#allocation3 + $0x1258] sm:$0xff]  ;;  %3929 = vmatpush.msra.mxu1 %v421_v54 }
 0x430   :  { %v933_v57 = vld [vmem:[#allocation3 + $0x1a58] sm:$0xff]  ;;  %3949 = vmatpush.msra.mxu2 %v677_v24 }
 0x431   :  { %v149_v61 = vld [vmem:[#allocation3 + $0x1d8] sm:$0xff]  ;;  %3969 = vmatpush.msra.mxu3 %v933_v57 }
 0x432   :  { %v405_v47 = vld [vmem:[#allocation3 + $0x9d8] sm:$0xff]  ;;  %3910 = vmatpush.msra.mxu0 %v149_v61 }
 0x433   :  { %v661_v62 = vld [vmem:[#allocation3 + $0x11d8] sm:$0xff]  ;;  %3930 = vmatpush.msra.mxu1 %v405_v47 }
 0x434   :  { %v917_v3 = vld [vmem:[#allocation3 + $0x19d8] sm:$0xff]  ;;  %3950 = vmatpush.msra.mxu2 %v661_v62 }
 0x435   :  { %v133_v6 = vld [vmem:[#allocation3 + $0x158] sm:$0xff]  ;;  %3970 = vmatpush.msra.mxu3 %v917_v3 }
 0x436   :  { %v389_v37 = vld [vmem:[#allocation3 + $0x958] sm:$0xff]  ;;  %3911 = vmatpush.msra.mxu0 %v133_v6 }
 0x437   :  { %v645_v12 = vld [vmem:[#allocation3 + $0x1158] sm:$0xff]  ;;  %3931 = vmatpush.msra.mxu1 %v389_v37 }
 0x438   :  { %v901_v63 = vld [vmem:[#allocation3 + $0x1958] sm:$0xff]  ;;  %3951 = vmatpush.msra.mxu2 %v645_v12 }
 0x439   :  { %v117_v50 = vld [vmem:[#allocation3 + $0xd8] sm:$0xff]  ;;  %3971 = vmatpush.msra.mxu3 %v901_v63 }
 0x43a   :  { %v373_v48 = vld [vmem:[#allocation3 + $0x8d8] sm:$0xff]  ;;  %3912 = vmatpush.msra.mxu0 %v117_v50 }
 0x43b   :  { %v629_v45 = vld [vmem:[#allocation3 + $0x10d8] sm:$0xff]  ;;  %3932 = vmatpush.msra.mxu1 %v373_v48 }
 0x43c   :  { %v885_v9 = vld [vmem:[#allocation3 + $0x18d8] sm:$0xff]  ;;  %3952 = vmatpush.msra.mxu2 %v629_v45 }
 0x43d   :  { %v101_v60 = vld [vmem:[#allocation3 + $0x58] sm:$0xff]  ;;  %3972 = vmatpush.msra.mxu3 %v885_v9 }
 0x43e   :  { %v357_v54 = vld [vmem:[#allocation3 + $0x858] sm:$0xff]  ;;  %3913 = vmatpush.msra.mxu0 %v101_v60 }
 0x43f   :  { %v613_v24 = vld [vmem:[#allocation3 + $0x1058] sm:$0xff]  ;;  %3933 = vmatpush.msra.mxu1 %v357_v54  ;;  %3914 = vmatmul.f32.vlgmr.msra.gmra.mxu0 %v5921_v36  ;;  %v1078_v36 = vld [vmem:[#allocation3 + $0x1ee0] sm:$0xff] }
 0x440   :  { %v869_v57 = vld [vmem:[#allocation3 + $0x1858] sm:$0xff]  ;;  %3953 = vmatpush.msra.mxu2 %v613_v24  ;;  %3934 = vmatmul.f32.vlgmr.msra.gmra.mxu1 %v5927_v29  ;;  %v550_v29 = vld [vmem:[#allocation3 + $0xe60] sm:$0xff] }
 0x441   :  { %v1365_v61 = vld [vmem:[#allocation3 + $0x27d8] sm:$0xff]  ;;  %3973 = vmatpush.msra.mxu3 %v869_v57  ;;  %3954 = vmatmul.f32.vlgmr.msra.gmra.mxu2 %v5915_v5  ;;  %v1094_v5 = vld [vmem:[#allocation3 + $0x1f60] sm:$0xff] }
 0x442   :  { %v1621_v47 = vld [vmem:[#allocation3 + $0x2fd8] sm:$0xff]  ;;  %3978 = vmatpush.msrb.mxu0 %v1365_v61  ;;  %3974 = vmatmul.f32.vlgmr.msra.gmra.mxu3 %v5933_v32  ;;  %v806_v32 = vld [vmem:[#allocation3 + $0x1660] sm:$0xff] }
 0x443   :  { %v1877_v62 = vld [vmem:[#allocation3 + $0x37d8] sm:$0xff]  ;;  %3998 = vmatpush.msrb.mxu1 %v1621_v47 }
 0x444   :  { %v2133_v3 = vld [vmem:[#allocation3 + $0x3fd8] sm:$0xff]  ;;  %4018 = vmatpush.msrb.mxu2 %v1877_v62 }
 0x445   :  { %v1349_v6 = vld [vmem:[#allocation3 + $0x2758] sm:$0xff]  ;;  %4038 = vmatpush.msrb.mxu3 %v2133_v3 }
 0x446   :  { %v1605_v37 = vld [vmem:[#allocation3 + $0x2f58] sm:$0xff]  ;;  %3979 = vmatpush.msrb.mxu0 %v1349_v6 }
 0x447   :  { %v1861_v12 = vld [vmem:[#allocation3 + $0x3758] sm:$0xff]  ;;  %3999 = vmatpush.msrb.mxu1 %v1605_v37 }
 0x448   :  { %v2117_v63 = vld [vmem:[#allocation3 + $0x3f58] sm:$0xff]  ;;  %4019 = vmatpush.msrb.mxu2 %v1861_v12 }
 0x449   :  { %v1333_v50 = vld [vmem:[#allocation3 + $0x26d8] sm:$0xff]  ;;  %4039 = vmatpush.msrb.mxu3 %v2117_v63 }
 0x44a   :  { %v1589_v48 = vld [vmem:[#allocation3 + $0x2ed8] sm:$0xff]  ;;  %3980 = vmatpush.msrb.mxu0 %v1333_v50 }
 0x44b   :  { %v1845_v45 = vld [vmem:[#allocation3 + $0x36d8] sm:$0xff]  ;;  %4000 = vmatpush.msrb.mxu1 %v1589_v48 }
 0x44c   :  { %v2101_v9 = vld [vmem:[#allocation3 + $0x3ed8] sm:$0xff]  ;;  %4020 = vmatpush.msrb.mxu2 %v1845_v45 }
 0x44d   :  { %v1317_v60 = vld [vmem:[#allocation3 + $0x2658] sm:$0xff]  ;;  %4040 = vmatpush.msrb.mxu3 %v2101_v9 }
 0x44e   :  { %v1573_v54 = vld [vmem:[#allocation3 + $0x2e58] sm:$0xff]  ;;  %3981 = vmatpush.msrb.mxu0 %v1317_v60 }
 0x44f   :  { %v1829_v24 = vld [vmem:[#allocation3 + $0x3658] sm:$0xff]  ;;  %4001 = vmatpush.msrb.mxu1 %v1573_v54 }
 0x450   :  { %v2085_v57 = vld [vmem:[#allocation3 + $0x3e58] sm:$0xff]  ;;  %4021 = vmatpush.msrb.mxu2 %v1829_v24 }
 0x451   :  { %v1301_v61 = vld [vmem:[#allocation3 + $0x25d8] sm:$0xff]  ;;  %4041 = vmatpush.msrb.mxu3 %v2085_v57 }
 0x452   :  { %v1557_v47 = vld [vmem:[#allocation3 + $0x2dd8] sm:$0xff]  ;;  %3982 = vmatpush.msrb.mxu0 %v1301_v61 }
 0x453   :  { %v1813_v62 = vld [vmem:[#allocation3 + $0x35d8] sm:$0xff]  ;;  %4002 = vmatpush.msrb.mxu1 %v1557_v47 }
 0x454   :  { %v2069_v3 = vld [vmem:[#allocation3 + $0x3dd8] sm:$0xff]  ;;  %4022 = vmatpush.msrb.mxu2 %v1813_v62 }
 0x455   :  { %v1285_v6 = vld [vmem:[#allocation3 + $0x2558] sm:$0xff]  ;;  %4042 = vmatpush.msrb.mxu3 %v2069_v3 }
 0x456   :  { %v1541_v37 = vld [vmem:[#allocation3 + $0x2d58] sm:$0xff]  ;;  %3983 = vmatpush.msrb.mxu0 %v1285_v6 }
 0x457   :  { %v1797_v12 = vld [vmem:[#allocation3 + $0x3558] sm:$0xff]  ;;  %4003 = vmatpush.msrb.mxu1 %v1541_v37 }
 0x458   :  { %v2053_v63 = vld [vmem:[#allocation3 + $0x3d58] sm:$0xff]  ;;  %4023 = vmatpush.msrb.mxu2 %v1797_v12 }
 0x459   :  { %v1269_v50 = vld [vmem:[#allocation3 + $0x24d8] sm:$0xff]  ;;  %4043 = vmatpush.msrb.mxu3 %v2053_v63 }
 0x45a   :  { %v1525_v48 = vld [vmem:[#allocation3 + $0x2cd8] sm:$0xff]  ;;  %3984 = vmatpush.msrb.mxu0 %v1269_v50 }
 0x45b   :  { %v1781_v45 = vld [vmem:[#allocation3 + $0x34d8] sm:$0xff]  ;;  %4004 = vmatpush.msrb.mxu1 %v1525_v48 }
 0x45c   :  { %v2037_v9 = vld [vmem:[#allocation3 + $0x3cd8] sm:$0xff]  ;;  %4024 = vmatpush.msrb.mxu2 %v1781_v45 }
 0x45d   :  { %v1253_v60 = vld [vmem:[#allocation3 + $0x2458] sm:$0xff]  ;;  %4044 = vmatpush.msrb.mxu3 %v2037_v9 }
 0x45e   :  { %v1509_v54 = vld [vmem:[#allocation3 + $0x2c58] sm:$0xff]  ;;  %3985 = vmatpush.msrb.mxu0 %v1253_v60 }
 0x45f   :  { %v1765_v24 = vld [vmem:[#allocation3 + $0x3458] sm:$0xff]  ;;  %4005 = vmatpush.msrb.mxu1 %v1509_v54 }
 0x460   :  { %v2021_v57 = vld [vmem:[#allocation3 + $0x3c58] sm:$0xff]  ;;  %4025 = vmatpush.msrb.mxu2 %v1765_v24 }
 0x461   :  { %v1237_v61 = vld [vmem:[#allocation3 + $0x23d8] sm:$0xff]  ;;  %4045 = vmatpush.msrb.mxu3 %v2021_v57 }
 0x462   :  { %v1493_v47 = vld [vmem:[#allocation3 + $0x2bd8] sm:$0xff]  ;;  %3986 = vmatpush.msrb.mxu0 %v1237_v61 }
 0x463   :  { %v1749_v62 = vld [vmem:[#allocation3 + $0x33d8] sm:$0xff]  ;;  %4006 = vmatpush.msrb.mxu1 %v1493_v47 }
 0x464   :  { %v2005_v3 = vld [vmem:[#allocation3 + $0x3bd8] sm:$0xff]  ;;  %4026 = vmatpush.msrb.mxu2 %v1749_v62 }
 0x465   :  { %v1221_v6 = vld [vmem:[#allocation3 + $0x2358] sm:$0xff]  ;;  %4046 = vmatpush.msrb.mxu3 %v2005_v3 }
 0x466   :  { %v1477_v37 = vld [vmem:[#allocation3 + $0x2b58] sm:$0xff]  ;;  %3987 = vmatpush.msrb.mxu0 %v1221_v6 }
 0x467   :  { %v1733_v12 = vld [vmem:[#allocation3 + $0x3358] sm:$0xff]  ;;  %4007 = vmatpush.msrb.mxu1 %v1477_v37 }
 0x468   :  { %v1989_v63 = vld [vmem:[#allocation3 + $0x3b58] sm:$0xff]  ;;  %4027 = vmatpush.msrb.mxu2 %v1733_v12 }
 0x469   :  { %v1205_v50 = vld [vmem:[#allocation3 + $0x22d8] sm:$0xff]  ;;  %4047 = vmatpush.msrb.mxu3 %v1989_v63 }
 0x46a   :  { %v1461_v48 = vld [vmem:[#allocation3 + $0x2ad8] sm:$0xff]  ;;  %3988 = vmatpush.msrb.mxu0 %v1205_v50 }
 0x46b   :  { %v1717_v45 = vld [vmem:[#allocation3 + $0x32d8] sm:$0xff]  ;;  %4008 = vmatpush.msrb.mxu1 %v1461_v48 }
 0x46c   :  { %v1973_v9 = vld [vmem:[#allocation3 + $0x3ad8] sm:$0xff]  ;;  %4028 = vmatpush.msrb.mxu2 %v1717_v45 }
 0x46d   :  { %v1189_v60 = vld [vmem:[#allocation3 + $0x2258] sm:$0xff]  ;;  %4048 = vmatpush.msrb.mxu3 %v1973_v9 }
 0x46e   :  { %v1445_v54 = vld [vmem:[#allocation3 + $0x2a58] sm:$0xff]  ;;  %3989 = vmatpush.msrb.mxu0 %v1189_v60 }
 0x46f   :  { %v1701_v24 = vld [vmem:[#allocation3 + $0x3258] sm:$0xff]  ;;  %4009 = vmatpush.msrb.mxu1 %v1445_v54 }
 0x470   :  { %v1957_v57 = vld [vmem:[#allocation3 + $0x3a58] sm:$0xff]  ;;  %4029 = vmatpush.msrb.mxu2 %v1701_v24 }
 0x471   :  { %v1173_v61 = vld [vmem:[#allocation3 + $0x21d8] sm:$0xff]  ;;  %4049 = vmatpush.msrb.mxu3 %v1957_v57 }
 0x472   :  { %v1429_v47 = vld [vmem:[#allocation3 + $0x29d8] sm:$0xff]  ;;  %3990 = vmatpush.msrb.mxu0 %v1173_v61  ;;  %v342_v61 = vld [vmem:[#allocation3 + $0x7e0] sm:$0xff] }
 0x473   :  { %v1685_v62 = vld [vmem:[#allocation3 + $0x31d8] sm:$0xff]  ;;  %4010 = vmatpush.msrb.mxu1 %v1429_v47  ;;  %v598_v47 = vld [vmem:[#allocation3 + $0xfe0] sm:$0xff] }
 0x474   :  { %v1941_v3 = vld [vmem:[#allocation3 + $0x39d8] sm:$0xff]  ;;  %4030 = vmatpush.msrb.mxu2 %v1685_v62  ;;  %v854_v62 = vld [vmem:[#allocation3 + $0x17e0] sm:$0xff] }
 0x475   :  { %v1157_v6 = vld [vmem:[#allocation3 + $0x2158] sm:$0xff]  ;;  %4050 = vmatpush.msrb.mxu3 %v1941_v3  ;;  %v1110_v3 = vld [vmem:[#allocation3 + $0x1fe0] sm:$0xff] }
 0x476   :  { %v1413_v37 = vld [vmem:[#allocation3 + $0x2958] sm:$0xff]  ;;  %3991 = vmatpush.msrb.mxu0 %v1157_v6  ;;  %v326_v6 = vld [vmem:[#allocation3 + $0x760] sm:$0xff] }
 0x477   :  { %v1669_v12 = vld [vmem:[#allocation3 + $0x3158] sm:$0xff]  ;;  %4011 = vmatpush.msrb.mxu1 %v1413_v37  ;;  %v582_v37 = vld [vmem:[#allocation3 + $0xf60] sm:$0xff] }
 0x478   :  { %v1925_v63 = vld [vmem:[#allocation3 + $0x3958] sm:$0xff]  ;;  %4031 = vmatpush.msrb.mxu2 %v1669_v12  ;;  %v838_v12 = vld [vmem:[#allocation3 + $0x1760] sm:$0xff] }
 0x479   :  { %v1141_v50 = vld [vmem:[#allocation3 + $0x20d8] sm:$0xff]  ;;  %4051 = vmatpush.msrb.mxu3 %v1925_v63  ;;  %v310_v63 = vld [vmem:[#allocation3 + $0x6e0] sm:$0xff] }
 0x47a   :  { %v1397_v48 = vld [vmem:[#allocation3 + $0x28d8] sm:$0xff]  ;;  %3992 = vmatpush.msrb.mxu0 %v1141_v50  ;;  %v566_v50 = vld [vmem:[#allocation3 + $0xee0] sm:$0xff] }
 0x47b   :  { %v1653_v45 = vld [vmem:[#allocation3 + $0x30d8] sm:$0xff]  ;;  %4012 = vmatpush.msrb.mxu1 %v1397_v48  ;;  %v822_v48 = vld [vmem:[#allocation3 + $0x16e0] sm:$0xff] }
 0x47c   :  { %v1909_v9 = vld [vmem:[#allocation3 + $0x38d8] sm:$0xff]  ;;  %4032 = vmatpush.msrb.mxu2 %v1653_v45  ;;  %v294_v45 = vld [vmem:[#allocation3 + $0x660] sm:$0xff] }
 0x47d   :  { %v1125_v60 = vld [vmem:[#allocation3 + $0x2058] sm:$0xff]  ;;  %4052 = vmatpush.msrb.mxu3 %v1909_v9  ;;  %v1062_v9 = vld [vmem:[#allocation3 + $0x1e60] sm:$0xff] }
 0x47e   :  { %v1381_v54 = vld [vmem:[#allocation3 + $0x2858] sm:$0xff]  ;;  %3993 = vmatpush.msrb.mxu0 %v1125_v60  ;;  %v278_v60 = vld [vmem:[#allocation3 + $0x5e0] sm:$0xff] }
 0x47f   :  { %v1637_v24 = vld [vmem:[#allocation3 + $0x3058] sm:$0xff]  ;;  %4013 = vmatpush.msrb.mxu1 %v1381_v54  ;;  %v534_v54 = vld [vmem:[#allocation3 + $0xde0] sm:$0xff]  ;;  %3994 = vmatmul.f32.vlgmr.msrb.gmra.mxu0 %v5947_v21 }
 0x480   :  { %v1893_v57 = vld [vmem:[#allocation3 + $0x3858] sm:$0xff]  ;;  %4033 = vmatpush.msrb.mxu2 %v1637_v24  ;;  %4058 = vmatpush.msra.mxu0 %v342_v61  ;;  %v790_v24 = vld [vmem:[#allocation3 + $0x15e0] sm:$0xff] }
 0x481   :  { %4053 = vmatpush.msrb.mxu3 %v1893_v57  ;;  %4078 = vmatpush.msra.mxu1 %v598_v47  ;;  %v1046_v57 = vld [vmem:[#allocation3 + $0x1de0] sm:$0xff] }
 0x482   :  { %4098 = vmatpush.msra.mxu2 %v854_v62  ;;  %4059 = vmatpush.msra.mxu0 %v326_v6  ;;  %v262_v61 = vld [vmem:[#allocation3 + $0x560] sm:$0xff] }
 0x483   :  { %4118 = vmatpush.msra.mxu3 %v1110_v3  ;;  %4079 = vmatpush.msra.mxu1 %v582_v37  ;;  %v518_v47 = vld [vmem:[#allocation3 + $0xd60] sm:$0xff] }
 0x484   :  { %4099 = vmatpush.msra.mxu2 %v838_v12  ;;  %4060 = vmatpush.msra.mxu0 %v310_v63  ;;  %v774_v62 = vld [vmem:[#allocation3 + $0x1560] sm:$0xff] }
 0x485   :  { %4119 = vmatpush.msra.mxu3 %v1094_v5  ;;  %4080 = vmatpush.msra.mxu1 %v566_v50  ;;  %v1030_v3 = vld [vmem:[#allocation3 + $0x1d60] sm:$0xff] }
 0x486   :  { %4100 = vmatpush.msra.mxu2 %v822_v48  ;;  %4061 = vmatpush.msra.mxu0 %v294_v45  ;;  %v502_v6 = vld [vmem:[#allocation3 + $0xce0] sm:$0xff] }
 0x487   :  { %4120 = vmatpush.msra.mxu3 %v1078_v36  ;;  %4034 = vmatmul.f32.vlgmr.msrb.gmra.mxu2 %v5941_v4  ;;  %v246_v4 = vld [vmem:[#allocation3 + $0x4e0] sm:$0xff] }
 0x488   :  { %4081 = vmatpush.msra.mxu1 %v550_v29  ;;  %4101 = vmatpush.msra.mxu2 %v806_v32  ;;  %v758_v37 = vld [vmem:[#allocation3 + $0x14e0] sm:$0xff] }
 0x489   :  { %4121 = vmatpush.msra.mxu3 %v1062_v9  ;;  %4062 = vmatpush.msra.mxu0 %v278_v60  ;;  %v1014_v12 = vld [vmem:[#allocation3 + $0x1ce0] sm:$0xff] }
 0x48a   :  { %4054 = vmatmul.f32.vlgmr.msrb.gmra.mxu3 %v5953_v25  ;;  %4082 = vmatpush.msra.mxu1 %v534_v54  ;;  %v230_v21 = vld [vmem:[#allocation3 + $0x460] sm:$0xff] }
 0x48b   :  { %4102 = vmatpush.msra.mxu2 %v790_v24  ;;  %4122 = vmatpush.msra.mxu3 %v1046_v57  ;;  %v486_v25 = vld [vmem:[#allocation3 + $0xc60] sm:$0xff] }
 0x48c   :  { %4014 = vmatmul.f32.vlgmr.msrb.gmra.mxu1 %v5959_v53  ;;  %4063 = vmatpush.msra.mxu0 %v262_v61  ;;  %v742_v5 = vld [vmem:[#allocation3 + $0x1460] sm:$0xff] }
 0x48d   :  { %4083 = vmatpush.msra.mxu1 %v518_v47  ;;  %4103 = vmatpush.msra.mxu2 %v774_v62  ;;  %v998_v63 = vld [vmem:[#allocation3 + $0x1c60] sm:$0xff] }
 0x48e   :  { %4123 = vmatpush.msra.mxu3 %v1030_v3  ;;  %4064 = vmatpush.msra.mxu0 %v246_v4  ;;  %v214_v50 = vld [vmem:[#allocation3 + $0x3e0] sm:$0xff] }
 0x48f   :  { %4084 = vmatpush.msra.mxu1 %v502_v6  ;;  %4104 = vmatpush.msra.mxu2 %v758_v37  ;;  %v470_v48 = vld [vmem:[#allocation3 + $0xbe0] sm:$0xff] }
 0x490   :  { %4124 = vmatpush.msra.mxu3 %v1014_v12  ;;  %4065 = vmatpush.msra.mxu0 %v230_v21  ;;  %v726_v53 = vld [vmem:[#allocation3 + $0x13e0] sm:$0xff] }
 0x491   :  { %4085 = vmatpush.msra.mxu1 %v486_v25  ;;  %v982_v36 = vld [vmem:[#allocation3 + $0x1be0] sm:$0xff]  ;;  %4105 = vmatpush.msra.mxu2 %v742_v5 }
 0x492   :  { %4125 = vmatpush.msra.mxu3 %v998_v63  ;;  %v198_v45 = vld [vmem:[#allocation3 + $0x360] sm:$0xff]  ;;  %4066 = vmatpush.msra.mxu0 %v214_v50 }
 0x493   :  { %v454_v29 = vld [vmem:[#allocation3 + $0xb60] sm:$0xff]  ;;  %4086 = vmatpush.msra.mxu1 %v470_v48  ;;  %4106 = vmatpush.msra.mxu2 %v726_v53 }
 0x494   :  { %v710_v32 = vld [vmem:[#allocation3 + $0x1360] sm:$0xff]  ;;  %4126 = vmatpush.msra.mxu3 %v982_v36  ;;  %4067 = vmatpush.msra.mxu0 %v198_v45 }
 0x495   :  { %v966_v9 = vld [vmem:[#allocation3 + $0x1b60] sm:$0xff]  ;;  %4087 = vmatpush.msra.mxu1 %v454_v29  ;;  %4107 = vmatpush.msra.mxu2 %v710_v32 }
 0x496   :  { %v182_v60 = vld [vmem:[#allocation3 + $0x2e0] sm:$0xff]  ;;  %4127 = vmatpush.msra.mxu3 %v966_v9 }
 0x497   :  { %v438_v54 = vld [vmem:[#allocation3 + $0xae0] sm:$0xff]  ;;  %4068 = vmatpush.msra.mxu0 %v182_v60 }
 0x498   :  { %v694_v24 = vld [vmem:[#allocation3 + $0x12e0] sm:$0xff]  ;;  %4088 = vmatpush.msra.mxu1 %v438_v54 }
 0x499   :  { %v950_v57 = vld [vmem:[#allocation3 + $0x1ae0] sm:$0xff]  ;;  %4108 = vmatpush.msra.mxu2 %v694_v24 }
 0x49a   :  { %v166_v61 = vld [vmem:[#allocation3 + $0x260] sm:$0xff]  ;;  %4128 = vmatpush.msra.mxu3 %v950_v57 }
 0x49b   :  { %v422_v47 = vld [vmem:[#allocation3 + $0xa60] sm:$0xff]  ;;  %4069 = vmatpush.msra.mxu0 %v166_v61 }
 0x49c   :  { %v678_v62 = vld [vmem:[#allocation3 + $0x1260] sm:$0xff]  ;;  %4089 = vmatpush.msra.mxu1 %v422_v47 }
 0x49d   :  { %v934_v3 = vld [vmem:[#allocation3 + $0x1a60] sm:$0xff]  ;;  %4109 = vmatpush.msra.mxu2 %v678_v62 }
 0x49e   :  { %v150_v4 = vld [vmem:[#allocation3 + $0x1e0] sm:$0xff]  ;;  %4129 = vmatpush.msra.mxu3 %v934_v3 }
 0x49f   :  { %v406_v6 = vld [vmem:[#allocation3 + $0x9e0] sm:$0xff]  ;;  %4070 = vmatpush.msra.mxu0 %v150_v4 }
 0x4a0   :  { %v662_v37 = vld [vmem:[#allocation3 + $0x11e0] sm:$0xff]  ;;  %4090 = vmatpush.msra.mxu1 %v406_v6 }
 0x4a1   :  { %v918_v12 = vld [vmem:[#allocation3 + $0x19e0] sm:$0xff]  ;;  %4110 = vmatpush.msra.mxu2 %v662_v37 }
 0x4a2   :  { %v134_v21 = vld [vmem:[#allocation3 + $0x160] sm:$0xff]  ;;  %4130 = vmatpush.msra.mxu3 %v918_v12 }
 0x4a3   :  { %v390_v25 = vld [vmem:[#allocation3 + $0x960] sm:$0xff]  ;;  %4071 = vmatpush.msra.mxu0 %v134_v21 }
 0x4a4   :  { %v646_v5 = vld [vmem:[#allocation3 + $0x1160] sm:$0xff]  ;;  %4091 = vmatpush.msra.mxu1 %v390_v25 }
 0x4a5   :  { %v902_v63 = vld [vmem:[#allocation3 + $0x1960] sm:$0xff]  ;;  %4111 = vmatpush.msra.mxu2 %v646_v5 }
 0x4a6   :  { %v118_v50 = vld [vmem:[#allocation3 + $0xe0] sm:$0xff]  ;;  %4131 = vmatpush.msra.mxu3 %v902_v63 }
 0x4a7   :  { %v374_v48 = vld [vmem:[#allocation3 + $0x8e0] sm:$0xff]  ;;  %4072 = vmatpush.msra.mxu0 %v118_v50 }
 0x4a8   :  { %v630_v53 = vld [vmem:[#allocation3 + $0x10e0] sm:$0xff]  ;;  %4092 = vmatpush.msra.mxu1 %v374_v48 }
 0x4a9   :  { %v886_v36 = vld [vmem:[#allocation3 + $0x18e0] sm:$0xff]  ;;  %4112 = vmatpush.msra.mxu2 %v630_v53 }
 0x4aa   :  { %v102_v45 = vld [vmem:[#allocation3 + $0x60] sm:$0xff]  ;;  %4132 = vmatpush.msra.mxu3 %v886_v36 }
 0x4ab   :  { %v358_v29 = vld [vmem:[#allocation3 + $0x860] sm:$0xff]  ;;  %4073 = vmatpush.msra.mxu0 %v102_v45 }
 0x4ac   :  { %v614_v32 = vld [vmem:[#allocation3 + $0x1060] sm:$0xff]  ;;  %4093 = vmatpush.msra.mxu1 %v358_v29 }
 0x4ad   :  { %v870_v9 = vld [vmem:[#allocation3 + $0x1860] sm:$0xff]  ;;  %4113 = vmatpush.msra.mxu2 %v614_v32 }
 0x4ae   :  { %v1366_v60 = vld [vmem:[#allocation3 + $0x27e0] sm:$0xff]  ;;  %4133 = vmatpush.msra.mxu3 %v870_v9 }
 0x4af   :  { %v1622_v54 = vld [vmem:[#allocation3 + $0x2fe0] sm:$0xff]  ;;  %4138 = vmatpush.msrb.mxu0 %v1366_v60 }
 0x4b0   :  { %v1878_v24 = vld [vmem:[#allocation3 + $0x37e0] sm:$0xff]  ;;  %4158 = vmatpush.msrb.mxu1 %v1622_v54 }
 0x4b1   :  { %v2134_v57 = vld [vmem:[#allocation3 + $0x3fe0] sm:$0xff]  ;;  %4178 = vmatpush.msrb.mxu2 %v1878_v24 }
 0x4b2   :  { %v1350_v61 = vld [vmem:[#allocation3 + $0x2760] sm:$0xff]  ;;  %4198 = vmatpush.msrb.mxu3 %v2134_v57 }
 0x4b3   :  { %v1606_v47 = vld [vmem:[#allocation3 + $0x2f60] sm:$0xff]  ;;  %4139 = vmatpush.msrb.mxu0 %v1350_v61 }
 0x4b4   :  { %v1862_v62 = vld [vmem:[#allocation3 + $0x3760] sm:$0xff]  ;;  %4159 = vmatpush.msrb.mxu1 %v1606_v47 }
 0x4b5   :  { %v2118_v3 = vld [vmem:[#allocation3 + $0x3f60] sm:$0xff]  ;;  %4179 = vmatpush.msrb.mxu2 %v1862_v62 }
 0x4b6   :  { %v1334_v4 = vld [vmem:[#allocation3 + $0x26e0] sm:$0xff]  ;;  %4199 = vmatpush.msrb.mxu3 %v2118_v3 }
 0x4b7   :  { %v1590_v6 = vld [vmem:[#allocation3 + $0x2ee0] sm:$0xff]  ;;  %4140 = vmatpush.msrb.mxu0 %v1334_v4 }
 0x4b8   :  { %v1846_v37 = vld [vmem:[#allocation3 + $0x36e0] sm:$0xff]  ;;  %4160 = vmatpush.msrb.mxu1 %v1590_v6 }
 0x4b9   :  { %v2102_v12 = vld [vmem:[#allocation3 + $0x3ee0] sm:$0xff]  ;;  %4180 = vmatpush.msrb.mxu2 %v1846_v37 }
 0x4ba   :  { %v1318_v21 = vld [vmem:[#allocation3 + $0x2660] sm:$0xff]  ;;  %4200 = vmatpush.msrb.mxu3 %v2102_v12 }
 0x4bb   :  { %v1574_v25 = vld [vmem:[#allocation3 + $0x2e60] sm:$0xff]  ;;  %4141 = vmatpush.msrb.mxu0 %v1318_v21 }
 0x4bc   :  { %v1830_v5 = vld [vmem:[#allocation3 + $0x3660] sm:$0xff]  ;;  %4161 = vmatpush.msrb.mxu1 %v1574_v25 }
 0x4bd   :  { %v2086_v63 = vld [vmem:[#allocation3 + $0x3e60] sm:$0xff]  ;;  %4181 = vmatpush.msrb.mxu2 %v1830_v5 }
 0x4be   :  { %v1302_v50 = vld [vmem:[#allocation3 + $0x25e0] sm:$0xff]  ;;  %4201 = vmatpush.msrb.mxu3 %v2086_v63 }
 0x4bf   :  { %v1558_v48 = vld [vmem:[#allocation3 + $0x2de0] sm:$0xff]  ;;  %4142 = vmatpush.msrb.mxu0 %v1302_v50 }
 0x4c0   :  { %v1814_v53 = vld [vmem:[#allocation3 + $0x35e0] sm:$0xff]  ;;  %4162 = vmatpush.msrb.mxu1 %v1558_v48 }
 0x4c1   :  { %v2070_v36 = vld [vmem:[#allocation3 + $0x3de0] sm:$0xff]  ;;  %4182 = vmatpush.msrb.mxu2 %v1814_v53 }
 0x4c2   :  { %v1286_v45 = vld [vmem:[#allocation3 + $0x2560] sm:$0xff]  ;;  %4202 = vmatpush.msrb.mxu3 %v2070_v36 }
 0x4c3   :  { %v1542_v29 = vld [vmem:[#allocation3 + $0x2d60] sm:$0xff]  ;;  %4143 = vmatpush.msrb.mxu0 %v1286_v45 }
 0x4c4   :  { %v1798_v32 = vld [vmem:[#allocation3 + $0x3560] sm:$0xff]  ;;  %4163 = vmatpush.msrb.mxu1 %v1542_v29 }
 0x4c5   :  { %v2054_v9 = vld [vmem:[#allocation3 + $0x3d60] sm:$0xff]  ;;  %4183 = vmatpush.msrb.mxu2 %v1798_v32 }
 0x4c6   :  { %v1270_v60 = vld [vmem:[#allocation3 + $0x24e0] sm:$0xff]  ;;  %4203 = vmatpush.msrb.mxu3 %v2054_v9 }
 0x4c7   :  { %v1526_v54 = vld [vmem:[#allocation3 + $0x2ce0] sm:$0xff]  ;;  %4144 = vmatpush.msrb.mxu0 %v1270_v60 }
 0x4c8   :  { %v1782_v24 = vld [vmem:[#allocation3 + $0x34e0] sm:$0xff]  ;;  %4164 = vmatpush.msrb.mxu1 %v1526_v54 }
 0x4c9   :  { %v2038_v57 = vld [vmem:[#allocation3 + $0x3ce0] sm:$0xff]  ;;  %4184 = vmatpush.msrb.mxu2 %v1782_v24 }
 0x4ca   :  { %v1254_v61 = vld [vmem:[#allocation3 + $0x2460] sm:$0xff]  ;;  %4204 = vmatpush.msrb.mxu3 %v2038_v57 }
 0x4cb   :  { %v1510_v47 = vld [vmem:[#allocation3 + $0x2c60] sm:$0xff]  ;;  %4145 = vmatpush.msrb.mxu0 %v1254_v61 }
 0x4cc   :  { %v1766_v62 = vld [vmem:[#allocation3 + $0x3460] sm:$0xff]  ;;  %4165 = vmatpush.msrb.mxu1 %v1510_v47 }
 0x4cd   :  { %v2022_v3 = vld [vmem:[#allocation3 + $0x3c60] sm:$0xff]  ;;  %4185 = vmatpush.msrb.mxu2 %v1766_v62 }
 0x4ce   :  { %v1238_v4 = vld [vmem:[#allocation3 + $0x23e0] sm:$0xff]  ;;  %4205 = vmatpush.msrb.mxu3 %v2022_v3 }
 0x4cf   :  { %v1494_v6 = vld [vmem:[#allocation3 + $0x2be0] sm:$0xff]  ;;  %4146 = vmatpush.msrb.mxu0 %v1238_v4 }
 0x4d0   :  { %v1750_v37 = vld [vmem:[#allocation3 + $0x33e0] sm:$0xff]  ;;  %4166 = vmatpush.msrb.mxu1 %v1494_v6 }
 0x4d1   :  { %v2006_v12 = vld [vmem:[#allocation3 + $0x3be0] sm:$0xff]  ;;  %4186 = vmatpush.msrb.mxu2 %v1750_v37 }
 0x4d2   :  { %v1222_v21 = vld [vmem:[#allocation3 + $0x2360] sm:$0xff]  ;;  %4206 = vmatpush.msrb.mxu3 %v2006_v12 }
 0x4d3   :  { %v1478_v25 = vld [vmem:[#allocation3 + $0x2b60] sm:$0xff]  ;;  %4147 = vmatpush.msrb.mxu0 %v1222_v21 }
 0x4d4   :  { %v1734_v5 = vld [vmem:[#allocation3 + $0x3360] sm:$0xff]  ;;  %4167 = vmatpush.msrb.mxu1 %v1478_v25 }
 0x4d5   :  { %v1990_v63 = vld [vmem:[#allocation3 + $0x3b60] sm:$0xff]  ;;  %4187 = vmatpush.msrb.mxu2 %v1734_v5 }
 0x4d6   :  { %v1206_v50 = vld [vmem:[#allocation3 + $0x22e0] sm:$0xff]  ;;  %4207 = vmatpush.msrb.mxu3 %v1990_v63 }
 0x4d7   :  { %v1462_v48 = vld [vmem:[#allocation3 + $0x2ae0] sm:$0xff]  ;;  %4148 = vmatpush.msrb.mxu0 %v1206_v50  ;;  %v5973_v50 = vld [vmem:[%s6274_s0 + $0x10] sm:$0xff] }
 0x4d8   :  { %v1718_v53 = vld [vmem:[#allocation3 + $0x32e0] sm:$0xff]  ;;  %4168 = vmatpush.msrb.mxu1 %v1462_v48  ;;  %4114 = vmatmul.f32.vlgmr.msra.gmra.mxu2 %v5973_v50  ;;  %v343_v48 = vld [vmem:[#allocation3 + $0x7e8] sm:$0xff] }
 0x4d9   :  { %v1974_v36 = vld [vmem:[#allocation3 + $0x3ae0] sm:$0xff]  ;;  %4188 = vmatpush.msrb.mxu2 %v1718_v53  ;;  %v599_v53 = vld [vmem:[#allocation3 + $0xfe8] sm:$0xff] }
 0x4da   :  { %v1190_v45 = vld [vmem:[#allocation3 + $0x2260] sm:$0xff]  ;;  %4208 = vmatpush.msrb.mxu3 %v1974_v36 }
 0x4db   :  { %v1446_v29 = vld [vmem:[#allocation3 + $0x2a60] sm:$0xff]  ;;  %4149 = vmatpush.msrb.mxu0 %v1190_v45  ;;  %v855_v45 = vld [vmem:[#allocation3 + $0x17e8] sm:$0xff] }
 0x4dc   :  { %v1702_v32 = vld [vmem:[#allocation3 + $0x3260] sm:$0xff]  ;;  %4169 = vmatpush.msrb.mxu1 %v1446_v29  ;;  %v1111_v29 = vld [vmem:[#allocation3 + $0x1fe8] sm:$0xff] }
 0x4dd   :  { %v1958_v9 = vld [vmem:[#allocation3 + $0x3a60] sm:$0xff]  ;;  %4189 = vmatpush.msrb.mxu2 %v1702_v32  ;;  %v5985_v32 = vld [vmem:[%s6274_s0 + $0x8] sm:$0xff] }
 0x4de   :  { %v1174_v60 = vld [vmem:[#allocation3 + $0x21e0] sm:$0xff]  ;;  %4209 = vmatpush.msrb.mxu3 %v1958_v9  ;;  %4094 = vmatmul.f32.vlgmr.msra.gmra.mxu1 %v5985_v32  ;;  %v5991_v9 = vld [vmem:[%s6274_s0 + $0x18] sm:$0xff] }
 0x4df   :  { %v1430_v54 = vld [vmem:[#allocation3 + $0x29e0] sm:$0xff]  ;;  %4150 = vmatpush.msrb.mxu0 %v1174_v60  ;;  %4134 = vmatmul.f32.vlgmr.msra.gmra.mxu3 %v5991_v9  ;;  %v327_v60 = vld [vmem:[#allocation3 + $0x768] sm:$0xff] }
 0x4e0   :  { %v1686_v24 = vld [vmem:[#allocation3 + $0x31e0] sm:$0xff]  ;;  %4170 = vmatpush.msrb.mxu1 %v1430_v54  ;;  %v583_v54 = vld [vmem:[#allocation3 + $0xf68] sm:$0xff] }
 0x4e1   :  { %v1942_v57 = vld [vmem:[#allocation3 + $0x39e0] sm:$0xff]  ;;  %4190 = vmatpush.msrb.mxu2 %v1686_v24  ;;  %v839_v24 = vld [vmem:[#allocation3 + $0x1768] sm:$0xff] }
 0x4e2   :  { %v1158_v61 = vld [vmem:[#allocation3 + $0x2160] sm:$0xff]  ;;  %4210 = vmatpush.msrb.mxu3 %v1942_v57  ;;  %v1095_v57 = vld [vmem:[#allocation3 + $0x1f68] sm:$0xff] }
 0x4e3   :  { %v1414_v47 = vld [vmem:[#allocation3 + $0x2960] sm:$0xff]  ;;  %4151 = vmatpush.msrb.mxu0 %v1158_v61  ;;  %v311_v61 = vld [vmem:[#allocation3 + $0x6e8] sm:$0xff] }
 0x4e4   :  { %v1670_v62 = vld [vmem:[#allocation3 + $0x3160] sm:$0xff]  ;;  %4171 = vmatpush.msrb.mxu1 %v1414_v47  ;;  %v567_v47 = vld [vmem:[#allocation3 + $0xee8] sm:$0xff] }
 0x4e5   :  { %v1926_v3 = vld [vmem:[#allocation3 + $0x3960] sm:$0xff]  ;;  %4191 = vmatpush.msrb.mxu2 %v1670_v62  ;;  %v823_v62 = vld [vmem:[#allocation3 + $0x16e8] sm:$0xff] }
 0x4e6   :  { %v1142_v4 = vld [vmem:[#allocation3 + $0x20e0] sm:$0xff]  ;;  %4211 = vmatpush.msrb.mxu3 %v1926_v3  ;;  %v1079_v3 = vld [vmem:[#allocation3 + $0x1ee8] sm:$0xff] }
 0x4e7   :  { %v1398_v6 = vld [vmem:[#allocation3 + $0x28e0] sm:$0xff]  ;;  %4152 = vmatpush.msrb.mxu0 %v1142_v4  ;;  %v295_v4 = vld [vmem:[#allocation3 + $0x668] sm:$0xff] }
 0x4e8   :  { %v1654_v37 = vld [vmem:[#allocation3 + $0x30e0] sm:$0xff]  ;;  %4172 = vmatpush.msrb.mxu1 %v1398_v6  ;;  %v551_v6 = vld [vmem:[#allocation3 + $0xe68] sm:$0xff] }
 0x4e9   :  { %v1910_v12 = vld [vmem:[#allocation3 + $0x38e0] sm:$0xff]  ;;  %4192 = vmatpush.msrb.mxu2 %v1654_v37  ;;  %v807_v37 = vld [vmem:[#allocation3 + $0x1668] sm:$0xff] }
 0x4ea   :  { %v1126_v21 = vld [vmem:[#allocation3 + $0x2060] sm:$0xff]  ;;  %4212 = vmatpush.msrb.mxu3 %v1910_v12  ;;  %v1063_v12 = vld [vmem:[#allocation3 + $0x1e68] sm:$0xff] }
 0x4eb   :  { %v1382_v25 = vld [vmem:[#allocation3 + $0x2860] sm:$0xff]  ;;  %4153 = vmatpush.msrb.mxu0 %v1126_v21  ;;  %v5997_v21 = vld [vmem:[%s6274_s0 + $0x30] sm:$0xff] }
 0x4ec   :  { %v1638_v5 = vld [vmem:[#allocation3 + $0x3060] sm:$0xff]  ;;  %4173 = vmatpush.msrb.mxu1 %v1382_v25  ;;  %v279_v25 = vld [vmem:[#allocation3 + $0x5e8] sm:$0xff] }
 0x4ed   :  { %v1894_v63 = vld [vmem:[#allocation3 + $0x3860] sm:$0xff]  ;;  %4193 = vmatpush.msrb.mxu2 %v1638_v5  ;;  %v535_v5 = vld [vmem:[#allocation3 + $0xde8] sm:$0xff] }
 0x4ee   :  { %4213 = vmatpush.msrb.mxu3 %v1894_v63  ;;  %v5979_v36 = vld [vmem:[%s6274_s0] sm:$0xff]  ;;  %4238 = vmatpush.msra.mxu1 %v599_v53  ;;  %v791_v63 = vld [vmem:[#allocation3 + $0x15e8] sm:$0xff] }
 0x4ef   :  { %4074 = vmatmul.f32.vlgmr.msra.gmra.mxu0 %v5979_v36  ;;  %4258 = vmatpush.msra.mxu2 %v855_v45  ;;  %v1047_v53 = vld [vmem:[#allocation3 + $0x1de8] sm:$0xff]  ;;  %v6009_v45 = vld [vmem:[%s6274_s0 + $0x38] sm:$0xff] }
 0x4f0   :  { %4218 = vmatpush.msra.mxu0 %v343_v48  ;;  %4278 = vmatpush.msra.mxu3 %v1111_v29  ;;  %v6003_v48 = vld [vmem:[%s6274_s0 + $0x20] sm:$0xff]  ;;  %v263_v29 = vld [vmem:[#allocation3 + $0x568] sm:$0xff] }
 0x4f1   :  { %4239 = vmatpush.msra.mxu1 %v583_v54  ;;  %4259 = vmatpush.msra.mxu2 %v839_v24  ;;  %v775_v54 = vld [vmem:[#allocation3 + $0x1568] sm:$0xff] }
 0x4f2   :  { %4219 = vmatpush.msra.mxu0 %v327_v60  ;;  %4279 = vmatpush.msra.mxu3 %v1095_v57  ;;  %v519_v60 = vld [vmem:[#allocation3 + $0xd68] sm:$0xff] }
 0x4f3   :  { %4240 = vmatpush.msra.mxu1 %v567_v47  ;;  %4260 = vmatpush.msra.mxu2 %v823_v62  ;;  %v1031_v24 = vld [vmem:[#allocation3 + $0x1d68] sm:$0xff] }
 0x4f4   :  { %4220 = vmatpush.msra.mxu0 %v311_v61  ;;  %4280 = vmatpush.msra.mxu3 %v1079_v3  ;;  %v6015_v57 = vld [vmem:[%s6274_s0 + $0x28] sm:$0xff] }
 0x4f5   :  { %4194 = vmatmul.f32.vlgmr.msrb.gmra.mxu2 %v5997_v21  ;;  %4241 = vmatpush.msra.mxu1 %v551_v6  ;;  %v247_v61 = vld [vmem:[#allocation3 + $0x4e8] sm:$0xff] }
 0x4f6   :  { %4221 = vmatpush.msra.mxu0 %v295_v4  ;;  %4261 = vmatpush.msra.mxu2 %v807_v37  ;;  %v503_v47 = vld [vmem:[#allocation3 + $0xce8] sm:$0xff] }
 0x4f7   :  { %4281 = vmatpush.msra.mxu3 %v1063_v12  ;;  %4154 = vmatmul.f32.vlgmr.msrb.gmra.mxu0 %v6003_v48  ;;  %v759_v62 = vld [vmem:[#allocation3 + $0x14e8] sm:$0xff] }
 0x4f8   :  { %4214 = vmatmul.f32.vlgmr.msrb.gmra.mxu3 %v6009_v45  ;;  %4222 = vmatpush.msra.mxu0 %v279_v25  ;;  %v1015_v3 = vld [vmem:[#allocation3 + $0x1ce8] sm:$0xff] }
 0x4f9   :  { %4242 = vmatpush.msra.mxu1 %v535_v5  ;;  %4262 = vmatpush.msra.mxu2 %v791_v63  ;;  %v231_v4 = vld [vmem:[#allocation3 + $0x468] sm:$0xff] }
 0x4fa   :  { %4282 = vmatpush.msra.mxu3 %v1047_v53  ;;  %4174 = vmatmul.f32.vlgmr.msrb.gmra.mxu1 %v6015_v57  ;;  %v487_v6 = vld [vmem:[#allocation3 + $0xc68] sm:$0xff] }
 0x4fb   :  { %4223 = vmatpush.msra.mxu0 %v263_v29  ;;  %4243 = vmatpush.msra.mxu1 %v519_v60  ;;  %v743_v37 = vld [vmem:[#allocation3 + $0x1468] sm:$0xff] }
 0x4fc   :  { %4263 = vmatpush.msra.mxu2 %v775_v54  ;;  %4283 = vmatpush.msra.mxu3 %v1031_v24  ;;  %v999_v12 = vld [vmem:[#allocation3 + $0x1c68] sm:$0xff] }
 0x4fd   :  { %4224 = vmatpush.msra.mxu0 %v247_v61  ;;  %4244 = vmatpush.msra.mxu1 %v503_v47  ;;  %v215_v25 = vld [vmem:[#allocation3 + $0x3e8] sm:$0xff] }
 0x4fe   :  { %4264 = vmatpush.msra.mxu2 %v759_v62  ;;  %4284 = vmatpush.msra.mxu3 %v1015_v3  ;;  %v471_v5 = vld [vmem:[#allocation3 + $0xbe8] sm:$0xff] }
 0x4ff   :  { %4225 = vmatpush.msra.mxu0 %v231_v4  ;;  %4245 = vmatpush.msra.mxu1 %v487_v6  ;;  %v727_v63 = vld [vmem:[#allocation3 + $0x13e8] sm:$0xff] }
 0x500   :  { %v983_v53 = vld [vmem:[#allocation3 + $0x1be8] sm:$0xff]  ;;  %4265 = vmatpush.msra.mxu2 %v743_v37  ;;  %4285 = vmatpush.msra.mxu3 %v999_v12 }
 0x501   :  { %v199_v29 = vld [vmem:[#allocation3 + $0x368] sm:$0xff]  ;;  %4226 = vmatpush.msra.mxu0 %v215_v25  ;;  %4246 = vmatpush.msra.mxu1 %v471_v5 }
 0x502   :  { %v455_v60 = vld [vmem:[#allocation3 + $0xb68] sm:$0xff]  ;;  %4266 = vmatpush.msra.mxu2 %v727_v63  ;;  %4286 = vmatpush.msra.mxu3 %v983_v53 }
 0x503   :  { %v711_v54 = vld [vmem:[#allocation3 + $0x1368] sm:$0xff]  ;;  %4227 = vmatpush.msra.mxu0 %v199_v29  ;;  %4247 = vmatpush.msra.mxu1 %v455_v60 }
 0x504   :  { %v967_v24 = vld [vmem:[#allocation3 + $0x1b68] sm:$0xff]  ;;  %4267 = vmatpush.msra.mxu2 %v711_v54 }
 0x505   :  { %v183_v61 = vld [vmem:[#allocation3 + $0x2e8] sm:$0xff]  ;;  %4287 = vmatpush.msra.mxu3 %v967_v24 }
 0x506   :  { %v439_v47 = vld [vmem:[#allocation3 + $0xae8] sm:$0xff]  ;;  %4228 = vmatpush.msra.mxu0 %v183_v61 }
 0x507   :  { %v695_v62 = vld [vmem:[#allocation3 + $0x12e8] sm:$0xff]  ;;  %4248 = vmatpush.msra.mxu1 %v439_v47 }
 0x508   :  { %v951_v3 = vld [vmem:[#allocation3 + $0x1ae8] sm:$0xff]  ;;  %4268 = vmatpush.msra.mxu2 %v695_v62 }
 0x509   :  { %v167_v4 = vld [vmem:[#allocation3 + $0x268] sm:$0xff]  ;;  %4288 = vmatpush.msra.mxu3 %v951_v3 }
 0x50a   :  { %v423_v6 = vld [vmem:[#allocation3 + $0xa68] sm:$0xff]  ;;  %4229 = vmatpush.msra.mxu0 %v167_v4 }
 0x50b   :  { %v679_v37 = vld [vmem:[#allocation3 + $0x1268] sm:$0xff]  ;;  %4249 = vmatpush.msra.mxu1 %v423_v6 }
 0x50c   :  { %v935_v12 = vld [vmem:[#allocation3 + $0x1a68] sm:$0xff]  ;;  %4269 = vmatpush.msra.mxu2 %v679_v37 }
 0x50d   :  { %v151_v25 = vld [vmem:[#allocation3 + $0x1e8] sm:$0xff]  ;;  %4289 = vmatpush.msra.mxu3 %v935_v12 }
 0x50e   :  { %v407_v5 = vld [vmem:[#allocation3 + $0x9e8] sm:$0xff]  ;;  %4230 = vmatpush.msra.mxu0 %v151_v25 }
 0x50f   :  { %v663_v63 = vld [vmem:[#allocation3 + $0x11e8] sm:$0xff]  ;;  %4250 = vmatpush.msra.mxu1 %v407_v5 }
 0x510   :  { %v919_v53 = vld [vmem:[#allocation3 + $0x19e8] sm:$0xff]  ;;  %4270 = vmatpush.msra.mxu2 %v663_v63 }
 0x511   :  { %v135_v29 = vld [vmem:[#allocation3 + $0x168] sm:$0xff]  ;;  %4290 = vmatpush.msra.mxu3 %v919_v53 }
 0x512   :  { %v391_v60 = vld [vmem:[#allocation3 + $0x968] sm:$0xff]  ;;  %4231 = vmatpush.msra.mxu0 %v135_v29 }
 0x513   :  { %v647_v54 = vld [vmem:[#allocation3 + $0x1168] sm:$0xff]  ;;  %4251 = vmatpush.msra.mxu1 %v391_v60 }
 0x514   :  { %v903_v24 = vld [vmem:[#allocation3 + $0x1968] sm:$0xff]  ;;  %4271 = vmatpush.msra.mxu2 %v647_v54 }
 0x515   :  { %v119_v61 = vld [vmem:[#allocation3 + $0xe8] sm:$0xff]  ;;  %4291 = vmatpush.msra.mxu3 %v903_v24 }
 0x516   :  { %v375_v47 = vld [vmem:[#allocation3 + $0x8e8] sm:$0xff]  ;;  %4232 = vmatpush.msra.mxu0 %v119_v61 }
 0x517   :  { %v631_v62 = vld [vmem:[#allocation3 + $0x10e8] sm:$0xff]  ;;  %4252 = vmatpush.msra.mxu1 %v375_v47 }
 0x518   :  { %v887_v3 = vld [vmem:[#allocation3 + $0x18e8] sm:$0xff]  ;;  %4272 = vmatpush.msra.mxu2 %v631_v62 }
 0x519   :  { %v103_v4 = vld [vmem:[#allocation3 + $0x68] sm:$0xff]  ;;  %4292 = vmatpush.msra.mxu3 %v887_v3 }
 0x51a   :  { %v359_v6 = vld [vmem:[#allocation3 + $0x868] sm:$0xff]  ;;  %4233 = vmatpush.msra.mxu0 %v103_v4 }
 0x51b   :  { %v615_v37 = vld [vmem:[#allocation3 + $0x1068] sm:$0xff]  ;;  %4253 = vmatpush.msra.mxu1 %v359_v6  ;;  %4234 = vmatmul.f32.vlgmr.msra.gmra.mxu0 %v5979_v36  ;;  %v1080_v36 = vld [vmem:[#allocation3 + $0x1ef0] sm:$0xff] }
 0x51c   :  { %v871_v12 = vld [vmem:[#allocation3 + $0x1868] sm:$0xff]  ;;  %4273 = vmatpush.msra.mxu2 %v615_v37  ;;  %4254 = vmatmul.f32.vlgmr.msra.gmra.mxu1 %v5985_v32  ;;  %v552_v32 = vld [vmem:[#allocation3 + $0xe70] sm:$0xff] }
 0x51d   :  { %v1367_v25 = vld [vmem:[#allocation3 + $0x27e8] sm:$0xff]  ;;  %4293 = vmatpush.msra.mxu3 %v871_v12  ;;  %4274 = vmatmul.f32.vlgmr.msra.gmra.mxu2 %v5973_v50  ;;  %v1096_v50 = vld [vmem:[#allocation3 + $0x1f70] sm:$0xff] }
 0x51e   :  { %v1623_v5 = vld [vmem:[#allocation3 + $0x2fe8] sm:$0xff]  ;;  %4298 = vmatpush.msrb.mxu0 %v1367_v25  ;;  %4294 = vmatmul.f32.vlgmr.msra.gmra.mxu3 %v5991_v9  ;;  %v808_v9 = vld [vmem:[#allocation3 + $0x1670] sm:$0xff] }
 0x51f   :  { %v1879_v63 = vld [vmem:[#allocation3 + $0x37e8] sm:$0xff]  ;;  %4318 = vmatpush.msrb.mxu1 %v1623_v5 }
 0x520   :  { %v2135_v53 = vld [vmem:[#allocation3 + $0x3fe8] sm:$0xff]  ;;  %4338 = vmatpush.msrb.mxu2 %v1879_v63 }
 0x521   :  { %v1351_v29 = vld [vmem:[#allocation3 + $0x2768] sm:$0xff]  ;;  %4358 = vmatpush.msrb.mxu3 %v2135_v53 }
 0x522   :  { %v1607_v60 = vld [vmem:[#allocation3 + $0x2f68] sm:$0xff]  ;;  %4299 = vmatpush.msrb.mxu0 %v1351_v29 }
 0x523   :  { %v1863_v54 = vld [vmem:[#allocation3 + $0x3768] sm:$0xff]  ;;  %4319 = vmatpush.msrb.mxu1 %v1607_v60 }
 0x524   :  { %v2119_v24 = vld [vmem:[#allocation3 + $0x3f68] sm:$0xff]  ;;  %4339 = vmatpush.msrb.mxu2 %v1863_v54 }
 0x525   :  { %v1335_v61 = vld [vmem:[#allocation3 + $0x26e8] sm:$0xff]  ;;  %4359 = vmatpush.msrb.mxu3 %v2119_v24 }
 0x526   :  { %v1591_v47 = vld [vmem:[#allocation3 + $0x2ee8] sm:$0xff]  ;;  %4300 = vmatpush.msrb.mxu0 %v1335_v61 }
 0x527   :  { %v1847_v62 = vld [vmem:[#allocation3 + $0x36e8] sm:$0xff]  ;;  %4320 = vmatpush.msrb.mxu1 %v1591_v47 }
 0x528   :  { %v2103_v3 = vld [vmem:[#allocation3 + $0x3ee8] sm:$0xff]  ;;  %4340 = vmatpush.msrb.mxu2 %v1847_v62 }
 0x529   :  { %v1319_v4 = vld [vmem:[#allocation3 + $0x2668] sm:$0xff]  ;;  %4360 = vmatpush.msrb.mxu3 %v2103_v3 }
 0x52a   :  { %v1575_v6 = vld [vmem:[#allocation3 + $0x2e68] sm:$0xff]  ;;  %4301 = vmatpush.msrb.mxu0 %v1319_v4 }
 0x52b   :  { %v1831_v37 = vld [vmem:[#allocation3 + $0x3668] sm:$0xff]  ;;  %4321 = vmatpush.msrb.mxu1 %v1575_v6 }
 0x52c   :  { %v2087_v12 = vld [vmem:[#allocation3 + $0x3e68] sm:$0xff]  ;;  %4341 = vmatpush.msrb.mxu2 %v1831_v37 }
 0x52d   :  { %v1303_v25 = vld [vmem:[#allocation3 + $0x25e8] sm:$0xff]  ;;  %4361 = vmatpush.msrb.mxu3 %v2087_v12 }
 0x52e   :  { %v1559_v5 = vld [vmem:[#allocation3 + $0x2de8] sm:$0xff]  ;;  %4302 = vmatpush.msrb.mxu0 %v1303_v25 }
 0x52f   :  { %v1815_v63 = vld [vmem:[#allocation3 + $0x35e8] sm:$0xff]  ;;  %4322 = vmatpush.msrb.mxu1 %v1559_v5 }
 0x530   :  { %v2071_v53 = vld [vmem:[#allocation3 + $0x3de8] sm:$0xff]  ;;  %4342 = vmatpush.msrb.mxu2 %v1815_v63 }
 0x531   :  { %v1287_v29 = vld [vmem:[#allocation3 + $0x2568] sm:$0xff]  ;;  %4362 = vmatpush.msrb.mxu3 %v2071_v53 }
 0x532   :  { %v1543_v60 = vld [vmem:[#allocation3 + $0x2d68] sm:$0xff]  ;;  %4303 = vmatpush.msrb.mxu0 %v1287_v29 }
 0x533   :  { %v1799_v54 = vld [vmem:[#allocation3 + $0x3568] sm:$0xff]  ;;  %4323 = vmatpush.msrb.mxu1 %v1543_v60 }
 0x534   :  { %v2055_v24 = vld [vmem:[#allocation3 + $0x3d68] sm:$0xff]  ;;  %4343 = vmatpush.msrb.mxu2 %v1799_v54 }
 0x535   :  { %v1271_v61 = vld [vmem:[#allocation3 + $0x24e8] sm:$0xff]  ;;  %4363 = vmatpush.msrb.mxu3 %v2055_v24 }
 0x536   :  { %v1527_v47 = vld [vmem:[#allocation3 + $0x2ce8] sm:$0xff]  ;;  %4304 = vmatpush.msrb.mxu0 %v1271_v61 }
 0x537   :  { %v1783_v62 = vld [vmem:[#allocation3 + $0x34e8] sm:$0xff]  ;;  %4324 = vmatpush.msrb.mxu1 %v1527_v47 }
 0x538   :  { %v2039_v3 = vld [vmem:[#allocation3 + $0x3ce8] sm:$0xff]  ;;  %4344 = vmatpush.msrb.mxu2 %v1783_v62 }
 0x539   :  { %v1255_v4 = vld [vmem:[#allocation3 + $0x2468] sm:$0xff]  ;;  %4364 = vmatpush.msrb.mxu3 %v2039_v3 }
 0x53a   :  { %v1511_v6 = vld [vmem:[#allocation3 + $0x2c68] sm:$0xff]  ;;  %4305 = vmatpush.msrb.mxu0 %v1255_v4 }
 0x53b   :  { %v1767_v37 = vld [vmem:[#allocation3 + $0x3468] sm:$0xff]  ;;  %4325 = vmatpush.msrb.mxu1 %v1511_v6 }
 0x53c   :  { %v2023_v12 = vld [vmem:[#allocation3 + $0x3c68] sm:$0xff]  ;;  %4345 = vmatpush.msrb.mxu2 %v1767_v37 }
 0x53d   :  { %v1239_v25 = vld [vmem:[#allocation3 + $0x23e8] sm:$0xff]  ;;  %4365 = vmatpush.msrb.mxu3 %v2023_v12 }
 0x53e   :  { %v1495_v5 = vld [vmem:[#allocation3 + $0x2be8] sm:$0xff]  ;;  %4306 = vmatpush.msrb.mxu0 %v1239_v25 }
 0x53f   :  { %v1751_v63 = vld [vmem:[#allocation3 + $0x33e8] sm:$0xff]  ;;  %4326 = vmatpush.msrb.mxu1 %v1495_v5 }
 0x540   :  { %v2007_v53 = vld [vmem:[#allocation3 + $0x3be8] sm:$0xff]  ;;  %4346 = vmatpush.msrb.mxu2 %v1751_v63 }
 0x541   :  { %v1223_v29 = vld [vmem:[#allocation3 + $0x2368] sm:$0xff]  ;;  %4366 = vmatpush.msrb.mxu3 %v2007_v53 }
 0x542   :  { %v1479_v60 = vld [vmem:[#allocation3 + $0x2b68] sm:$0xff]  ;;  %4307 = vmatpush.msrb.mxu0 %v1223_v29 }
 0x543   :  { %v1735_v54 = vld [vmem:[#allocation3 + $0x3368] sm:$0xff]  ;;  %4327 = vmatpush.msrb.mxu1 %v1479_v60 }
 0x544   :  { %v1991_v24 = vld [vmem:[#allocation3 + $0x3b68] sm:$0xff]  ;;  %4347 = vmatpush.msrb.mxu2 %v1735_v54 }
 0x545   :  { %v1207_v61 = vld [vmem:[#allocation3 + $0x22e8] sm:$0xff]  ;;  %4367 = vmatpush.msrb.mxu3 %v1991_v24 }
 0x546   :  { %v1463_v47 = vld [vmem:[#allocation3 + $0x2ae8] sm:$0xff]  ;;  %4308 = vmatpush.msrb.mxu0 %v1207_v61 }
 0x547   :  { %v1719_v62 = vld [vmem:[#allocation3 + $0x32e8] sm:$0xff]  ;;  %4328 = vmatpush.msrb.mxu1 %v1463_v47 }
 0x548   :  { %v1975_v3 = vld [vmem:[#allocation3 + $0x3ae8] sm:$0xff]  ;;  %4348 = vmatpush.msrb.mxu2 %v1719_v62 }
 0x549   :  { %v1191_v4 = vld [vmem:[#allocation3 + $0x2268] sm:$0xff]  ;;  %4368 = vmatpush.msrb.mxu3 %v1975_v3 }
 0x54a   :  { %v1447_v6 = vld [vmem:[#allocation3 + $0x2a68] sm:$0xff]  ;;  %4309 = vmatpush.msrb.mxu0 %v1191_v4 }
 0x54b   :  { %v1703_v37 = vld [vmem:[#allocation3 + $0x3268] sm:$0xff]  ;;  %4329 = vmatpush.msrb.mxu1 %v1447_v6 }
 0x54c   :  { %v1959_v12 = vld [vmem:[#allocation3 + $0x3a68] sm:$0xff]  ;;  %4349 = vmatpush.msrb.mxu2 %v1703_v37 }
 0x54d   :  { %v1175_v25 = vld [vmem:[#allocation3 + $0x21e8] sm:$0xff]  ;;  %4369 = vmatpush.msrb.mxu3 %v1959_v12 }
 0x54e   :  { %v1431_v5 = vld [vmem:[#allocation3 + $0x29e8] sm:$0xff]  ;;  %4310 = vmatpush.msrb.mxu0 %v1175_v25  ;;  %v344_v25 = vld [vmem:[#allocation3 + $0x7f0] sm:$0xff] }
 0x54f   :  { %v1687_v63 = vld [vmem:[#allocation3 + $0x31e8] sm:$0xff]  ;;  %4330 = vmatpush.msrb.mxu1 %v1431_v5  ;;  %v600_v5 = vld [vmem:[#allocation3 + $0xff0] sm:$0xff] }
 0x550   :  { %v1943_v53 = vld [vmem:[#allocation3 + $0x39e8] sm:$0xff]  ;;  %4350 = vmatpush.msrb.mxu2 %v1687_v63  ;;  %v856_v63 = vld [vmem:[#allocation3 + $0x17f0] sm:$0xff] }
 0x551   :  { %v1159_v29 = vld [vmem:[#allocation3 + $0x2168] sm:$0xff]  ;;  %4370 = vmatpush.msrb.mxu3 %v1943_v53  ;;  %v1112_v53 = vld [vmem:[#allocation3 + $0x1ff0] sm:$0xff] }
 0x552   :  { %v1415_v60 = vld [vmem:[#allocation3 + $0x2968] sm:$0xff]  ;;  %4311 = vmatpush.msrb.mxu0 %v1159_v29  ;;  %v328_v29 = vld [vmem:[#allocation3 + $0x770] sm:$0xff] }
 0x553   :  { %v1671_v54 = vld [vmem:[#allocation3 + $0x3168] sm:$0xff]  ;;  %4331 = vmatpush.msrb.mxu1 %v1415_v60  ;;  %v584_v60 = vld [vmem:[#allocation3 + $0xf70] sm:$0xff] }
 0x554   :  { %v1927_v24 = vld [vmem:[#allocation3 + $0x3968] sm:$0xff]  ;;  %4351 = vmatpush.msrb.mxu2 %v1671_v54  ;;  %v840_v54 = vld [vmem:[#allocation3 + $0x1770] sm:$0xff] }
 0x555   :  { %v1143_v61 = vld [vmem:[#allocation3 + $0x20e8] sm:$0xff]  ;;  %4371 = vmatpush.msrb.mxu3 %v1927_v24  ;;  %v312_v24 = vld [vmem:[#allocation3 + $0x6f0] sm:$0xff] }
 0x556   :  { %v1399_v47 = vld [vmem:[#allocation3 + $0x28e8] sm:$0xff]  ;;  %4312 = vmatpush.msrb.mxu0 %v1143_v61  ;;  %v568_v61 = vld [vmem:[#allocation3 + $0xef0] sm:$0xff] }
 0x557   :  { %v1655_v62 = vld [vmem:[#allocation3 + $0x30e8] sm:$0xff]  ;;  %4332 = vmatpush.msrb.mxu1 %v1399_v47  ;;  %v824_v47 = vld [vmem:[#allocation3 + $0x16f0] sm:$0xff] }
 0x558   :  { %v1911_v3 = vld [vmem:[#allocation3 + $0x38e8] sm:$0xff]  ;;  %4352 = vmatpush.msrb.mxu2 %v1655_v62  ;;  %v296_v62 = vld [vmem:[#allocation3 + $0x670] sm:$0xff] }
 0x559   :  { %v1127_v4 = vld [vmem:[#allocation3 + $0x2068] sm:$0xff]  ;;  %4372 = vmatpush.msrb.mxu3 %v1911_v3  ;;  %v1064_v3 = vld [vmem:[#allocation3 + $0x1e70] sm:$0xff] }
 0x55a   :  { %v1383_v6 = vld [vmem:[#allocation3 + $0x2868] sm:$0xff]  ;;  %4313 = vmatpush.msrb.mxu0 %v1127_v4  ;;  %v280_v4 = vld [vmem:[#allocation3 + $0x5f0] sm:$0xff] }
 0x55b   :  { %v1639_v37 = vld [vmem:[#allocation3 + $0x3068] sm:$0xff]  ;;  %4333 = vmatpush.msrb.mxu1 %v1383_v6  ;;  %v536_v6 = vld [vmem:[#allocation3 + $0xdf0] sm:$0xff]  ;;  %4314 = vmatmul.f32.vlgmr.msrb.gmra.mxu0 %v6003_v48 }
 0x55c   :  { %v1895_v12 = vld [vmem:[#allocation3 + $0x3868] sm:$0xff]  ;;  %4353 = vmatpush.msrb.mxu2 %v1639_v37  ;;  %4378 = vmatpush.msra.mxu0 %v344_v25  ;;  %v792_v37 = vld [vmem:[#allocation3 + $0x15f0] sm:$0xff] }
 0x55d   :  { %4373 = vmatpush.msrb.mxu3 %v1895_v12  ;;  %4398 = vmatpush.msra.mxu1 %v600_v5  ;;  %v1048_v12 = vld [vmem:[#allocation3 + $0x1df0] sm:$0xff] }
 0x55e   :  { %4418 = vmatpush.msra.mxu2 %v856_v63  ;;  %4379 = vmatpush.msra.mxu0 %v328_v29  ;;  %v264_v25 = vld [vmem:[#allocation3 + $0x570] sm:$0xff] }
 0x55f   :  { %4438 = vmatpush.msra.mxu3 %v1112_v53  ;;  %4399 = vmatpush.msra.mxu1 %v584_v60  ;;  %v520_v5 = vld [vmem:[#allocation3 + $0xd70] sm:$0xff] }
 0x560   :  { %4419 = vmatpush.msra.mxu2 %v840_v54  ;;  %4380 = vmatpush.msra.mxu0 %v312_v24  ;;  %v776_v63 = vld [vmem:[#allocation3 + $0x1570] sm:$0xff] }
 0x561   :  { %4439 = vmatpush.msra.mxu3 %v1096_v50  ;;  %4400 = vmatpush.msra.mxu1 %v568_v61  ;;  %v1032_v53 = vld [vmem:[#allocation3 + $0x1d70] sm:$0xff] }
 0x562   :  { %4420 = vmatpush.msra.mxu2 %v824_v47  ;;  %4381 = vmatpush.msra.mxu0 %v296_v62  ;;  %v504_v29 = vld [vmem:[#allocation3 + $0xcf0] sm:$0xff] }
 0x563   :  { %4440 = vmatpush.msra.mxu3 %v1080_v36  ;;  %4354 = vmatmul.f32.vlgmr.msrb.gmra.mxu2 %v5997_v21  ;;  %v248_v21 = vld [vmem:[#allocation3 + $0x4f0] sm:$0xff] }
 0x564   :  { %4401 = vmatpush.msra.mxu1 %v552_v32  ;;  %4421 = vmatpush.msra.mxu2 %v808_v9  ;;  %v760_v60 = vld [vmem:[#allocation3 + $0x14f0] sm:$0xff] }
 0x565   :  { %4441 = vmatpush.msra.mxu3 %v1064_v3  ;;  %4382 = vmatpush.msra.mxu0 %v280_v4  ;;  %v1016_v54 = vld [vmem:[#allocation3 + $0x1cf0] sm:$0xff] }
 0x566   :  { %4374 = vmatmul.f32.vlgmr.msrb.gmra.mxu3 %v6009_v45  ;;  %4402 = vmatpush.msra.mxu1 %v536_v6  ;;  %v232_v48 = vld [vmem:[#allocation3 + $0x470] sm:$0xff] }
 0x567   :  { %4422 = vmatpush.msra.mxu2 %v792_v37  ;;  %4442 = vmatpush.msra.mxu3 %v1048_v12  ;;  %v488_v45 = vld [vmem:[#allocation3 + $0xc70] sm:$0xff] }
 0x568   :  { %4334 = vmatmul.f32.vlgmr.msrb.gmra.mxu1 %v6015_v57  ;;  %4383 = vmatpush.msra.mxu0 %v264_v25  ;;  %v744_v50 = vld [vmem:[#allocation3 + $0x1470] sm:$0xff] }
 0x569   :  { %4403 = vmatpush.msra.mxu1 %v520_v5  ;;  %4423 = vmatpush.msra.mxu2 %v776_v63  ;;  %v1000_v24 = vld [vmem:[#allocation3 + $0x1c70] sm:$0xff] }
 0x56a   :  { %4443 = vmatpush.msra.mxu3 %v1032_v53  ;;  %4384 = vmatpush.msra.mxu0 %v248_v21  ;;  %v216_v61 = vld [vmem:[#allocation3 + $0x3f0] sm:$0xff] }
 0x56b   :  { %4404 = vmatpush.msra.mxu1 %v504_v29  ;;  %4424 = vmatpush.msra.mxu2 %v760_v60  ;;  %v472_v47 = vld [vmem:[#allocation3 + $0xbf0] sm:$0xff] }
 0x56c   :  { %4444 = vmatpush.msra.mxu3 %v1016_v54  ;;  %4385 = vmatpush.msra.mxu0 %v232_v48  ;;  %v728_v57 = vld [vmem:[#allocation3 + $0x13f0] sm:$0xff] }
 0x56d   :  { %4405 = vmatpush.msra.mxu1 %v488_v45  ;;  %v984_v36 = vld [vmem:[#allocation3 + $0x1bf0] sm:$0xff]  ;;  %4425 = vmatpush.msra.mxu2 %v744_v50 }
 0x56e   :  { %4445 = vmatpush.msra.mxu3 %v1000_v24  ;;  %v200_v62 = vld [vmem:[#allocation3 + $0x370] sm:$0xff]  ;;  %4386 = vmatpush.msra.mxu0 %v216_v61 }
 0x56f   :  { %v456_v32 = vld [vmem:[#allocation3 + $0xb70] sm:$0xff]  ;;  %4406 = vmatpush.msra.mxu1 %v472_v47  ;;  %4426 = vmatpush.msra.mxu2 %v728_v57 }
 0x570   :  { %v712_v9 = vld [vmem:[#allocation3 + $0x1370] sm:$0xff]  ;;  %4446 = vmatpush.msra.mxu3 %v984_v36  ;;  %4387 = vmatpush.msra.mxu0 %v200_v62 }
 0x571   :  { %v968_v3 = vld [vmem:[#allocation3 + $0x1b70] sm:$0xff]  ;;  %4407 = vmatpush.msra.mxu1 %v456_v32  ;;  %4427 = vmatpush.msra.mxu2 %v712_v9 }
 0x572   :  { %v184_v4 = vld [vmem:[#allocation3 + $0x2f0] sm:$0xff]  ;;  %4447 = vmatpush.msra.mxu3 %v968_v3 }
 0x573   :  { %v440_v6 = vld [vmem:[#allocation3 + $0xaf0] sm:$0xff]  ;;  %4388 = vmatpush.msra.mxu0 %v184_v4 }
 0x574   :  { %v696_v37 = vld [vmem:[#allocation3 + $0x12f0] sm:$0xff]  ;;  %4408 = vmatpush.msra.mxu1 %v440_v6 }
 0x575   :  { %v952_v12 = vld [vmem:[#allocation3 + $0x1af0] sm:$0xff]  ;;  %4428 = vmatpush.msra.mxu2 %v696_v37 }
 0x576   :  { %v168_v25 = vld [vmem:[#allocation3 + $0x270] sm:$0xff]  ;;  %4448 = vmatpush.msra.mxu3 %v952_v12 }
 0x577   :  { %v424_v5 = vld [vmem:[#allocation3 + $0xa70] sm:$0xff]  ;;  %4389 = vmatpush.msra.mxu0 %v168_v25 }
 0x578   :  { %v680_v63 = vld [vmem:[#allocation3 + $0x1270] sm:$0xff]  ;;  %4409 = vmatpush.msra.mxu1 %v424_v5 }
 0x579   :  { %v936_v53 = vld [vmem:[#allocation3 + $0x1a70] sm:$0xff]  ;;  %4429 = vmatpush.msra.mxu2 %v680_v63 }
 0x57a   :  { %v152_v21 = vld [vmem:[#allocation3 + $0x1f0] sm:$0xff]  ;;  %4449 = vmatpush.msra.mxu3 %v936_v53 }
 0x57b   :  { %v408_v29 = vld [vmem:[#allocation3 + $0x9f0] sm:$0xff]  ;;  %4390 = vmatpush.msra.mxu0 %v152_v21 }
 0x57c   :  { %v664_v60 = vld [vmem:[#allocation3 + $0x11f0] sm:$0xff]  ;;  %4410 = vmatpush.msra.mxu1 %v408_v29 }
 0x57d   :  { %v920_v54 = vld [vmem:[#allocation3 + $0x19f0] sm:$0xff]  ;;  %4430 = vmatpush.msra.mxu2 %v664_v60 }
 0x57e   :  { %v136_v48 = vld [vmem:[#allocation3 + $0x170] sm:$0xff]  ;;  %4450 = vmatpush.msra.mxu3 %v920_v54 }
 0x57f   :  { %v392_v45 = vld [vmem:[#allocation3 + $0x970] sm:$0xff]  ;;  %4391 = vmatpush.msra.mxu0 %v136_v48 }
 0x580   :  { %v648_v50 = vld [vmem:[#allocation3 + $0x1170] sm:$0xff]  ;;  %4411 = vmatpush.msra.mxu1 %v392_v45 }
 0x581   :  { %v904_v24 = vld [vmem:[#allocation3 + $0x1970] sm:$0xff]  ;;  %4431 = vmatpush.msra.mxu2 %v648_v50 }
 0x582   :  { %v120_v61 = vld [vmem:[#allocation3 + $0xf0] sm:$0xff]  ;;  %4451 = vmatpush.msra.mxu3 %v904_v24 }
 0x583   :  { %v376_v47 = vld [vmem:[#allocation3 + $0x8f0] sm:$0xff]  ;;  %4392 = vmatpush.msra.mxu0 %v120_v61 }
 0x584   :  { %v632_v57 = vld [vmem:[#allocation3 + $0x10f0] sm:$0xff]  ;;  %4412 = vmatpush.msra.mxu1 %v376_v47 }
 0x585   :  { %v888_v36 = vld [vmem:[#allocation3 + $0x18f0] sm:$0xff]  ;;  %4432 = vmatpush.msra.mxu2 %v632_v57 }
 0x586   :  { %v104_v62 = vld [vmem:[#allocation3 + $0x70] sm:$0xff]  ;;  %4452 = vmatpush.msra.mxu3 %v888_v36 }
 0x587   :  { %v360_v32 = vld [vmem:[#allocation3 + $0x870] sm:$0xff]  ;;  %4393 = vmatpush.msra.mxu0 %v104_v62 }
 0x588   :  { %v616_v9 = vld [vmem:[#allocation3 + $0x1070] sm:$0xff]  ;;  %4413 = vmatpush.msra.mxu1 %v360_v32 }
 0x589   :  { %v872_v3 = vld [vmem:[#allocation3 + $0x1870] sm:$0xff]  ;;  %4433 = vmatpush.msra.mxu2 %v616_v9 }
 0x58a   :  { %v1368_v4 = vld [vmem:[#allocation3 + $0x27f0] sm:$0xff]  ;;  %4453 = vmatpush.msra.mxu3 %v872_v3 }
 0x58b   :  { %v1624_v6 = vld [vmem:[#allocation3 + $0x2ff0] sm:$0xff]  ;;  %4458 = vmatpush.msrb.mxu0 %v1368_v4 }
 0x58c   :  { %v1880_v37 = vld [vmem:[#allocation3 + $0x37f0] sm:$0xff]  ;;  %4478 = vmatpush.msrb.mxu1 %v1624_v6 }
 0x58d   :  { %v2136_v12 = vld [vmem:[#allocation3 + $0x3ff0] sm:$0xff]  ;;  %4498 = vmatpush.msrb.mxu2 %v1880_v37 }
 0x58e   :  { %v1352_v25 = vld [vmem:[#allocation3 + $0x2770] sm:$0xff]  ;;  %4518 = vmatpush.msrb.mxu3 %v2136_v12 }
 0x58f   :  { %v1608_v5 = vld [vmem:[#allocation3 + $0x2f70] sm:$0xff]  ;;  %4459 = vmatpush.msrb.mxu0 %v1352_v25 }
 0x590   :  { %v1864_v63 = vld [vmem:[#allocation3 + $0x3770] sm:$0xff]  ;;  %4479 = vmatpush.msrb.mxu1 %v1608_v5 }
 0x591   :  { %v2120_v53 = vld [vmem:[#allocation3 + $0x3f70] sm:$0xff]  ;;  %4499 = vmatpush.msrb.mxu2 %v1864_v63 }
 0x592   :  { %v1336_v21 = vld [vmem:[#allocation3 + $0x26f0] sm:$0xff]  ;;  %4519 = vmatpush.msrb.mxu3 %v2120_v53 }
 0x593   :  { %v1592_v29 = vld [vmem:[#allocation3 + $0x2ef0] sm:$0xff]  ;;  %4460 = vmatpush.msrb.mxu0 %v1336_v21 }
 0x594   :  { %v1848_v60 = vld [vmem:[#allocation3 + $0x36f0] sm:$0xff]  ;;  %4480 = vmatpush.msrb.mxu1 %v1592_v29 }
 0x595   :  { %v2104_v54 = vld [vmem:[#allocation3 + $0x3ef0] sm:$0xff]  ;;  %4500 = vmatpush.msrb.mxu2 %v1848_v60 }
 0x596   :  { %v1320_v48 = vld [vmem:[#allocation3 + $0x2670] sm:$0xff]  ;;  %4520 = vmatpush.msrb.mxu3 %v2104_v54 }
 0x597   :  { %v1576_v45 = vld [vmem:[#allocation3 + $0x2e70] sm:$0xff]  ;;  %4461 = vmatpush.msrb.mxu0 %v1320_v48 }
 0x598   :  { %v1832_v50 = vld [vmem:[#allocation3 + $0x3670] sm:$0xff]  ;;  %4481 = vmatpush.msrb.mxu1 %v1576_v45 }
 0x599   :  { %v2088_v24 = vld [vmem:[#allocation3 + $0x3e70] sm:$0xff]  ;;  %4501 = vmatpush.msrb.mxu2 %v1832_v50 }
 0x59a   :  { %v1304_v61 = vld [vmem:[#allocation3 + $0x25f0] sm:$0xff]  ;;  %4521 = vmatpush.msrb.mxu3 %v2088_v24 }
 0x59b   :  { %v1560_v47 = vld [vmem:[#allocation3 + $0x2df0] sm:$0xff]  ;;  %4462 = vmatpush.msrb.mxu0 %v1304_v61 }
 0x59c   :  { %v1816_v57 = vld [vmem:[#allocation3 + $0x35f0] sm:$0xff]  ;;  %4482 = vmatpush.msrb.mxu1 %v1560_v47 }
 0x59d   :  { %v2072_v36 = vld [vmem:[#allocation3 + $0x3df0] sm:$0xff]  ;;  %4502 = vmatpush.msrb.mxu2 %v1816_v57 }
 0x59e   :  { %v1288_v62 = vld [vmem:[#allocation3 + $0x2570] sm:$0xff]  ;;  %4522 = vmatpush.msrb.mxu3 %v2072_v36 }
 0x59f   :  { %v1544_v32 = vld [vmem:[#allocation3 + $0x2d70] sm:$0xff]  ;;  %4463 = vmatpush.msrb.mxu0 %v1288_v62 }
 0x5a0   :  { %v1800_v9 = vld [vmem:[#allocation3 + $0x3570] sm:$0xff]  ;;  %4483 = vmatpush.msrb.mxu1 %v1544_v32 }
 0x5a1   :  { %v2056_v3 = vld [vmem:[#allocation3 + $0x3d70] sm:$0xff]  ;;  %4503 = vmatpush.msrb.mxu2 %v1800_v9 }
 0x5a2   :  { %v1272_v4 = vld [vmem:[#allocation3 + $0x24f0] sm:$0xff]  ;;  %4523 = vmatpush.msrb.mxu3 %v2056_v3 }
 0x5a3   :  { %v1528_v6 = vld [vmem:[#allocation3 + $0x2cf0] sm:$0xff]  ;;  %4464 = vmatpush.msrb.mxu0 %v1272_v4 }
 0x5a4   :  { %v1784_v37 = vld [vmem:[#allocation3 + $0x34f0] sm:$0xff]  ;;  %4484 = vmatpush.msrb.mxu1 %v1528_v6 }
 0x5a5   :  { %v2040_v12 = vld [vmem:[#allocation3 + $0x3cf0] sm:$0xff]  ;;  %4504 = vmatpush.msrb.mxu2 %v1784_v37 }
 0x5a6   :  { %v1256_v25 = vld [vmem:[#allocation3 + $0x2470] sm:$0xff]  ;;  %4524 = vmatpush.msrb.mxu3 %v2040_v12 }
 0x5a7   :  { %v1512_v5 = vld [vmem:[#allocation3 + $0x2c70] sm:$0xff]  ;;  %4465 = vmatpush.msrb.mxu0 %v1256_v25 }
 0x5a8   :  { %v1768_v63 = vld [vmem:[#allocation3 + $0x3470] sm:$0xff]  ;;  %4485 = vmatpush.msrb.mxu1 %v1512_v5 }
 0x5a9   :  { %v2024_v53 = vld [vmem:[#allocation3 + $0x3c70] sm:$0xff]  ;;  %4505 = vmatpush.msrb.mxu2 %v1768_v63 }
 0x5aa   :  { %v1240_v21 = vld [vmem:[#allocation3 + $0x23f0] sm:$0xff]  ;;  %4525 = vmatpush.msrb.mxu3 %v2024_v53 }
 0x5ab   :  { %v1496_v29 = vld [vmem:[#allocation3 + $0x2bf0] sm:$0xff]  ;;  %4466 = vmatpush.msrb.mxu0 %v1240_v21 }
 0x5ac   :  { %v1752_v60 = vld [vmem:[#allocation3 + $0x33f0] sm:$0xff]  ;;  %4486 = vmatpush.msrb.mxu1 %v1496_v29 }
 0x5ad   :  { %v2008_v54 = vld [vmem:[#allocation3 + $0x3bf0] sm:$0xff]  ;;  %4506 = vmatpush.msrb.mxu2 %v1752_v60 }
 0x5ae   :  { %v1224_v48 = vld [vmem:[#allocation3 + $0x2370] sm:$0xff]  ;;  %4526 = vmatpush.msrb.mxu3 %v2008_v54 }
 0x5af   :  { %v1480_v45 = vld [vmem:[#allocation3 + $0x2b70] sm:$0xff]  ;;  %4467 = vmatpush.msrb.mxu0 %v1224_v48 }
 0x5b0   :  { %v1736_v50 = vld [vmem:[#allocation3 + $0x3370] sm:$0xff]  ;;  %4487 = vmatpush.msrb.mxu1 %v1480_v45 }
 0x5b1   :  { %v1992_v24 = vld [vmem:[#allocation3 + $0x3b70] sm:$0xff]  ;;  %4507 = vmatpush.msrb.mxu2 %v1736_v50 }
 0x5b2   :  { %v1208_v61 = vld [vmem:[#allocation3 + $0x22f0] sm:$0xff]  ;;  %4527 = vmatpush.msrb.mxu3 %v1992_v24 }
 0x5b3   :  { %v1464_v47 = vld [vmem:[#allocation3 + $0x2af0] sm:$0xff]  ;;  %4468 = vmatpush.msrb.mxu0 %v1208_v61 }
 0x5b4   :  { %v1720_v57 = vld [vmem:[#allocation3 + $0x32f0] sm:$0xff]  ;;  %4488 = vmatpush.msrb.mxu1 %v1464_v47  ;;  %v345_v47 = vld [vmem:[#allocation3 + $0x7f8] sm:$0xff] }
 0x5b5   :  { %v1976_v36 = vld [vmem:[#allocation3 + $0x3af0] sm:$0xff]  ;;  %4508 = vmatpush.msrb.mxu2 %v1720_v57  ;;  %v601_v57 = vld [vmem:[#allocation3 + $0xff8] sm:$0xff] }
 0x5b6   :  { %v1192_v62 = vld [vmem:[#allocation3 + $0x2270] sm:$0xff]  ;;  %4528 = vmatpush.msrb.mxu3 %v1976_v36  ;;  %v6035_v36 = vld [vmem:[%s6274_s0] sm:$0xff] }
 0x5b7   :  { %v1448_v32 = vld [vmem:[#allocation3 + $0x2a70] sm:$0xff]  ;;  %4469 = vmatpush.msrb.mxu0 %v1192_v62  ;;  %v857_v62 = vld [vmem:[#allocation3 + $0x17f8] sm:$0xff] }
 0x5b8   :  { %v1704_v9 = vld [vmem:[#allocation3 + $0x3270] sm:$0xff]  ;;  %4489 = vmatpush.msrb.mxu1 %v1448_v32  ;;  %4394 = vmatmul.f32.vlgmr.msra.gmra.mxu0 %v6035_v36  ;;  %v1113_v32 = vld [vmem:[#allocation3 + $0x1ff8] sm:$0xff] }
 0x5b9   :  { %v1960_v3 = vld [vmem:[#allocation3 + $0x3a70] sm:$0xff]  ;;  %4509 = vmatpush.msrb.mxu2 %v1704_v9  ;;  %v6041_v9 = vld [vmem:[%s6274_s0 + $0x8] sm:$0xff] }
 0x5ba   :  { %v1176_v4 = vld [vmem:[#allocation3 + $0x21f0] sm:$0xff]  ;;  %4529 = vmatpush.msrb.mxu3 %v1960_v3  ;;  %4414 = vmatmul.f32.vlgmr.msra.gmra.mxu1 %v6041_v9  ;;  %v6047_v3 = vld [vmem:[%s6274_s0 + $0x18] sm:$0xff] }
 0x5bb   :  { %v1432_v6 = vld [vmem:[#allocation3 + $0x29f0] sm:$0xff]  ;;  %4470 = vmatpush.msrb.mxu0 %v1176_v4  ;;  %4454 = vmatmul.f32.vlgmr.msra.gmra.mxu3 %v6047_v3  ;;  %v329_v4 = vld [vmem:[#allocation3 + $0x778] sm:$0xff] }
 0x5bc   :  { %v1688_v37 = vld [vmem:[#allocation3 + $0x31f0] sm:$0xff]  ;;  %4490 = vmatpush.msrb.mxu1 %v1432_v6  ;;  %v585_v6 = vld [vmem:[#allocation3 + $0xf78] sm:$0xff] }
 0x5bd   :  { %v1944_v12 = vld [vmem:[#allocation3 + $0x39f0] sm:$0xff]  ;;  %4510 = vmatpush.msrb.mxu2 %v1688_v37  ;;  %v841_v37 = vld [vmem:[#allocation3 + $0x1778] sm:$0xff] }
 0x5be   :  { %v1160_v25 = vld [vmem:[#allocation3 + $0x2170] sm:$0xff]  ;;  %4530 = vmatpush.msrb.mxu3 %v1944_v12  ;;  %v1097_v12 = vld [vmem:[#allocation3 + $0x1f78] sm:$0xff] }
 0x5bf   :  { %v1416_v5 = vld [vmem:[#allocation3 + $0x2970] sm:$0xff]  ;;  %4471 = vmatpush.msrb.mxu0 %v1160_v25  ;;  %v313_v25 = vld [vmem:[#allocation3 + $0x6f8] sm:$0xff] }
 0x5c0   :  { %v1672_v63 = vld [vmem:[#allocation3 + $0x3170] sm:$0xff]  ;;  %4491 = vmatpush.msrb.mxu1 %v1416_v5  ;;  %v569_v5 = vld [vmem:[#allocation3 + $0xef8] sm:$0xff] }
 0x5c1   :  { %v1928_v53 = vld [vmem:[#allocation3 + $0x3970] sm:$0xff]  ;;  %4511 = vmatpush.msrb.mxu2 %v1672_v63  ;;  %v825_v63 = vld [vmem:[#allocation3 + $0x16f8] sm:$0xff] }
 0x5c2   :  { %v1144_v21 = vld [vmem:[#allocation3 + $0x20f0] sm:$0xff]  ;;  %4531 = vmatpush.msrb.mxu3 %v1928_v53  ;;  %v1081_v53 = vld [vmem:[#allocation3 + $0x1ef8] sm:$0xff] }
 0x5c3   :  { %v1400_v29 = vld [vmem:[#allocation3 + $0x28f0] sm:$0xff]  ;;  %4472 = vmatpush.msrb.mxu0 %v1144_v21  ;;  %v297_v21 = vld [vmem:[#allocation3 + $0x678] sm:$0xff] }
 0x5c4   :  { %v1656_v60 = vld [vmem:[#allocation3 + $0x30f0] sm:$0xff]  ;;  %4492 = vmatpush.msrb.mxu1 %v1400_v29  ;;  %v553_v29 = vld [vmem:[#allocation3 + $0xe78] sm:$0xff] }
 0x5c5   :  { %v1912_v54 = vld [vmem:[#allocation3 + $0x38f0] sm:$0xff]  ;;  %4512 = vmatpush.msrb.mxu2 %v1656_v60  ;;  %v809_v60 = vld [vmem:[#allocation3 + $0x1678] sm:$0xff] }
 0x5c6   :  { %v1128_v48 = vld [vmem:[#allocation3 + $0x2070] sm:$0xff]  ;;  %4532 = vmatpush.msrb.mxu3 %v1912_v54  ;;  %v1065_v54 = vld [vmem:[#allocation3 + $0x1e78] sm:$0xff] }
 0x5c7   :  { %v1384_v45 = vld [vmem:[#allocation3 + $0x2870] sm:$0xff]  ;;  %4473 = vmatpush.msrb.mxu0 %v1128_v48 }
 0x5c8   :  { %v1640_v50 = vld [vmem:[#allocation3 + $0x3070] sm:$0xff]  ;;  %4493 = vmatpush.msrb.mxu1 %v1384_v45  ;;  %v281_v45 = vld [vmem:[#allocation3 + $0x5f8] sm:$0xff] }
 0x5c9   :  { %v1896_v24 = vld [vmem:[#allocation3 + $0x3870] sm:$0xff]  ;;  %4513 = vmatpush.msrb.mxu2 %v1640_v50  ;;  %4538 = vmatpush.msra.mxu0 %v345_v47  ;;  %v537_v50 = vld [vmem:[#allocation3 + $0xdf8] sm:$0xff]  ;;  %v6059_v47 = vld [vmem:[%s6274_s0 + $0x20] sm:$0xff] }
 0x5ca   :  { %v6029_v61 = vld [vmem:[%s6274_s0 + $0x10] sm:$0xff]  ;;  %4533 = vmatpush.msrb.mxu3 %v1896_v24  ;;  %4558 = vmatpush.msra.mxu1 %v601_v57  ;;  %v793_v24 = vld [vmem:[#allocation3 + $0x15f8] sm:$0xff] }
 0x5cb   :  { %4434 = vmatmul.f32.vlgmr.msra.gmra.mxu2 %v6029_v61  ;;  %4539 = vmatpush.msra.mxu0 %v329_v4  ;;  %v6053_v48 = vld [vmem:[%s6274_s0 + $0x30] sm:$0xff]  ;;  %v1049_v57 = vld [vmem:[#allocation3 + $0x1df8] sm:$0xff] }
 0x5cc   :  { %4578 = vmatpush.msra.mxu2 %v857_v62  ;;  %4598 = vmatpush.msra.mxu3 %v1113_v32  ;;  %v6065_v62 = vld [vmem:[%s6274_s0 + $0x38] sm:$0xff] }
 0x5cd   :  { %4559 = vmatpush.msra.mxu1 %v585_v6  ;;  %4540 = vmatpush.msra.mxu0 %v313_v25  ;;  %v265_v32 = vld [vmem:[#allocation3 + $0x578] sm:$0xff] }
 0x5ce   :  { %4579 = vmatpush.msra.mxu2 %v841_v37  ;;  %4599 = vmatpush.msra.mxu3 %v1097_v12  ;;  %v521_v4 = vld [vmem:[#allocation3 + $0xd78] sm:$0xff]  ;;  %v6071_v12 = vld [vmem:[%s6274_s0 + $0x28] sm:$0xff] }
 0x5cf   :  { %4560 = vmatpush.msra.mxu1 %v569_v5  ;;  %4541 = vmatpush.msra.mxu0 %v297_v21  ;;  %v777_v6 = vld [vmem:[#allocation3 + $0x1578] sm:$0xff] }
 0x5d0   :  { %4580 = vmatpush.msra.mxu2 %v825_v63  ;;  %4600 = vmatpush.msra.mxu3 %v1081_v53  ;;  %v1033_v37 = vld [vmem:[#allocation3 + $0x1d78] sm:$0xff] }
 0x5d1   :  { %4561 = vmatpush.msra.mxu1 %v553_v29  ;;  %4474 = vmatmul.f32.vlgmr.msrb.gmra.mxu0 %v6059_v47  ;;  %v249_v25 = vld [vmem:[#allocation3 + $0x4f8] sm:$0xff] }
 0x5d2   :  { %4581 = vmatpush.msra.mxu2 %v809_v60  ;;  %4601 = vmatpush.msra.mxu3 %v1065_v54  ;;  %v505_v5 = vld [vmem:[#allocation3 + $0xcf8] sm:$0xff] }
 0x5d3   :  { %4514 = vmatmul.f32.vlgmr.msrb.gmra.mxu2 %v6053_v48  ;;  %4534 = vmatmul.f32.vlgmr.msrb.gmra.mxu3 %v6065_v62  ;;  %v761_v63 = vld [vmem:[#allocation3 + $0x14f8] sm:$0xff] }
 0x5d4   :  { %4542 = vmatpush.msra.mxu0 %v281_v45  ;;  %4562 = vmatpush.msra.mxu1 %v537_v50  ;;  %v1017_v53 = vld [vmem:[#allocation3 + $0x1cf8] sm:$0xff] }
 0x5d5   :  { %4582 = vmatpush.msra.mxu2 %v793_v24  ;;  %4602 = vmatpush.msra.mxu3 %v1049_v57  ;;  %v233_v21 = vld [vmem:[#allocation3 + $0x478] sm:$0xff] }
 0x5d6   :  { %4494 = vmatmul.f32.vlgmr.msrb.gmra.mxu1 %v6071_v12  ;;  %4543 = vmatpush.msra.mxu0 %v265_v32  ;;  %v489_v29 = vld [vmem:[#allocation3 + $0xc78] sm:$0xff] }
 0x5d7   :  { %4563 = vmatpush.msra.mxu1 %v521_v4  ;;  %4583 = vmatpush.msra.mxu2 %v777_v6  ;;  %v745_v60 = vld [vmem:[#allocation3 + $0x1478] sm:$0xff] }
 0x5d8   :  { %4603 = vmatpush.msra.mxu3 %v1033_v37  ;;  %4544 = vmatpush.msra.mxu0 %v249_v25  ;;  %v1001_v54 = vld [vmem:[#allocation3 + $0x1c78] sm:$0xff] }
 0x5d9   :  { %4564 = vmatpush.msra.mxu1 %v505_v5  ;;  %4584 = vmatpush.msra.mxu2 %v761_v63  ;;  %v217_v45 = vld [vmem:[#allocation3 + $0x3f8] sm:$0xff] }
 0x5da   :  { %4604 = vmatpush.msra.mxu3 %v1017_v53  ;;  %v473_v50 = vld [vmem:[#allocation3 + $0xbf8] sm:$0xff]  ;;  %4545 = vmatpush.msra.mxu0 %v233_v21 }
 0x5db   :  { %4565 = vmatpush.msra.mxu1 %v489_v29  ;;  %v729_v24 = vld [vmem:[#allocation3 + $0x13f8] sm:$0xff]  ;;  %4585 = vmatpush.msra.mxu2 %v745_v60 }
 0x5dc   :  { %v985_v57 = vld [vmem:[#allocation3 + $0x1bf8] sm:$0xff]  ;;  %4605 = vmatpush.msra.mxu3 %v1001_v54  ;;  %4546 = vmatpush.msra.mxu0 %v217_v45 }
 0x5dd   :  { %v201_v32 = vld [vmem:[#allocation3 + $0x378] sm:$0xff]  ;;  %4566 = vmatpush.msra.mxu1 %v473_v50  ;;  %4586 = vmatpush.msra.mxu2 %v729_v24 }
 0x5de   :  { %v457_v4 = vld [vmem:[#allocation3 + $0xb78] sm:$0xff]  ;;  %4606 = vmatpush.msra.mxu3 %v985_v57  ;;  %4547 = vmatpush.msra.mxu0 %v201_v32 }
 0x5df   :  { %v713_v6 = vld [vmem:[#allocation3 + $0x1378] sm:$0xff]  ;;  %4567 = vmatpush.msra.mxu1 %v457_v4 }
 0x5e0   :  { %v969_v37 = vld [vmem:[#allocation3 + $0x1b78] sm:$0xff]  ;;  %4587 = vmatpush.msra.mxu2 %v713_v6 }
 0x5e1   :  { %v185_v25 = vld [vmem:[#allocation3 + $0x2f8] sm:$0xff]  ;;  %4607 = vmatpush.msra.mxu3 %v969_v37 }
 0x5e2   :  { %v441_v5 = vld [vmem:[#allocation3 + $0xaf8] sm:$0xff]  ;;  %4548 = vmatpush.msra.mxu0 %v185_v25 }
 0x5e3   :  { %v697_v63 = vld [vmem:[#allocation3 + $0x12f8] sm:$0xff]  ;;  %4568 = vmatpush.msra.mxu1 %v441_v5 }
 0x5e4   :  { %v953_v53 = vld [vmem:[#allocation3 + $0x1af8] sm:$0xff]  ;;  %4588 = vmatpush.msra.mxu2 %v697_v63 }
 0x5e5   :  { %v169_v21 = vld [vmem:[#allocation3 + $0x278] sm:$0xff]  ;;  %4608 = vmatpush.msra.mxu3 %v953_v53 }
 0x5e6   :  { %v425_v29 = vld [vmem:[#allocation3 + $0xa78] sm:$0xff]  ;;  %4549 = vmatpush.msra.mxu0 %v169_v21 }
 0x5e7   :  { %v681_v60 = vld [vmem:[#allocation3 + $0x1278] sm:$0xff]  ;;  %4569 = vmatpush.msra.mxu1 %v425_v29 }
 0x5e8   :  { %v937_v54 = vld [vmem:[#allocation3 + $0x1a78] sm:$0xff]  ;;  %4589 = vmatpush.msra.mxu2 %v681_v60 }
 0x5e9   :  { %v153_v45 = vld [vmem:[#allocation3 + $0x1f8] sm:$0xff]  ;;  %4609 = vmatpush.msra.mxu3 %v937_v54 }
 0x5ea   :  { %v409_v50 = vld [vmem:[#allocation3 + $0x9f8] sm:$0xff]  ;;  %4550 = vmatpush.msra.mxu0 %v153_v45 }
 0x5eb   :  { %v665_v24 = vld [vmem:[#allocation3 + $0x11f8] sm:$0xff]  ;;  %4570 = vmatpush.msra.mxu1 %v409_v50 }
 0x5ec   :  { %v921_v57 = vld [vmem:[#allocation3 + $0x19f8] sm:$0xff]  ;;  %4590 = vmatpush.msra.mxu2 %v665_v24 }
 0x5ed   :  { %v137_v32 = vld [vmem:[#allocation3 + $0x178] sm:$0xff]  ;;  %4610 = vmatpush.msra.mxu3 %v921_v57 }
 0x5ee   :  { %v393_v4 = vld [vmem:[#allocation3 + $0x978] sm:$0xff]  ;;  %4551 = vmatpush.msra.mxu0 %v137_v32 }
 0x5ef   :  { %v649_v6 = vld [vmem:[#allocation3 + $0x1178] sm:$0xff]  ;;  %4571 = vmatpush.msra.mxu1 %v393_v4 }
 0x5f0   :  { %v905_v37 = vld [vmem:[#allocation3 + $0x1978] sm:$0xff]  ;;  %4591 = vmatpush.msra.mxu2 %v649_v6 }
 0x5f1   :  { %v121_v25 = vld [vmem:[#allocation3 + $0xf8] sm:$0xff]  ;;  %4611 = vmatpush.msra.mxu3 %v905_v37 }
 0x5f2   :  { %v377_v5 = vld [vmem:[#allocation3 + $0x8f8] sm:$0xff]  ;;  %4552 = vmatpush.msra.mxu0 %v121_v25 }
 0x5f3   :  { %v633_v63 = vld [vmem:[#allocation3 + $0x10f8] sm:$0xff]  ;;  %4572 = vmatpush.msra.mxu1 %v377_v5 }
 0x5f4   :  { %v889_v53 = vld [vmem:[#allocation3 + $0x18f8] sm:$0xff]  ;;  %4592 = vmatpush.msra.mxu2 %v633_v63 }
 0x5f5   :  { %v105_v21 = vld [vmem:[#allocation3 + $0x78] sm:$0xff]  ;;  %4612 = vmatpush.msra.mxu3 %v889_v53 }
 0x5f6   :  { %v361_v29 = vld [vmem:[#allocation3 + $0x878] sm:$0xff]  ;;  %4553 = vmatpush.msra.mxu0 %v105_v21 }
 0x5f7   :  { %v617_v60 = vld [vmem:[#allocation3 + $0x1078] sm:$0xff]  ;;  %4573 = vmatpush.msra.mxu1 %v361_v29  ;;  %4554 = vmatmul.f32.vlgmr.msra.gmra.mxu0 %v6035_v36 }
 0x5f8   :  { %v873_v54 = vld [vmem:[#allocation3 + $0x1878] sm:$0xff]  ;;  %4593 = vmatpush.msra.mxu2 %v617_v60  ;;  %4574 = vmatmul.f32.vlgmr.msra.gmra.mxu1 %v6041_v9 }
 0x5f9   :  { %v1369_v45 = vld [vmem:[#allocation3 + $0x27f8] sm:$0xff]  ;;  %4613 = vmatpush.msra.mxu3 %v873_v54  ;;  %4594 = vmatmul.f32.vlgmr.msra.gmra.mxu2 %v6029_v61 }
 0x5fa   :  { %v1625_v50 = vld [vmem:[#allocation3 + $0x2ff8] sm:$0xff]  ;;  %4618 = vmatpush.msrb.mxu0 %v1369_v45  ;;  %4614 = vmatmul.f32.vlgmr.msra.gmra.mxu3 %v6047_v3 }
 0x5fb   :  { %v1881_v24 = vld [vmem:[#allocation3 + $0x37f8] sm:$0xff]  ;;  %4638 = vmatpush.msrb.mxu1 %v1625_v50 }
 0x5fc   :  { %v2137_v57 = vld [vmem:[#allocation3 + $0x3ff8] sm:$0xff]  ;;  %4658 = vmatpush.msrb.mxu2 %v1881_v24 }
 0x5fd   :  { %v1353_v32 = vld [vmem:[#allocation3 + $0x2778] sm:$0xff]  ;;  %4678 = vmatpush.msrb.mxu3 %v2137_v57 }
 0x5fe   :  { %v1609_v4 = vld [vmem:[#allocation3 + $0x2f78] sm:$0xff]  ;;  %4619 = vmatpush.msrb.mxu0 %v1353_v32 }
 0x5ff   :  { %v1865_v6 = vld [vmem:[#allocation3 + $0x3778] sm:$0xff]  ;;  %4639 = vmatpush.msrb.mxu1 %v1609_v4 }
 0x600   :  { %v2121_v37 = vld [vmem:[#allocation3 + $0x3f78] sm:$0xff]  ;;  %4659 = vmatpush.msrb.mxu2 %v1865_v6 }
 0x601   :  { %v1337_v25 = vld [vmem:[#allocation3 + $0x26f8] sm:$0xff]  ;;  %4679 = vmatpush.msrb.mxu3 %v2121_v37 }
 0x602   :  { %v1593_v5 = vld [vmem:[#allocation3 + $0x2ef8] sm:$0xff]  ;;  %4620 = vmatpush.msrb.mxu0 %v1337_v25 }
 0x603   :  { %v1849_v63 = vld [vmem:[#allocation3 + $0x36f8] sm:$0xff]  ;;  %4640 = vmatpush.msrb.mxu1 %v1593_v5 }
 0x604   :  { %v2105_v53 = vld [vmem:[#allocation3 + $0x3ef8] sm:$0xff]  ;;  %4660 = vmatpush.msrb.mxu2 %v1849_v63 }
 0x605   :  { %v1321_v21 = vld [vmem:[#allocation3 + $0x2678] sm:$0xff]  ;;  %4680 = vmatpush.msrb.mxu3 %v2105_v53 }
 0x606   :  { %v1577_v29 = vld [vmem:[#allocation3 + $0x2e78] sm:$0xff]  ;;  %4621 = vmatpush.msrb.mxu0 %v1321_v21 }
 0x607   :  { %v1833_v60 = vld [vmem:[#allocation3 + $0x3678] sm:$0xff]  ;;  %4641 = vmatpush.msrb.mxu1 %v1577_v29 }
 0x608   :  { %v2089_v54 = vld [vmem:[#allocation3 + $0x3e78] sm:$0xff]  ;;  %4661 = vmatpush.msrb.mxu2 %v1833_v60 }
 0x609   :  { %v1305_v45 = vld [vmem:[#allocation3 + $0x25f8] sm:$0xff]  ;;  %4681 = vmatpush.msrb.mxu3 %v2089_v54 }
 0x60a   :  { %v1561_v50 = vld [vmem:[#allocation3 + $0x2df8] sm:$0xff]  ;;  %4622 = vmatpush.msrb.mxu0 %v1305_v45 }
 0x60b   :  { %v1817_v24 = vld [vmem:[#allocation3 + $0x35f8] sm:$0xff]  ;;  %4642 = vmatpush.msrb.mxu1 %v1561_v50 }
 0x60c   :  { %v2073_v57 = vld [vmem:[#allocation3 + $0x3df8] sm:$0xff]  ;;  %4662 = vmatpush.msrb.mxu2 %v1817_v24 }
 0x60d   :  { %v1289_v32 = vld [vmem:[#allocation3 + $0x2578] sm:$0xff]  ;;  %4682 = vmatpush.msrb.mxu3 %v2073_v57 }
 0x60e   :  { %v1545_v4 = vld [vmem:[#allocation3 + $0x2d78] sm:$0xff]  ;;  %4623 = vmatpush.msrb.mxu0 %v1289_v32 }
 0x60f   :  { %v1801_v6 = vld [vmem:[#allocation3 + $0x3578] sm:$0xff]  ;;  %4643 = vmatpush.msrb.mxu1 %v1545_v4 }
 0x610   :  { %v2057_v37 = vld [vmem:[#allocation3 + $0x3d78] sm:$0xff]  ;;  %4663 = vmatpush.msrb.mxu2 %v1801_v6 }
 0x611   :  { %v1273_v25 = vld [vmem:[#allocation3 + $0x24f8] sm:$0xff]  ;;  %4683 = vmatpush.msrb.mxu3 %v2057_v37 }
 0x612   :  { %v1529_v5 = vld [vmem:[#allocation3 + $0x2cf8] sm:$0xff]  ;;  %4624 = vmatpush.msrb.mxu0 %v1273_v25 }
 0x613   :  { %v1785_v63 = vld [vmem:[#allocation3 + $0x34f8] sm:$0xff]  ;;  %4644 = vmatpush.msrb.mxu1 %v1529_v5 }
 0x614   :  { %v2041_v53 = vld [vmem:[#allocation3 + $0x3cf8] sm:$0xff]  ;;  %4664 = vmatpush.msrb.mxu2 %v1785_v63 }
 0x615   :  { %v1257_v21 = vld [vmem:[#allocation3 + $0x2478] sm:$0xff]  ;;  %4684 = vmatpush.msrb.mxu3 %v2041_v53 }
 0x616   :  { %v1513_v29 = vld [vmem:[#allocation3 + $0x2c78] sm:$0xff]  ;;  %4625 = vmatpush.msrb.mxu0 %v1257_v21 }
 0x617   :  { %v1769_v60 = vld [vmem:[#allocation3 + $0x3478] sm:$0xff]  ;;  %4645 = vmatpush.msrb.mxu1 %v1513_v29 }
 0x618   :  { %v2025_v54 = vld [vmem:[#allocation3 + $0x3c78] sm:$0xff]  ;;  %4665 = vmatpush.msrb.mxu2 %v1769_v60 }
 0x619   :  { %v1241_v45 = vld [vmem:[#allocation3 + $0x23f8] sm:$0xff]  ;;  %4685 = vmatpush.msrb.mxu3 %v2025_v54 }
 0x61a   :  { %v1497_v50 = vld [vmem:[#allocation3 + $0x2bf8] sm:$0xff]  ;;  %4626 = vmatpush.msrb.mxu0 %v1241_v45 }
 0x61b   :  { %v1753_v24 = vld [vmem:[#allocation3 + $0x33f8] sm:$0xff]  ;;  %4646 = vmatpush.msrb.mxu1 %v1497_v50 }
 0x61c   :  { %v2009_v57 = vld [vmem:[#allocation3 + $0x3bf8] sm:$0xff]  ;;  %4666 = vmatpush.msrb.mxu2 %v1753_v24 }
 0x61d   :  { %v1225_v32 = vld [vmem:[#allocation3 + $0x2378] sm:$0xff]  ;;  %4686 = vmatpush.msrb.mxu3 %v2009_v57 }
 0x61e   :  { %v1481_v4 = vld [vmem:[#allocation3 + $0x2b78] sm:$0xff]  ;;  %4627 = vmatpush.msrb.mxu0 %v1225_v32 }
 0x61f   :  { %v1737_v6 = vld [vmem:[#allocation3 + $0x3378] sm:$0xff]  ;;  %4647 = vmatpush.msrb.mxu1 %v1481_v4 }
 0x620   :  { %v1993_v37 = vld [vmem:[#allocation3 + $0x3b78] sm:$0xff]  ;;  %4667 = vmatpush.msrb.mxu2 %v1737_v6 }
 0x621   :  { %v1209_v25 = vld [vmem:[#allocation3 + $0x22f8] sm:$0xff]  ;;  %4687 = vmatpush.msrb.mxu3 %v1993_v37 }
 0x622   :  { %v1465_v5 = vld [vmem:[#allocation3 + $0x2af8] sm:$0xff]  ;;  %4628 = vmatpush.msrb.mxu0 %v1209_v25 }
 0x623   :  { %v1721_v63 = vld [vmem:[#allocation3 + $0x32f8] sm:$0xff]  ;;  %4648 = vmatpush.msrb.mxu1 %v1465_v5 }
 0x624   :  { %v1977_v53 = vld [vmem:[#allocation3 + $0x3af8] sm:$0xff]  ;;  %4668 = vmatpush.msrb.mxu2 %v1721_v63 }
 0x625   :  { %v1193_v21 = vld [vmem:[#allocation3 + $0x2278] sm:$0xff]  ;;  %4688 = vmatpush.msrb.mxu3 %v1977_v53 }
 0x626   :  { %v1449_v29 = vld [vmem:[#allocation3 + $0x2a78] sm:$0xff]  ;;  %4629 = vmatpush.msrb.mxu0 %v1193_v21 }
 0x627   :  { %v1705_v60 = vld [vmem:[#allocation3 + $0x3278] sm:$0xff]  ;;  %4649 = vmatpush.msrb.mxu1 %v1449_v29 }
 0x628   :  { %v1961_v54 = vld [vmem:[#allocation3 + $0x3a78] sm:$0xff]  ;;  %4669 = vmatpush.msrb.mxu2 %v1705_v60 }
 0x629   :  { %v1177_v45 = vld [vmem:[#allocation3 + $0x21f8] sm:$0xff]  ;;  %4689 = vmatpush.msrb.mxu3 %v1961_v54 }
 0x62a   :  { %v1433_v50 = vld [vmem:[#allocation3 + $0x29f8] sm:$0xff]  ;;  %4630 = vmatpush.msrb.mxu0 %v1177_v45  ;;  %v4779_v45 = vld [vmem:[#allocation5 + $0x70] sm:$0xff] }
 0x62b   :  { %v1689_v24 = vld [vmem:[#allocation3 + $0x31f8] sm:$0xff]  ;;  %4650 = vmatpush.msrb.mxu1 %v1433_v50  ;;  %v4795_v50 = vld [vmem:[#allocation5 + $0xf0] sm:$0xff] }
 0x62c   :  { %v1945_v57 = vld [vmem:[#allocation3 + $0x39f8] sm:$0xff]  ;;  %4670 = vmatpush.msrb.mxu2 %v1689_v24  ;;  %v4811_v24 = vld [vmem:[#allocation5 + $0x170] sm:$0xff] }
 0x62d   :  { %v1161_v32 = vld [vmem:[#allocation3 + $0x2178] sm:$0xff]  ;;  %4690 = vmatpush.msrb.mxu3 %v1945_v57  ;;  %v4827_v57 = vld [vmem:[#allocation5 + $0x1f0] sm:$0xff] }
 0x62e   :  { %v1417_v4 = vld [vmem:[#allocation3 + $0x2978] sm:$0xff]  ;;  %4631 = vmatpush.msrb.mxu0 %v1161_v32  ;;  %v4778_v32 = vld [vmem:[#allocation5 + $0x68] sm:$0xff] }
 0x62f   :  { %v1673_v6 = vld [vmem:[#allocation3 + $0x3178] sm:$0xff]  ;;  %4651 = vmatpush.msrb.mxu1 %v1417_v4  ;;  %v4794_v4 = vld [vmem:[#allocation5 + $0xe8] sm:$0xff] }
 0x630   :  { %v1929_v37 = vld [vmem:[#allocation3 + $0x3978] sm:$0xff]  ;;  %4671 = vmatpush.msrb.mxu2 %v1673_v6  ;;  %v2176_v6 = vadd.f32 %v5736_v35, %v5734_v34  ;;  %v4809_v34 = vld [vmem:[#allocation5 + $0x160] sm:$0xff] }
 0x631   :  { %v1145_v61 = vld [vmem:[#allocation3 + $0x20f8] sm:$0xff]  ;;  %4691 = vmatpush.msrb.mxu3 %v1929_v37  ;;  %v4826_v37 = vld [vmem:[#allocation5 + $0x1e8] sm:$0xff]  ;;  %v4825_v35 = vld [vmem:[#allocation5 + $0x1e0] sm:$0xff] }
 0x632   :  { %v1401_v25 = vld [vmem:[#allocation3 + $0x28f8] sm:$0xff]  ;;  %4632 = vmatpush.msrb.mxu0 %v1145_v61  ;;  %v2496_v61 = vadd.f32 %v5768_v17, %v5766_v11 }
 0x633   :  { %v1657_v5 = vld [vmem:[#allocation3 + $0x30f8] sm:$0xff]  ;;  %4652 = vmatpush.msrb.mxu1 %v1401_v25  ;;  %v4793_v25 = vld [vmem:[#allocation5 + $0xe0] sm:$0xff] }
 0x634   :  { %v1913_v63 = vld [vmem:[#allocation3 + $0x38f8] sm:$0xff]  ;;  %4672 = vmatpush.msrb.mxu2 %v1657_v5  ;;  %v6090_v5 = vpop.f32.mrf.mxu0 }
 0x635   :  { %v1129_v36 = vld [vmem:[#allocation3 + $0x2078] sm:$0xff]  ;;  %4692 = vmatpush.msrb.mxu3 %v1913_v63  ;;  %v2196_v63 = vadd.f32 %v5738_v46, %v2176_v6  ;;  %v4823_v46 = vld [vmem:[#allocation5 + $0x1d0] sm:$0xff]  ;;  %v4805_v6 = vld [vmem:[#allocation5 + $0x140] sm:$0xff] }
 0x636   :  { %v1385_v3 = vld [vmem:[#allocation3 + $0x2878] sm:$0xff]  ;;  %4633 = vmatpush.msrb.mxu0 %v1129_v36 }
 0x637   :  { %v1641_v53 = vld [vmem:[#allocation3 + $0x3078] sm:$0xff]  ;;  %4653 = vmatpush.msrb.mxu1 %v1385_v3  ;;  %4634 = vmatmul.f32.vlgmr.msrb.gmra.mxu0 %v6059_v47  ;;  %v4810_v47 = vld [vmem:[#allocation5 + $0x168] sm:$0xff]  ;;  %v4775_v3 = vld [vmem:[#allocation5 + $0x50] sm:$0xff] }
 0x638   :  { %v1897_v21 = vld [vmem:[#allocation3 + $0x3878] sm:$0xff]  ;;  %4673 = vmatpush.msrb.mxu2 %v1641_v53  ;;  %4654 = vmatmul.f32.vlgmr.msrb.gmra.mxu1 %v6071_v12  ;;  %v2656_v12 = vadd.f32 %v5788_v15, %v5786_v10  ;;  %v2516_v15 = vadd.f32 %v5770_v31, %v2496_v61  ;;  %v4791_v53 = vld [vmem:[#allocation5 + $0xd0] sm:$0xff]  ;;  %v2216_v31 = vadd.f32 %v5740_v30, %v2196_v63  ;;  %v4821_v30 = vld [vmem:[#allocation5 + $0x1c0] sm:$0xff] }
 0x639   :  { %v4780_v29 = vld [vmem:[#allocation5 + $0x78] sm:$0xff]  ;;  %4693 = vmatpush.msrb.mxu3 %v1897_v21  ;;  %4674 = vmatmul.f32.vlgmr.msrb.gmra.mxu2 %v6053_v48  ;;  %v2336_v48 = vadd.f32 %v5752_v20, %v5750_v19  ;;  %v6096_v21 = vpop.f32.mrf.mxu1 }
 0x63a   :  { %v4796_v9 = vld [vmem:[#allocation5 + $0xf8] sm:$0xff]  ;;  %5021 = vmatpush.msra.mxu0 %v4780_v29  ;;  %4694 = vmatmul.f32.vlgmr.msrb.gmra.mxu3 %v6065_v62  ;;  %v4777_v62 = vld [vmem:[#allocation5 + $0x60] sm:$0xff]  ;;  %v2676_v36 = vadd.f32 %v5790_v28, %v2656_v12  ;;  %v4807_v29 = vld [vmem:[#allocation5 + $0x150] sm:$0xff] }
 0x63b   :  { %v4812_v60 = vld [vmem:[#allocation5 + $0x178] sm:$0xff]  ;;  %5041 = vmatpush.msra.mxu1 %v4796_v9  ;;  %v2356_v11 = vadd.f32 %v5754_v33, %v2336_v48  ;;  %v6098_v9 = vpop.f32.mrf.mxu2  ;;  %v4774_v33 = vld [vmem:[#allocation5 + $0x48] sm:$0xff] }
 0x63c   :  { %v4828_v54 = vld [vmem:[#allocation5 + $0x1f8] sm:$0xff]  ;;  %5061 = vmatpush.msra.mxu2 %v4812_v60  ;;  %5022 = vmatpush.msra.mxu0 %v4779_v45  ;;  %v4790_v60 = vld [vmem:[#allocation5 + $0xc8] sm:$0xff] }
 0x63d   :  { %5081 = vmatpush.msra.mxu3 %v4828_v54  ;;  %5042 = vmatpush.msra.mxu1 %v4795_v50  ;;  %v4776_v19 = vld [vmem:[#allocation5 + $0x58] sm:$0xff]  ;;  %v2376_v28 = vadd.f32 %v5756_v39, %v2356_v11  ;;  %v4806_v54 = vld [vmem:[#allocation5 + $0x148] sm:$0xff]  ;;  %v2536_v50 = vadd.f32 %v5772_v38, %v2516_v15 }
 0x63e   :  { %5062 = vmatpush.msra.mxu2 %v4811_v24  ;;  %5023 = vmatpush.msra.mxu0 %v4778_v32  ;;  %v4792_v20 = vld [vmem:[#allocation5 + $0xd8] sm:$0xff]  ;;  %v4822_v45 = vld [vmem:[#allocation5 + $0x1c8] sm:$0xff]  ;;  %v2696_v24 = vadd.f32 %v5793_v2, %v2676_v36  ;;  %v4789_v32 = vld [vmem:[#allocation5 + $0xc0] sm:$0xff] }
 0x63f   :  { %5082 = vmatpush.msra.mxu3 %v4827_v57  ;;  %5043 = vmatpush.msra.mxu1 %v4794_v4  ;;  %v4808_v17 = vld [vmem:[#allocation5 + $0x158] sm:$0xff]  ;;  %v4773_v57 = vld [vmem:[#allocation5 + $0x40] sm:$0xff]  ;;  %v6104_v4 = vpop.f32.mrf.mxu3  ;;  %v2396_v38 = vadd.f32 %v5758_v26, %v2376_v28  ;;  %v2556_v61 = vadd.f32 %v5774_v27, %v2536_v50  ;;  %v4770_v26 = vld [vmem:[#allocation5 + $0x28] sm:$0xff] }
 0x640   :  { %5063 = vmatpush.msra.mxu2 %v4810_v47  ;;  %5024 = vmatpush.msra.mxu0 %v4777_v62  ;;  %v4824_v10 = vld [vmem:[#allocation5 + $0x1d8] sm:$0xff]  ;;  %v2236_v47 = vadd.f32 %v5742_v58, %v2216_v31  ;;  %v2716_v12 = vadd.f32 %v5797_v43, %v2696_v24  ;;  %v6110_v62 = vpop.f32.mrf.mxu0  ;;  %v4819_v58 = vld [vmem:[#allocation5 + $0x1b0] sm:$0xff]  ;;  %v4802_v43 = vld [vmem:[#allocation5 + $0x128] sm:$0xff] }
 0x641   :  { %5083 = vmatpush.msra.mxu3 %v4826_v37  ;;  %5044 = vmatpush.msra.mxu1 %v4793_v25  ;;  %v4772_v39 = vld [vmem:[#allocation5 + $0x38] sm:$0xff]  ;;  %v4771_v25 = vld [vmem:[#allocation5 + $0x30] sm:$0xff]  ;;  %v2416_v27 = vadd.f32 %v5760_v51, %v2396_v38  ;;  %v6114_v63 = vpop.f32.mrf.mxu1  ;;  %v4818_v11 = vld [vmem:[#allocation5 + $0x1a8] sm:$0xff] }
 0x642   :  { %5064 = vmatpush.msra.mxu2 %v4809_v34  ;;  %5025 = vmatpush.msra.mxu0 %v4776_v19  ;;  %v4788_v48 = vld [vmem:[#allocation5 + $0xb8] sm:$0xff]  ;;  %v4787_v34 = vld [vmem:[#allocation5 + $0xb0] sm:$0xff]  ;;  %v4786_v19 = vld [vmem:[#allocation5 + $0xa8] sm:$0xff] }
 0x643   :  { %5084 = vmatpush.msra.mxu3 %v4825_v35  ;;  %5045 = vmatpush.msra.mxu1 %v4792_v20  ;;  %v4804_v2 = vld [vmem:[#allocation5 + $0x138] sm:$0xff]  ;;  %v4803_v35 = vld [vmem:[#allocation5 + $0x130] sm:$0xff]  ;;  %v2256_v20 = vadd.f32 %v5744_v16, %v2236_v47  ;;  %v6118_v15 = vpop.f32.mrf.mxu2  ;;  %v4769_v36 = vld [vmem:[#allocation5 + $0x20] sm:$0xff] }
 0x644   :  { %5065 = vmatpush.msra.mxu2 %v4808_v17  ;;  %5026 = vmatpush.msra.mxu0 %v4775_v3  ;;  %v4820_v37 = vld [vmem:[#allocation5 + $0x1b8] sm:$0xff]  ;;  %v2576_v17 = vadd.f32 %v5776_v52, %v2556_v61  ;;  %v4785_v3 = vld [vmem:[#allocation5 + $0xa0] sm:$0xff]  ;;  %v2436_v52 = vadd.f32 %v5762_v0, %v2416_v27  ;;  %v4783_v50 = vld [vmem:[#allocation5 + $0x90] sm:$0xff] }
 0x645   :  { %5085 = vmatpush.msra.mxu3 %v4824_v10  ;;  %5046 = vmatpush.msra.mxu1 %v4791_v53  ;;  %v2736_v10 = vadd.f32 %v5800_v49, %v2716_v12  ;;  %v4801_v16 = vld [vmem:[#allocation5 + $0x120] sm:$0xff]  ;;  %v4768_v53 = vld [vmem:[#allocation5 + $0x18] sm:$0xff]  ;;  %v4815_v0 = vld [vmem:[#allocation5 + $0x190] sm:$0xff] }
 0x646   :  { %5066 = vmatpush.msra.mxu2 %v4807_v29  ;;  %5027 = vmatpush.msra.mxu0 %v4774_v33  ;;  %v4817_v51 = vld [vmem:[#allocation5 + $0x1a0] sm:$0xff]  ;;  %v4784_v29 = vld [vmem:[#allocation5 + $0x98] sm:$0xff]  ;;  %v2596_v31 = vadd.f32 %v5779_v59, %v2576_v17  ;;  %v4766_v24 = vld [vmem:[#allocation5 + $0x8] sm:$0xff]  ;;  %v2456_v59 = vadd.f32 %v5764_v8, %v2436_v52 }
 0x647   :  { %5086 = vmatpush.msra.mxu3 %v4823_v46  ;;  %5047 = vmatpush.msra.mxu1 %v4790_v60  ;;  %v2276_v46 = vadd.f32 %v5746_v23, %v2256_v20  ;;  %v6122_v33 = vpop.f32.mrf.mxu3  ;;  %v4800_v49 = vld [vmem:[#allocation5 + $0x118] sm:$0xff]  ;;  %v2756_v28 = vadd.f32 %v5802_v55, %v2736_v10  ;;  %v4799_v23 = vld [vmem:[#allocation5 + $0x110] sm:$0xff]  ;;  %v4798_v55 = vld [vmem:[#allocation5 + $0x108] sm:$0xff]  ;;  %v2816_v10 = vadd.f32 %v5808_v41, %v5806_v13 }
 0x648   :  { %5067 = vmatpush.msra.mxu2 %v4806_v54  ;;  %5028 = vmatpush.msra.mxu0 %v4773_v57  ;;  %v4816_v60 = vld [vmem:[#allocation5 + $0x198] sm:$0xff]  ;;  %v6126_v54 = vpop.f32.mrf.mxu0  ;;  %v4782_v57 = vld [vmem:[#allocation5 + $0x88] sm:$0xff]  ;;  %v4765_v38 = vld [vmem:[#allocation5] sm:$0xff]  ;;  %v4750_v61 = vmul.f32 %v2456_v59, %v2456_v59 }
 0x649   :  { %5087 = vmatpush.msra.mxu3 %v4822_v45  ;;  %5048 = vmatpush.msra.mxu1 %v4789_v32  ;;  %v4767_v45 = vld [vmem:[#allocation5 + $0x10] sm:$0xff]  ;;  %v2296_v32 = vadd.f32 %v5748_v14, %v2276_v46  ;;  %v4797_v14 = vld [vmem:[#allocation5 + $0x100] sm:$0xff]  ;;  %v4858_v17 = vld [vmem:[#allocation5 + $0x2e8] sm:$0xff] }
 0x64a   :  { %5068 = vmatpush.msra.mxu2 %v4805_v6  ;;  %5029 = vmatpush.msra.mxu0 %v4772_v39  ;;  %v6130_v6 = vpop.f32.mrf.mxu1  ;;  %v2616_v39 = vadd.f32 %v5784_v7, %v2596_v31  ;;  %v4813_v8 = vld [vmem:[#allocation5 + $0x180] sm:$0xff]  ;;  %v4859_v20 = vld [vmem:[#allocation5 + $0x2f0] sm:$0xff] }
 0x64b   :  { %5088 = vmatpush.msra.mxu3 %v4821_v30  ;;  %5049 = vmatpush.msra.mxu1 %v4788_v48  ;;  %v4814_v30 = vld [vmem:[#allocation5 + $0x188] sm:$0xff]  ;;  %v2776_v48 = vadd.f32 %v5804_v22, %v2756_v28  ;;  %v6134_v47 = vpop.f32.mrf.mxu2  ;;  %v4875_v27 = vld [vmem:[#allocation5 + $0x370] sm:$0xff]  ;;  %v4841_v46 = vld [vmem:[#allocation5 + $0x260] sm:$0xff] }
 0x64c   :  { %5069 = vmatpush.msra.mxu2 %v4804_v2  ;;  %5030 = vmatpush.msra.mxu0 %v4771_v25  ;;  %v4781_v2 = vld [vmem:[#allocation5 + $0x80] sm:$0xff]  ;;  %v4751_v7 = vmul.f32 %v2616_v39, %v2616_v39  ;;  %v4844_v25 = vld [vmem:[#allocation5 + $0x278] sm:$0xff] }
 0x64d   :  { %5089 = vmatpush.msra.mxu3 %v4820_v37  ;;  %5050 = vmatpush.msra.mxu1 %v4787_v34  ;;  %v4749_v37 = vmul.f32 %v2296_v32, %v2296_v32  ;;  %v4752_v22 = vmul.f32 %v2776_v48, %v2776_v48  ;;  %v4860_v34 = vld [vmem:[#allocation5 + $0x2f8] sm:$0xff]  ;;  %v4857_v52 = vld [vmem:[#allocation5 + $0x2e0] sm:$0xff]  ;;  %v4870_v48 = vld [vmem:[#allocation5 + $0x348] sm:$0xff] }
 0x64e   :  { %5070 = vmatpush.msra.mxu2 %v4803_v35  ;;  %5031 = vmatpush.msra.mxu0 %v4770_v26  ;;  %v4876_v35 = vld [vmem:[#allocation5 + $0x378] sm:$0xff]  ;;  %v4873_v13 = vld [vmem:[#allocation5 + $0x360] sm:$0xff] }
 0x64f   :  { %5090 = vmatpush.msra.mxu3 %v4819_v58  ;;  %5051 = vmatpush.msra.mxu1 %v4786_v19  ;;  %v6136_v12 = vpop.f32.mrf.mxu3  ;;  %v4892_v58 = vld [vmem:[#allocation5 + $0x3f8] sm:$0xff]  ;;  %v4843_v19 = vld [vmem:[#allocation5 + $0x270] sm:$0xff]  ;;  %v4889_v41 = vld [vmem:[#allocation5 + $0x3e0] sm:$0xff] }
 0x650   :  { %5071 = vmatpush.msra.mxu2 %v4802_v43  ;;  %5032 = vmatpush.msra.mxu0 %v4769_v36  ;;  %v6138_v26 = vpop.f32.mrf.mxu0  ;;  %v4891_v43 = vld [vmem:[#allocation5 + $0x3f0] sm:$0xff]  ;;  %v2976_v36 = vadd.f32 %v5824_v18, %v5822_v42  ;;  %v4840_v42 = vld [vmem:[#allocation5 + $0x258] sm:$0xff]  ;;  %v6297_v32 = vld [vmem:[#allocation9_spill] sm:$0xff] }
 0x651   :  { %5091 = vmatpush.msra.mxu3 %v4818_v11  ;;  %5052 = vmatpush.msra.mxu1 %v4785_v3  ;;  %v4842_v11 = vld [vmem:[#allocation5 + $0x268] sm:$0xff]  ;;  %v4856_v18 = vld [vmem:[#allocation5 + $0x2d8] sm:$0xff] }
 0x652   :  { %5072 = vmatpush.msra.mxu2 %v4801_v16  ;;  %5033 = vmatpush.msra.mxu0 %v4768_v53  ;;  %v6144_v3 = vpop.f32.mrf.mxu1  ;;  %v4874_v16 = vld [vmem:[#allocation5 + $0x368] sm:$0xff]  ;;  %v3296_v53 = vadd.f32 %v5898_v56, %v5896_v40  ;;  %v4872_v40 = vld [vmem:[#allocation5 + $0x358] sm:$0xff] }
 0x653   :  { %5092 = vmatpush.msra.mxu3 %v4817_v51  ;;  %5053 = vmatpush.msra.mxu1 %v4784_v29  ;;  %v4890_v51 = vld [vmem:[#allocation5 + $0x3e8] sm:$0xff]  ;;  %v6148_v29 = vpop.f32.mrf.mxu2  ;;  %v4888_v56 = vld [vmem:[#allocation5 + $0x3d8] sm:$0xff] }
 0x654   :  { %5073 = vmatpush.msra.mxu2 %v4800_v49  ;;  %5034 = vmatpush.msra.mxu0 %v4767_v45  ;;  %v2836_v49 = vadd.f32 %v5810_v1, %v2816_v10  ;;  %v6296_v28 = vld [vmem:[#allocation20_spill] sm:$0xff]  ;;  %v4887_v1 = vld [vmem:[#allocation5 + $0x3d0] sm:$0xff] }
 0x655   :  { %5093 = vmatpush.msra.mxu3 %v4816_v60  ;;  %5054 = vmatpush.msra.mxu1 %v4783_v50  ;;  %v2996_v60 = vadd.f32 %v5826_v44, %v2976_v36  ;;  %v3316_v45 = vadd.f32 %v6296_v28, %v3296_v53  ;;  %v4838_v44 = vld [vmem:[#allocation5 + $0x248] sm:$0xff]  ;;  %v4835_v36 = vld [vmem:[#allocation5 + $0x230] sm:$0xff] }
 0x656   :  { %5074 = vmatpush.msra.mxu2 %v4799_v23  ;;  %5035 = vmatpush.msra.mxu0 %v4766_v24  ;;  %v4839_v23 = vld [vmem:[#allocation5 + $0x250] sm:$0xff]  ;;  %v2856_v59 = vadd.f32 %v6297_v32, %v2836_v49  ;;  %v4848_v32 = vld [vmem:[#allocation5 + $0x298] sm:$0xff] }
 0x657   :  { %5094 = vmatpush.msra.mxu3 %v4815_v0  ;;  %5055 = vmatpush.msra.mxu1 %v4782_v57  ;;  %v6152_v31 = vpop.f32.mrf.mxu3  ;;  %v4855_v0 = vld [vmem:[#allocation5 + $0x2d0] sm:$0xff]  ;;  %v4854_v57 = vld [vmem:[#allocation5 + $0x2c8] sm:$0xff] }
 0x658   :  { %5075 = vmatpush.msra.mxu2 %v4798_v55  ;;  %5036 = vmatpush.msra.mxu0 %v4765_v38  ;;  %v6155_v50 = vpop.f32.mrf.mxu0  ;;  %v4871_v24 = vld [vmem:[#allocation5 + $0x350] sm:$0xff]  ;;  %v6298_v55 = vld [vmem:[#allocation14_spill] sm:$0xff] }
 0x659   :  { %5095 = vmatpush.msra.mxu3 %v4814_v30  ;;  %5056 = vmatpush.msra.mxu1 %v4781_v2  ;;  %v3016_v30 = vadd.f32 %v6298_v55, %v2996_v60  ;;  %v4886_v38 = vld [vmem:[#allocation5 + $0x3c8] sm:$0xff]  ;;  %v6299_v2 = vld [vmem:[#allocation21_spill] sm:$0xff]  ;;  %v4883_v53 = vld [vmem:[#allocation5 + $0x3b0] sm:$0xff] }
 0x65a   :  { %5076 = vmatpush.msra.mxu2 %v4797_v14  ;;  %5037 = vmatmul.f32.vlgmr.msra.gmra.mxu0 %v4749_v37  ;;  %v6159_v39 = vpop.f32.mrf.mxu1  ;;  %v3336_v14 = vadd.f32 %v6299_v2, %v3316_v45  ;;  %v4837_v37 = vld [vmem:[#allocation5 + $0x240] sm:$0xff]  ;;  %v4866_v60 = vld [vmem:[#allocation5 + $0x328] sm:$0xff]  ;;  %v4880_v2 = vld [vmem:[#allocation5 + $0x398] sm:$0xff] }
 0x65b   :  { %5096 = vmatpush.msra.mxu3 %v4813_v8  ;;  %5057 = vmatmul.f32.vlgmr.msra.gmra.mxu1 %v4750_v61  ;;  %v6162_v8 = vpop.f32.mrf.mxu2  ;;  %v4853_v61 = vld [vmem:[#allocation5 + $0x2c0] sm:$0xff] }
 0x65c   :  { %5077 = vmatmul.f32.vlgmr.msra.gmra.mxu2 %v4751_v7  ;;  %5097 = vmatmul.f32.vlgmr.msra.gmra.mxu3 %v4752_v22  ;;  %v4869_v7 = vld [vmem:[#allocation5 + $0x340] sm:$0xff] }
 0x65d   :  { %5101 = vmatpush.msrb.mxu0 %v4844_v25  ;;  %5121 = vmatpush.msrb.mxu1 %v4860_v34  ;;  %v4885_v22 = vld [vmem:[#allocation5 + $0x3c0] sm:$0xff]  ;;  %v4836_v25 = vld [vmem:[#allocation5 + $0x238] sm:$0xff] }
 0x65e   :  { %5141 = vmatpush.msrb.mxu2 %v4876_v35  ;;  %5161 = vmatpush.msrb.mxu3 %v4892_v58  ;;  %v4852_v34 = vld [vmem:[#allocation5 + $0x2b8] sm:$0xff]  ;;  %v6300_v35 = vld [vmem:[#allocation10_spill] sm:$0xff]  ;;  %v4833_v45 = vld [vmem:[#allocation5 + $0x220] sm:$0xff] }
 0x65f   :  { %5102 = vmatpush.msrb.mxu0 %v4843_v19  ;;  %5122 = vmatpush.msrb.mxu1 %v4859_v20  ;;  %v2876_v58 = vadd.f32 %v6300_v35, %v2856_v59  ;;  %v6301_v19 = vld [vmem:[#allocation15_spill] sm:$0xff]  ;;  %v6306_v59 = vld [vmem:[#allocation12_spill] sm:$0xff] }
 0x660   :  { %5142 = vmatpush.msrb.mxu2 %v4875_v27  ;;  %5162 = vmatpush.msrb.mxu3 %v4891_v43  ;;  %v3036_v20 = vadd.f32 %v6301_v19, %v3016_v30  ;;  %v6166_v27 = vpop.f32.mrf.mxu3  ;;  %v4868_v43 = vld [vmem:[#allocation5 + $0x338] sm:$0xff]  ;;  %v6307_v30 = vld [vmem:[#allocation17_spill] sm:$0xff]  ;;  %v4846_v19 = vld [vmem:[#allocation5 + $0x288] sm:$0xff] }
 0x661   :  { %5103 = vmatpush.msrb.mxu0 %v4842_v11  ;;  %5123 = vmatpush.msrb.mxu1 %v4858_v17  ;;  %v4884_v11 = vld [vmem:[#allocation5 + $0x3b8] sm:$0xff]  ;;  %v6302_v17 = vld [vmem:[#allocation22_spill] sm:$0xff] }
 0x662   :  { %5143 = vmatpush.msrb.mxu2 %v4874_v16  ;;  %5163 = vmatpush.msrb.mxu3 %v4890_v51  ;;  %v3356_v10 = vadd.f32 %v6302_v17, %v3336_v14  ;;  %v4851_v16 = vld [vmem:[#allocation5 + $0x2b0] sm:$0xff]  ;;  %v6308_v14 = vld [vmem:[#allocation24_spill] sm:$0xff] }
 0x663   :  { %5104 = vmatpush.msrb.mxu0 %v4841_v46  ;;  %5124 = vmatpush.msrb.mxu1 %v4857_v52  ;;  %v4867_v51 = vld [vmem:[#allocation5 + $0x330] sm:$0xff]  ;;  %v6169_v46 = vpop.f32.mrf.mxu0  ;;  %v4834_v52 = vld [vmem:[#allocation5 + $0x228] sm:$0xff] }
 0x664   :  { %5144 = vmatpush.msrb.mxu2 %v4873_v13  ;;  %5164 = vmatpush.msrb.mxu3 %v4889_v41  ;;  %v4850_v13 = vld [vmem:[#allocation5 + $0x2a8] sm:$0xff]  ;;  %v6303_v41 = vld [vmem:[#allocation11_spill] sm:$0xff] }
 0x665   :  { %5105 = vmatpush.msrb.mxu0 %v4840_v42  ;;  %5125 = vmatpush.msrb.mxu1 %v4856_v18  ;;  %v2896_v42 = vadd.f32 %v6303_v41, %v2876_v58  ;;  %v6304_v18 = vld [vmem:[#allocation16_spill] sm:$0xff]  ;;  %v4830_v58 = vld [vmem:[#allocation5 + $0x208] sm:$0xff]  ;;  %v4861_v41 = vld [vmem:[#allocation5 + $0x300] sm:$0xff] }
 0x666   :  { %5145 = vmatpush.msrb.mxu2 %v4872_v40  ;;  %5165 = vmatpush.msrb.mxu3 %v4888_v56  ;;  %v3056_v49 = vadd.f32 %v6304_v18, %v3036_v20  ;;  %v4882_v40 = vld [vmem:[#allocation5 + $0x3a8] sm:$0xff]  ;;  %v6305_v56 = vld [vmem:[#allocation23_spill] sm:$0xff]  ;;  %v6309_v20 = vld [vmem:[#allocation13_spill] sm:$0xff] }
 0x667   :  { %5106 = vmatpush.msrb.mxu0 %v4839_v23  ;;  %5126 = vmatpush.msrb.mxu1 %v4855_v0  ;;  %v3376_v28 = vadd.f32 %v6305_v56, %v3356_v10  ;;  %v4849_v23 = vld [vmem:[#allocation5 + $0x2a0] sm:$0xff]  ;;  %v6174_v0 = vpop.f32.mrf.mxu1  ;;  %v2916_v55 = vadd.f32 %v6306_v59, %v2896_v42  ;;  %v4862_v10 = vld [vmem:[#allocation5 + $0x308] sm:$0xff]  ;;  %v4923_v59 = vld [vmem:[#allocation5 + $0x4f0] sm:$0xff] }
 0x668   :  { %5146 = vmatpush.msrb.mxu2 %v4871_v24  ;;  %5166 = vmatpush.msrb.mxu3 %v4887_v1  ;;  %v4865_v24 = vld [vmem:[#allocation5 + $0x320] sm:$0xff] }
 0x669   :  { %5107 = vmatpush.msrb.mxu0 %v4838_v44  ;;  %5127 = vmatpush.msrb.mxu1 %v4854_v57  ;;  %v4881_v1 = vld [vmem:[#allocation5 + $0x3a0] sm:$0xff]  ;;  %v6176_v44 = vpop.f32.mrf.mxu2  ;;  %v4832_v57 = vld [vmem:[#allocation5 + $0x218] sm:$0xff] }
 0x66a   :  { %5147 = vmatpush.msrb.mxu2 %v4870_v48  ;;  %5167 = vmatpush.msrb.mxu3 %v4886_v38  ;;  %v3076_v48 = vadd.f32 %v6307_v30, %v3056_v49  ;;  %v4864_v38 = vld [vmem:[#allocation5 + $0x318] sm:$0xff]  ;;  %v4877_v42 = vld [vmem:[#allocation5 + $0x380] sm:$0xff]  ;;  %v4955_v30 = vld [vmem:[#allocation5 + $0x5f0] sm:$0xff] }
 0x66b   :  { %5108 = vmatpush.msrb.mxu0 %v4837_v37  ;;  %5128 = vmatpush.msrb.mxu1 %v4853_v61  ;;  %v3396_v37 = vadd.f32 %v6308_v14, %v3376_v28  ;;  %v4831_v61 = vld [vmem:[#allocation5 + $0x210] sm:$0xff]  ;;  %v6183_v35 = vpop.f32.mrf.mxu0  ;;  %v3616_v14 = vadd.f32 %v6096_v21, %v6090_v5  ;;  %v4953_v5 = vld [vmem:[#allocation5 + $0x5e0] sm:$0xff] }
 0x66c   :  { %5148 = vmatpush.msrb.mxu2 %v4869_v7  ;;  %5168 = vmatpush.msrb.mxu3 %v4885_v22  ;;  %v4847_v7 = vld [vmem:[#allocation5 + $0x290] sm:$0xff]  ;;  %v6181_v22 = vpop.f32.mrf.mxu3 }
 0x66d   :  { %5109 = vmatpush.msrb.mxu0 %v4836_v25  ;;  %5129 = vmatpush.msrb.mxu1 %v4852_v34  ;;  %v4863_v25 = vld [vmem:[#allocation5 + $0x310] sm:$0xff] }
 0x66e   :  { %5149 = vmatpush.msrb.mxu2 %v4868_v43  ;;  %5169 = vmatpush.msrb.mxu3 %v4884_v11  ;;  %v4879_v34 = vld [vmem:[#allocation5 + $0x390] sm:$0xff]  ;;  %v2936_v43 = vadd.f32 %v6309_v20, %v2916_v55  ;;  %v6310_v11 = vld [vmem:[#allocation18_spill] sm:$0xff]  ;;  %v4937_v20 = vld [vmem:[#allocation5 + $0x560] sm:$0xff] }
 0x66f   :  { %5110 = vmatpush.msrb.mxu0 %v4835_v36  ;;  %5130 = vmatpush.msrb.mxu1 %v4851_v16  ;;  %v3096_v17 = vadd.f32 %v6310_v11, %v3076_v48  ;;  %v4878_v36 = vld [vmem:[#allocation5 + $0x388] sm:$0xff]  ;;  %v6311_v16 = vld [vmem:[#allocation25_spill] sm:$0xff]  ;;  %v4939_v55 = vld [vmem:[#allocation5 + $0x570] sm:$0xff] }
 0x670   :  { %5150 = vmatpush.msrb.mxu2 %v4867_v51  ;;  %5170 = vmatpush.msrb.mxu3 %v4883_v53  ;;  %v3416_v51 = vadd.f32 %v6311_v16, %v3396_v37  ;;  %v4829_v53 = vld [vmem:[#allocation5 + $0x200] sm:$0xff]  ;;  %v4753_v49 = vmul.f32 %v2936_v43, %v2936_v43  ;;  %v4938_v37 = vld [vmem:[#allocation5 + $0x568] sm:$0xff]  ;;  %v4904_v43 = vld [vmem:[#allocation5 + $0x458] sm:$0xff] }
 0x671   :  { %5111 = vmatpush.msrb.mxu0 %v4834_v52  ;;  %5131 = vmatpush.msrb.mxu1 %v4850_v13  ;;  %v4845_v52 = vld [vmem:[#allocation5 + $0x280] sm:$0xff]  ;;  %v6188_v13 = vpop.f32.mrf.mxu1  ;;  %v6190_v18 = vpop.f32.mrf.mxu2  ;;  %v4920_v11 = vld [vmem:[#allocation5 + $0x4d8] sm:$0xff] }
 0x672   :  { %5151 = vmatpush.msrb.mxu2 %v4866_v60  ;;  %5171 = vmatpush.msrb.mxu3 %v4882_v40  ;;  %v4754_v60 = vmul.f32 %v3096_v17, %v3096_v17  ;;  %v6312_v40 = vld [vmem:[#allocation19_spill] sm:$0xff]  ;;  %v4756_v28 = vmul.f32 %v3416_v51, %v3416_v51 }
 0x673   :  { %5112 = vmatpush.msrb.mxu0 %v4833_v45  ;;  %5132 = vmatpush.msrb.mxu1 %v4849_v23  ;;  %v4755_v56 = vmul.f32 %v6312_v40, %v6312_v40  ;;  %v4908_v45 = vld [vmem:[#allocation5 + $0x478] sm:$0xff]  ;;  %v6196_v48 = vpop.f32.mrf.mxu0  ;;  %v4935_v51 = vld [vmem:[#allocation5 + $0x550] sm:$0xff]  ;;  %v4901_v40 = vld [vmem:[#allocation5 + $0x440] sm:$0xff] }
 0x674   :  { %5152 = vmatpush.msrb.mxu2 %v4865_v24  ;;  %5172 = vmatpush.msrb.mxu3 %v4881_v1  ;;  %v4924_v23 = vld [vmem:[#allocation5 + $0x4f8] sm:$0xff]  ;;  %v6194_v24 = vpop.f32.mrf.mxu3 }
 0x675   :  { %5113 = vmatpush.msrb.mxu0 %v4832_v57  ;;  %5133 = vmatpush.msrb.mxu1 %v4848_v32  ;;  %v4940_v1 = vld [vmem:[#allocation5 + $0x578] sm:$0xff]  ;;  %v4907_v32 = vld [vmem:[#allocation5 + $0x470] sm:$0xff] }
 0x676   :  { %5153 = vmatpush.msrb.mxu2 %v4864_v38  ;;  %5173 = vmatpush.msrb.mxu3 %v4880_v2  ;;  %v4956_v57 = vld [vmem:[#allocation5 + $0x5f8] sm:$0xff]  ;;  %v4906_v38 = vld [vmem:[#allocation5 + $0x468] sm:$0xff] }
 0x677   :  { %5114 = vmatpush.msrb.mxu0 %v4831_v61  ;;  %5134 = vmatpush.msrb.mxu1 %v4847_v7  ;;  %v4922_v2 = vld [vmem:[#allocation5 + $0x4e8] sm:$0xff]  ;;  %v3776_v7 = vadd.f32 %v6130_v6, %v6126_v54  ;;  %v3636_v54 = vadd.f32 %v6098_v9, %v3616_v14  ;;  %v4936_v6 = vld [vmem:[#allocation5 + $0x558] sm:$0xff]  ;;  %v4931_v14 = vld [vmem:[#allocation5 + $0x530] sm:$0xff] }
 0x678   :  { %5154 = vmatpush.msrb.mxu2 %v4863_v25  ;;  %5174 = vmatpush.msrb.mxu3 %v4879_v34  ;;  %v4954_v61 = vld [vmem:[#allocation5 + $0x5e8] sm:$0xff]  ;;  %v3936_v25 = vadd.f32 %v6159_v39, %v6155_v50  ;;  %v4905_v34 = vld [vmem:[#allocation5 + $0x460] sm:$0xff]  ;;  %v4952_v50 = vld [vmem:[#allocation5 + $0x5d8] sm:$0xff] }
 0x679   :  { %5115 = vmatpush.msrb.mxu0 %v4830_v58  ;;  %5135 = vmatpush.msrb.mxu1 %v4846_v19  ;;  %v4921_v58 = vld [vmem:[#allocation5 + $0x4e0] sm:$0xff]  ;;  %v6204_v19 = vpop.f32.mrf.mxu1  ;;  %v6206_v21 = vpop.f32.mrf.mxu2  ;;  %v3796_v39 = vadd.f32 %v6134_v47, %v3776_v7  ;;  %v4902_v9 = vld [vmem:[#allocation5 + $0x448] sm:$0xff]  ;;  %v3656_v47 = vadd.f32 %v6104_v4, %v3636_v54  ;;  %v4900_v4 = vld [vmem:[#allocation5 + $0x438] sm:$0xff] }
 0x67a   :  { %5155 = vmatpush.msrb.mxu2 %v4862_v10  ;;  %5175 = vmatpush.msrb.mxu3 %v4878_v36  ;;  %v3956_v17 = vadd.f32 %v6162_v8, %v3936_v25  ;;  %v4903_v10 = vld [vmem:[#allocation5 + $0x450] sm:$0xff]  ;;  %v4934_v8 = vld [vmem:[#allocation5 + $0x548] sm:$0xff]  ;;  %v4912_v54 = vld [vmem:[#allocation5 + $0x498] sm:$0xff] }
 0x67b   :  { %5116 = vmatpush.msrb.mxu0 %v4829_v53  ;;  %5136 = vmatpush.msrb.mxu1 %v4845_v52  ;;  %v4919_v36 = vld [vmem:[#allocation5 + $0x4d0] sm:$0xff]  ;;  %v6213_v52 = vpop.f32.mrf.mxu0 }
 0x67c   :  { %5156 = vmatpush.msrb.mxu2 %v4861_v41  ;;  %5176 = vmatpush.msrb.mxu3 %v4877_v42  ;;  %v6211_v16 = vpop.f32.mrf.mxu3  ;;  %v4951_v53 = vld [vmem:[#allocation5 + $0x5d0] sm:$0xff]  ;;  %v4918_v41 = vld [vmem:[#allocation5 + $0x4c8] sm:$0xff] }
 0x67d   :  { %5117 = vmatmul.f32.vlgmr.msrb.gmra.mxu0 %v4753_v49  ;;  %5137 = vmatmul.f32.vlgmr.msrb.gmra.mxu1 %v4754_v60  ;;  %v4950_v42 = vld [vmem:[#allocation5 + $0x5c8] sm:$0xff]  ;;  %v3816_v49 = vadd.f32 %v6136_v12, %v3796_v39  ;;  %v3976_v60 = vadd.f32 %v6166_v27, %v3956_v17  ;;  %v3676_v12 = vadd.f32 %v6110_v62, %v3656_v47  ;;  %v4932_v27 = vld [vmem:[#allocation5 + $0x538] sm:$0xff] }
 0x67e   :  { %5157 = vmatmul.f32.vlgmr.msrb.gmra.mxu2 %v4755_v56  ;;  %5177 = vmatmul.f32.vlgmr.msrb.gmra.mxu3 %v4756_v28  ;;  %v4917_v56 = vld [vmem:[#allocation5 + $0x4c0] sm:$0xff]  ;;  %v4898_v62 = vld [vmem:[#allocation5 + $0x428] sm:$0xff] }
 0x67f   :  { %5181 = vmatpush.msra.mxu0 %v4908_v45  ;;  %5201 = vmatpush.msra.mxu1 %v4924_v23  ;;  %v4933_v45 = vld [vmem:[#allocation5 + $0x540] sm:$0xff]  ;;  %v3696_v7 = vadd.f32 %v6114_v63, %v3676_v12  ;;  %v4896_v63 = vld [vmem:[#allocation5 + $0x418] sm:$0xff] }
 0x680   :  { %5221 = vmatpush.msra.mxu2 %v4940_v1  ;;  %5241 = vmatpush.msra.mxu3 %v4956_v57  ;;  %v4949_v23 = vld [vmem:[#allocation5 + $0x5c0] sm:$0xff]  ;;  %v4916_v57 = vld [vmem:[#allocation5 + $0x4b8] sm:$0xff] }
 0x681   :  { %5182 = vmatpush.msra.mxu0 %v4907_v32  ;;  %5202 = vmatpush.msra.mxu1 %v4923_v59  ;;  %v6218_v28 = vpop.f32.mrf.mxu1  ;;  %v6220_v1 = vpop.f32.mrf.mxu2  ;;  %v4948_v32 = vld [vmem:[#allocation5 + $0x5b8] sm:$0xff]  ;;  %v3836_v59 = vadd.f32 %v6138_v26, %v3816_v49  ;;  %v4930_v26 = vld [vmem:[#allocation5 + $0x528] sm:$0xff] }
 0x682   :  { %5222 = vmatpush.msra.mxu2 %v4939_v55  ;;  %5242 = vmatpush.msra.mxu3 %v4955_v30  ;;  %v3996_v55 = vadd.f32 %v6169_v46, %v3976_v60  ;;  %v4899_v30 = vld [vmem:[#allocation5 + $0x430] sm:$0xff]  ;;  %v4946_v46 = vld [vmem:[#allocation5 + $0x5a8] sm:$0xff] }
 0x683   :  { %5183 = vmatpush.msra.mxu0 %v4906_v38  ;;  %5203 = vmatpush.msra.mxu1 %v4922_v2  ;;  %v4915_v38 = vld [vmem:[#allocation5 + $0x4b0] sm:$0xff]  ;;  %v3856_v25 = vadd.f32 %v6144_v3, %v3836_v59  ;;  %v4928_v3 = vld [vmem:[#allocation5 + $0x518] sm:$0xff] }
 0x684   :  { %5223 = vmatpush.msra.mxu2 %v4938_v37  ;;  %5243 = vmatpush.msra.mxu3 %v4954_v61  ;;  %v6225_v2 = vpop.f32.mrf.mxu3  ;;  %v4947_v37 = vld [vmem:[#allocation5 + $0x5b0] sm:$0xff]  ;;  %v4914_v61 = vld [vmem:[#allocation5 + $0x4a8] sm:$0xff]  ;;  %v4988_v59 = vld [vmem:[#allocation5 + $0x6f8] sm:$0xff] }
 0x685   :  { %5184 = vmatpush.msra.mxu0 %v4905_v34  ;;  %5204 = vmatpush.msra.mxu1 %v4921_v58  ;;  %v4016_v34 = vadd.f32 %v6174_v0, %v3996_v55  ;;  %v6230_v58 = vpop.f32.mrf.mxu0  ;;  %v4944_v0 = vld [vmem:[#allocation5 + $0x598] sm:$0xff]  ;;  %v3876_v39 = vadd.f32 %v6148_v29, %v3856_v25  ;;  %v4926_v29 = vld [vmem:[#allocation5 + $0x508] sm:$0xff]  ;;  %v4256_v25 = vadd.f32 %v6218_v28, %v6213_v52 }
 0x686   :  { %5224 = vmatpush.msra.mxu2 %v4937_v20  ;;  %5244 = vmatpush.msra.mxu3 %v4953_v5  ;;  %v4897_v20 = vld [vmem:[#allocation5 + $0x420] sm:$0xff]  ;;  %v5004_v55 = vld [vmem:[#allocation5 + $0x778] sm:$0xff] }
 0x687   :  { %5185 = vmatpush.msra.mxu0 %v4904_v43  ;;  %5205 = vmatpush.msra.mxu1 %v4920_v11  ;;  %v4913_v5 = vld [vmem:[#allocation5 + $0x4a0] sm:$0xff]  ;;  %v4036_v17 = vadd.f32 %v6176_v44, %v4016_v34  ;;  %v4942_v44 = vld [vmem:[#allocation5 + $0x588] sm:$0xff]  ;;  %v4276_v52 = vadd.f32 %v6220_v1, %v4256_v25 }
 0x688   :  { %5225 = vmatpush.msra.mxu2 %v4936_v6  ;;  %5245 = vmatpush.msra.mxu3 %v4952_v50  ;;  %v4929_v43 = vld [vmem:[#allocation5 + $0x520] sm:$0xff]  ;;  %v3716_v6 = vadd.f32 %v6118_v15, %v3696_v7  ;;  %v4943_v15 = vld [vmem:[#allocation5 + $0x590] sm:$0xff]  ;;  %v4096_v7 = vadd.f32 %v6188_v13, %v6183_v35  ;;  %v4966_v1 = vld [vmem:[#allocation5 + $0x648] sm:$0xff] }
 0x689   :  { %5186 = vmatpush.msra.mxu0 %v4903_v10  ;;  %5206 = vmatpush.msra.mxu1 %v4919_v36  ;;  %v4945_v11 = vld [vmem:[#allocation5 + $0x5a0] sm:$0xff]  ;;  %v6233_v50 = vpop.f32.mrf.mxu1  ;;  %v6237_v10 = vpop.f32.mrf.mxu2  ;;  %v4895_v36 = vld [vmem:[#allocation5 + $0x410] sm:$0xff]  ;;  %v4056_v49 = vadd.f32 %v6181_v22, %v4036_v17  ;;  %v5016_v17 = vld [vmem:[#allocation5 + $0x7d8] sm:$0xff] }
 0x68a   :  { %5226 = vmatpush.msra.mxu2 %v4935_v51  ;;  %5246 = vmatpush.msra.mxu3 %v4951_v53  ;;  %v4911_v51 = vld [vmem:[#allocation5 + $0x490] sm:$0xff]  ;;  %v3736_v47 = vadd.f32 %v6122_v33, %v3716_v6  ;;  %v6313_v33 = vld [vmem:[#allocation26_spill] sm:$0xff]  ;;  %v5001_v35 = vld [vmem:[#allocation5 + $0x760] sm:$0xff] }
 0x68b   :  { %5187 = vmatpush.msra.mxu0 %v4902_v9  ;;  %5207 = vmatpush.msra.mxu1 %v4918_v41  ;;  %v4927_v53 = vld [vmem:[#allocation5 + $0x510] sm:$0xff]  ;;  %v4894_v9 = vld [vmem:[#allocation5 + $0x408] sm:$0xff]  ;;  %v4760_v22 = vmul.f32 %v4056_v49, %v4056_v49  ;;  %v5017_v13 = vld [vmem:[#allocation5 + $0x7e0] sm:$0xff] }
 0x68c   :  { %5227 = vmatpush.msra.mxu2 %v4934_v8  ;;  %5247 = vmatpush.msra.mxu3 %v4950_v42  ;;  %v4910_v41 = vld [vmem:[#allocation5 + $0x488] sm:$0xff]  ;;  %v6240_v8 = vpop.f32.mrf.mxu3  ;;  %v3896_v42 = vadd.f32 %v6152_v31, %v3876_v39  ;;  %v4968_v6 = vld [vmem:[#allocation5 + $0x658] sm:$0xff]  ;;  %v4961_v25 = vld [vmem:[#allocation5 + $0x620] sm:$0xff] }
 0x68d   :  { %5188 = vmatpush.msra.mxu0 %v4901_v40  ;;  %5208 = vmatpush.msra.mxu1 %v4917_v56  ;;  %v4395_v60 = vpop.f32.mrf.mxu0  ;;  %v4893_v40 = vld [vmem:[#allocation5 + $0x400] sm:$0xff]  ;;  %v5000_v39 = vld [vmem:[#allocation5 + $0x758] sm:$0xff]  ;;  %v5014_v49 = vld [vmem:[#allocation5 + $0x7c8] sm:$0xff] }
 0x68e   :  { %5228 = vmatpush.msra.mxu2 %v4933_v45  ;;  %5248 = vmatpush.msra.mxu3 %v4949_v23  ;;  %v4909_v56 = vld [vmem:[#allocation5 + $0x480] sm:$0xff]  ;;  %v4759_v31 = vmul.f32 %v3896_v42, %v3896_v42  ;;  %v4998_v42 = vld [vmem:[#allocation5 + $0x748] sm:$0xff] }
 0x68f   :  { %5189 = vmatpush.msra.mxu0 %v4900_v4  ;;  %5209 = vmatpush.msra.mxu1 %v4916_v57  ;;  %v4925_v45 = vld [vmem:[#allocation5 + $0x500] sm:$0xff]  ;;  %v4757_v4 = vmul.f32 %v6313_v33, %v6313_v33  ;;  %v4758_v57 = vmul.f32 %v3736_v47, %v3736_v47  ;;  %v4296_v47 = vadd.f32 %v6225_v2, %v4276_v52  ;;  %v4964_v2 = vld [vmem:[#allocation5 + $0x638] sm:$0xff]  ;;  %v4959_v52 = vld [vmem:[#allocation5 + $0x610] sm:$0xff] }
 0x690   :  { %5229 = vmatpush.msra.mxu2 %v4932_v27  ;;  %5249 = vmatpush.msra.mxu3 %v4948_v32  ;;  %v4941_v23 = vld [vmem:[#allocation5 + $0x580] sm:$0xff]  ;;  %v4972_v32 = vld [vmem:[#allocation5 + $0x678] sm:$0xff] }
 0x691   :  { %5190 = vmatpush.msra.mxu0 %v4899_v30  ;;  %5210 = vmatpush.msra.mxu1 %v4915_v38  ;;  %v4415_v12 = vpop.f32.mrf.mxu1  ;;  %v4435_v27 = vpop.f32.mrf.mxu2  ;;  %v5020_v30 = vld [vmem:[#allocation5 + $0x7f8] sm:$0xff]  ;;  %v4971_v38 = vld [vmem:[#allocation5 + $0x670] sm:$0xff] }
 0x692   :  { %5230 = vmatpush.msra.mxu2 %v4931_v14  ;;  %5250 = vmatpush.msra.mxu3 %v4947_v37  ;;  %v4987_v14 = vld [vmem:[#allocation5 + $0x6f0] sm:$0xff]  ;;  %v4416_v34 = vadd.f32 %v4415_v12, %v4395_v60  ;;  %v4965_v60 = vld [vmem:[#allocation5 + $0x640] sm:$0xff]  ;;  %v4980_v33 = vld [vmem:[#allocation5 + $0x6b8] sm:$0xff] }
 0x693   :  { %5191 = vmatpush.msra.mxu0 %v4898_v62  ;;  %5211 = vmatpush.msra.mxu1 %v4914_v61  ;;  %v5003_v62 = vld [vmem:[#allocation5 + $0x770] sm:$0xff]  ;;  %v4996_v12 = vld [vmem:[#allocation5 + $0x738] sm:$0xff] }
 0x694   :  { %5231 = vmatpush.msra.mxu2 %v4930_v26  ;;  %5251 = vmatpush.msra.mxu3 %v4946_v46  ;;  %v4455_v37 = vpop.f32.mrf.mxu3  ;;  %v5019_v61 = vld [vmem:[#allocation5 + $0x7f0] sm:$0xff]  ;;  %v4970_v26 = vld [vmem:[#allocation5 + $0x668] sm:$0xff]  ;;  %v4436_v28 = vadd.f32 %v4435_v27, %v4416_v34  ;;  %v4977_v34 = vld [vmem:[#allocation5 + $0x6a0] sm:$0xff] }
 0x695   :  { %5192 = vmatpush.msra.mxu0 %v4897_v20  ;;  %5212 = vmatpush.msra.mxu1 %v4913_v5  ;;  %v4986_v46 = vld [vmem:[#allocation5 + $0x6e8] sm:$0xff]  ;;  %v4963_v27 = vld [vmem:[#allocation5 + $0x630] sm:$0xff] }
 0x696   :  { %5232 = vmatpush.msra.mxu2 %v4929_v43  ;;  %5252 = vmatpush.msra.mxu3 %v4945_v11  ;;  %v5002_v20 = vld [vmem:[#allocation5 + $0x768] sm:$0xff]  ;;  %v4475_v43 = vpop.f32.mrf.mxu0  ;;  %v4969_v11 = vld [vmem:[#allocation5 + $0x660] sm:$0xff] }
 0x697   :  { %5193 = vmatpush.msra.mxu0 %v4896_v63  ;;  %5213 = vmatpush.msra.mxu1 %v4912_v54  ;;  %v5018_v5 = vld [vmem:[#allocation5 + $0x7e8] sm:$0xff]  ;;  %v4985_v63 = vld [vmem:[#allocation5 + $0x6e0] sm:$0xff]  ;;  %v4116_v54 = vadd.f32 %v6190_v18, %v4096_v7  ;;  %v4999_v18 = vld [vmem:[#allocation5 + $0x750] sm:$0xff] }
 0x698   :  { %5233 = vmatpush.msra.mxu2 %v4928_v3  ;;  %5253 = vmatpush.msra.mxu3 %v4944_v0  ;;  %v4984_v3 = vld [vmem:[#allocation5 + $0x6d8] sm:$0xff]  ;;  %v4994_v7 = vld [vmem:[#allocation5 + $0x728] sm:$0xff] }
 0x699   :  { %5194 = vmatpush.msra.mxu0 %v4895_v36  ;;  %5214 = vmatpush.msra.mxu1 %v4911_v51  ;;  %v6252_v0 = vpop.f32.mrf.mxu1  ;;  %v6254_v36 = vpop.f32.mrf.mxu2  ;;  %v4967_v51 = vld [vmem:[#allocation5 + $0x650] sm:$0xff] }
 0x69a   :  { %5234 = vmatpush.msra.mxu2 %v4927_v53  ;;  %5254 = vmatpush.msra.mxu3 %v4943_v15  ;;  %v4983_v53 = vld [vmem:[#allocation5 + $0x6d0] sm:$0xff] }
 0x69b   :  { %5195 = vmatpush.msra.mxu0 %v4894_v9  ;;  %5215 = vmatpush.msra.mxu1 %v4910_v41  ;;  %v5015_v15 = vld [vmem:[#allocation5 + $0x7d0] sm:$0xff]  ;;  %v4136_v9 = vadd.f32 %v6194_v24, %v4116_v54  ;;  %v4982_v41 = vld [vmem:[#allocation5 + $0x6c8] sm:$0xff]  ;;  %v4997_v24 = vld [vmem:[#allocation5 + $0x740] sm:$0xff] }
 0x69c   :  { %5235 = vmatpush.msra.mxu2 %v4926_v29  ;;  %5255 = vmatpush.msra.mxu3 %v4942_v44  ;;  %v4456_v29 = vadd.f32 %v4455_v37, %v4436_v28  ;;  %v6258_v44 = vpop.f32.mrf.mxu3  ;;  %v4992_v54 = vld [vmem:[#allocation5 + $0x718] sm:$0xff]  ;;  %v4975_v28 = vld [vmem:[#allocation5 + $0x690] sm:$0xff] }
 0x69d   :  { %5196 = vmatpush.msra.mxu0 %v4893_v40  ;;  %5216 = vmatpush.msra.mxu1 %v4909_v56  ;;  %v4981_v40 = vld [vmem:[#allocation5 + $0x6c0] sm:$0xff] }
 0x69e   :  { %5236 = vmatpush.msra.mxu2 %v4925_v45  ;;  %5256 = vmatpush.msra.mxu3 %v4941_v23  ;;  %v4555_v56 = vpop.f32.mrf.mxu0  ;;  %v5013_v45 = vld [vmem:[#allocation5 + $0x7c0] sm:$0xff]  ;;  %v4156_v23 = vadd.f32 %v6196_v48, %v4136_v9  ;;  %v4995_v48 = vld [vmem:[#allocation5 + $0x730] sm:$0xff]  ;;  %v5006_v9 = vld [vmem:[#allocation5 + $0x788] sm:$0xff] }
 0x69f   :  { %5197 = vmatmul.f32.vlgmr.msra.gmra.mxu0 %v4757_v4  ;;  %5217 = vmatmul.f32.vlgmr.msra.gmra.mxu1 %v4758_v57  ;;  %v4316_v4 = vadd.f32 %v6230_v58, %v4296_v47  ;;  %v4476_v57 = vadd.f32 %v4475_v43, %v4456_v29  ;;  %v4962_v58 = vld [vmem:[#allocation5 + $0x628] sm:$0xff] }
 0x6a0   :  { %5237 = vmatmul.f32.vlgmr.msra.gmra.mxu2 %v4759_v31  ;;  %5257 = vmatmul.f32.vlgmr.msra.gmra.mxu3 %v4760_v22  ;;  %v5012_v22 = vld [vmem:[#allocation5 + $0x7b8] sm:$0xff] }
 0x6a1   :  { %5261 = vmatpush.msrb.mxu0 %v4972_v32  ;;  %5281 = vmatpush.msrb.mxu1 %v4988_v59  ;;  %v4575_v31 = vpop.f32.mrf.mxu1  ;;  %v4979_v32 = vld [vmem:[#allocation5 + $0x6b0] sm:$0xff] }
 0x6a2   :  { %5301 = vmatpush.msrb.mxu2 %v5004_v55  ;;  %5321 = vmatpush.msrb.mxu3 %v5020_v30  ;;  %v4576_v59 = vadd.f32 %v4575_v31, %v4555_v56  ;;  %v4595_v55 = vpop.f32.mrf.mxu2  ;;  %v5011_v30 = vld [vmem:[#allocation5 + $0x7b0] sm:$0xff] }
 0x6a3   :  { %5262 = vmatpush.msrb.mxu0 %v4971_v38  ;;  %5282 = vmatpush.msrb.mxu1 %v4987_v14  ;;  %v4176_v38 = vadd.f32 %v6204_v19, %v4156_v23  ;;  %v4978_v14 = vld [vmem:[#allocation5 + $0x6a8] sm:$0xff]  ;;  %v4993_v19 = vld [vmem:[#allocation5 + $0x720] sm:$0xff] }
 0x6a4   :  { %5302 = vmatpush.msrb.mxu2 %v5003_v62  ;;  %5322 = vmatpush.msrb.mxu3 %v5019_v61  ;;  %v4596_v37 = vadd.f32 %v4595_v55, %v4576_v59  ;;  %v4336_v62 = vadd.f32 %v6233_v50, %v4316_v4  ;;  %v4496_v61 = vadd.f32 %v6252_v0, %v4476_v57  ;;  %v4960_v50 = vld [vmem:[#allocation5 + $0x618] sm:$0xff]  ;;  %v5491_v59 = vmov 127  }
 0x6a5   :  { %5263 = vmatpush.msrb.mxu0 %v4970_v26  ;;  %5283 = vmatpush.msrb.mxu1 %v4986_v46  ;;  %v4615_v26 = vpop.f32.mrf.mxu3  ;;  %v5010_v46 = vld [vmem:[#allocation5 + $0x7a8] sm:$0xff]  ;;  %v4196_v43 = vadd.f32 %v6206_v21, %v4176_v38  ;;  %v4991_v21 = vld [vmem:[#allocation5 + $0x710] sm:$0xff] }
 0x6a6   :  { %5303 = vmatpush.msrb.mxu2 %v5002_v20  ;;  %5323 = vmatpush.msrb.mxu3 %v5018_v5  ;;  %v4616_v20 = vadd.f32 %v4615_v26, %v4596_v37  ;;  %v5009_v5 = vld [vmem:[#allocation5 + $0x7a0] sm:$0xff] }
 0x6a7   :  { %5264 = vmatpush.msrb.mxu0 %v4969_v11  ;;  %5284 = vmatpush.msrb.mxu1 %v4985_v63  ;;  %v4976_v11 = vld [vmem:[#allocation5 + $0x698] sm:$0xff] }
 0x6a8   :  { %5304 = vmatpush.msrb.mxu2 %v5001_v35  ;;  %5324 = vmatpush.msrb.mxu3 %v5017_v13  ;;  %v4356_v35 = vadd.f32 %v6237_v10, %v4336_v62  ;;  %v4516_v13 = vadd.f32 %v6254_v36, %v4496_v61  ;;  %v4958_v10 = vld [vmem:[#allocation5 + $0x608] sm:$0xff] }
 0x6a9   :  { %5265 = vmatpush.msrb.mxu0 %v4968_v6  ;;  %5285 = vmatpush.msrb.mxu1 %v4984_v3  ;;  %v5008_v3 = vld [vmem:[#allocation5 + $0x798] sm:$0xff] }
 0x6aa   :  { %5305 = vmatpush.msrb.mxu2 %v5000_v39  ;;  %5325 = vmatpush.msrb.mxu3 %v5016_v17  ;;  %v5007_v39 = vld [vmem:[#allocation5 + $0x790] sm:$0xff]  ;;  %v4216_v17 = vadd.f32 %v6211_v16, %v4196_v43  ;;  %v4376_v36 = vadd.f32 %v6240_v8, %v4356_v35  ;;  %v4989_v16 = vld [vmem:[#allocation5 + $0x700] sm:$0xff] }
 0x6ab   :  { %5266 = vmatpush.msrb.mxu0 %v4967_v51  ;;  %5286 = vmatpush.msrb.mxu1 %v4983_v53  ;;  %v4974_v51 = vld [vmem:[#allocation5 + $0x688] sm:$0xff]  ;;  %v4536_v53 = vadd.f32 %v6258_v44, %v4516_v13 }
 0x6ac   :  { %5306 = vmatpush.msrb.mxu2 %v4999_v18  ;;  %5326 = vmatpush.msrb.mxu3 %v5015_v15  ;;  %v4990_v18 = vld [vmem:[#allocation5 + $0x708] sm:$0xff]  ;;  %v4762_v8 = vmul.f32 %v4376_v36, %v4376_v36 }
 0x6ad   :  { %5267 = vmatpush.msrb.mxu0 %v4966_v1  ;;  %5287 = vmatpush.msrb.mxu1 %v4982_v41  ;;  %v4957_v1 = vld [vmem:[#allocation5 + $0x600] sm:$0xff] }
 0x6ae   :  { %5307 = vmatpush.msrb.mxu2 %v4998_v42  ;;  %5327 = vmatpush.msrb.mxu3 %v5014_v49  ;;  %v4973_v41 = vld [vmem:[#allocation5 + $0x680] sm:$0xff]  ;;  %v4761_v42 = vmul.f32 %v4216_v17, %v4216_v17  ;;  %v4763_v49 = vmul.f32 %v4536_v53, %v4536_v53 }
 0x6af   :  { %5268 = vmatpush.msrb.mxu0 %v4965_v60  ;;  %5288 = vmatpush.msrb.mxu1 %v4981_v40  ;;  %v5005_v60 = vld [vmem:[#allocation5 + $0x780] sm:$0xff] }
 0x6b0   :  { %5308 = vmatpush.msrb.mxu2 %v4997_v24  ;;  %5328 = vmatpush.msrb.mxu3 %v5013_v45 }
 0x6b1   :  { %5269 = vmatpush.msrb.mxu0 %v4964_v2  ;;  %5289 = vmatpush.msrb.mxu1 %v4980_v33 }
 0x6b2   :  { %5309 = vmatpush.msrb.mxu2 %v4996_v12  ;;  %5329 = vmatpush.msrb.mxu3 %v5012_v22 }
 0x6b3   :  { %5270 = vmatpush.msrb.mxu0 %v4963_v27  ;;  %5290 = vmatpush.msrb.mxu1 %v4979_v32 }
 0x6b4   :  { %5310 = vmatpush.msrb.mxu2 %v4995_v48  ;;  %5330 = vmatpush.msrb.mxu3 %v5011_v30  ;;  %v4635_v63 = vpop.f32.mrf.mxu0 }
 0x6b5   :  { %5271 = vmatpush.msrb.mxu0 %v4962_v58  ;;  %5291 = vmatpush.msrb.mxu1 %v4978_v14  ;;  %v4636_v6 = vadd.f32 %v4635_v63, %v4616_v20  ;;  %v4655_v0 = vpop.f32.mrf.mxu1 }
 0x6b6   :  { %5311 = vmatpush.msrb.mxu2 %v4994_v7  ;;  %5331 = vmatpush.msrb.mxu3 %v5010_v46 }
 0x6b7   :  { %5272 = vmatpush.msrb.mxu0 %v4961_v25  ;;  %5292 = vmatpush.msrb.mxu1 %v4977_v34  ;;  %v4656_v15 = vadd.f32 %v4655_v0, %v4636_v6 }
 0x6b8   :  { %5312 = vmatpush.msrb.mxu2 %v4993_v19  ;;  %5332 = vmatpush.msrb.mxu3 %v5009_v5 }
 0x6b9   :  { %5273 = vmatpush.msrb.mxu0 %v4960_v50  ;;  %5293 = vmatpush.msrb.mxu1 %v4976_v11 }
 0x6ba   :  { %5313 = vmatpush.msrb.mxu2 %v4992_v54  ;;  %5333 = vmatpush.msrb.mxu3 %v5008_v3 }
 0x6bb   :  { %5274 = vmatpush.msrb.mxu0 %v4959_v52  ;;  %5294 = vmatpush.msrb.mxu1 %v4975_v28 }
 0x6bc   :  { %5314 = vmatpush.msrb.mxu2 %v4991_v21  ;;  %v4675_v47 = vpop.f32.mrf.mxu2  ;;  %5334 = vmatpush.msrb.mxu3 %v5007_v39 }
 0x6bd   :  { %5275 = vmatpush.msrb.mxu0 %v4958_v10  ;;  %5295 = vmatpush.msrb.mxu1 %v4974_v51  ;;  %v4676_v29 = vadd.f32 %v4675_v47, %v4656_v15  ;;  %v4695_v44 = vpop.f32.mrf.mxu3 }
 0x6be   :  { %5315 = vmatpush.msrb.mxu2 %v4990_v18  ;;  %5335 = vmatpush.msrb.mxu3 %v5006_v9 }
 0x6bf   :  { %5276 = vmatpush.msrb.mxu0 %v4957_v1  ;;  %5296 = vmatpush.msrb.mxu1 %v4973_v41  ;;  %v4696_v40 = vadd.f32 %v4695_v44, %v4676_v29 }
 0x6c0   :  { %5316 = vmatpush.msrb.mxu2 %v4989_v16  ;;  %5277 = vmatmul.f32.vlgmr.msrb.gmra.mxu0 %v4761_v42 }
 0x6c1   :  { %5297 = vmatmul.f32.vlgmr.msrb.gmra.mxu1 %v4762_v8  ;;  %5317 = vmatmul.f32.vlgmr.msrb.gmra.mxu2 %v4763_v49  ;;  %v4764_v56 = vmul.f32 %v4696_v40, %v4696_v40 }
 0x6c2   :  { %5336 = vmatpush.msrb.mxu3 %v5005_v60  ;;  %5375 = vset.pattern.permute.xlu0 %v5491_v59 }
 0x6c3   :  { %5337 = vmatmul.f32.vlgmr.msrb.gmra.mxu3 %v4764_v56 }
 0x6d7   :  { %v5038_v24 = vpop.f32.mrf.mxu0 }
 0x6d8   :  { %v5058_v45 = vpop.f32.mrf.mxu1 }
 0x6d9   :  { %v5059_v2 = vadd.f32 %v5058_v45, %v5038_v24 }
 0x6df   :  { %v5078_v23 = vpop.f32.mrf.mxu2  ;;  %v5098_v4 = vpop.f32.mrf.mxu3 }
 0x6e0   :  { %v5079_v33 = vadd.f32 %v5078_v23, %v5059_v2 }
 0x6e2   :  { %v5099_v12 = vadd.f32 %v5098_v4, %v5079_v33 }
 0x6fa   :  { %v5118_v57 = vpop.f32.mrf.mxu0  ;;  %v5138_v22 = vpop.f32.mrf.mxu1 }
 0x6fb   :  { %v5119_v31 = vadd.f32 %v5118_v57, %v5099_v12 }
 0x6fd   :  { %v5139_v32 = vadd.f32 %v5138_v22, %v5119_v31 }
 0x701   :  { %v5158_v27 = vpop.f32.mrf.mxu2  ;;  %v5178_v48 = vpop.f32.mrf.mxu3 }
 0x702   :  { %v5159_v55 = vadd.f32 %v5158_v27, %v5139_v32 }
 0x704   :  { %v5179_v38 = vadd.f32 %v5178_v48, %v5159_v55 }
 0x71c   :  { %v5198_v30 = vpop.f32.mrf.mxu0  ;;  %v5218_v14 = vpop.f32.mrf.mxu1 }
 0x71d   :  { %v5199_v58 = vadd.f32 %v5198_v30, %v5179_v38 }
 0x71f   :  { %v5219_v62 = vadd.f32 %v5218_v14, %v5199_v58 }
 0x723   :  { %v5238_v37 = vpop.f32.mrf.mxu2  ;;  %v5258_v7 = vpop.f32.mrf.mxu3 }
 0x724   :  { %v5239_v61 = vadd.f32 %v5238_v37, %v5219_v62 }
 0x726   :  { %v5259_v46 = vadd.f32 %v5258_v7, %v5239_v61 }
 0x73d   :  { %v5278_v26 = vpop.f32.mrf.mxu0 }
 0x73e   :  { %v5279_v25 = vadd.f32 %v5278_v26, %v5259_v46  ;;  %v5298_v34 = vpop.f32.mrf.mxu1 }
 0x740   :  { %v5299_v20 = vadd.f32 %v5298_v34, %v5279_v25 }
 0x744   :  { %v5318_v19 = vpop.f32.mrf.mxu2 }
 0x745   :  { %v5319_v5 = vadd.f32 %v5318_v19, %v5299_v20 }
 0x746   :  { %v5338_v43 = vpop.f32.mrf.mxu3 }
 0x747   :  { %v5339_v50 = vadd.f32 %v5338_v43, %v5319_v5 }
 0x749   :  { %v5341_v11 = vmax.f32 %v5339_v50, 1e-12 }
 0x74b   :  { %5376 = vrcp.f32 %v5341_v11  ;;  %v5353_v54 = vand.u32 2147483648, %v5341_v11  ;;  %v5351_v3 = vand.u32 2147483647, %v5341_v11  ;;  %vm5347_vm1 = vweird.f32 %v5341_v11 }
 0x74d   :  { %v5354_v28 = vor.u32 1.1754944e-38, %v5353_v54  ;;  %vm5352_vm3 = vcmp.eq.f32.partialorder %v5351_v3, 8.507059e+37 }
 0x751   :  { %v5377_v63 = vpop.eup %5376 }
 0x752   :  { %v5343_v35 = vmul.f32 %v5377_v63, %v5341_v11  ;;  %vm5348_vm0 = vweird.f32 %v5377_v63 }
 0x753   :  { %vm5349_vm2 = vmor %vm5347_vm1, %vm5348_vm0 }
 0x754   :  { %v5344_v13 = vsub.f32 1.0, %v5343_v35 }
 0x756   :  { %v5345_v6 = vmul.f32 %v5377_v63, %v5344_v13 }
 0x758   :  { %v5346_v52 = vadd.f32 %v5377_v63, %v5345_v6 }
 0x75a   :  { %v5350_v21 = vsel %vm5349_vm2, %v5377_v63, %v5346_v52 }
 0x75b   :  { %v5355_v0 = vsel %vm5352_vm3, %v5354_v28, %v5350_v21 }
 0x75c   :  { %5358 = vperm.xlu0 %5375, %v5355_v0  }
 0x7ce   :  { %v5359_v39 = vpop.permute.xlu0 %5358 }
 0x7cf   :  { %v5361_v17 = vmul.f32 %v5359_v39, %v5339_v50 }
 0x7d1   :  { %5362 = vst [vmem:[%s6277_s3] sm:$0xff] %v5361_v17 }
 0x7d2   :  { %5367 = vsyncpa [#allocation4], 1 }
 0x7d3   :  { %5368 = vsyncpa [#allocation6], 1 }

</bundles_post_ra>
